<compile_context>
chip_gen: v7x
topology: tpu7x:2x2x1
jax: 0.10.0
libtpu: 0.0.40
codegen_flags: <defaults>
</compile_context>

<pallas_src>
from functools import partial

import numpy as np
import jax
import jax.numpy as jnp
from jax.experimental import pallas as pl
from jax.experimental.pallas import tpu as pltpu


# ----------------------------------------------------------------------------
# Fused Block kernel (one grid step = B_TILE batch elements, all T timesteps)
#   rows  = (t, b_local, h)   -> ROWS = T * B_TILE * H
#   lanes = (w, c)            -> WC   = W * C
# ----------------------------------------------------------------------------

def _block_kernel(x_ref, lmats_ref, rmats_ref, bconv2_ref, wfc1_ref, wfc2_ref,
                  shifts_ref, fc1_shift_ref, o_ref,
                  s_xs, s_n1, s_hs, s_n2, s_ms, s_hh,
                  *, T, RT, H, tau, vth):
    f32, bf16 = jnp.float32, jnp.bfloat16
    ROWS = T * RT
    WC = x_ref.shape[-1]

    def mm(a, b):
        # bf16 MXU operands (spikes / prefolded weights), f32 accumulation.
        return jnp.dot(a, b, preferred_element_type=f32)

    def lif(get_t, out_ref):
        # Multi-step LIF (spikingjelly): v += (x - v)/tau, spike at vth, hard
        # reset to 0.  Per-timestep spike slabs are written straight into the
        # preallocated scratch ref (no concatenate); membrane state stays f32.
        # T is small/static -> the Python loop is the fully-unrolled form.
        v = jnp.zeros((RT, out_ref.shape[-1]), f32)
        for t in range(T):
            v = v + (get_t(t) - v) * (1.0 / tau)
            s = jnp.where(v >= vth, 1.0, 0.0)
            out_ref[t * RT:(t + 1) * RT, :] = s.astype(out_ref.dtype)
            v = v * (1.0 - s)

    def negif(x2, out_ref):
        # Ternary IF ("NegIF"): spikes in {-1, 0, +1}, soft reset by vth.
        v = jnp.zeros((RT, out_ref.shape[-1]), f32)
        for t in range(T):
            v = v + x2[t * RT:(t + 1) * RT, :]
            s = jnp.where(v >= vth, 1.0, 0.0) - jnp.where(v <= -vth, 1.0, 0.0)
            out_ref[t * RT:(t + 1) * RT, :] = s.astype(out_ref.dtype)
            v = v - s * vth

    shifts = shifts_ref[...]                      # (8, WC) f32
    sh = lambda i: shifts[i:i + 1, :]             # (1, WC) broadcast row

    l_fwd, l_inv = lmats_ref[0], lmats_ref[1]     # Haar over H (fwd / inv)
    r_fwd, r_inv = rmats_ref[0], rmats_ref[1]     # Haar over W (+ BN folded)
    w_mul, w_c1 = rmats_ref[2], rmats_ref[3]      # block multiply / conv1

    # x_neuron spikes: f32 copy for the XLU roll path, bf16 cast hoisted once.
    lif(lambda t: x_ref[t], s_xs)
    xs_f = s_xs[...]
    xs_bf = xs_f.astype(bf16)

    # ------------------------------ FATM mixer ------------------------------
    # Haar2DForward (H transform -> NegIF -> W transform) + haar_forward_bn
    negif(mm(l_fwd, xs_bf), s_n1)
    haar = mm(s_n1[...], r_fwd) + sh(0)
    lif(lambda t: haar[t * RT:(t + 1) * RT, :], s_hs)          # haar_neuron
    # block-wise multiply ('...bd,bdk->...bk') + haar_multiply_bn (folded)
    haar = mm(s_hs[...], w_mul) + sh(1)
    # Haar2DInverse (H transform -> NegIF -> W transform) + haar_inverse_bn
    negif(mm(l_inv, haar.astype(bf16)), s_n2)
    haar = mm(s_n2[...], r_inv) + sh(2)

    # conv1 (1x1, per-block shared weight) + bias + conv1_bn (folded)
    conv1 = mm(xs_bf, w_c1) + sh(3)

    # conv2 (3x3, padding=1): H shifts via XLU roll + boundary masks, then a
    # SINGLE fused K=3*WC tap matmul (dx shift, block-diag weight and BN scale
    # are folded into the stacked tap matrix at prep time).
    # Roll convention (jnp.roll): roll(x, +1)[i] = x[i-1], roll(x, N-1)[i] = x[i+1].
    hrow = jax.lax.broadcasted_iota(jnp.int32, (ROWS, WC), 0) % H
    xs_hm1 = jnp.where(hrow != 0, pltpu.roll(xs_f, 1, axis=0), 0.0)            # x[h-1]
    xs_hp1 = jnp.where(hrow != H - 1, pltpu.roll(xs_f, ROWS - 1, axis=0), 0.0)  # x[h+1]
    conv2_in = jnp.concatenate(
        [xs_hm1.astype(bf16), xs_bf, xs_hp1.astype(bf16)], axis=1)  # (ROWS, 3*WC)
    conv2 = mm(conv2_in, bconv2_ref[...]) + sh(4)

    mixer = haar + conv1 + conv2                  # mixer(x); mid = x + mixer

    # --------------------------------- MLP ----------------------------------
    lif(lambda t: x_ref[t] + mixer[t * RT:(t + 1) * RT, :], s_ms)   # fc1_lif(mid)
    h = mm(s_ms[...], wfc1_ref[...]) + fc1_shift_ref[...]           # fc1 + bn (folded)
    lif(lambda t: h[t * RT:(t + 1) * RT, :], s_hh)                  # fc2_lif
    o = mm(s_hh[...], wfc2_ref[...]) + sh(5)                        # fc2 + bn (folded)

    for t in range(T):                            # out = mid + mlp(mid)
        rs = slice(t * RT, (t + 1) * RT)
        o_ref[t] = x_ref[t] + mixer[rs, :] + o[rs, :]


# ----------------------------------------------------------------------------
# One-time host-side weight preparation (hoisted out of the jitted forward)
# ----------------------------------------------------------------------------

def _haar_matrix(n):
    if n == 1:
        return np.ones((1, 1), np.float64)
    h = _haar_matrix(n // 2)
    top = np.kron(h, np.array([[1.0, 1.0]]))
    bot = np.kron(np.eye(n // 2), np.array([[1.0, -1.0]]))
    return np.concatenate([top, bot], axis=0) / np.sqrt(2.0)


def _bn_affine(p, eps=1e-5):
    s = np.asarray(p["gamma"], np.float64) / np.sqrt(
        np.asarray(p["var"], np.float64) + eps)
    t = np.asarray(p["beta"], np.float64) - np.asarray(p["mean"], np.float64) * s
    return s, t


def _block_diag(blocks):
    n = len(blocks)
    r, c = blocks[0].shape
    out = np.zeros((n * r, n * c), np.float64)
    for i, b in enumerate(blocks):
        out[i * r:(i + 1) * r, i * c:(i + 1) * c] = b
    return out


def _shift_matrix(n, d):
    # (S @ x)[i] = x[i + d], zero outside the valid range.
    s = np.zeros((n, n), np.float64)
    for i in range(n):
        if 0 <= i + d < n:
            s[i, i + d] = 1.0
    return s


def prepare_block_weights(params, T, C, H, W, num_blocks, b_tile):
    """Fold BN/bias into block-diag / kron-expanded matrices laid out for the
    per-grid-step (T*b_tile*H, W*C) channels-last slab (lane index = w*C + c)."""
    assert H == W and C % num_blocks == 0
    nb = num_blocks
    mixer, mlp = params["mixer"], params["mlp"]
    npa = lambda a: np.asarray(a, np.float64)

    M = _haar_matrix(H)                     # orthonormal Haar transform
    eye_w = np.eye(W)
    G = T * b_tile                          # number of H-row groups per tile

    s_hf, t_hf = _bn_affine(mixer["haar_forward_bn"])
    s_mu, t_mu = _bn_affine(mixer["haar_multiply_bn"])
    s_hi, t_hi = _bn_affine(mixer["haar_inverse_bn"])
    s_c1, t_c1 = _bn_affine(mixer["conv1_bn"])
    s_c2, t_c2 = _bn_affine(mixer["conv2_bn"])
    s_f1, t_f1 = _bn_affine(mlp["fc1_bn"])
    s_f2, t_f2 = _bn_affine(mlp["fc2_bn"])

    # ---- left (row-mixing) matrices: Haar over H, block-diag per (t, b) ----
    l_fwd = np.kron(np.eye(G), M)
    l_inv = np.kron(np.eye(G), M.T)
    lmats = np.stack([l_fwd, l_inv])                        # (2, G*H, G*H)

    # ---- right (lane-mixing, (W*C, .)) matrices, BN scale folded ------------
    r_fwd = np.kron(M.T, np.diag(s_hf))     # Haar forward over W + bn scale
    r_inv = np.kron(M, np.diag(s_hi))       # Haar inverse over W + bn scale

    hw = npa(mixer["haar_weight"])                              # (nb, bs, bs)
    w_mul = np.kron(eye_w, _block_diag(list(hw)) * s_mu[None, :])

    w1 = npa(mixer["conv1_w"])[:, :, 0, 0]                      # (out, in)
    w_c1 = np.kron(eye_w, _block_diag([w1.T] * nb) * s_c1[None, :])

    # conv2: stack the dy = -1, 0, +1 tap matrices vertically so the kernel
    # can do a single K = 3*W*C matmul against [x[h-1], x[h], x[h+1]].
    w2 = npa(mixer["conv2_w"])                                  # (out, in, 3, 3)
    taps = []
    for dy in (-1, 0, 1):
        acc = np.zeros((W * C, W * C))
        for dx in (-1, 0, 1):
            a_dx = _shift_matrix(W, dx).T                       # [w,w']=[w==w'+dx]
            wc = _block_diag([w2[:, :, dy + 1, dx + 1].T] * nb) * s_c2[None, :]
            acc = acc + np.kron(a_dx, wc)
        taps.append(acc)
    bconv2 = np.concatenate(taps, axis=0)                       # (3*W*C, W*C)

    # NOTE: for production C >= 128, switch fc1/fc2 to a lanes=C layout
    # (rows = B*T*H*W) so the eye_W kron (1/W dense) disappears here.
    wf1 = npa(mlp["fc1_w"])[:, :, 0, 0]                         # (hidden, C)
    wf2 = npa(mlp["fc2_w"])[:, :, 0, 0]                         # (C, hidden)
    wfc1 = np.kron(eye_w, wf1.T * s_f1[None, :])                # (W*C, W*hid)
    wfc2 = np.kron(eye_w, wf2.T * s_f2[None, :])                # (W*hid, W*C)

    # ---- per-lane shift vectors (bias * bn_scale + bn_shift, tiled over W) --
    shifts = np.zeros((8, W * C))
    shifts[0] = np.tile(t_hf, W)
    shifts[1] = np.tile(t_mu, W)
    shifts[2] = np.tile(t_hi, W)
    shifts[3] = np.tile(np.tile(npa(mixer["conv1_b"]), nb) * s_c1 + t_c1, W)
    shifts[4] = np.tile(np.tile(npa(mixer["conv2_b"]), nb) * s_c2 + t_c2, W)
    shifts[5] = np.tile(npa(mlp["fc2_b"]) * s_f2 + t_f2, W)
    fc1_shift = np.tile(npa(mlp["fc1_b"]) * s_f1 + t_f1, W)[None, :]

    bf16, f32 = jnp.bfloat16, jnp.float32
    return {
        "lmats": jnp.asarray(lmats, bf16),                              # (2,R,R)
        "rmats": jnp.asarray(np.stack([r_fwd, r_inv, w_mul, w_c1]), bf16),
        "bconv2": jnp.asarray(bconv2, bf16),                            # (3WC,WC)
        "wfc1": jnp.asarray(wfc1, bf16),
        "wfc2": jnp.asarray(wfc2, bf16),
        "shifts": jnp.asarray(shifts, f32),
        "fc1_shift": jnp.asarray(fc1_shift, f32),
    }


# ----------------------------------------------------------------------------
# Slab layout helpers (applied ONCE at model entry/exit; stacked Blocks chain
# block_forward_slab directly on the slab with no intermediate transposes).
# ----------------------------------------------------------------------------

def to_slab(x):
    """(T, B, C, H, W) -> (T, B*H, W*C) channels-last slab."""
    T, B, C, H, W = x.shape
    return jnp.transpose(x, (0, 1, 3, 4, 2)).reshape(T, B * H, W * C)


def from_slab(y, C, H, W):
    """(T, B*H, W*C) slab -> (T, B, C, H, W)."""
    T, BH, WC = y.shape
    B = BH // H
    return y.reshape(T, B, H, W, C).transpose(0, 1, 4, 2, 3)


# ----------------------------------------------------------------------------
# Jitted forward: one pallas_call, slab in / slab out
# ----------------------------------------------------------------------------

@partial(jax.jit, static_argnames=("h", "b_tile"))
def block_forward_slab(weights, x_slab, *, h, b_tile):
    """x_slab: (T, B*H, W*C) float32 -> (T, B*H, W*C) float32."""
    T, BH, WC = x_slab.shape
    assert BH % h == 0
    B = BH // h
    assert B % b_tile == 0, "batch must be divisible by b_tile"
    RT = b_tile * h                         # rows per timestep inside a tile
    ROWS = T * RT                           # matmul M dim (128 v5e / 256 v6e+)
    assert weights["lmats"].shape[-1] == ROWS, \
        "weights were prepared for a different (T, H, b_tile)"
    WHID = weights["wfc1"].shape[-1]

    out = pl.pallas_call(
        partial(_block_kernel, T=T, RT=RT, H=h, tau=2.0, vth=1.0),
        out_shape=jax.ShapeDtypeStruct((T, BH, WC), jnp.float32),
        grid=(B // b_tile,),
        in_specs=[
            pl.BlockSpec((T, RT, WC), lambda g: (0, g, 0)),              # x
            pl.BlockSpec(weights["lmats"].shape, lambda g: (0, 0, 0)),
            pl.BlockSpec(weights["rmats"].shape, lambda g: (0, 0, 0)),
            pl.BlockSpec(weights["bconv2"].shape, lambda g: (0, 0)),
            pl.BlockSpec(weights["wfc1"].shape, lambda g: (0, 0)),
            pl.BlockSpec(weights["wfc2"].shape, lambda g: (0, 0)),
            pl.BlockSpec(weights["shifts"].shape, lambda g: (0, 0)),
            pl.BlockSpec(weights["fc1_shift"].shape, lambda g: (0, 0)),
        ],
        out_specs=pl.BlockSpec((T, RT, WC), lambda g: (0, g, 0)),
        scratch_shapes=[
            pltpu.VMEM((ROWS, WC), jnp.float32),      # x_neuron spikes (f32: roll path)
            pltpu.VMEM((ROWS, WC), jnp.bfloat16),     # NegIF (haar forward)
            pltpu.VMEM((ROWS, WC), jnp.bfloat16),     # haar_neuron
            pltpu.VMEM((ROWS, WC), jnp.bfloat16),     # NegIF (haar inverse)
            pltpu.VMEM((ROWS, WC), jnp.bfloat16),     # fc1_lif
            pltpu.VMEM((ROWS, WHID), jnp.bfloat16),   # fc2_lif
        ],
        compiler_params=pltpu.CompilerParams(
            dimension_semantics=("parallel",),        # batch tiles across TCs
            vmem_limit_bytes=32 * 1024 * 1024),
    )(x_slab, weights["lmats"], weights["rmats"], weights["bconv2"],
      weights["wfc1"], weights["wfc2"], weights["shifts"], weights["fc1_shift"])
    return out


# ----------------------------------------------------------------------------
# Deterministic parameter init (shapes match the PyTorch module __init__)
# ----------------------------------------------------------------------------

def init_bn(key, c):
    k1, k2, k3, k4 = jax.random.split(key, 4)
    return {
        "gamma": 1.0 + 0.1 * jax.random.normal(k1, (c,), jnp.float32),
        "beta": 0.1 * jax.random.normal(k2, (c,), jnp.float32),
        "mean": 0.1 * jax.random.normal(k3, (c,), jnp.float32),
        "var": 1.0 + 0.1 * jax.random.uniform(k4, (c,), jnp.float32),
    }


def init_block_params(key, dim, fl_blocks, mlp_hidden):
    bs = dim // fl_blocks
    ks = jax.random.split(key, 16)
    mixer = {
        "haar_weight": 0.02 * jax.random.normal(ks[0], (fl_blocks, bs, bs), jnp.float32),
        "conv1_w": 0.1 * jax.random.normal(ks[1], (bs, bs, 1, 1), jnp.float32),
        "conv1_b": 0.1 * jax.random.normal(ks[2], (bs,), jnp.float32),
        "conv2_w": 0.1 * jax.random.normal(ks[3], (bs, bs, 3, 3), jnp.float32),
        "conv2_b": 0.1 * jax.random.normal(ks[4], (bs,), jnp.float32),
        "haar_forward_bn": init_bn(ks[5], dim),
        "haar_multiply_bn": init_bn(ks[6], dim),
        "haar_inverse_bn": init_bn(ks[7], dim),
        "conv1_bn": init_bn(ks[8], dim),
        "conv2_bn": init_bn(ks[9], dim),
    }
    mlp = {
        "fc1_w": 0.1 * jax.random.normal(ks[10], (mlp_hidden, dim, 1, 1), jnp.float32),
        "fc1_b": 0.1 * jax.random.normal(ks[11], (mlp_hidden,), jnp.float32),
        "fc1_bn": init_bn(ks[12], mlp_hidden),
        "fc2_w": 0.1 * jax.random.normal(ks[13], (dim, mlp_hidden, 1, 1), jnp.float32),
        "fc2_b": 0.1 * jax.random.normal(ks[14], (dim,), jnp.float32),
        "fc2_bn": init_bn(ks[15], dim),
    }
    return {"mixer": mixer, "mlp": mlp}


# ----------------------------------------------------------------------------
# Main
# ----------------------------------------------------------------------------

if __name__ == "__main__":
    T, B, C, H, W = 2, 16, 32, 8, 8     # H=W power of 2 for the Haar transform
    FL_BLOCKS = 8                        # C % FL_BLOCKS == 0 -> block_size = 4
    MLP_RATIO = 4.0
    B_TILE = 8                           # rows/grid-step = B_TILE*T*H = 128
                                         # (v5e MXU fill; use 16 -> 256 rows on
                                         # v6e/v7x).  B // B_TILE = 2 steps keep
                                         # both v7x TensorCores busy.

    key = jax.random.PRNGKey(0)
    kx, kp = jax.random.split(key)
    x = jax.random.normal(kx, (T, B, C, H, W), jnp.float32)
    params = init_block_params(kp, C, FL_BLOCKS, int(C * MLP_RATIO))

    weights = prepare_block_weights(params, T, C, H, W, FL_BLOCKS, B_TILE)

    x_slab = to_slab(x)                         # one-time relayout (model entry)
    out_slab = jax.block_until_ready(
        block_forward_slab(weights, x_slab, h=H, b_tile=B_TILE))
    out = from_slab(out_slab, C, H, W)          # one-time relayout (model exit)

    assert out.shape == (T, B, C, H, W), out.shape
    assert bool(jnp.all(jnp.isfinite(out)))
    print("KERNEL_OK")
</pallas_src>

<mosaic_0001>
module attributes {stable_mosaic.version = 11 : i64} {
  func.func @_block_kernel(%arg0: i32, %arg1: memref<2x64x256xf32, #tpu.memory_space<vmem>>, %arg2: memref<2x128x128xbf16, #tpu.memory_space<vmem>>, %arg3: memref<4x256x256xbf16, #tpu.memory_space<vmem>>, %arg4: memref<768x256xbf16, #tpu.memory_space<vmem>>, %arg5: memref<256x1024xbf16, #tpu.memory_space<vmem>>, %arg6: memref<1024x256xbf16, #tpu.memory_space<vmem>>, %arg7: memref<8x256xf32, #tpu.memory_space<vmem>>, %arg8: memref<1x1024xf32, #tpu.memory_space<vmem>>, %arg9: memref<2x64x256xf32, #tpu.memory_space<vmem>>, %arg10: memref<128x256xf32, #tpu.memory_space<vmem>>, %arg11: memref<128x256xbf16, #tpu.memory_space<vmem>>, %arg12: memref<128x256xbf16, #tpu.memory_space<vmem>>, %arg13: memref<128x256xbf16, #tpu.memory_space<vmem>>, %arg14: memref<128x256xbf16, #tpu.memory_space<vmem>>, %arg15: memref<128x1024xbf16, #tpu.memory_space<vmem>>) attributes {dimension_semantics = [#tpu.dimension_semantics<parallel>], iteration_bounds = array<i64: 2>, scalar_prefetch = 0 : i64, scratch_operands = 6 : i64, tpu.core_type = #tpu.core_type<tc>, window_params = [{transform_indices = @transform_0, window_bounds = array<i64: 2, 64, 256>}, {pipeline_mode = #tpu.pipeline_mode<synchronous>, transform_indices = @transform_1, window_bounds = array<i64: 2, 128, 128>}, {pipeline_mode = #tpu.pipeline_mode<synchronous>, transform_indices = @transform_2, window_bounds = array<i64: 4, 256, 256>}, {pipeline_mode = #tpu.pipeline_mode<synchronous>, transform_indices = @transform_3, window_bounds = array<i64: 768, 256>}, {pipeline_mode = #tpu.pipeline_mode<synchronous>, transform_indices = @transform_4, window_bounds = array<i64: 256, 1024>}, {pipeline_mode = #tpu.pipeline_mode<synchronous>, transform_indices = @transform_5, window_bounds = array<i64: 1024, 256>}, {pipeline_mode = #tpu.pipeline_mode<synchronous>, transform_indices = @transform_6, window_bounds = array<i64: 8, 256>}, {pipeline_mode = #tpu.pipeline_mode<synchronous>, transform_indices = @transform_7, window_bounds = array<i64: 1, 1024>}, {transform_indices = @transform_8, window_bounds = array<i64: 2, 64, 256>}]} {
    %c0 = arith.constant 0 : index
    %c0_0 = arith.constant 0 : index
    %0 = vector.load %arg7[%c0, %c0_0] : memref<8x256xf32, #tpu.memory_space<vmem>>, vector<8x256xf32>
    %c0_1 = arith.constant 0 : index
    %c0_2 = arith.constant 0 : index
    %c0_3 = arith.constant 0 : index
    %1 = vector.load %arg2[%c0_1, %c0_2, %c0_3] : memref<2x128x128xbf16, #tpu.memory_space<vmem>>, vector<1x128x128xbf16>
    %2 = vector.shape_cast %1 : vector<1x128x128xbf16> to vector<128x128xbf16>
    %c1 = arith.constant 1 : index
    %c0_4 = arith.constant 0 : index
    %c0_5 = arith.constant 0 : index
    %3 = vector.load %arg2[%c1, %c0_4, %c0_5] : memref<2x128x128xbf16, #tpu.memory_space<vmem>>, vector<1x128x128xbf16>
    %4 = vector.shape_cast %3 : vector<1x128x128xbf16> to vector<128x128xbf16>
    %c0_6 = arith.constant 0 : index
    %c0_7 = arith.constant 0 : index
    %c0_8 = arith.constant 0 : index
    %5 = vector.load %arg3[%c0_6, %c0_7, %c0_8] : memref<4x256x256xbf16, #tpu.memory_space<vmem>>, vector<1x256x256xbf16>
    %6 = vector.shape_cast %5 : vector<1x256x256xbf16> to vector<256x256xbf16>
    %c1_9 = arith.constant 1 : index
    %c0_10 = arith.constant 0 : index
    %c0_11 = arith.constant 0 : index
    %7 = vector.load %arg3[%c1_9, %c0_10, %c0_11] : memref<4x256x256xbf16, #tpu.memory_space<vmem>>, vector<1x256x256xbf16>
    %8 = vector.shape_cast %7 : vector<1x256x256xbf16> to vector<256x256xbf16>
    %c2 = arith.constant 2 : index
    %c0_12 = arith.constant 0 : index
    %c0_13 = arith.constant 0 : index
    %9 = vector.load %arg3[%c2, %c0_12, %c0_13] : memref<4x256x256xbf16, #tpu.memory_space<vmem>>, vector<1x256x256xbf16>
    %10 = vector.shape_cast %9 : vector<1x256x256xbf16> to vector<256x256xbf16>
    %c3 = arith.constant 3 : index
    %c0_14 = arith.constant 0 : index
    %c0_15 = arith.constant 0 : index
    %11 = vector.load %arg3[%c3, %c0_14, %c0_15] : memref<4x256x256xbf16, #tpu.memory_space<vmem>>, vector<1x256x256xbf16>
    %12 = vector.shape_cast %11 : vector<1x256x256xbf16> to vector<256x256xbf16>
    %cst = arith.constant 0.000000e+00 : f32
    %13 = vector.broadcast %cst : f32 to vector<64x256xf32>
    %c0_16 = arith.constant 0 : index
    %c0_17 = arith.constant 0 : index
    %c0_18 = arith.constant 0 : index
    %14 = vector.load %arg1[%c0_16, %c0_17, %c0_18] : memref<2x64x256xf32, #tpu.memory_space<vmem>>, vector<1x64x256xf32>
    %15 = vector.shape_cast %14 : vector<1x64x256xf32> to vector<64x256xf32>
    %16 = arith.subf %15, %13 : vector<64x256xf32>
    %cst_19 = arith.constant 5.000000e-01 : f32
    %17 = vector.broadcast %cst_19 : f32 to vector<64x256xf32>
    %18 = arith.mulf %16, %17 : vector<64x256xf32>
    %19 = arith.addf %13, %18 : vector<64x256xf32>
    %cst_20 = arith.constant 1.000000e+00 : f32
    %20 = vector.broadcast %cst_20 : f32 to vector<64x256xf32>
    %21 = arith.cmpf oge, %19, %20 : vector<64x256xf32>
    %cst_21 = arith.constant 1.000000e+00 : f32
    %cst_22 = arith.constant 0.000000e+00 : f32
    %22 = vector.broadcast %cst_21 : f32 to vector<64x256xf32>
    %23 = vector.broadcast %cst_22 : f32 to vector<64x256xf32>
    %24 = arith.select %21, %22, %23 : vector<64x256xi1>, vector<64x256xf32>
    %c0_23 = arith.constant 0 : index
    %c0_24 = arith.constant 0 : index
    %25 = vector.load %arg10[%c0_23, %c0_24] : memref<128x256xf32, #tpu.memory_space<vmem>>, vector<64x256xf32>
    tpu.vector_store %arg10[%c0_23, %c0_24], %24 {strides = array<i32>} : memref<128x256xf32, #tpu.memory_space<vmem>>, vector<64x256xf32>,
    %cst_25 = arith.constant 1.000000e+00 : f32
    %26 = vector.broadcast %cst_25 : f32 to vector<64x256xf32>
    %27 = arith.subf %26, %24 : vector<64x256xf32>
    %28 = arith.mulf %19, %27 : vector<64x256xf32>
    %c1_26 = arith.constant 1 : index
    %c0_27 = arith.constant 0 : index
    %c0_28 = arith.constant 0 : index
    %29 = vector.load %arg1[%c1_26, %c0_27, %c0_28] : memref<2x64x256xf32, #tpu.memory_space<vmem>>, vector<1x64x256xf32>
    %30 = vector.shape_cast %29 : vector<1x64x256xf32> to vector<64x256xf32>
    %31 = arith.subf %30, %28 : vector<64x256xf32>
    %cst_29 = arith.constant 5.000000e-01 : f32
    %32 = vector.broadcast %cst_29 : f32 to vector<64x256xf32>
    %33 = arith.mulf %31, %32 : vector<64x256xf32>
    %34 = arith.addf %28, %33 : vector<64x256xf32>
    %cst_30 = arith.constant 1.000000e+00 : f32
    %35 = vector.broadcast %cst_30 : f32 to vector<64x256xf32>
    %36 = arith.cmpf oge, %34, %35 : vector<64x256xf32>
    %cst_31 = arith.constant 1.000000e+00 : f32
    %cst_32 = arith.constant 0.000000e+00 : f32
    %37 = vector.broadcast %cst_31 : f32 to vector<64x256xf32>
    %38 = vector.broadcast %cst_32 : f32 to vector<64x256xf32>
    %39 = arith.select %36, %37, %38 : vector<64x256xi1>, vector<64x256xf32>
    %c64 = arith.constant 64 : index
    %c0_33 = arith.constant 0 : index
    %40 = vector.load %arg10[%c64, %c0_33] : memref<128x256xf32, #tpu.memory_space<vmem>>, vector<64x256xf32>
    tpu.vector_store %arg10[%c64, %c0_33], %39 {strides = array<i32>} : memref<128x256xf32, #tpu.memory_space<vmem>>, vector<64x256xf32>,
    %c0_34 = arith.constant 0 : index
    %c0_35 = arith.constant 0 : index
    %41 = vector.load %arg10[%c0_34, %c0_35] : memref<128x256xf32, #tpu.memory_space<vmem>>, vector<128x256xf32>
    %42 = arith.truncf %41 : vector<128x256xf32> to vector<128x256xbf16>
    %cst_36 = arith.constant dense<0.000000e+00> : vector<128x256xf32>
    %43 = tpu.matmul %2, %42, %cst_36 {dimension_numbers = #tpu.dot_dimension_numbers<[1], [0], [0], [1], [0, 0, 1, 1], [], []>} : vector<128x128xbf16>, vector<128x256xbf16>, vector<128x256xf32> -> vector<128x256xf32>
    %cst_37 = arith.constant 0.000000e+00 : f32
    %44 = vector.broadcast %cst_37 : f32 to vector<64x256xf32>
    %45 = vector.extract_strided_slice %43 {offsets = [0, 0], sizes = [64, 256], strides = [1, 1]} : vector<128x256xf32> to vector<64x256xf32>
    %46 = arith.addf %44, %45 : vector<64x256xf32>
    %cst_38 = arith.constant 1.000000e+00 : f32
    %47 = vector.broadcast %cst_38 : f32 to vector<64x256xf32>
    %48 = arith.cmpf oge, %46, %47 : vector<64x256xf32>
    %cst_39 = arith.constant 1.000000e+00 : f32
    %cst_40 = arith.constant 0.000000e+00 : f32
    %49 = vector.broadcast %cst_39 : f32 to vector<64x256xf32>
    %50 = vector.broadcast %cst_40 : f32 to vector<64x256xf32>
    %51 = arith.select %48, %49, %50 : vector<64x256xi1>, vector<64x256xf32>
    %cst_41 = arith.constant -1.000000e+00 : f32
    %52 = vector.broadcast %cst_41 : f32 to vector<64x256xf32>
    %53 = arith.cmpf ole, %46, %52 : vector<64x256xf32>
    %cst_42 = arith.constant 1.000000e+00 : f32
    %cst_43 = arith.constant 0.000000e+00 : f32
    %54 = vector.broadcast %cst_42 : f32 to vector<64x256xf32>
    %55 = vector.broadcast %cst_43 : f32 to vector<64x256xf32>
    %56 = arith.select %53, %54, %55 : vector<64x256xi1>, vector<64x256xf32>
    %57 = arith.subf %51, %56 : vector<64x256xf32>
    %58 = arith.truncf %57 : vector<64x256xf32> to vector<64x256xbf16>
    %c0_44 = arith.constant 0 : index
    %c0_45 = arith.constant 0 : index
    %59 = vector.load %arg11[%c0_44, %c0_45] : memref<128x256xbf16, #tpu.memory_space<vmem>>, vector<64x256xbf16>
    tpu.vector_store %arg11[%c0_44, %c0_45], %58 {strides = array<i32>} : memref<128x256xbf16, #tpu.memory_space<vmem>>, vector<64x256xbf16>,
    %cst_46 = arith.constant 1.000000e+00 : f32
    %60 = vector.broadcast %cst_46 : f32 to vector<64x256xf32>
    %61 = arith.mulf %57, %60 : vector<64x256xf32>
    %62 = arith.subf %46, %61 : vector<64x256xf32>
    %63 = vector.extract_strided_slice %43 {offsets = [64, 0], sizes = [64, 256], strides = [1, 1]} : vector<128x256xf32> to vector<64x256xf32>
    %64 = arith.addf %62, %63 : vector<64x256xf32>
    %cst_47 = arith.constant 1.000000e+00 : f32
    %65 = vector.broadcast %cst_47 : f32 to vector<64x256xf32>
    %66 = arith.cmpf oge, %64, %65 : vector<64x256xf32>
    %cst_48 = arith.constant 1.000000e+00 : f32
    %cst_49 = arith.constant 0.000000e+00 : f32
    %67 = vector.broadcast %cst_48 : f32 to vector<64x256xf32>
    %68 = vector.broadcast %cst_49 : f32 to vector<64x256xf32>
    %69 = arith.select %66, %67, %68 : vector<64x256xi1>, vector<64x256xf32>
    %cst_50 = arith.constant -1.000000e+00 : f32
    %70 = vector.broadcast %cst_50 : f32 to vector<64x256xf32>
    %71 = arith.cmpf ole, %64, %70 : vector<64x256xf32>
    %cst_51 = arith.constant 1.000000e+00 : f32
    %cst_52 = arith.constant 0.000000e+00 : f32
    %72 = vector.broadcast %cst_51 : f32 to vector<64x256xf32>
    %73 = vector.broadcast %cst_52 : f32 to vector<64x256xf32>
    %74 = arith.select %71, %72, %73 : vector<64x256xi1>, vector<64x256xf32>
    %75 = arith.subf %69, %74 : vector<64x256xf32>
    %76 = arith.truncf %75 : vector<64x256xf32> to vector<64x256xbf16>
    %c64_53 = arith.constant 64 : index
    %c0_54 = arith.constant 0 : index
    %77 = vector.load %arg11[%c64_53, %c0_54] : memref<128x256xbf16, #tpu.memory_space<vmem>>, vector<64x256xbf16>
    tpu.vector_store %arg11[%c64_53, %c0_54], %76 {strides = array<i32>} : memref<128x256xbf16, #tpu.memory_space<vmem>>, vector<64x256xbf16>,
    %c0_55 = arith.constant 0 : index
    %c0_56 = arith.constant 0 : index
    %78 = vector.load %arg11[%c0_55, %c0_56] : memref<128x256xbf16, #tpu.memory_space<vmem>>, vector<128x256xbf16>
    %cst_57 = arith.constant dense<0.000000e+00> : vector<128x256xf32>
    %79 = tpu.matmul %78, %6, %cst_57 {dimension_numbers = #tpu.dot_dimension_numbers<[1], [0], [0], [1], [0, 0, 1, 1], [], []>} : vector<128x256xbf16>, vector<256x256xbf16>, vector<128x256xf32> -> vector<128x256xf32>
    %80 = vector.extract_strided_slice %0 {offsets = [0, 0], sizes = [1, 256], strides = [1, 1]} : vector<8x256xf32> to vector<1x256xf32>
    %81 = vector.broadcast %80 : vector<1x256xf32> to vector<128x256xf32>
    %82 = arith.addf %79, %81 : vector<128x256xf32>
    %cst_58 = arith.constant 0.000000e+00 : f32
    %83 = vector.broadcast %cst_58 : f32 to vector<64x256xf32>
    %84 = vector.extract_strided_slice %82 {offsets = [0, 0], sizes = [64, 256], strides = [1, 1]} : vector<128x256xf32> to vector<64x256xf32>
    %85 = arith.subf %84, %83 : vector<64x256xf32>
    %cst_59 = arith.constant 5.000000e-01 : f32
    %86 = vector.broadcast %cst_59 : f32 to vector<64x256xf32>
    %87 = arith.mulf %85, %86 : vector<64x256xf32>
    %88 = arith.addf %83, %87 : vector<64x256xf32>
    %cst_60 = arith.constant 1.000000e+00 : f32
    %89 = vector.broadcast %cst_60 : f32 to vector<64x256xf32>
    %90 = arith.cmpf oge, %88, %89 : vector<64x256xf32>
    %cst_61 = arith.constant 1.000000e+00 : f32
    %cst_62 = arith.constant 0.000000e+00 : f32
    %91 = vector.broadcast %cst_61 : f32 to vector<64x256xf32>
    %92 = vector.broadcast %cst_62 : f32 to vector<64x256xf32>
    %93 = arith.select %90, %91, %92 : vector<64x256xi1>, vector<64x256xf32>
    %94 = arith.truncf %93 : vector<64x256xf32> to vector<64x256xbf16>
    %c0_63 = arith.constant 0 : index
    %c0_64 = arith.constant 0 : index
    %95 = vector.load %arg12[%c0_63, %c0_64] : memref<128x256xbf16, #tpu.memory_space<vmem>>, vector<64x256xbf16>
    tpu.vector_store %arg12[%c0_63, %c0_64], %94 {strides = array<i32>} : memref<128x256xbf16, #tpu.memory_space<vmem>>, vector<64x256xbf16>,
    %cst_65 = arith.constant 1.000000e+00 : f32
    %96 = vector.broadcast %cst_65 : f32 to vector<64x256xf32>
    %97 = arith.subf %96, %93 : vector<64x256xf32>
    %98 = arith.mulf %88, %97 : vector<64x256xf32>
    %99 = vector.extract_strided_slice %82 {offsets = [64, 0], sizes = [64, 256], strides = [1, 1]} : vector<128x256xf32> to vector<64x256xf32>
    %100 = arith.subf %99, %98 : vector<64x256xf32>
    %cst_66 = arith.constant 5.000000e-01 : f32
    %101 = vector.broadcast %cst_66 : f32 to vector<64x256xf32>
    %102 = arith.mulf %100, %101 : vector<64x256xf32>
    %103 = arith.addf %98, %102 : vector<64x256xf32>
    %cst_67 = arith.constant 1.000000e+00 : f32
    %104 = vector.broadcast %cst_67 : f32 to vector<64x256xf32>
    %105 = arith.cmpf oge, %103, %104 : vector<64x256xf32>
    %cst_68 = arith.constant 1.000000e+00 : f32
    %cst_69 = arith.constant 0.000000e+00 : f32
    %106 = vector.broadcast %cst_68 : f32 to vector<64x256xf32>
    %107 = vector.broadcast %cst_69 : f32 to vector<64x256xf32>
    %108 = arith.select %105, %106, %107 : vector<64x256xi1>, vector<64x256xf32>
    %109 = arith.truncf %108 : vector<64x256xf32> to vector<64x256xbf16>
    %c64_70 = arith.constant 64 : index
    %c0_71 = arith.constant 0 : index
    %110 = vector.load %arg12[%c64_70, %c0_71] : memref<128x256xbf16, #tpu.memory_space<vmem>>, vector<64x256xbf16>
    tpu.vector_store %arg12[%c64_70, %c0_71], %109 {strides = array<i32>} : memref<128x256xbf16, #tpu.memory_space<vmem>>, vector<64x256xbf16>,
    %c0_72 = arith.constant 0 : index
    %c0_73 = arith.constant 0 : index
    %111 = vector.load %arg12[%c0_72, %c0_73] : memref<128x256xbf16, #tpu.memory_space<vmem>>, vector<128x256xbf16>
    %cst_74 = arith.constant dense<0.000000e+00> : vector<128x256xf32>
    %112 = tpu.matmul %111, %10, %cst_74 {dimension_numbers = #tpu.dot_dimension_numbers<[1], [0], [0], [1], [0, 0, 1, 1], [], []>} : vector<128x256xbf16>, vector<256x256xbf16>, vector<128x256xf32> -> vector<128x256xf32>
    %113 = vector.extract_strided_slice %0 {offsets = [1, 0], sizes = [1, 256], strides = [1, 1]} : vector<8x256xf32> to vector<1x256xf32>
    %114 = vector.broadcast %113 : vector<1x256xf32> to vector<128x256xf32>
    %115 = arith.addf %112, %114 : vector<128x256xf32>
    %116 = arith.truncf %115 : vector<128x256xf32> to vector<128x256xbf16>
    %cst_75 = arith.constant dense<0.000000e+00> : vector<128x256xf32>
    %117 = tpu.matmul %4, %116, %cst_75 {dimension_numbers = #tpu.dot_dimension_numbers<[1], [0], [0], [1], [0, 0, 1, 1], [], []>} : vector<128x128xbf16>, vector<128x256xbf16>, vector<128x256xf32> -> vector<128x256xf32>
    %cst_76 = arith.constant 0.000000e+00 : f32
    %118 = vector.broadcast %cst_76 : f32 to vector<64x256xf32>
    %119 = vector.extract_strided_slice %117 {offsets = [0, 0], sizes = [64, 256], strides = [1, 1]} : vector<128x256xf32> to vector<64x256xf32>
    %120 = arith.addf %118, %119 : vector<64x256xf32>
    %cst_77 = arith.constant 1.000000e+00 : f32
    %121 = vector.broadcast %cst_77 : f32 to vector<64x256xf32>
    %122 = arith.cmpf oge, %120, %121 : vector<64x256xf32>
    %cst_78 = arith.constant 1.000000e+00 : f32
    %cst_79 = arith.constant 0.000000e+00 : f32
    %123 = vector.broadcast %cst_78 : f32 to vector<64x256xf32>
    %124 = vector.broadcast %cst_79 : f32 to vector<64x256xf32>
    %125 = arith.select %122, %123, %124 : vector<64x256xi1>, vector<64x256xf32>
    %cst_80 = arith.constant -1.000000e+00 : f32
    %126 = vector.broadcast %cst_80 : f32 to vector<64x256xf32>
    %127 = arith.cmpf ole, %120, %126 : vector<64x256xf32>
    %cst_81 = arith.constant 1.000000e+00 : f32
    %cst_82 = arith.constant 0.000000e+00 : f32
    %128 = vector.broadcast %cst_81 : f32 to vector<64x256xf32>
    %129 = vector.broadcast %cst_82 : f32 to vector<64x256xf32>
    %130 = arith.select %127, %128, %129 : vector<64x256xi1>, vector<64x256xf32>
    %131 = arith.subf %125, %130 : vector<64x256xf32>
    %132 = arith.truncf %131 : vector<64x256xf32> to vector<64x256xbf16>
    %c0_83 = arith.constant 0 : index
    %c0_84 = arith.constant 0 : index
    %133 = vector.load %arg13[%c0_83, %c0_84] : memref<128x256xbf16, #tpu.memory_space<vmem>>, vector<64x256xbf16>
    tpu.vector_store %arg13[%c0_83, %c0_84], %132 {strides = array<i32>} : memref<128x256xbf16, #tpu.memory_space<vmem>>, vector<64x256xbf16>,
    %cst_85 = arith.constant 1.000000e+00 : f32
    %134 = vector.broadcast %cst_85 : f32 to vector<64x256xf32>
    %135 = arith.mulf %131, %134 : vector<64x256xf32>
    %136 = arith.subf %120, %135 : vector<64x256xf32>
    %137 = vector.extract_strided_slice %117 {offsets = [64, 0], sizes = [64, 256], strides = [1, 1]} : vector<128x256xf32> to vector<64x256xf32>
    %138 = arith.addf %136, %137 : vector<64x256xf32>
    %cst_86 = arith.constant 1.000000e+00 : f32
    %139 = vector.broadcast %cst_86 : f32 to vector<64x256xf32>
    %140 = arith.cmpf oge, %138, %139 : vector<64x256xf32>
    %cst_87 = arith.constant 1.000000e+00 : f32
    %cst_88 = arith.constant 0.000000e+00 : f32
    %141 = vector.broadcast %cst_87 : f32 to vector<64x256xf32>
    %142 = vector.broadcast %cst_88 : f32 to vector<64x256xf32>
    %143 = arith.select %140, %141, %142 : vector<64x256xi1>, vector<64x256xf32>
    %cst_89 = arith.constant -1.000000e+00 : f32
    %144 = vector.broadcast %cst_89 : f32 to vector<64x256xf32>
    %145 = arith.cmpf ole, %138, %144 : vector<64x256xf32>
    %cst_90 = arith.constant 1.000000e+00 : f32
    %cst_91 = arith.constant 0.000000e+00 : f32
    %146 = vector.broadcast %cst_90 : f32 to vector<64x256xf32>
    %147 = vector.broadcast %cst_91 : f32 to vector<64x256xf32>
    %148 = arith.select %145, %146, %147 : vector<64x256xi1>, vector<64x256xf32>
    %149 = arith.subf %143, %148 : vector<64x256xf32>
    %150 = arith.truncf %149 : vector<64x256xf32> to vector<64x256xbf16>
    %c64_92 = arith.constant 64 : index
    %c0_93 = arith.constant 0 : index
    %151 = vector.load %arg13[%c64_92, %c0_93] : memref<128x256xbf16, #tpu.memory_space<vmem>>, vector<64x256xbf16>
    tpu.vector_store %arg13[%c64_92, %c0_93], %150 {strides = array<i32>} : memref<128x256xbf16, #tpu.memory_space<vmem>>, vector<64x256xbf16>,
    %c0_94 = arith.constant 0 : index
    %c0_95 = arith.constant 0 : index
    %152 = vector.load %arg13[%c0_94, %c0_95] : memref<128x256xbf16, #tpu.memory_space<vmem>>, vector<128x256xbf16>
    %cst_96 = arith.constant dense<0.000000e+00> : vector<128x256xf32>
    %153 = tpu.matmul %152, %8, %cst_96 {dimension_numbers = #tpu.dot_dimension_numbers<[1], [0], [0], [1], [0, 0, 1, 1], [], []>} : vector<128x256xbf16>, vector<256x256xbf16>, vector<128x256xf32> -> vector<128x256xf32>
    %154 = vector.extract_strided_slice %0 {offsets = [2, 0], sizes = [1, 256], strides = [1, 1]} : vector<8x256xf32> to vector<1x256xf32>
    %155 = vector.broadcast %154 : vector<1x256xf32> to vector<128x256xf32>
    %156 = arith.addf %153, %155 : vector<128x256xf32>
    %cst_97 = arith.constant dense<0.000000e+00> : vector<128x256xf32>
    %157 = tpu.matmul %42, %12, %cst_97 {dimension_numbers = #tpu.dot_dimension_numbers<[1], [0], [0], [1], [0, 0, 1, 1], [], []>} : vector<128x256xbf16>, vector<256x256xbf16>, vector<128x256xf32> -> vector<128x256xf32>
    %158 = vector.extract_strided_slice %0 {offsets = [3, 0], sizes = [1, 256], strides = [1, 1]} : vector<8x256xf32> to vector<1x256xf32>
    %159 = vector.broadcast %158 : vector<1x256xf32> to vector<128x256xf32>
    %160 = arith.addf %157, %159 : vector<128x256xf32>
    %161 = tpu.iota {dimensions = array<i32: 0>} : vector<128x256xi32>
    %c8_i32 = arith.constant 8 : i32
    %c0_i32 = arith.constant 0 : i32
    %162 = arith.cmpi eq, %c8_i32, %c0_i32 : i32
    %c1_i32 = arith.constant 1 : i32
    %163 = arith.select %162, %c1_i32, %c8_i32 : i32
    %164 = vector.broadcast %163 : i32 to vector<128x256xi32>
    %165 = arith.remsi %161, %164 : vector<128x256xi32>
    %c0_i32_98 = arith.constant 0 : i32
    %166 = vector.broadcast %c0_i32_98 : i32 to vector<128x256xi32>
    %167 = arith.cmpi ne, %165, %166 : vector<128x256xi32>
    %c0_i32_99 = arith.constant 0 : i32
    %168 = vector.broadcast %c0_i32_99 : i32 to vector<128x256xi32>
    %169 = arith.cmpi slt, %165, %168 : vector<128x256xi32>
    %c0_i32_100 = arith.constant 0 : i32
    %170 = arith.cmpi slt, %163, %c0_i32_100 : i32
    %171 = vector.broadcast %170 : i1 to vector<128x256xi1>
    %172 = vector.broadcast %171 : vector<128x256xi1> to vector<128x256xi1>
    %173 = arith.xori %169, %172 : vector<128x256xi1>
    %174 = arith.andi %173, %167 : vector<128x256xi1>
    %175 = vector.broadcast %163 : i32 to vector<128x256xi32>
    %176 = arith.addi %165, %175 : vector<128x256xi32>
    %177 = arith.select %174, %176, %165 : vector<128x256xi1>, vector<128x256xi32>
    %c0_i32_101 = arith.constant 0 : i32
    %178 = vector.broadcast %c0_i32_101 : i32 to vector<128x256xi32>
    %179 = arith.cmpi ne, %177, %178 : vector<128x256xi32>
    %c1_i32_102 = arith.constant 1 : i32
    %180 = tpu.dynamic_rotate %41 by %c1_i32_102 dim 0 : vector<128x256xf32>, i32 -> vector<128x256xf32>
    %cst_103 = arith.constant 0.000000e+00 : f32
    %181 = vector.broadcast %cst_103 : f32 to vector<128x256xf32>
    %182 = arith.select %179, %180, %181 : vector<128x256xi1>, vector<128x256xf32>
    %c7_i32 = arith.constant 7 : i32
    %183 = vector.broadcast %c7_i32 : i32 to vector<128x256xi32>
    %184 = arith.cmpi ne, %177, %183 : vector<128x256xi32>
    %c127_i32 = arith.constant 127 : i32
    %185 = tpu.dynamic_rotate %41 by %c127_i32 dim 0 : vector<128x256xf32>, i32 -> vector<128x256xf32>
    %cst_104 = arith.constant 0.000000e+00 : f32
    %186 = vector.broadcast %cst_104 : f32 to vector<128x256xf32>
    %187 = arith.select %184, %185, %186 : vector<128x256xi1>, vector<128x256xf32>
    %188 = arith.truncf %182 : vector<128x256xf32> to vector<128x256xbf16>
    %189 = arith.truncf %187 : vector<128x256xf32> to vector<128x256xbf16>
    %190 = tpu.concatenate %188, %42, %189 in 1 : vector<128x256xbf16>, vector<128x256xbf16>, vector<128x256xbf16> -> vector<128x768xbf16>
    %c0_105 = arith.constant 0 : index
    %c0_106 = arith.constant 0 : index
    %191 = vector.load %arg4[%c0_105, %c0_106] : memref<768x256xbf16, #tpu.memory_space<vmem>>, vector<768x256xbf16>
    %cst_107 = arith.constant dense<0.000000e+00> : vector<128x256xf32>
    %192 = tpu.matmul %190, %191, %cst_107 {dimension_numbers = #tpu.dot_dimension_numbers<[1], [0], [0], [1], [0, 0, 1, 1], [], []>} : vector<128x768xbf16>, vector<768x256xbf16>, vector<128x256xf32> -> vector<128x256xf32>
    %193 = vector.extract_strided_slice %0 {offsets = [4, 0], sizes = [1, 256], strides = [1, 1]} : vector<8x256xf32> to vector<1x256xf32>
    %194 = vector.broadcast %193 : vector<1x256xf32> to vector<128x256xf32>
    %195 = arith.addf %192, %194 : vector<128x256xf32>
    %196 = arith.addf %156, %160 : vector<128x256xf32>
    %197 = arith.addf %196, %195 : vector<128x256xf32>
    %cst_108 = arith.constant 0.000000e+00 : f32
    %198 = vector.broadcast %cst_108 : f32 to vector<64x256xf32>
    %c0_109 = arith.constant 0 : index
    %c0_110 = arith.constant 0 : index
    %c0_111 = arith.constant 0 : index
    %199 = vector.load %arg1[%c0_109, %c0_110, %c0_111] : memref<2x64x256xf32, #tpu.memory_space<vmem>>, vector<1x64x256xf32>
    %200 = vector.shape_cast %199 : vector<1x64x256xf32> to vector<64x256xf32>
    %201 = vector.extract_strided_slice %197 {offsets = [0, 0], sizes = [64, 256], strides = [1, 1]} : vector<128x256xf32> to vector<64x256xf32>
    %202 = arith.addf %200, %201 : vector<64x256xf32>
    %203 = arith.subf %202, %198 : vector<64x256xf32>
    %cst_112 = arith.constant 5.000000e-01 : f32
    %204 = vector.broadcast %cst_112 : f32 to vector<64x256xf32>
    %205 = arith.mulf %203, %204 : vector<64x256xf32>
    %206 = arith.addf %198, %205 : vector<64x256xf32>
    %cst_113 = arith.constant 1.000000e+00 : f32
    %207 = vector.broadcast %cst_113 : f32 to vector<64x256xf32>
    %208 = arith.cmpf oge, %206, %207 : vector<64x256xf32>
    %cst_114 = arith.constant 1.000000e+00 : f32
    %cst_115 = arith.constant 0.000000e+00 : f32
    %209 = vector.broadcast %cst_114 : f32 to vector<64x256xf32>
    %210 = vector.broadcast %cst_115 : f32 to vector<64x256xf32>
    %211 = arith.select %208, %209, %210 : vector<64x256xi1>, vector<64x256xf32>
    %212 = arith.truncf %211 : vector<64x256xf32> to vector<64x256xbf16>
    %c0_116 = arith.constant 0 : index
    %c0_117 = arith.constant 0 : index
    %213 = vector.load %arg14[%c0_116, %c0_117] : memref<128x256xbf16, #tpu.memory_space<vmem>>, vector<64x256xbf16>
    tpu.vector_store %arg14[%c0_116, %c0_117], %212 {strides = array<i32>} : memref<128x256xbf16, #tpu.memory_space<vmem>>, vector<64x256xbf16>,
    %cst_118 = arith.constant 1.000000e+00 : f32
    %214 = vector.broadcast %cst_118 : f32 to vector<64x256xf32>
    %215 = arith.subf %214, %211 : vector<64x256xf32>
    %216 = arith.mulf %206, %215 : vector<64x256xf32>
    %c1_119 = arith.constant 1 : index
    %c0_120 = arith.constant 0 : index
    %c0_121 = arith.constant 0 : index
    %217 = vector.load %arg1[%c1_119, %c0_120, %c0_121] : memref<2x64x256xf32, #tpu.memory_space<vmem>>, vector<1x64x256xf32>
    %218 = vector.shape_cast %217 : vector<1x64x256xf32> to vector<64x256xf32>
    %219 = vector.extract_strided_slice %197 {offsets = [64, 0], sizes = [64, 256], strides = [1, 1]} : vector<128x256xf32> to vector<64x256xf32>
    %220 = arith.addf %218, %219 : vector<64x256xf32>
    %221 = arith.subf %220, %216 : vector<64x256xf32>
    %cst_122 = arith.constant 5.000000e-01 : f32
    %222 = vector.broadcast %cst_122 : f32 to vector<64x256xf32>
    %223 = arith.mulf %221, %222 : vector<64x256xf32>
    %224 = arith.addf %216, %223 : vector<64x256xf32>
    %cst_123 = arith.constant 1.000000e+00 : f32
    %225 = vector.broadcast %cst_123 : f32 to vector<64x256xf32>
    %226 = arith.cmpf oge, %224, %225 : vector<64x256xf32>
    %cst_124 = arith.constant 1.000000e+00 : f32
    %cst_125 = arith.constant 0.000000e+00 : f32
    %227 = vector.broadcast %cst_124 : f32 to vector<64x256xf32>
    %228 = vector.broadcast %cst_125 : f32 to vector<64x256xf32>
    %229 = arith.select %226, %227, %228 : vector<64x256xi1>, vector<64x256xf32>
    %230 = arith.truncf %229 : vector<64x256xf32> to vector<64x256xbf16>
    %c64_126 = arith.constant 64 : index
    %c0_127 = arith.constant 0 : index
    %231 = vector.load %arg14[%c64_126, %c0_127] : memref<128x256xbf16, #tpu.memory_space<vmem>>, vector<64x256xbf16>
    tpu.vector_store %arg14[%c64_126, %c0_127], %230 {strides = array<i32>} : memref<128x256xbf16, #tpu.memory_space<vmem>>, vector<64x256xbf16>,
    %c0_128 = arith.constant 0 : index
    %c0_129 = arith.constant 0 : index
    %232 = vector.load %arg14[%c0_128, %c0_129] : memref<128x256xbf16, #tpu.memory_space<vmem>>, vector<128x256xbf16>
    %c0_130 = arith.constant 0 : index
    %c0_131 = arith.constant 0 : index
    %233 = vector.load %arg5[%c0_130, %c0_131] : memref<256x1024xbf16, #tpu.memory_space<vmem>>, vector<256x1024xbf16>
    %cst_132 = arith.constant dense<0.000000e+00> : vector<128x1024xf32>
    %234 = tpu.matmul %232, %233, %cst_132 {dimension_numbers = #tpu.dot_dimension_numbers<[1], [0], [0], [1], [0, 0, 1, 1], [], []>} : vector<128x256xbf16>, vector<256x1024xbf16>, vector<128x1024xf32> -> vector<128x1024xf32>
    %c0_133 = arith.constant 0 : index
    %c0_134 = arith.constant 0 : index
    %235 = vector.load %arg8[%c0_133, %c0_134] : memref<1x1024xf32, #tpu.memory_space<vmem>>, vector<1x1024xf32>
    %236 = vector.broadcast %235 : vector<1x1024xf32> to vector<128x1024xf32>
    %237 = arith.addf %234, %236 : vector<128x1024xf32>
    %cst_135 = arith.constant 0.000000e+00 : f32
    %238 = vector.broadcast %cst_135 : f32 to vector<64x1024xf32>
    %239 = vector.extract_strided_slice %237 {offsets = [0, 0], sizes = [64, 1024], strides = [1, 1]} : vector<128x1024xf32> to vector<64x1024xf32>
    %240 = arith.subf %239, %238 : vector<64x1024xf32>
    %cst_136 = arith.constant 5.000000e-01 : f32
    %241 = vector.broadcast %cst_136 : f32 to vector<64x1024xf32>
    %242 = arith.mulf %240, %241 : vector<64x1024xf32>
    %243 = arith.addf %238, %242 : vector<64x1024xf32>
    %cst_137 = arith.constant 1.000000e+00 : f32
    %244 = vector.broadcast %cst_137 : f32 to vector<64x1024xf32>
    %245 = arith.cmpf oge, %243, %244 : vector<64x1024xf32>
    %cst_138 = arith.constant 1.000000e+00 : f32
    %cst_139 = arith.constant 0.000000e+00 : f32
    %246 = vector.broadcast %cst_138 : f32 to vector<64x1024xf32>
    %247 = vector.broadcast %cst_139 : f32 to vector<64x1024xf32>
    %248 = arith.select %245, %246, %247 : vector<64x1024xi1>, vector<64x1024xf32>
    %249 = arith.truncf %248 : vector<64x1024xf32> to vector<64x1024xbf16>
    %c0_140 = arith.constant 0 : index
    %c0_141 = arith.constant 0 : index
    %250 = vector.load %arg15[%c0_140, %c0_141] : memref<128x1024xbf16, #tpu.memory_space<vmem>>, vector<64x1024xbf16>
    tpu.vector_store %arg15[%c0_140, %c0_141], %249 {strides = array<i32>} : memref<128x1024xbf16, #tpu.memory_space<vmem>>, vector<64x1024xbf16>,
    %cst_142 = arith.constant 1.000000e+00 : f32
    %251 = vector.broadcast %cst_142 : f32 to vector<64x1024xf32>
    %252 = arith.subf %251, %248 : vector<64x1024xf32>
    %253 = arith.mulf %243, %252 : vector<64x1024xf32>
    %254 = vector.extract_strided_slice %237 {offsets = [64, 0], sizes = [64, 1024], strides = [1, 1]} : vector<128x1024xf32> to vector<64x1024xf32>
    %255 = arith.subf %254, %253 : vector<64x1024xf32>
    %cst_143 = arith.constant 5.000000e-01 : f32
    %256 = vector.broadcast %cst_143 : f32 to vector<64x1024xf32>
    %257 = arith.mulf %255, %256 : vector<64x1024xf32>
    %258 = arith.addf %253, %257 : vector<64x1024xf32>
    %cst_144 = arith.constant 1.000000e+00 : f32
    %259 = vector.broadcast %cst_144 : f32 to vector<64x1024xf32>
    %260 = arith.cmpf oge, %258, %259 : vector<64x1024xf32>
    %cst_145 = arith.constant 1.000000e+00 : f32
    %cst_146 = arith.constant 0.000000e+00 : f32
    %261 = vector.broadcast %cst_145 : f32 to vector<64x1024xf32>
    %262 = vector.broadcast %cst_146 : f32 to vector<64x1024xf32>
    %263 = arith.select %260, %261, %262 : vector<64x1024xi1>, vector<64x1024xf32>
    %264 = arith.truncf %263 : vector<64x1024xf32> to vector<64x1024xbf16>
    %c64_147 = arith.constant 64 : index
    %c0_148 = arith.constant 0 : index
    %265 = vector.load %arg15[%c64_147, %c0_148] : memref<128x1024xbf16, #tpu.memory_space<vmem>>, vector<64x1024xbf16>
    tpu.vector_store %arg15[%c64_147, %c0_148], %264 {strides = array<i32>} : memref<128x1024xbf16, #tpu.memory_space<vmem>>, vector<64x1024xbf16>,
    %c0_149 = arith.constant 0 : index
    %c0_150 = arith.constant 0 : index
    %266 = vector.load %arg15[%c0_149, %c0_150] : memref<128x1024xbf16, #tpu.memory_space<vmem>>, vector<128x1024xbf16>
    %c0_151 = arith.constant 0 : index
    %c0_152 = arith.constant 0 : index
    %267 = vector.load %arg6[%c0_151, %c0_152] : memref<1024x256xbf16, #tpu.memory_space<vmem>>, vector<1024x256xbf16>
    %cst_153 = arith.constant dense<0.000000e+00> : vector<128x256xf32>
    %268 = tpu.matmul %266, %267, %cst_153 {dimension_numbers = #tpu.dot_dimension_numbers<[1], [0], [0], [1], [0, 0, 1, 1], [], []>} : vector<128x1024xbf16>, vector<1024x256xbf16>, vector<128x256xf32> -> vector<128x256xf32>
    %269 = vector.extract_strided_slice %0 {offsets = [5, 0], sizes = [1, 256], strides = [1, 1]} : vector<8x256xf32> to vector<1x256xf32>
    %270 = vector.broadcast %269 : vector<1x256xf32> to vector<128x256xf32>
    %271 = arith.addf %268, %270 : vector<128x256xf32>
    %c0_154 = arith.constant 0 : index
    %c0_155 = arith.constant 0 : index
    %c0_156 = arith.constant 0 : index
    %272 = vector.load %arg1[%c0_154, %c0_155, %c0_156] : memref<2x64x256xf32, #tpu.memory_space<vmem>>, vector<1x64x256xf32>
    %273 = vector.shape_cast %272 : vector<1x64x256xf32> to vector<64x256xf32>
    %274 = vector.extract_strided_slice %197 {offsets = [0, 0], sizes = [64, 256], strides = [1, 1]} : vector<128x256xf32> to vector<64x256xf32>
    %275 = arith.addf %273, %274 : vector<64x256xf32>
    %276 = vector.extract_strided_slice %271 {offsets = [0, 0], sizes = [64, 256], strides = [1, 1]} : vector<128x256xf32> to vector<64x256xf32>
    %277 = arith.addf %275, %276 : vector<64x256xf32>
    %c0_157 = arith.constant 0 : index
    %c0_158 = arith.constant 0 : index
    %c0_159 = arith.constant 0 : index
    %278 = vector.load %arg9[%c0_157, %c0_158, %c0_159] : memref<2x64x256xf32, #tpu.memory_space<vmem>>, vector<1x64x256xf32>
    %279 = vector.shape_cast %278 : vector<1x64x256xf32> to vector<64x256xf32>
    %280 = vector.shape_cast %277 : vector<64x256xf32> to vector<1x64x256xf32>
    tpu.vector_store %arg9[%c0_157, %c0_158, %c0_159], %280 {strides = array<i32>} : memref<2x64x256xf32, #tpu.memory_space<vmem>>, vector<1x64x256xf32>,
    %c1_160 = arith.constant 1 : index
    %c0_161 = arith.constant 0 : index
    %c0_162 = arith.constant 0 : index
    %281 = vector.load %arg1[%c1_160, %c0_161, %c0_162] : memref<2x64x256xf32, #tpu.memory_space<vmem>>, vector<1x64x256xf32>
    %282 = vector.shape_cast %281 : vector<1x64x256xf32> to vector<64x256xf32>
    %283 = vector.extract_strided_slice %197 {offsets = [64, 0], sizes = [64, 256], strides = [1, 1]} : vector<128x256xf32> to vector<64x256xf32>
    %284 = arith.addf %282, %283 : vector<64x256xf32>
    %285 = vector.extract_strided_slice %271 {offsets = [64, 0], sizes = [64, 256], strides = [1, 1]} : vector<128x256xf32> to vector<64x256xf32>
    %286 = arith.addf %284, %285 : vector<64x256xf32>
    %c1_163 = arith.constant 1 : index
    %c0_164 = arith.constant 0 : index
    %c0_165 = arith.constant 0 : index
    %287 = vector.load %arg9[%c1_163, %c0_164, %c0_165] : memref<2x64x256xf32, #tpu.memory_space<vmem>>, vector<1x64x256xf32>
    %288 = vector.shape_cast %287 : vector<1x64x256xf32> to vector<64x256xf32>
    %289 = vector.shape_cast %286 : vector<64x256xf32> to vector<1x64x256xf32>
    tpu.vector_store %arg9[%c1_163, %c0_164, %c0_165], %289 {strides = array<i32>} : memref<2x64x256xf32, #tpu.memory_space<vmem>>, vector<1x64x256xf32>,
    return
  }
  func.func @transform_0(%arg0: i32) -> (i32, i32, i32) {
    %c0_i32 = arith.constant 0 : i32
    %c0_i32_0 = arith.constant 0 : i32
    %c0_i32_1 = arith.constant 0 : i32
    return %c0_i32, %arg0, %c0_i32_0 : i32, i32, i32
  }
  func.func @transform_1(%arg0: i32) -> (i32, i32, i32) {
    %c0_i32 = arith.constant 0 : i32
    %c0_i32_0 = arith.constant 0 : i32
    %c0_i32_1 = arith.constant 0 : i32
    %c0_i32_2 = arith.constant 0 : i32
    return %c0_i32, %c0_i32_0, %c0_i32_1 : i32, i32, i32
  }
  func.func @transform_2(%arg0: i32) -> (i32, i32, i32) {
    %c0_i32 = arith.constant 0 : i32
    %c0_i32_0 = arith.constant 0 : i32
    %c0_i32_1 = arith.constant 0 : i32
    %c0_i32_2 = arith.constant 0 : i32
    return %c0_i32, %c0_i32_0, %c0_i32_1 : i32, i32, i32
  }
  func.func @transform_3(%arg0: i32) -> (i32, i32) {
    %c0_i32 = arith.constant 0 : i32
    %c0_i32_0 = arith.constant 0 : i32
    %c0_i32_1 = arith.constant 0 : i32
    return %c0_i32, %c0_i32_0 : i32, i32
  }
  func.func @transform_4(%arg0: i32) -> (i32, i32) {
    %c0_i32 = arith.constant 0 : i32
    %c0_i32_0 = arith.constant 0 : i32
    %c0_i32_1 = arith.constant 0 : i32
    return %c0_i32, %c0_i32_0 : i32, i32
  }
  func.func @transform_5(%arg0: i32) -> (i32, i32) {
    %c0_i32 = arith.constant 0 : i32
    %c0_i32_0 = arith.constant 0 : i32
    %c0_i32_1 = arith.constant 0 : i32
    return %c0_i32, %c0_i32_0 : i32, i32
  }
  func.func @transform_6(%arg0: i32) -> (i32, i32) {
    %c0_i32 = arith.constant 0 : i32
    %c0_i32_0 = arith.constant 0 : i32
    %c0_i32_1 = arith.constant 0 : i32
    return %c0_i32, %c0_i32_0 : i32, i32
  }
  func.func @transform_7(%arg0: i32) -> (i32, i32) {
    %c0_i32 = arith.constant 0 : i32
    %c0_i32_0 = arith.constant 0 : i32
    %c0_i32_1 = arith.constant 0 : i32
    return %c0_i32, %c0_i32_0 : i32, i32
  }
  func.func @transform_8(%arg0: i32) -> (i32, i32, i32) {
    %c0_i32 = arith.constant 0 : i32
    %c0_i32_0 = arith.constant 0 : i32
    %c0_i32_1 = arith.constant 0 : i32
    return %c0_i32, %arg0, %c0_i32_0 : i32, i32, i32
  }
}

</mosaic_0001>

<bundles_post_ra>
// kernel: block_forward_slab.1
= control target key start
LH: loop header
LB: loop body
LE: loop exit
PB: predicated region body
PF: predicated region fallthrough
CT: control target
= control target key end

     0   :  { %s15610_s0 = inlined_call_operand.hbm [shape: f32[2,128,256], index: 0, kind: input, shape index: {}]   ;;  %s15611_s1 = inlined_call_operand.hbm [shape: bf16[2,128,128], index: 1, kind: input, shape index: {}]   ;;  %s15612_s2 = inlined_call_operand.hbm [shape: bf16[4,256,256], index: 2, kind: input, shape index: {}]   ;;  %s15613_s3 = inlined_call_operand.hbm [shape: bf16[768,256], index: 3, kind: input, shape index: {}]   ;;  %s15614_s4 = inlined_call_operand.hbm [shape: bf16[256,1024], index: 4, kind: input, shape index: {}]   ;;  %s15615_s5 = inlined_call_operand.hbm [shape: bf16[1024,256], index: 5, kind: input, shape index: {}]   ;;  %s15616_s6 = inlined_call_operand.hbm [shape: f32[8,256], index: 6, kind: input, shape index: {}]   ;;  %s15617_s7 = inlined_call_operand.hbm [shape: f32[1,1024], index: 7, kind: input, shape index: {}]   ;;  %s15618_s8 = inlined_call_operand.hbm [shape: f32[2,128,256], index: 8, kind: output, shape index: {}]  }
   0x1   :  { %15873 = sst [smem:[#allocation86_spill]] %s15611_s1 }
   0x2   :  { %15874 = sst [smem:[#allocation87_spill]] %s15618_s8 }
   0x3   :  { %13 = vsyncpa [#allocation9], 0 }
   0x4   :  { %15 = vsyncpa [#allocation9 + $0x1], 0 }
   0x5   :  { %16 = vsyncpa [#allocation12], 0 }
   0x6   :  { %17 = vsyncpa [#allocation15], 0 }
   0x7   :  { %18 = vsyncpa [#allocation18], 0 }
   0x8   :  { %19 = vsyncpa [#allocation21], 0 }
   0x9   :  { %20 = vsyncpa [#allocation10], 0 }
   0xa   :  { %22 = vsyncpa [#allocation10 + $0x1], 0  ;;  %s11059_s27 = smov 0   ;;  %s11061_s28 = smov 0  }
   0xb   :  { %s11063_s29 = smov 0   ;;  %s11065_s30 = smov 0  }
   0xc LB: > { %15875 = sst [smem:[#allocation34_spill]] %s10971_s27  ;;  %s11080_s9 = sadd.s32 4294967295, %s10983_s30   ;;  %s10983_s30 = sphi %s11065_s30, %s16567_s30   ;;  %s10979_s29 = sphi %s11063_s29, %s16571_s29   ;;  %s10975_s28 = sphi %s11061_s28, %s16570_s28   ;;  %s10971_s27 = sphi %s11059_s27, %s16569_s27  }
   0xd   : > { %15876 = sst [smem:[#allocation35_spill]] %s11080_s9  ;;  %s8545_s10 = sadd.s32 4294967294, %s10983_s30  }
   0xe   : > { %s11084_s11 = sadd.s32 1, %s10983_s30   ;;  %s35_s12 = sadd.s32 1, %s10979_s29 }
   0xf   : > { %15877 = sst [smem:[#allocation36_spill]] %s11084_s11  ;;  %s32_s13 = ssub.s32 %s10983_s30, %s11084_s11 }
  0x10   : > { %p42_p0 = scmp.ne.s32.totalorder %s10979_s29, %s10975_s28  ;;  %p33_p1 = scmp.eq.s32.totalorder %s32_s13, 0 }
  0x11   : > { %p43_p2 = scmp.eq.s32.totalorder %s10983_s30, 0  ;;  %p48_p3 = scmp.ne.s32.totalorder %s10975_s28, %s10971_s27 }
  0x12   : > { %p15621_p4 = scmp.eq.s32.totalorder %s11080_s9, 0  ;;  %p219_p7 = scmp.eq.s32.totalorder %s11080_s9, 1 }
  0x13   : > { %s11096_s14 = scalar_select %p33_p1, %s10979_s29, %s35_s12  }
  0x14   : > { %p11098_p5 = por %p43_p2, %p42_p0  ;;  %p11104_p6 = por %p15621_p4, %p48_p3 }
  0x15   : > { %15878 = sst [smem:[#allocation37_spill]] %s11096_s14  ;;  %p225_p8 = scmp.eq.s32.totalorder %s8545_s10, 1 }
  0x16   : > { %s15879_s15 = scalar_select %p11098_p5, 1, 0 }
  0x17   : > { %s15880_s16 = scalar_select %p11104_p6, 1, 0 }
  0x18   : > { %p8546_p9 = scmp.ge.s32.totalorder %s10983_s30, 1  ;;  %p232_p10 = scmp.lt.s32.totalorder %s10983_s30, 3 }
  0x19   : > { %p11111_p11 = por %p219_p7, %p42_p0  ;;  %p11115_p12 = por %p225_p8, %p48_p3 }
  0x1a   : > { %p11119_p13 = pnand %p8546_p9, %p232_p10  ;;  %s10985_s20 = smov [#allocation11]  }
  0x1b   : > { %s15881_s17 = scalar_select %p11111_p11, 1, 0 }
  0x1c   : > { %s15883_s18 = scalar_select %p11115_p12, 1, 0 }
  0x1d   : > { %15882 = sst [smem:[#allocation38_spill]] %s15881_s17  ;;  %p10050_p1 = pneg %p11119_p13 }
  0x1e   : > { %15884 = sst [smem:[#allocation39_spill]] %s15883_s18  ;;  %s244_s21 = sshll.u32 %s10985_s20, 4  ;;  %s245_s21 = int_to_ptr.vmem [resolvable:$true] %s244_s21 }
  0x1f   : > { %s15885_s19 = scalar_select %p11119_p13, 1, 0 }
  0x20   : > { %p11127_p2 = pnand %p10050_p1, %p15621_p4  ;;  %s10986_s23 = smov [#allocation14]  }
  0x21   : > { %s270_s24 = sshll.u32 %s10986_s23, 4  ;;  %s15887_s1 = sld [smem:[#allocation86_spill]]  ;;  %s271_s24 = int_to_ptr.vmem [resolvable:$true] %s270_s24 }
  0x22   : > { %p11139_p3 = pneg %p11127_p2 }
  0x27   : > { %s10733_s10 = scalar_lea.hbm %s15887_s1, 2048 }
  0x28   : > { %p10734_p0 = scmp.ne.s32.totalorder %s15887_s1, %s10733_s10  ;;  %p10740_p9 = scmp.lt.u32.totalorder %s10733_s10, %s15887_s1 }
  0x2a   : > { %p10736_p7 = pnand %p11139_p3, %p10734_p0 }
  0x2c   : > { %p10737_p8 = pneg %p10736_p7 }
  0x2e   : > { %p10742_p10 = pnand %p10740_p9, %p10737_p8 }
  0x30   : > { %10745 = shalt.err (!%p10742_p10)
}
  0x31   : > { %s10746_s23 = scalar_lea.vmem %s245_s21, 2048  ;;  %p10754_p11 = scmp.lt.s32.totalorder %s245_s21, %s245_s21 }
  0x32   : > { %p10747_p1 = scmp.ne.s32.totalorder %s245_s21, %s10746_s23  ;;  %p10755_p6 = scmp.lt.s32.totalorder %s10746_s23, %s10746_s23 }
  0x34   : > { %p10749_p4 = pnand %p10747_p1, %p11139_p3  ;;  %p10756_p13 = por %p10755_p6, %p10754_p11 }
  0x36   : > { %p10750_p12 = pneg %p10749_p4 }
  0x38   : > { %p10757_p5 = pnand %p10756_p13, %p10750_p12 }
  0x3a   : > { %10760 = shalt.err (!%p10757_p5)
}
  0x3b   : > { %s10987_s25 = smov 64   ;;  %s10988_s26 = smov 4  }
  0x3c   : > { %10053 = dma.hbm_to_vmem [thread:$0]  (!%p11127_p2), %s15887_s1, 2048, %s245_s21, [#allocation12], %s10987_s25, %s10987_s25, %s10988_s26  }
  0x3d   : > { %s10761_s13 = scalar_lea.hbm %s15613_s3, 12288 }
  0x3e   : > { %p10762_p4 = scmp.ne.s32.totalorder %s15613_s3, %s10761_s13  ;;  %p10768_p11 = scmp.lt.u32.totalorder %s10761_s13, %s15613_s3 }
  0x40   : > { %p10764_p5 = pnand %p10762_p4, %p11139_p3 }
  0x42   : > { %p10765_p6 = pneg %p10764_p5 }
  0x44   : > { %p10770_p12 = pnand %p10768_p11, %p10765_p6 }
  0x46   : > { %10773 = shalt.err (!%p10770_p12)
}
  0x47   : > { %s10774_s11 = scalar_lea.vmem %s271_s24, 12288  ;;  %p10782_p8 = scmp.lt.s32.totalorder %s271_s24, %s271_s24 }
  0x48   : > { %p10775_p13 = scmp.ne.s32.totalorder %s271_s24, %s10774_s11  ;;  %p10783_p9 = scmp.lt.s32.totalorder %s10774_s11, %s10774_s11 }
  0x4a   : > { %p10777_p0 = pnand %p10775_p13, %p11139_p3  ;;  %p10784_p10 = por %p10783_p9, %p10782_p8 }
  0x4c   : > { %p10778_p7 = pneg %p10777_p0 }
  0x4e   : > { %p10785_p1 = pnand %p10784_p10, %p10778_p7 }
  0x50   : > { %10788 = shalt.err (!%p10785_p1)
}
  0x51   : > { %s10989_s27 = smov 128   ;;  %s10990_s18 = smov 8  }
  0x52   : > { %10059 = dma.hbm_to_vmem [thread:$0]  (!%p11127_p2), %s15613_s3, 12288, %s271_s24, [#allocation15], %s10989_s27, %s10989_s27, %s10990_s18  }
  0x53   : > { %s10991_s25 = smov [#allocation17]   ;;  %s10992_s14 = smov [#allocation13]  }
  0x54   : > { %s296_s26 = sshll.u32 %s10991_s25, 4  ;;  %s257_s10 = sshll.u32 %s10992_s14, 4  ;;  %s297_s26 = int_to_ptr.vmem [resolvable:$true] %s296_s26  ;;  %s258_s10 = int_to_ptr.vmem [resolvable:$true] %s257_s10 }
  0x55   : > { %s10789_s23 = scalar_lea.hbm %s15615_s5, 16384 }
  0x56   : > { %p10790_p4 = scmp.ne.s32.totalorder %s15615_s5, %s10789_s23  ;;  %p10796_p11 = scmp.lt.u32.totalorder %s10789_s23, %s15615_s5 }
  0x58   : > { %p10792_p5 = pnand %p10790_p4, %p11139_p3 }
  0x5a   : > { %p10793_p6 = pneg %p10792_p5 }
  0x5c   : > { %p10798_p12 = pnand %p10796_p11, %p10793_p6 }
  0x5e   : > { %10801 = shalt.err (!%p10798_p12)
}
  0x5f   : > { %s10802_s24 = scalar_lea.vmem %s297_s26, 16384  ;;  %p10810_p8 = scmp.lt.s32.totalorder %s297_s26, %s297_s26 }
  0x60   : > { %p10803_p13 = scmp.ne.s32.totalorder %s297_s26, %s10802_s24  ;;  %p10811_p9 = scmp.lt.s32.totalorder %s10802_s24, %s10802_s24 }
  0x62   : > { %p10805_p0 = pnand %p10803_p13, %p11139_p3  ;;  %p10812_p10 = por %p10811_p9, %p10810_p8 }
  0x64   : > { %p10806_p7 = pneg %p10805_p0 }
  0x66   : > { %p10813_p1 = pnand %p10812_p10, %p10806_p7 }
  0x68   : > { %10816 = shalt.err (!%p10813_p1)
}
  0x69   : > { %10065 = dma.hbm_to_vmem [thread:$0]  (!%p11127_p2), %s15615_s5, 16384, %s297_s26, [#allocation18], %s10989_s27, %s10989_s27, %s10990_s18  }
  0x6a   : > { %s10817_s21 = scalar_lea.hbm %s15612_s2, 16384 }
  0x6b   : > { %p10818_p4 = scmp.ne.s32.totalorder %s15612_s2, %s10817_s21  ;;  %p10824_p11 = scmp.lt.u32.totalorder %s10817_s21, %s15612_s2 }
  0x6d   : > { %p10820_p5 = pnand %p10818_p4, %p11139_p3 }
  0x6f   : > { %p10821_p6 = pneg %p10820_p5 }
  0x71   : > { %p10826_p12 = pnand %p10824_p11, %p10821_p6 }
  0x73   : > { %10829 = shalt.err (!%p10826_p12)
}
  0x74   : > { %s10830_s23 = scalar_lea.vmem %s258_s10, 16384  ;;  %p10838_p8 = scmp.lt.s32.totalorder %s258_s10, %s258_s10 }
  0x75   : > { %p10831_p13 = scmp.ne.s32.totalorder %s258_s10, %s10830_s23  ;;  %p10839_p9 = scmp.lt.s32.totalorder %s10830_s23, %s10830_s23 }
  0x77   : > { %p10833_p0 = pnand %p10831_p13, %p11139_p3  ;;  %p10840_p10 = por %p10839_p9, %p10838_p8 }
  0x79   : > { %p10834_p7 = pneg %p10833_p0 }
  0x7b   : > { %p10841_p1 = pnand %p10840_p10, %p10834_p7 }
  0x7d   : > { %10844 = shalt.err (!%p10841_p1)
}
  0x7e   : > { %10056 = dma.hbm_to_vmem [thread:$0]  (!%p11127_p2), %s15612_s2, 16384, %s258_s10, [#allocation12], %s10989_s27, %s10989_s27, %s10990_s18  }
  0x7f   : > { %s10993_s24 = smov [#allocation16]   ;;  %s10845_s8 = scalar_lea.hbm %s15614_s4, 16384 }
  0x80   : > { %s283_s1 = sshll.u32 %s10993_s24, 4  ;;  %p10846_p4 = scmp.ne.s32.totalorder %s15614_s4, %s10845_s8  ;;  %s284_s1 = int_to_ptr.vmem [resolvable:$true] %s283_s1 }
  0x81   : > { %p10852_p11 = scmp.lt.u32.totalorder %s10845_s8, %s15614_s4 }
  0x82   : > { %p10848_p5 = pnand %p10846_p4, %p11139_p3 }
  0x84   : > { %p10849_p6 = pneg %p10848_p5 }
  0x86   : > { %p10854_p12 = pnand %p10852_p11, %p10849_p6 }
  0x88   : > { %10857 = shalt.err (!%p10854_p12)
}
  0x89   : > { %s10858_s27 = scalar_lea.vmem %s284_s1, 16384  ;;  %p10866_p8 = scmp.lt.s32.totalorder %s284_s1, %s284_s1 }
  0x8a   : > { %p10859_p13 = scmp.ne.s32.totalorder %s284_s1, %s10858_s27  ;;  %p10867_p9 = scmp.lt.s32.totalorder %s10858_s27, %s10858_s27 }
  0x8c   : > { %p10861_p0 = pnand %p10859_p13, %p11139_p3  ;;  %p10868_p10 = por %p10867_p9, %p10866_p8 }
  0x8e   : > { %p10862_p7 = pneg %p10861_p0 }
  0x90   : > { %p10869_p1 = pnand %p10868_p10, %p10862_p7 }
  0x92   : > { %10872 = shalt.err (!%p10869_p1)
}
  0x93   : > { %s10994_s18 = smov 512   ;;  %s10995_s10 = smov 32  }
  0x94   : > { %10062 = dma.hbm_to_vmem [thread:$0]  (!%p11127_p2), %s15614_s4, 16384, %s284_s1, [#allocation15], %s10994_s18, %s10994_s18, %s10995_s10  }
  0x95   : > { %s10996_s26 = smov [#allocation19]   ;;  %s10997_s24 = smov [#allocation20]  }
  0x96   : > { %s310_s11 = sshll.u32 %s10996_s26, 4  ;;  %s321_s9 = sshll.u32 %s10997_s24, 4  ;;  %s311_s11 = int_to_ptr.vmem [resolvable:$true] %s310_s11  ;;  %s11236_s9 = int_to_ptr.vmem [resolvable:$true] %s321_s9 }
  0x97   : > { %s10873_s21 = scalar_lea.hbm %s15616_s6, 256 }
  0x98   : > { %p10874_p4 = scmp.ne.s32.totalorder %s15616_s6, %s10873_s21  ;;  %p10880_p11 = scmp.lt.u32.totalorder %s10873_s21, %s15616_s6 }
  0x9a   : > { %p10876_p5 = pnand %p10874_p4, %p11139_p3 }
  0x9c   : > { %p10877_p6 = pneg %p10876_p5 }
  0x9e   : > { %p10882_p12 = pnand %p10880_p11, %p10877_p6 }
  0xa0   : > { %10885 = shalt.err (!%p10882_p12)
}
  0xa1   : > { %s10886_s27 = scalar_lea.vmem %s311_s11, 256  ;;  %p10894_p8 = scmp.lt.s32.totalorder %s311_s11, %s311_s11 }
  0xa2   : > { %p10887_p13 = scmp.ne.s32.totalorder %s311_s11, %s10886_s27  ;;  %p10895_p9 = scmp.lt.s32.totalorder %s10886_s27, %s10886_s27 }
  0xa4   : > { %p10889_p0 = pnand %p10887_p13, %p11139_p3  ;;  %p10896_p10 = por %p10895_p9, %p10894_p8 }
  0xa6   : > { %p10890_p7 = pneg %p10889_p0 }
  0xa8   : > { %p10897_p1 = pnand %p10896_p10, %p10890_p7 }
  0xaa   : > { %10900 = shalt.err (!%p10897_p1)
}
  0xab   : > { %10068 = dma.hbm_to_vmem [thread:$0]  (!%p11127_p2), %s15616_s6, 256, %s311_s11, [#allocation18]  }
  0xac   : > { %s10901_s26 = scalar_lea.hbm %s15617_s7, 128 }
  0xad   : > { %p10902_p4 = scmp.ne.s32.totalorder %s15617_s7, %s10901_s26  ;;  %p10908_p11 = scmp.lt.u32.totalorder %s10901_s26, %s15617_s7 }
  0xaf   : > { %p10904_p5 = pnand %p10902_p4, %p11139_p3 }
  0xb1   : > { %p10905_p6 = pneg %p10904_p5 }
  0xb3   : > { %p10910_p12 = pnand %p10908_p11, %p10905_p6 }
  0xb5   : > { %10913 = shalt.err (!%p10910_p12)
}
  0xb6   : > { %s10914_s11 = scalar_lea.vmem %s11236_s9, 128  ;;  %p10922_p8 = scmp.lt.s32.totalorder %s11236_s9, %s11236_s9 }
  0xb7   : > { %p10915_p13 = scmp.ne.s32.totalorder %s11236_s9, %s10914_s11  ;;  %p10923_p9 = scmp.lt.s32.totalorder %s10914_s11, %s10914_s11 }
  0xb9   : > { %p10917_p0 = pnand %p10915_p13, %p11139_p3  ;;  %p10924_p10 = por %p10923_p9, %p10922_p8 }
  0xbb   : > { %p10918_p7 = pneg %p10917_p0 }
  0xbd   : > { %p10925_p1 = pnand %p10924_p10, %p10918_p7 }
  0xbf   : > { %10928 = shalt.err (!%p10925_p1)
}
  0xc0   : > { %10071 = dma.hbm_to_vmem [thread:$0]  (!%p11127_p2), %s15617_s7, 128, %s11236_s9, [#allocation21]  }
  0xc1   : > { %p8554_p4 = scmp.ge.s32.totalorder %s10983_s30, 2 }
  0xc3   : > { %328 = sbr.rel (%p8554_p4) target bundleno = 217 (0xd9), region = 44 }
  0xca   : > { %s332_s20 = sand.u32 1, %s10979_s29   ;;  %s9234_s12 = sshll.u32 %s10983_s30, 11 }
  0xcb   : > { %s8555_s22 = sshll.u32 %s332_s20, 8  ;;  %s343_s9 = scalar_lea.hbm %s15610_s0, %s9234_s12 }
  0xcc   : > { %p15889_p2 = scmp.ne.s32.totalorder %s15879_s15, 0  ;;  %s336_s10 = scalar_lea.vmem [#allocation8], %s8555_s22 }
  0xcd   : > { %s356_s13 = sshll.u32 %s336_s10, 4  ;;  %s10998_s26 = smov 4096   ;;  %s357_s13 = int_to_ptr.vmem [resolvable:$true] %s356_s13 }
  0xce   : > { %s10019_s18 = scalar_select %p15889_p2, [#allocation0], [#allocation27] }
  0xcf   : > { %10020 = sst [smem:[#allocation24]] (%p15889_p2), %s10998_s26  ;;  %s10999_s24 = smov 2048  }
  0xd0   : > { %s348_s23 = sld [smem:[%s10019_s18]]   ;;  %s11000_s17 = smov 8  }
  0xd1   : > { %10021 = sst [smem:[#allocation24 + $0x1]] (%p15889_p2), %s10999_s24  ;;  %s11001_s8 = smov 256  }
  0xd2   : > { %10022 = sst [smem:[#allocation24 + $0x2]] (%p15889_p2), %s11000_s17  ;;  %s11002_s11 = smov 16  }
  0xd3   : > { %10023 = sst [smem:[#allocation24 + $0x3]] (%p15889_p2), %s11001_s8  ;;  %s333_s14 = scalar_lea.sflag [#allocation9], %s332_s20 }
  0xd4   : > { %10024 = sst [smem:[#allocation24 + $0x4]] (%p15889_p2), %s11001_s8  ;;  %s11003_s12 = smov [#allocation23]  }
  0xd5   : > { %10025 = sst [smem:[#allocation24 + $0x5]] (%p15889_p2), %s11002_s11 }
  0xd6   : > { %s8559_s21 = sshll.u32 %s348_s23, 26 }
  0xd7   : > { %s8560_s25 = sadd.s32 134217728, %s8559_s21 }
  0xd8   : > { %10026 = dma.general (%p15889_p2), %s343_s9, 4096, %s357_s13, %s333_s14, %s11003_s12, [#allocation24], %s8560_s25, 0  }
  0xd9 PF: > { %p15890_p3 = scmp.ne.s32.totalorder %s15885_s19, 0 }
  0xdb   : > { %381 = sbr.rel (%p15890_p3) target bundleno = 2463 (0x99f), region = 52 }
  0xe2   : > { %s11306_s22 = sand.u32 1, %s10975_s28   ;;  %p15891_p5 = scmp.ne.s32.totalorder %s15880_s16, 0 }
  0xe3   : > { %s8562_s1 = sshll.u32 %s11306_s22, 8  ;;  %s384_s27 = scalar_lea.sflag [#allocation9], %s11306_s22 }
  0xe4   : > { %s11312_s18 = scalar_lea.vmem [#allocation8], %s8562_s1 }
  0xe5   : > { %10946 = dma.done.wait (%p15891_p5), %s384_s27, 4096  }
  0xe6   : > { %10948 = vsyncadd (%p15891_p5), %s384_s27, 4294963200  ;;  %s15892_s15 = sld [smem:[#allocation35_spill]] }
  0xec   : > { %p15893_p6 = scmp.eq.s32.totalorder %s15892_s15, 0 }
  0xee   : > { %10950 = dma.done.wait (%p15893_p6), [#allocation12], 18432   ;;  %p15894_p11 = pmov %p15893_p6 }
  0xef   : > { %p15895_p12 = pmov %p15893_p6 }
  0xf0   : > { %10952 = vsyncadd (%p15894_p11), [#allocation12], 4294948864 }
  0xf1   : > { %10954 = dma.done.wait (%p15895_p12), [#allocation15], 28672   ;;  %p15896_p13 = pmov %p15893_p6 }
  0xf2   : > { %p15897_p0 = pmov %p15893_p6 }
  0xf3   : > { %10956 = vsyncadd (%p15896_p13), [#allocation15], 4294938624 }
  0xf4   : > { %10958 = dma.done.wait (%p15897_p0), [#allocation18], 16640   ;;  %p15898_p7 = pmov %p15897_p0 }
  0xf5   : > { %p15899_p8 = pmov %p15897_p0 }
  0xf6   : > { %10960 = vsyncadd (%p15898_p7), [#allocation18], 4294950656 }
  0xf7   : > { %10962 = dma.done.wait (%p15899_p8), [#allocation21], 128   ;;  %p15900_p9 = pmov %p15897_p0 }
  0xf8   : > { %v15637_v0 = vmov 0   ;;  %v618_v1 = vld [vmem:[%s11312_s18 + $0x8] sm:$0xff]  ;;  %v620_v2 = vld [vmem:[%s11312_s18 + $0x18] sm:$0xff]  ;;  %v617_v3 = vld [vmem:[%s11312_s18] sm:$0xff]  ;;  %v1323_v8 = vlaneseq  ;;  %v15901_v12 = vmov 0  ;;  %v15904_v14 = vmov 0 }
  0xf9   : > { %10964 = vsyncadd (%p15900_p9), [#allocation21], 4294967168  ;;  %986 = vmatprep.mubr.bf16.mxu0 %v15637_v0  ;;  %2205 = vmatprep.mubr.bf16.mxu1 %v15637_v0  ;;  %v11339_v4 = vmul.f32 0.5, %v618_v1  ;;  %v11341_v5 = vmul.f32 0.5, %v620_v2  ;;  %v619_v6 = vld [vmem:[%s11312_s18 + $0x10] sm:$0xff]  ;;  %v11344_v7 = vmul.f32 0.5, %v617_v3 }
  0xfa   : > { %v11346_v9 = vmul.f32 0.5, %v619_v6  ;;  %v622_v10 = vld [vmem:[%s11312_s18 + $0x28] sm:$0xff]  ;;  %v624_v11 = vld [vmem:[%s11312_s18 + $0x38] sm:$0xff]  ;;  %v15640_v13 = vmov 1.0|1.0   ;;  %v11369_v15 = vshrl.u32 %v1323_v8, 7 }
  0xfb   : > { %vm666_vm0 = vcmp.ge.f32.partialorder %v11339_v4, 1.0  ;;  %vm668_vm1 = vcmp.ge.f32.partialorder %v11341_v5, 1.0  ;;  %vm665_vm2 = vcmp.ge.f32.partialorder %v11344_v7, 1.0  ;;  %v11371_v16 = vmul.f32 0.5, %v622_v10  ;;  %v621_v18 = vld [vmem:[%s11312_s18 + $0x20] sm:$0xff]  ;;  %v623_v21 = vld [vmem:[%s11312_s18 + $0x30] sm:$0xff] }
  0xfc   : > { %vm11357_vm3 = vmpackc.low %vm668_vm1, %vm666_vm0  ;;  %vm667_vm4 = vcmp.ge.f32.partialorder %v11346_v9, 1.0  ;;  %15907 = vst [vmem:[#allocation42_spill] sm:$0xff] %v11369_v15  ;;  %v11373_v17 = vmul.f32 0.5, %v624_v11  ;;  %v15642_v19 = vmov 0.0   ;;  %vm15633_vm6 = vcmp.lt.s32.totalorder %v11369_v15, 1  ;;  %v626_v32 = vld [vmem:[%s11312_s18 + $0x48] sm:$0xff] }
  0xfd   : > { %v15902_v12 = vsel %vm11357_vm3, 4294967295, %v15901_v12  ;;  %9238 = vmatprep.subr.msk.bf16.mxu0 %vm11357_vm3, %v15640_v13  ;;  %vm11365_vm5 = vmpackc.low %vm667_vm4, %vm665_vm2  ;;  %v11377_v20 = vsel %vm665_vm2, 1.0, %v15642_v19  ;;  %v11384_v22 = vsel %vm667_vm4, 1.0, %v15642_v19  ;;  %vm15632_vm7 = vcmp.lt.s32.totalorder %v11369_v15, 7  ;;  %v628_v33 = vld [vmem:[%s11312_s18 + $0x58] sm:$0xff]  ;;  %v625_v34 = vld [vmem:[%s11312_s18 + $0x40] sm:$0xff] }
  0xfe   : > { %15903 = vst [vmem:[#allocation40_spill] sm:$0xff] %v15902_v12  ;;  %v15905_v14 = vsel %vm11365_vm5, 4294967295, %v15904_v14  ;;  %15908 = vst [vmem:[#allocation43_spill] sm:$0xff] %v11377_v20  ;;  %9240 = vmatpush1.bf16.msk.msra.mxu0 %vm11365_vm5, %v15640_v13  ;;  %v15639_v23 = vrot.slane %v11377_v20, 7  ;;  %v15636_v24 = vrot.slane %v11384_v22, 7  ;;  %v15634_v25 = vrot.slane %v11377_v20, 1 }
  0xff   : > { %15906 = vst [vmem:[#allocation41_spill] sm:$0xff] %v15905_v14  ;;  %15909 = vst [vmem:[#allocation44_spill] sm:$0xff] %v11384_v22  ;;  %v3444_v26 = vrot.slane %v11384_v22, 1  ;;  %v11392_v27 = vmul.f32 0.5, %v621_v18  ;;  %vm670_vm8 = vcmp.ge.f32.partialorder %v11371_v16, 1.0  ;;  %vm672_vm9 = vcmp.ge.f32.partialorder %v11373_v17, 1.0 }
 0x100   : > { %v11396_v28 = vmul.f32 0.5, %v623_v21  ;;  %v11404_v29 = vsel %vm15633_vm6, %v15639_v23, %v15636_v24  ;;  %vm11416_vm10 = vmpackc.low %vm672_vm9, %vm670_vm8  ;;  %v15912_v31 = vmov 0  ;;  %v15915_v35 = vmov 0  ;;  %v627_v38 = vld [vmem:[%s11312_s18 + $0x50] sm:$0xff]  ;;  %v630_v43 = vld [vmem:[%s11312_s18 + $0x68] sm:$0xff]  ;;  %s15476_s16 = scalar_lea.vmem [#allocation22], %s8562_s1 }
 0x101   : > { %15910 = vst [vmem:[#allocation45_spill] sm:$0xff] %v11404_v29  ;;  %v11410_v30 = vsel %vm15632_vm7, %v15634_v25, %v3444_v26  ;;  %v15913_v31 = vsel %vm11416_vm10, 4294967295, %v15912_v31  ;;  %9242 = vmatprep.subr.msk.bf16.mxu0 %vm11416_vm10, %v15640_v13  ;;  %vm669_vm11 = vcmp.ge.f32.partialorder %v11392_v27, 1.0  ;;  %v11434_v36 = vmul.f32 0.5, %v626_v32  ;;  %v632_v47 = vld [vmem:[%s11312_s18 + $0x78] sm:$0xff]  ;;  %v629_v49 = vld [vmem:[%s11312_s18 + $0x60] sm:$0xff] }
 0x102   : > { %15911 = vst [vmem:[#allocation46_spill] sm:$0xff] %v11410_v30  ;;  %15914 = vst [vmem:[#allocation47_spill] sm:$0xff] %v15913_v31  ;;  %vm671_vm12 = vcmp.ge.f32.partialorder %v11396_v28, 1.0  ;;  %v11436_v37 = vmul.f32 0.5, %v628_v33  ;;  %v11442_v39 = vsel %vm666_vm0, 1.0, %v15642_v19  ;;  %v11445_v40 = vsel %vm669_vm11, 1.0, %v15642_v19 }
 0x103   : > { %vm11430_vm13 = vmpackc.low %vm671_vm12, %vm669_vm11  ;;  %15918 = vst [vmem:[#allocation49_spill] sm:$0xff] %v11442_v39  ;;  %v11453_v41 = vsel %vm668_vm1, 1.0, %v15642_v19  ;;  %v15635_v42 = vrot.slane %v11445_v40, 1  ;;  %vm674_vm14 = vcmp.ge.f32.partialorder %v11434_v36, 1.0  ;;  %v15921_v44 = vmov 0  ;;  %v631_v50 = vld [vmem:[%s11312_s18 + $0x70] sm:$0xff] }
 0x104   : > { %v15916_v35 = vsel %vm11430_vm13, 4294967295, %v15915_v35  ;;  %15919 = vst [vmem:[#allocation50_spill] sm:$0xff] %v11445_v40  ;;  %9244 = vmatpush1.bf16.msk.msra.mxu0 %vm11430_vm13, %v15640_v13  ;;  %15920 = vst [vmem:[#allocation51_spill] sm:$0xff] %v11453_v41  ;;  %vm676_vm15 = vcmp.ge.f32.partialorder %v11436_v37, 1.0  ;;  %v11467_v45 = vmul.f32 0.5, %v625_v34  ;;  %v11469_v46 = vmul.f32 0.5, %v627_v38 }
 0x105   : > { %15917 = vst [vmem:[#allocation48_spill] sm:$0xff] %v15916_v35  ;;  %vm11463_vm0 = vmpackc.low %vm676_vm15, %vm674_vm14  ;;  %v11476_v48 = vsel %vm15632_vm7, %v3444_v26, %v15635_v42  ;;  %v714_v51 = vsub.f32 1.0, %v11442_v39  ;;  %v716_v52 = vsub.f32 1.0, %v11453_v41  ;;  %v11489_v54 = vmul.f32 0.5, %v630_v43  ;;  %v8572_v6 = vld [vmem:[%s11312_s18 + $0x88] sm:$0xff]  ;;  %v8574_v18 = vld [vmem:[%s11312_s18 + $0x98] sm:$0xff] }
 0x106   : > { %v15922_v44 = vsel %vm11463_vm0, 4294967295, %v15921_v44  ;;  %15924 = vst [vmem:[#allocation53_spill] sm:$0xff] %v11476_v48  ;;  %9246 = vmatprep.subr.msk.bf16.mxu0 %vm11463_vm0, %v15640_v13  ;;  %vm673_vm1 = vcmp.ge.f32.partialorder %v11467_v45, 1.0  ;;  %vm675_vm2 = vcmp.ge.f32.partialorder %v11469_v46, 1.0  ;;  %v11491_v55 = vmul.f32 0.5, %v632_v47  ;;  %v8573_v26 = vld [vmem:[%s11312_s18 + $0x90] sm:$0xff] }
 0x107   : > { %15923 = vst [vmem:[#allocation52_spill] sm:$0xff] %v15922_v44  ;;  %v713_v56 = vsub.f32 1.0, %v11377_v20  ;;  %v715_v57 = vsub.f32 1.0, %v11384_v22  ;;  %vm11499_vm4 = vmpackc.low %vm675_vm2, %vm673_vm1  ;;  %v15925_v58 = vmov 0  ;;  %v11503_v59 = vmul.f32 0.5, %v629_v49  ;;  %v8576_v32 = vld [vmem:[%s11312_s18 + $0xa8] sm:$0xff] }
 0x108   : > { %v15926_v58 = vsel %vm11499_vm4, 4294967295, %v15925_v58  ;;  %v11505_v60 = vmul.f32 0.5, %v631_v50  ;;  %v11510_v61 = vsel %vm670_vm8, 1.0, %v15642_v19  ;;  %v11515_v62 = vsel %vm672_vm9, 1.0, %v15642_v19  ;;  %9248 = vmatpush1.bf16.msk.msra.mxu0 %vm11499_vm4, %v15640_v13  ;;  %v8578_v33 = vld [vmem:[%s11312_s18 + $0xb8] sm:$0xff]  ;;  %v8575_v34 = vld [vmem:[%s11312_s18 + $0xa0] sm:$0xff] }
 0x109   : > { %15927 = vst [vmem:[#allocation54_spill] sm:$0xff] %v15926_v58  ;;  %15928 = vst [vmem:[#allocation55_spill] sm:$0xff] %v11510_v61  ;;  %v11523_v63 = vsel %vm671_vm12, 1.0, %v15642_v19  ;;  %vm678_vm11 = vcmp.ge.f32.partialorder %v11489_v54, 1.0  ;;  %vm680_vm8 = vcmp.ge.f32.partialorder %v11491_v55, 1.0  ;;  %v730_v1 = vmul.f32 %v714_v51, %v11339_v4  ;;  %s8362_s19 = scalar_lea.sflag [#allocation10], %s11306_s22 }
 0x10a   : > { %v732_v2 = vmul.f32 %v716_v52, %v11341_v5  ;;  %vm11533_vm9 = vmpackc.low %vm680_vm8, %vm678_vm11  ;;  %v15929_v3 = vmov 0  ;;  %vm15646_vm12 = vcmp.ge.f32.partialorder %v11503_v59, 1.0  ;;  %vm15645_vm7 = vcmp.ge.f32.partialorder %v11505_v60, 1.0  ;;  %v10216_v31 = vld [vmem:[#allocation13 + $0x224] ss:$8 sps:$4 sm:$0xff]  }
 0x10b   : > { %v15930_v3 = vsel %vm11533_vm9, 4294967295, %v15929_v3  ;;  %v729_v4 = vmul.f32 %v713_v56, %v11344_v7  ;;  %v731_v5 = vmul.f32 %v715_v57, %v11346_v9  ;;  %v718_v8 = vsub.f32 1.0, %v11510_v61  ;;  %9250 = vmatprep.subr.msk.bf16.mxu0 %vm11533_vm9, %v15640_v13  ;;  %vm11551_vm6 = vmpackc.low %vm15645_vm7, %vm15646_vm12  ;;  %v8571_v7 = vld [vmem:[%s11312_s18 + $0x80] sm:$0xff]  ;;  %v8577_v57 = vld [vmem:[%s11312_s18 + $0xb0] sm:$0xff] }
 0x10c   : > { %15931 = vst [vmem:[#allocation56_spill] sm:$0xff] %v15930_v3  ;;  %v720_v10 = vsub.f32 1.0, %v11515_v62  ;;  %v15932_v11 = vmov 0  ;;  %v717_v9 = vsub.f32 1.0, %v11445_v40  ;;  %v719_v21 = vsub.f32 1.0, %v11523_v63  ;;  %9252 = vmatpush1.bf16.msk.msra.mxu0 %vm11551_vm6, %v15640_v13 }
 0x10d   : > { %v15933_v11 = vsel %vm11551_vm6, 4294967295, %v15932_v11  ;;  %v11569_v38 = vsel %vm674_vm14, 1.0, %v15642_v19  ;;  %v11574_v43 = vsel %vm676_vm15, 1.0, %v15642_v19  ;;  %v763_v47 = vsub.f32 %v8572_v6, %v730_v1 }
 0x10e   : > { %15934 = vst [vmem:[#allocation57_spill] sm:$0xff] %v15933_v11  ;;  %v765_v49 = vsub.f32 %v8574_v18, %v732_v2  ;;  %v762_v50 = vsub.f32 %v8571_v7, %v729_v4  ;;  %v764_v51 = vsub.f32 %v8573_v26, %v731_v5  ;;  %v734_v52 = vmul.f32 %v718_v8, %v11371_v16  ;;  %v8585_v11 = vld [vmem:[%s11312_s18 + $0xf0] sm:$0xff] }
 0x10f   : > { %v736_v56 = vmul.f32 %v720_v10, %v11373_v17  ;;  %v779_v53 = vmul.f32 0.5, %v763_v47  ;;  %v733_v42 = vmul.f32 %v717_v9, %v11392_v27  ;;  %v735_v24 = vmul.f32 %v719_v21, %v11396_v28 }
 0x110   : > { %v781_v25 = vmul.f32 0.5, %v765_v49  ;;  %v778_v0 = vmul.f32 0.5, %v762_v50  ;;  %v780_v23 = vmul.f32 0.5, %v764_v51  ;;  %v767_v13 = vsub.f32 %v8576_v32, %v734_v52  ;;  %v8580_v50 = vld [vmem:[%s11312_s18 + $0xc8] sm:$0xff]  ;;  %v8582_v51 = vld [vmem:[%s11312_s18 + $0xd8] sm:$0xff] }
 0x111   : > { %v769_v19 = vsub.f32 %v8578_v33, %v736_v56  ;;  %v11581_v30 = vadd.f32 %v779_v53, %v730_v1  ;;  %v766_v18 = vsub.f32 %v8575_v34, %v733_v42  ;;  %v768_v7 = vsub.f32 %v8577_v57, %v735_v24 }
 0x112   : > { %v11583_v6 = vadd.f32 %v781_v25, %v732_v2  ;;  %v11585_v16 = vadd.f32 %v778_v0, %v729_v4  ;;  %v11587_v17 = vadd.f32 %v780_v23, %v731_v5  ;;  %v783_v8 = vmul.f32 0.5, %v767_v13 }
 0x113   : > { %15935 = vst [vmem:[#allocation58_spill] sm:$0xff] %v11581_v30  ;;  %v785_v10 = vmul.f32 0.5, %v769_v19  ;;  %v15939_v26 = vmov 0.0   ;;  %vm15671_vm14 = vcmp.ge.f32.partialorder %v11581_v30, 1.0  ;;  %v15940_v0 = vmov 0 }
 0x114   : > { %15936 = vst [vmem:[#allocation59_spill] sm:$0xff] %v11583_v6  ;;  %15937 = vst [vmem:[#allocation60_spill] sm:$0xff] %v11585_v16  ;;  %v11592_v27 = vsel %vm673_vm1, 1.0, %v15939_v26  ;;  %v11597_v28 = vsel %vm675_vm2, 1.0, %v15939_v26  ;;  %vm15649_vm15 = vcmp.ge.f32.partialorder %v11583_v6, 1.0  ;;  %vm15648_vm1 = vcmp.ge.f32.partialorder %v11585_v16, 1.0 }
 0x115   : > { %15938 = vst [vmem:[#allocation61_spill] sm:$0xff] %v11587_v17  ;;  %vm11605_vm7 = vmpackc.low %vm15649_vm15, %vm15671_vm14  ;;  %vm15647_vm12 = vcmp.ge.f32.partialorder %v11587_v17, 1.0  ;;  %v782_v13 = vmul.f32 0.5, %v766_v18  ;;  %v784_v19 = vmul.f32 0.5, %v768_v7  ;;  %v722_v23 = vsub.f32 1.0, %v11569_v38 }
 0x116   : > { %v15941_v0 = vsel %vm11605_vm7, 4294967295, %v15940_v0  ;;  %v724_v25 = vsub.f32 1.0, %v11574_v43  ;;  %v15943_v53 = vmov 1.0|1.0   ;;  %vm11620_vm2 = vmpackc.low %vm15647_vm12, %vm15648_vm1  ;;  %v15944_v1 = vmov 0 }
 0x117   : > { %15942 = vst [vmem:[#allocation62_spill] sm:$0xff] %v15941_v0  ;;  %9254 = vmatprep.subr.msk.bf16.mxu0 %vm11605_vm7, %v15943_v53  ;;  %v15945_v1 = vsel %vm11620_vm2, 4294967295, %v15944_v1  ;;  %v721_v2 = vsub.f32 1.0, %v11592_v27  ;;  %v723_v4 = vsub.f32 1.0, %v11597_v28  ;;  %v11629_v5 = vadd.f32 %v783_v8, %v734_v52  ;;  %v8579_v8 = vld [vmem:[%s11312_s18 + $0xc0] sm:$0xff] }
 0x118   : > { %15946 = vst [vmem:[#allocation63_spill] sm:$0xff] %v15945_v1  ;;  %9256 = vmatpush1.bf16.msk.msra.mxu0 %vm11620_vm2, %v15943_v53  ;;  %v11631_v9 = vadd.f32 %v785_v10, %v736_v56  ;;  %v11636_v21 = vsel %vm678_vm11, 1.0, %v15939_v26  ;;  %v11641_v32 = vsel %vm680_vm8, 1.0, %v15939_v26  ;;  %vm15949_vm12 = vcmp.ge.f32.partialorder %v11503_v59, 1.0  ;;  %v8581_v10 = vld [vmem:[%s11312_s18 + $0xd0] sm:$0xff]  ;;  %v8586_v1 = vld [vmem:[%s11312_s18 + $0xf8] sm:$0xff] }
 0x119   : > { %15947 = vst [vmem:[#allocation64_spill] sm:$0xff] %v11629_v5  ;;  %v11646_v33 = vsel %vm15949_vm12, 1.0, %v15939_v26  ;;  %vm15950_vm1 = vcmp.ge.f32.partialorder %v11505_v60, 1.0  ;;  %vm15670_vm15 = vcmp.ge.f32.partialorder %v11629_v5, 1.0  ;;  %v11655_v47 = vadd.f32 %v782_v13, %v733_v42  ;;  %v8583_v0 = vld [vmem:[%s11312_s18 + $0xe0] sm:$0xff] }
 0x11a   : > { %15948 = vst [vmem:[#allocation65_spill] sm:$0xff] %v11631_v9  ;;  %v11651_v34 = vsel %vm15950_vm1, 1.0, %v15939_v26  ;;  %vm15650_vm11 = vcmp.ge.f32.partialorder %v11631_v9, 1.0  ;;  %v11657_v49 = vadd.f32 %v784_v19, %v735_v24  ;;  %v15954_v52 = vmov 0  ;;  %v10223_v9 = vld [vmem:[#allocation13 + $0x250] ss:$8 sps:$4 sm:$0xff]  }
 0x11b   : > { %15951 = vst [vmem:[#allocation66_spill] sm:$0xff] %v11651_v34  ;;  %15952 = vst [vmem:[#allocation67_spill] sm:$0xff] %v11655_v47  ;;  %v738_v56 = vmul.f32 %v722_v23, %v11434_v36  ;;  %v740_v57 = vmul.f32 %v724_v25, %v11436_v37  ;;  %v726_v42 = vsub.f32 1.0, %v11636_v21  ;;  %v728_v24 = vsub.f32 1.0, %v11641_v32  ;;  %v8584_v25 = vld [vmem:[%s11312_s18 + $0xe8] sm:$0xff] }
 0x11c   : > { %15953 = vst [vmem:[#allocation68_spill] sm:$0xff] %v11657_v49  ;;  %vm11665_vm8 = vmpackc.low %vm15650_vm11, %vm15670_vm15  ;;  %v725_v18 = vsub.f32 1.0, %v11646_v33  ;;  %v727_v7 = vsub.f32 1.0, %v11651_v34  ;;  %vm15669_vm12 = vcmp.ge.f32.partialorder %v11655_v47, 1.0  ;;  %vm15668_vm1 = vcmp.ge.f32.partialorder %v11657_v49, 1.0 }
 0x11d   : > { %v15955_v52 = vsel %vm11665_vm8, 4294967295, %v15954_v52  ;;  %9258 = vmatprep.subr.msk.bf16.mxu0 %vm11665_vm8, %v15943_v53  ;;  %v771_v36 = vsub.f32 %v8580_v50, %v738_v56  ;;  %v773_v37 = vsub.f32 %v8582_v51, %v740_v57  ;;  %vm11686_vm11 = vmpackc.low %vm15668_vm1, %vm15669_vm12  ;;  %v15957_v13 = vmov 0  ;;  %v10228_v16 = vld [vmem:[#allocation13 + $0x264] ss:$8 sps:$4 sm:$0xff]  }
 0x11e   : > { %15956 = vst [vmem:[#allocation69_spill] sm:$0xff] %v15955_v52  ;;  %v15958_v13 = vsel %vm11686_vm11, 4294967295, %v15957_v13  ;;  %v737_v19 = vmul.f32 %v721_v2, %v11467_v45  ;;  %v739_v23 = vmul.f32 %v723_v4, %v11469_v46  ;;  %9260 = vmatpush1.bf16.msk.msra.mxu0 %vm11686_vm11, %v15943_v53  ;;  %v742_v3 = vmul.f32 %v726_v42, %v11489_v54  ;;  %v10162_v42 = vld [vmem:[#allocation13 + $0x4] ss:$8 sps:$4 sm:$0xff]  }
 0x11f   : > { %15959 = vst [vmem:[#allocation70_spill] sm:$0xff] %v15958_v13  ;;  %v787_v50 = vmul.f32 0.5, %v771_v36  ;;  %v789_v51 = vmul.f32 0.5, %v773_v37  ;;  %v744_v58 = vmul.f32 %v728_v24, %v11491_v55  ;;  %v741_v45 = vmul.f32 %v725_v18, %v11503_v59  ;;  %v10160_v24 = vld [vmem:[#allocation13] ss:$8 sps:$4 sm:$0xff]  }
 0x120   : > { %v770_v48 = vsub.f32 %v8579_v8, %v737_v19  ;;  %v772_v52 = vsub.f32 %v8581_v10, %v739_v23  ;;  %v743_v46 = vmul.f32 %v727_v7, %v11505_v60  ;;  %v775_v37 = vsub.f32 %v8584_v25, %v742_v3 }
 0x121   : > { %v11703_v2 = vadd.f32 %v787_v50, %v738_v56  ;;  %v11705_v4 = vadd.f32 %v789_v51, %v740_v57  ;;  %v777_v8 = vsub.f32 %v8586_v1, %v744_v58  ;;  %v774_v10 = vsub.f32 %v8583_v0, %v741_v45  ;;  %v10163_v50 = vld [vmem:[#allocation13 + $0x10] ss:$8 sps:$4 sm:$0xff]  }
 0x122   : > { %v786_v13 = vmul.f32 0.5, %v770_v48  ;;  %v788_v36 = vmul.f32 0.5, %v772_v52  ;;  %v776_v44 = vsub.f32 %v8585_v11, %v743_v46  ;;  %v15964_v59 = vmov 0 }
 0x123   : > { %15960 = vst [vmem:[#allocation71_spill] sm:$0xff] %v11703_v2  ;;  %15961 = vst [vmem:[#allocation72_spill] sm:$0xff] %v11705_v4  ;;  %vm15675_vm1 = vcmp.ge.f32.partialorder %v11703_v2, 1.0  ;;  %vm15674_vm12 = vcmp.ge.f32.partialorder %v11705_v4, 1.0  ;;  %v791_v48 = vmul.f32 0.5, %v775_v37  ;;  %v793_v60 = vmul.f32 0.5, %v777_v8 }
 0x124   : > { %v11709_v54 = vadd.f32 %v786_v13, %v737_v19  ;;  %v11711_v55 = vadd.f32 %v788_v36, %v739_v23  ;;  %vm11717_vm15 = vmpackc.low %vm15674_vm12, %vm15675_vm1  ;;  %v15968_v1 = vmov 0  ;;  %v790_v52 = vmul.f32 0.5, %v774_v10  ;;  %v10165_v19 = vld [vmem:[#allocation13 + $0x14] ss:$8 sps:$4 sm:$0xff]   ;;  %v10153_v36 = vld [vmem:[#allocation11 + $0x8] sm:$0xff]  }
 0x125   : > { %v15965_v59 = vsel %vm11717_vm15, 4294967295, %v15964_v59  ;;  %9262 = vmatprep.subr.msk.bf16.mxu0 %vm11717_vm15, %v15943_v53  ;;  %v11726_v11 = vadd.f32 %v791_v48, %v742_v3  ;;  %v11728_v0 = vadd.f32 %v793_v60, %v744_v58  ;;  %v792_v56 = vmul.f32 0.5, %v776_v44  ;;  %v10152_v44 = vld [vmem:[#allocation11] sm:$0xff]   ;;  %v10171_v8 = vld [vmem:[#allocation13 + $0x34] ss:$8 sps:$4 sm:$0xff]  }
 0x126   : > { %15962 = vst [vmem:[#allocation73_spill] sm:$0xff] %v11709_v54  ;;  %15963 = vst [vmem:[#allocation74_spill] sm:$0xff] %v11711_v55  ;;  %vm15679_vm14 = vcmp.ge.f32.partialorder %v11709_v54, 1.0  ;;  %vm15678_vm11 = vcmp.ge.f32.partialorder %v11711_v55, 1.0  ;;  %v11743_v58 = vadd.f32 %v790_v52, %v741_v45  ;;  %v15972_v57 = vmov 0  ;;  %v10154_v60 = vld [vmem:[#allocation11 + $0x10] sm:$0xff]  }
 0x127   : > { %15966 = vst [vmem:[#allocation75_spill] sm:$0xff] %v15965_v59  ;;  %15967 = vst [vmem:[#allocation76_spill] sm:$0xff] %v11726_v11  ;;  %vm15684_vm1 = vcmp.ge.f32.partialorder %v11726_v11, 1.0  ;;  %vm15686_vm15 = vcmp.ge.f32.partialorder %v11728_v0, 1.0  ;;  %v808_v3 = vadd.f32 %v792_v56, %v743_v46  ;;  %v15976_v7 = vmov 0 }
 0x128   : > { %vm11734_vm12 = vmpackc.low %vm15678_vm11, %vm15679_vm14  ;;  %15971 = vst [vmem:[#allocation78_spill] sm:$0xff] %v11743_v58  ;;  %vm15685_vm14 = vcmp.ge.f32.partialorder %v11743_v58, 1.0  ;;  %v15979_v23 = vrot.slane %v11377_v20, 7  ;;  %v10168_v45 = vld [vmem:[#allocation13 + $0x24] ss:$8 sps:$4 sm:$0xff]   ;;  %v15982_v46 = vmov 0  }
 0x129   : > { %v15969_v1 = vsel %vm11734_vm12, 4294967295, %v15968_v1  ;;  %9264 = vmatpush1.bf16.msk.msra.mxu0 %vm11734_vm12, %v15943_v53  ;;  %vm11749_vm11 = vmpackc.low %vm15686_vm15, %vm15684_vm1  ;;  %vm824_vm12 = vcmp.ge.f32.partialorder %v808_v3, 1.0  ;;  %vm15980_vm1 = vcmp.lt.s32.totalorder %v11369_v15, 1  ;;  %v10166_v37 = vld [vmem:[#allocation13 + $0x20] ss:$8 sps:$4 sm:$0xff]  }
 0x12a   : > { %15970 = vst [vmem:[#allocation77_spill] sm:$0xff] %v15969_v1  ;;  %v15973_v57 = vsel %vm11749_vm11, 4294967295, %v15972_v57  ;;  %9266 = vmatprep.subr.msk.bf16.mxu0 %vm11749_vm11, %v15943_v53  ;;  %v11758_v18 = vsel %vm824_vm12, 1.0, %v15939_v26  ;;  %vm11762_vm8 = vmpackc.low %vm824_vm12, %vm15685_vm14  ;;  %v10169_v10 = vld [vmem:[#allocation13 + $0x30] ss:$8 sps:$4 sm:$0xff]  }
 0x12b   : > { %15974 = vst [vmem:[#allocation79_spill] sm:$0xff] %v15973_v57  ;;  %15975 = vst [vmem:[#allocation80_spill] sm:$0xff] %v11758_v18  ;;  %v15977_v7 = vsel %vm11762_vm8, 4294967295, %v15976_v7  ;;  %v15693_v13 = vrot.slane %v11758_v18, 7  ;;  %v10174_v48 = vld [vmem:[#allocation13 + $0x44] ss:$8 sps:$4 sm:$0xff]  }
 0x12c   : > { %15978 = vst [vmem:[#allocation81_spill] sm:$0xff] %v15977_v7  ;;  %v10172_v52 = vld [vmem:[#allocation13 + $0x40] ss:$8 sps:$4 sm:$0xff]   ;;  %v10177_v56 = vld [vmem:[#allocation13 + $0x54] ss:$8 sps:$4 sm:$0xff]  }
 0x12d   : > { %9268 = vmatpush1.bf16.msk.msra.mxu0 %vm11762_vm8, %v15943_v53  ;;  %v11776_v25 = vsel %vm15980_vm1, %v15693_v13, %v15979_v23  ;;  %v10175_v3 = vld [vmem:[#allocation13 + $0x50] ss:$8 sps:$4 sm:$0xff]   ;;  %v10222_v4 = vld [vmem:[#allocation13 + $0x244] ss:$8 sps:$4 sm:$0xff]  }
 0x12e   : > { %1491 = vmatprep.subr.bf16.mxu0 %v10162_v42  ;;  %15981 = vst [vmem:[#allocation82_spill] sm:$0xff] %v11776_v25  ;;  %v10155_v42 = vld [vmem:[#allocation11 + $0x18] sm:$0xff]  }
 0x12f   : > { %v10181_v23 = vld [vmem:[#allocation13 + $0x70] ss:$8 sps:$4 sm:$0xff]  }
 0x130   : > { %987 = vmatmul.mubr.bf16.vlgmr.msra.gmra.mrb[0].mxu0 %v10152_v44  ;;  %v10180_v44 = vld [vmem:[#allocation13 + $0x64] ss:$8 sps:$4 sm:$0xff]   ;;  %v10211_v1 = vld [vmem:[#allocation13 + $0x210] ss:$8 sps:$4 sm:$0xff]  }
 0x131   : > { %996 = vmatprep.mubr.bf16.mxu0 %v15982_v46  ;;  %1492 = vmatpush1.bf16.msra.mxu0 %v10160_v24  ;;  %v10178_v24 = vld [vmem:[#allocation13 + $0x60] ss:$8 sps:$4 sm:$0xff]   ;;  %v10217_v11 = vld [vmem:[#allocation13 + $0x230] ss:$8 sps:$4 sm:$0xff]  }
 0x132   : > { %1493 = vmatprep.subr.bf16.mxu0 %v10165_v19  ;;  %v10183_v19 = vld [vmem:[#allocation13 + $0x74] ss:$8 sps:$4 sm:$0xff]  }
 0x135   : > { %1494 = vmatpush1.bf16.msra.mxu0 %v10163_v50  ;;  %v10186_v50 = vld [vmem:[#allocation13 + $0x84] ss:$8 sps:$4 sm:$0xff]  }
 0x136   : > { %1495 = vmatprep.subr.bf16.mxu0 %v10168_v45  ;;  %v10156_v45 = vld [vmem:[#allocation11 + $0x20] sm:$0xff]  }
 0x138   : > { %997 = vmatmul.mubr.bf16.gmra.mrb[4].mxu0 %v10153_v36  ;;  %v10184_v36 = vld [vmem:[#allocation13 + $0x80] ss:$8 sps:$4 sm:$0xff]  }
 0x139   : > { %1006 = vmatprep.mubr.bf16.mxu0 %v15982_v46  ;;  %1496 = vmatpush1.bf16.msra.mxu0 %v10166_v37  ;;  %v10189_v37 = vld [vmem:[#allocation13 + $0x94] ss:$8 sps:$4 sm:$0xff]  }
 0x13a   : > { %1497 = vmatprep.subr.bf16.mxu0 %v10171_v8  ;;  %v10187_v8 = vld [vmem:[#allocation13 + $0x90] ss:$8 sps:$4 sm:$0xff]  }
 0x13d   : > { %1498 = vmatpush1.bf16.msra.mxu0 %v10169_v10  ;;  %v10192_v10 = vld [vmem:[#allocation13 + $0xa4] ss:$8 sps:$4 sm:$0xff]  }
 0x13e   : > { %1499 = vmatprep.subr.bf16.mxu0 %v10174_v48  ;;  %v10157_v48 = vld [vmem:[#allocation11 + $0x28] sm:$0xff]  }
 0x140   : > { %1007 = vmatmul.mubr.bf16.gmra.mrb[8].mxu0 %v10154_v60  ;;  %v10190_v60 = vld [vmem:[#allocation13 + $0xa0] ss:$8 sps:$4 sm:$0xff]  }
 0x141   : > { %1016 = vmatprep.mubr.bf16.mxu0 %v15982_v46  ;;  %1500 = vmatpush1.bf16.msra.mxu0 %v10172_v52  ;;  %v10195_v52 = vld [vmem:[#allocation13 + $0xb4] ss:$8 sps:$4 sm:$0xff]  }
 0x142   : > { %1501 = vmatprep.subr.bf16.mxu0 %v10177_v56  ;;  %v10193_v56 = vld [vmem:[#allocation13 + $0xb0] ss:$8 sps:$4 sm:$0xff]  }
 0x145   : > { %1502 = vmatpush1.bf16.msra.mxu0 %v10175_v3  ;;  %v10198_v3 = vld [vmem:[#allocation13 + $0xc4] ss:$8 sps:$4 sm:$0xff]  }
 0x146   : > { %1503 = vmatprep.subr.bf16.mxu0 %v10180_v44  ;;  %v10158_v44 = vld [vmem:[#allocation11 + $0x30] sm:$0xff]  }
 0x148   : > { %1017 = vmatmul.mubr.bf16.gmra.mrb[12].mxu0 %v10155_v42  ;;  %v10196_v42 = vld [vmem:[#allocation13 + $0xc0] ss:$8 sps:$4 sm:$0xff]  }
 0x149   : > { %1026 = vmatprep.mubr.bf16.mxu0 %v15982_v46  ;;  %1504 = vmatpush1.bf16.msra.mxu0 %v10178_v24  ;;  %v10201_v24 = vld [vmem:[#allocation13 + $0xd4] ss:$8 sps:$4 sm:$0xff]  }
 0x14a   : > { %1505 = vmatprep.subr.bf16.mxu0 %v10183_v19  ;;  %v10199_v19 = vld [vmem:[#allocation13 + $0xd0] ss:$8 sps:$4 sm:$0xff]  }
 0x14d   : > { %1506 = vmatpush1.bf16.msra.mxu0 %v10181_v23  ;;  %v10159_v23 = vld [vmem:[#allocation11 + $0x38] sm:$0xff]  }
 0x14e   : > { %1507 = vmatprep.subr.bf16.mxu0 %v10186_v50  ;;  %v10204_v50 = vld [vmem:[#allocation13 + $0xe4] ss:$8 sps:$4 sm:$0xff]  }
 0x150   : > { %1027 = vmatmul.mubr.bf16.gmra.mrb[16].mxu0 %v10156_v45  ;;  %v10202_v45 = vld [vmem:[#allocation13 + $0xe0] ss:$8 sps:$4 sm:$0xff]  }
 0x151   : > { %1036 = vmatprep.mubr.bf16.mxu0 %v15982_v46  ;;  %1508 = vmatpush1.bf16.msra.mxu0 %v10184_v36  ;;  %v10207_v36 = vld [vmem:[#allocation13 + $0xf4] ss:$8 sps:$4 sm:$0xff]  }
 0x152   : > { %1509 = vmatprep.subr.bf16.mxu0 %v10189_v37  ;;  %v10205_v37 = vld [vmem:[#allocation13 + $0xf0] ss:$8 sps:$4 sm:$0xff]  }
 0x155   : > { %1510 = vmatpush1.bf16.msra.mxu0 %v10187_v8  ;;  %v10210_v8 = vld [vmem:[#allocation13 + $0x204] ss:$8 sps:$4 sm:$0xff]  }
 0x156   : > { %1511 = vmatprep.subr.bf16.mxu0 %v10192_v10 }
 0x158   : > { %1037 = vmatmul.mubr.bf16.gmra.mrb[20].mxu0 %v10157_v48 }
 0x159   : > { %1046 = vmatprep.mubr.bf16.mxu0 %v15982_v46  ;;  %1512 = vmatpush1.bf16.msra.mxu0 %v10190_v60 }
 0x15a   : > { %1513 = vmatprep.subr.bf16.mxu0 %v10195_v52 }
 0x15d   : > { %1514 = vmatpush1.bf16.msra.mxu0 %v10193_v56 }
 0x15e   : > { %1515 = vmatprep.subr.bf16.mxu0 %v10198_v3 }
 0x160   : > { %1047 = vmatmul.mubr.bf16.gmra.mrb[24].mxu0 %v10158_v44 }
 0x161   : > { %1056 = vmatprep.mubr.bf16.mxu0 %v15982_v46  ;;  %1516 = vmatpush1.bf16.msra.mxu0 %v10196_v42 }
 0x162   : > { %1517 = vmatprep.subr.bf16.mxu0 %v10201_v24 }
 0x165   : > { %1518 = vmatpush1.bf16.msra.mxu0 %v10199_v19 }
 0x166   : > { %1519 = vmatprep.subr.bf16.mxu0 %v10204_v50 }
 0x168   : > { %1057 = vmatmul.mubr.bf16.gmra.mrb[28].mxu0 %v10159_v23 }
 0x169   : > { %1520 = vmatpush1.bf16.msra.mxu0 %v10202_v45 }
 0x16a   : > { %1521 = vmatprep.subr.bf16.mxu0 %v10207_v36 }
 0x16d   : > { %1522 = vmatpush1.bf16.msra.mxu0 %v10205_v37 }
 0x16e   : > { %1996 = vmatprep.subr.bf16.mxu0 %v10210_v8 }
 0x203   : > { %v11787_v10 = vpop.f32.mrb[0].mxu0 }
 0x204   : > { %vm1083_vm12 = vcmp.ge.f32.partialorder %v11787_v10, 1.0  ;;  %vm1115_vm1 = vcmp.le.f32.partialorder %v11787_v10, -1.0  ;;  %v11791_v48 = vpop.f32.mrb[1].mxu0 }
 0x205   : > { %vm1084_vm14 = vcmp.ge.f32.partialorder %v11791_v48, 1.0  ;;  %vm1116_vm15 = vcmp.le.f32.partialorder %v11791_v48, -1.0  ;;  %v11795_v60 = vpop.f32.mrb[2].mxu0  ;;  %v1099_v52 = vsel %vm1083_vm12, 1.0, %v15939_v26  ;;  %v1131_v56 = vsel %vm1115_vm1, 1.0, %v15939_v26 }
 0x206   : > { %v1100_v3 = vsel %vm1084_vm14, 1.0, %v15939_v26  ;;  %vm1085_vm8 = vcmp.ge.f32.partialorder %v11795_v60, 1.0  ;;  %v11801_v44 = vpop.f32.mrb[3].mxu0  ;;  %v1132_v42 = vsel %vm1116_vm15, 1.0, %v15939_v26  ;;  %vm1117_vm11 = vcmp.le.f32.partialorder %v11795_v60, -1.0 }
 0x207   : > { %v1101_v24 = vsel %vm1085_vm8, 1.0, %v15939_v26  ;;  %vm1086_vm2 = vcmp.ge.f32.partialorder %v11801_v44, 1.0  ;;  %v1133_v19 = vsel %vm1117_vm11, 1.0, %v15939_v26  ;;  %vm1118_vm12 = vcmp.le.f32.partialorder %v11801_v44, -1.0 }
 0x208   : > { %v1102_v23 = vsel %vm1086_vm2, 1.0, %v15939_v26  ;;  %v11810_v50 = vsub.f32 %v1099_v52, %v1131_v56  ;;  %v11812_v45 = vsub.f32 %v1101_v24, %v1133_v19  ;;  %v1134_v36 = vsel %vm1118_vm12, 1.0, %v15939_v26  ;;  %v10208_v56 = vld [vmem:[#allocation13 + $0x200] ss:$8 sps:$4 sm:$0xff]  }
 0x209   : > { %v11815_v37 = vsub.f32 %v1100_v3, %v1132_v42  ;;  %v11817_v8 = vsub.f32 %v1102_v23, %v1134_v36  ;;  %v10213_v42 = vld [vmem:[#allocation13 + $0x214] ss:$8 sps:$4 sm:$0xff]  }
 0x20a   : > { %v1163_v51 = vpack.c.bf16 %v11812_v45, %v11810_v50 }
 0x20b   : > { %v11821_v13 = vpop.f32.mrb[4].mxu0  ;;  %v1164_v52 = vpack.c.bf16 %v11817_v8, %v11815_v37 }
 0x20c   : > { %vm1087_vm14 = vcmp.ge.f32.partialorder %v11821_v13, 1.0  ;;  %vm1119_vm15 = vcmp.le.f32.partialorder %v11821_v13, -1.0  ;;  %v11825_v20 = vpop.f32.mrb[5].mxu0 }
 0x20d   : > { %vm1088_vm2 = vcmp.ge.f32.partialorder %v11825_v20, 1.0  ;;  %vm1120_vm11 = vcmp.le.f32.partialorder %v11825_v20, -1.0  ;;  %v11831_v3 = vpop.f32.mrb[6].mxu0  ;;  %v1103_v24 = vsel %vm1087_vm14, 1.0, %v15939_v26  ;;  %v1135_v19 = vsel %vm1119_vm15, 1.0, %v15939_v26  ;;  %1523 = vmatprep.mubr.bf16.mxu0 %v1164_v52 }
 0x20e   : > { %v1104_v23 = vsel %vm1088_vm2, 1.0, %v15939_v26  ;;  %vm1089_vm8 = vcmp.ge.f32.partialorder %v11831_v3, 1.0  ;;  %v11837_v36 = vpop.f32.mrb[7].mxu0  ;;  %v1136_v25 = vsel %vm1120_vm11, 1.0, %v15939_v26  ;;  %vm1121_vm1 = vcmp.le.f32.partialorder %v11831_v3, -1.0  ;;  %1524 = vmatmul.mubr.bf16.vlgmr.msra.gmra.mrb[32].mxu0 %v1163_v51 }
 0x20f   : > { %v1105_v29 = vsel %vm1089_vm8, 1.0, %v15939_v26  ;;  %vm1090_vm12 = vcmp.ge.f32.partialorder %v11837_v36, 1.0  ;;  %v1137_v7 = vsel %vm1121_vm1, 1.0, %v15939_v26  ;;  %vm1122_vm14 = vcmp.le.f32.partialorder %v11837_v36, -1.0  ;;  %1997 = vmatpush1.bf16.msra.mxu0 %v10208_v56 }
 0x210   : > { %v1106_v57 = vsel %vm1090_vm12, 1.0, %v15939_v26  ;;  %v11846_v52 = vsub.f32 %v1103_v24, %v1135_v19  ;;  %v11848_v59 = vsub.f32 %v1105_v29, %v1137_v7  ;;  %v1138_v35 = vsel %vm1122_vm14, 1.0, %v15939_v26  ;;  %1998 = vmatprep.subr.bf16.mxu0 %v10213_v42  ;;  %v10214_v7 = vld [vmem:[#allocation13 + $0x220] ss:$8 sps:$4 sm:$0xff]  }
 0x211   : > { %v11851_v14 = vsub.f32 %v1104_v23, %v1136_v25  ;;  %v11853_v18 = vsub.f32 %v1106_v57, %v1138_v35  ;;  %v10219_v57 = vld [vmem:[#allocation13 + $0x234] ss:$8 sps:$4 sm:$0xff]  }
 0x212   : > { %v1165_v12 = vpack.c.bf16 %v11848_v59, %v11846_v52 }
 0x213   : > { %v11855_v51 = vpop.f32.mrb[8].mxu0  ;;  %v1166_v29 = vpack.c.bf16 %v11853_v18, %v11851_v14  ;;  %1999 = vmatpush1.bf16.msra.mxu0 %v10211_v1 }
 0x214   : > { %vm1091_vm15 = vcmp.ge.f32.partialorder %v11855_v51, 1.0  ;;  %vm1123_vm2 = vcmp.le.f32.partialorder %v11855_v51, -1.0  ;;  %v11861_v56 = vpop.f32.mrb[9].mxu0  ;;  %2000 = vmatprep.subr.bf16.mxu0 %v10216_v31 }
 0x215   : > { %vm1092_vm11 = vcmp.ge.f32.partialorder %v11861_v56, 1.0  ;;  %vm1124_vm8 = vcmp.le.f32.partialorder %v11861_v56, -1.0  ;;  %v11867_v35 = vpop.f32.mrb[10].mxu0  ;;  %v1107_v25 = vsel %vm1091_vm15, 1.0, %v15939_v26  ;;  %v1139_v42 = vsel %vm1123_vm2, 1.0, %v15939_v26  ;;  %1533 = vmatprep.mubr.bf16.mxu0 %v1166_v29 }
 0x216   : > { %v1108_v24 = vsel %vm1092_vm11, 1.0, %v15939_v26  ;;  %vm1093_vm1 = vcmp.ge.f32.partialorder %v11867_v35, 1.0  ;;  %v11873_v19 = vpop.f32.mrb[11].mxu0  ;;  %v1140_v1 = vsel %vm1124_vm8, 1.0, %v15939_v26  ;;  %vm1125_vm12 = vcmp.le.f32.partialorder %v11867_v35, -1.0  ;;  %1534 = vmatmul.mubr.bf16.gmra.mrb[36].mxu0 %v1165_v12 }
 0x217   : > { %v1109_v23 = vsel %vm1093_vm1, 1.0, %v15939_v26  ;;  %vm1094_vm14 = vcmp.ge.f32.partialorder %v11873_v19, 1.0  ;;  %v1141_v31 = vsel %vm1125_vm12, 1.0, %v15939_v26  ;;  %vm1126_vm15 = vcmp.le.f32.partialorder %v11873_v19, -1.0  ;;  %2001 = vmatpush1.bf16.msra.mxu0 %v10214_v7 }
 0x218   : > { %v1110_v58 = vsel %vm1094_vm14, 1.0, %v15939_v26  ;;  %v11882_v29 = vsub.f32 %v1107_v25, %v1139_v42  ;;  %v11884_v55 = vsub.f32 %v1109_v23, %v1141_v31  ;;  %v1142_v54 = vsel %vm1126_vm15, 1.0, %v15939_v26  ;;  %2002 = vmatprep.subr.bf16.mxu0 %v10219_v57  ;;  %v10220_v57 = vld [vmem:[#allocation13 + $0x240] ss:$8 sps:$4 sm:$0xff]  }
 0x219   : > { %v11887_v22 = vsub.f32 %v1108_v24, %v1140_v1  ;;  %v11889_v2 = vsub.f32 %v1110_v58, %v1142_v54  ;;  %v10225_v58 = vld [vmem:[#allocation13 + $0x254] ss:$8 sps:$4 sm:$0xff]  }
 0x21a   : > { %v1167_v49 = vpack.c.bf16 %v11884_v55, %v11882_v29 }
 0x21b   : > { %v11891_v12 = vpop.f32.mrb[12].mxu0  ;;  %v1168_v25 = vpack.c.bf16 %v11889_v2, %v11887_v22  ;;  %2003 = vmatpush1.bf16.msra.mxu0 %v10217_v11 }
 0x21c   : > { %vm1095_vm2 = vcmp.ge.f32.partialorder %v11891_v12, 1.0  ;;  %vm1127_vm11 = vcmp.le.f32.partialorder %v11891_v12, -1.0  ;;  %v11897_v7 = vpop.f32.mrb[13].mxu0  ;;  %2004 = vmatprep.subr.bf16.mxu0 %v10222_v4 }
 0x21d   : > { %vm1096_vm8 = vcmp.ge.f32.partialorder %v11897_v7, 1.0  ;;  %vm1128_vm1 = vcmp.le.f32.partialorder %v11897_v7, -1.0  ;;  %v11903_v54 = vpop.f32.mrb[14].mxu0  ;;  %v1111_v42 = vsel %vm1095_vm2, 1.0, %v15939_v26  ;;  %v1143_v24 = vsel %vm1127_vm11, 1.0, %v15939_v26  ;;  %1543 = vmatprep.mubr.bf16.mxu0 %v1168_v25 }
 0x21e   : > { %v1112_v1 = vsel %vm1096_vm8, 1.0, %v15939_v26  ;;  %vm1097_vm12 = vcmp.ge.f32.partialorder %v11903_v54, 1.0  ;;  %v11909_v23 = vpop.f32.mrb[15].mxu0  ;;  %v1144_v11 = vsel %vm1128_vm1, 1.0, %v15939_v26  ;;  %vm1129_vm14 = vcmp.le.f32.partialorder %v11903_v54, -1.0  ;;  %1544 = vmatmul.mubr.bf16.gmra.mrb[40].mxu0 %v1167_v49 }
 0x21f   : > { %v1113_v31 = vsel %vm1097_vm12, 1.0, %v15939_v26  ;;  %vm1098_vm15 = vcmp.ge.f32.partialorder %v11909_v23, 1.0  ;;  %v1145_v4 = vsel %vm1129_vm14, 1.0, %v15939_v26  ;;  %vm1130_vm2 = vcmp.le.f32.partialorder %v11909_v23, -1.0  ;;  %2005 = vmatpush1.bf16.msra.mxu0 %v10220_v57 }
 0x220   : > { %v1114_v47 = vsel %vm1098_vm15, 1.0, %v15939_v26  ;;  %v11918_v25 = vsub.f32 %v1111_v42, %v1143_v24  ;;  %v11920_v5 = vsub.f32 %v1113_v31, %v1145_v4  ;;  %v1146_v17 = vsel %vm1130_vm2, 1.0, %v15939_v26  ;;  %2006 = vmatprep.subr.bf16.mxu0 %v10225_v58 }
 0x221   : > { %v11923_v6 = vsub.f32 %v1112_v1, %v1144_v11  ;;  %v11925_v30 = vsub.f32 %v1114_v47, %v1146_v17  ;;  %v1179_v49 = vsub.f32 %v11787_v10, %v11810_v50  ;;  %v1180_v57 = vsub.f32 %v11791_v48, %v11815_v37  ;;  %v10226_v17 = vld [vmem:[#allocation13 + $0x260] ss:$8 sps:$4 sm:$0xff]   ;;  %v10231_v10 = vld [vmem:[#allocation13 + $0x274] ss:$8 sps:$4 sm:$0xff]  }
 0x222   : > { %v1169_v42 = vpack.c.bf16 %v11920_v5, %v11918_v25  ;;  %v1181_v58 = vsub.f32 %v11795_v60, %v11812_v45  ;;  %v1183_v4 = vsub.f32 %v11821_v13, %v11846_v52  ;;  %v1185_v52 = vsub.f32 %v11831_v3, %v11848_v59 }
 0x223   : > { %v1028_v34 = vpop.f32.mrb[16].mxu0  ;;  %v1170_v1 = vpack.c.bf16 %v11925_v30, %v11923_v6  ;;  %2007 = vmatpush1.bf16.msra.mxu0 %v10223_v9  ;;  %v10229_v9 = vld [vmem:[#allocation13 + $0x270] ss:$8 sps:$4 sm:$0xff]   ;;  %v1186_v59 = vsub.f32 %v11837_v36, %v11853_v18  ;;  %v1187_v3 = vsub.f32 %v11855_v51, %v11882_v29  ;;  %v10240_v18 = vld [vmem:[#allocation13 + $0x2a4] ss:$8 sps:$4 sm:$0xff]  }
 0x224   : > { %v1195_v24 = vadd.f32 %v1179_v49, %v1028_v34  ;;  %v1030_v31 = vpop.f32.mrb[17].mxu0  ;;  %2008 = vmatprep.subr.bf16.mxu0 %v10228_v16  ;;  %v1182_v34 = vsub.f32 %v11801_v44, %v11817_v8  ;;  %v10234_v49 = vld [vmem:[#allocation13 + $0x284] ss:$8 sps:$4 sm:$0xff]   ;;  %v1184_v8 = vsub.f32 %v11825_v20, %v11851_v14 }
 0x225   : > { %v1196_v47 = vadd.f32 %v1180_v57, %v1030_v31  ;;  %v1032_v11 = vpop.f32.mrb[18].mxu0  ;;  %1553 = vmatprep.mubr.bf16.mxu0 %v1170_v1 }
 0x226   : > { %vm1211_vm11 = vcmp.ge.f32.partialorder %v1195_v24, 1.0  ;;  %vm1243_vm8 = vcmp.le.f32.partialorder %v1195_v24, -1.0  ;;  %v1197_v48 = vadd.f32 %v1181_v58, %v1032_v11  ;;  %v1034_v50 = vpop.f32.mrb[19].mxu0  ;;  %1554 = vmatmul.mubr.bf16.gmra.mrb[44].mxu0 %v1169_v42 }
 0x227   : > { %v1227_v60 = vsel %vm1211_vm11, 1.0, %v15939_v26  ;;  %v1259_v45 = vsel %vm1243_vm8, 1.0, %v15939_v26  ;;  %2009 = vmatpush1.bf16.msra.mxu0 %v10226_v17  ;;  %v1198_v16 = vadd.f32 %v1182_v34, %v1034_v50  ;;  %vm1212_vm14 = vcmp.ge.f32.partialorder %v1196_v47, 1.0  ;;  %v10232_v17 = vld [vmem:[#allocation13 + $0x280] ss:$8 sps:$4 sm:$0xff]  }
 0x228   : > { %vm1213_vm1 = vcmp.ge.f32.partialorder %v1197_v48, 1.0  ;;  %vm1245_vm12 = vcmp.le.f32.partialorder %v1197_v48, -1.0  ;;  %2010 = vmatprep.subr.bf16.mxu0 %v10231_v10  ;;  %vm1244_vm15 = vcmp.le.f32.partialorder %v1196_v47, -1.0  ;;  %v1275_v57 = vsub.f32 %v1227_v60, %v1259_v45  ;;  %v10237_v50 = vld [vmem:[#allocation13 + $0x294] ss:$8 sps:$4 sm:$0xff]  }
 0x229   : > { %v1229_v37 = vsel %vm1213_vm1, 1.0, %v15939_v26  ;;  %v1261_v44 = vsel %vm1245_vm12, 1.0, %v15939_v26  ;;  %vm1214_vm2 = vcmp.ge.f32.partialorder %v1198_v16, 1.0  ;;  %vm1246_vm11 = vcmp.le.f32.partialorder %v1198_v16, -1.0  ;;  %v10235_v16 = vld [vmem:[#allocation13 + $0x290] ss:$8 sps:$4 sm:$0xff]  }
 0x22a   : > { %v1277_v42 = vsub.f32 %v1229_v37, %v1261_v44  ;;  %v1230_v31 = vsel %vm1214_vm2, 1.0, %v15939_v26  ;;  %v1262_v58 = vsel %vm1246_vm11, 1.0, %v15939_v26  ;;  %v1228_v11 = vsel %vm1212_vm14, 1.0, %v15939_v26 }
 0x22b   : > { %v1038_v24 = vpop.f32.mrb[20].mxu0  ;;  %2011 = vmatpush1.bf16.msra.mxu0 %v10229_v9  ;;  %v1260_v14 = vsel %vm1244_vm15, 1.0, %v15939_v26  ;;  %v1278_v34 = vsub.f32 %v1230_v31, %v1262_v58  ;;  %v1188_v44 = vsub.f32 %v11861_v56, %v11887_v22  ;;  %v1189_v22 = vsub.f32 %v11867_v35, %v11884_v55  ;;  %v10238_v56 = vld [vmem:[#allocation13 + $0x2a0] ss:$8 sps:$4 sm:$0xff]  }
 0x22c   : > { %v1199_v1 = vadd.f32 %v1183_v4, %v1038_v24  ;;  %v1040_v13 = vpop.f32.mrb[21].mxu0  ;;  %v1291_v48 = vpack.c.bf16 %v1277_v42, %v1275_v57  ;;  %2012 = vmatprep.subr.bf16.mxu0 %v10234_v49  ;;  %v1276_v9 = vsub.f32 %v1228_v11, %v1260_v14  ;;  %v10243_v14 = vld [vmem:[#allocation13 + $0x2b4] ss:$8 sps:$4 sm:$0xff]   ;;  %v1190_v55 = vsub.f32 %v11873_v19, %v11889_v2  ;;  %v10246_v2 = vld [vmem:[#allocation13 + $0x2c4] ss:$8 sps:$4 sm:$0xff]  }
 0x22d   : > { %v1200_v20 = vadd.f32 %v1184_v8, %v1040_v13  ;;  %v1042_v10 = vpop.f32.mrb[22].mxu0  ;;  %v1191_v35 = vsub.f32 %v11891_v12, %v11918_v25 }
 0x22e   : > { %vm1215_vm8 = vcmp.ge.f32.partialorder %v1199_v1, 1.0  ;;  %vm1247_vm1 = vcmp.le.f32.partialorder %v1199_v1, -1.0  ;;  %v1201_v60 = vadd.f32 %v1185_v52, %v1042_v10  ;;  %v1044_v45 = vpop.f32.mrb[23].mxu0  ;;  %v1292_v51 = vpack.c.bf16 %v1278_v34, %v1276_v9 }
 0x22f   : > { %v1231_v47 = vsel %vm1215_vm8, 1.0, %v15939_v26  ;;  %v1263_v37 = vsel %vm1247_vm1, 1.0, %v15939_v26  ;;  %2013 = vmatpush1.bf16.msra.mxu0 %v10232_v17  ;;  %v1202_v49 = vadd.f32 %v1186_v59, %v1044_v45  ;;  %vm1216_vm15 = vcmp.ge.f32.partialorder %v1200_v20, 1.0  ;;  %v10241_v45 = vld [vmem:[#allocation13 + $0x2b0] ss:$8 sps:$4 sm:$0xff]  }
 0x230   : > { %vm1217_vm12 = vcmp.ge.f32.partialorder %v1201_v60, 1.0  ;;  %vm1249_vm14 = vcmp.le.f32.partialorder %v1201_v60, -1.0  ;;  %2014 = vmatprep.subr.bf16.mxu0 %v10237_v50  ;;  %vm1248_vm2 = vcmp.le.f32.partialorder %v1200_v20, -1.0  ;;  %v1279_v29 = vsub.f32 %v1231_v47, %v1263_v37  ;;  %1563 = vmatprep.mubr.bf16.mxu0 %v1292_v51 }
 0x231   : > { %v1233_v4 = vsel %vm1217_vm12, 1.0, %v15939_v26  ;;  %v1265_v36 = vsel %vm1249_vm14, 1.0, %v15939_v26  ;;  %vm1218_vm11 = vcmp.ge.f32.partialorder %v1202_v49, 1.0  ;;  %vm1250_vm8 = vcmp.le.f32.partialorder %v1202_v49, -1.0  ;;  %1564 = vmatmul.mubr.bf16.gmra.mrb[48].mxu0 %v1291_v48 }
 0x232   : > { %v1281_v8 = vsub.f32 %v1233_v4, %v1265_v36  ;;  %v1234_v42 = vsel %vm1218_vm11, 1.0, %v15939_v26  ;;  %v1266_v24 = vsel %vm1250_vm8, 1.0, %v15939_v26  ;;  %v1232_v1 = vsel %vm1216_vm15, 1.0, %v15939_v26 }
 0x233   : > { %v1048_v57 = vpop.f32.mrb[24].mxu0  ;;  %2015 = vmatpush1.bf16.msra.mxu0 %v10235_v16  ;;  %v1264_v13 = vsel %vm1248_vm2, 1.0, %v15939_v26  ;;  %v1282_v10 = vsub.f32 %v1234_v42, %v1266_v24  ;;  %v1192_v9 = vsub.f32 %v11897_v7, %v11923_v6  ;;  %v1193_v6 = vsub.f32 %v11903_v54, %v11920_v5  ;;  %v10244_v7 = vld [vmem:[#allocation13 + $0x2c0] ss:$8 sps:$4 sm:$0xff]  }
 0x234   : > { %v1203_v31 = vadd.f32 %v1187_v3, %v1048_v57  ;;  %v1050_v58 = vpop.f32.mrb[25].mxu0  ;;  %v1293_v11 = vpack.c.bf16 %v1281_v8, %v1279_v29  ;;  %2016 = vmatprep.subr.bf16.mxu0 %v10240_v18  ;;  %v1280_v60 = vsub.f32 %v1232_v1, %v1264_v13  ;;  %v10249_v57 = vld [vmem:[#allocation13 + $0x2d4] ss:$8 sps:$4 sm:$0xff]   ;;  %v1194_v5 = vsub.f32 %v11909_v23, %v11925_v30 }
 0x235   : > { %v1204_v52 = vadd.f32 %v1188_v44, %v1050_v58  ;;  %v1052_v17 = vpop.f32.mrb[26].mxu0 }
 0x236   : > { %vm1219_vm1 = vcmp.ge.f32.partialorder %v1203_v31, 1.0  ;;  %vm1251_vm12 = vcmp.le.f32.partialorder %v1203_v31, -1.0  ;;  %v1205_v50 = vadd.f32 %v1189_v22, %v1052_v17  ;;  %v1054_v34 = vpop.f32.mrb[27].mxu0  ;;  %v1294_v12 = vpack.c.bf16 %v1282_v10, %v1280_v60 }
 0x237   : > { %v1235_v20 = vsel %vm1219_vm1, 1.0, %v15939_v26  ;;  %v1267_v48 = vsel %vm1251_vm12, 1.0, %v15939_v26  ;;  %2017 = vmatpush1.bf16.msra.mxu0 %v10238_v56  ;;  %v1206_v3 = vadd.f32 %v1190_v55, %v1054_v34  ;;  %vm1220_vm2 = vcmp.ge.f32.partialorder %v1204_v52, 1.0  ;;  %v10247_v56 = vld [vmem:[#allocation13 + $0x2d0] ss:$8 sps:$4 sm:$0xff]  }
 0x238   : > { %vm1221_vm14 = vcmp.ge.f32.partialorder %v1205_v50, 1.0  ;;  %vm1253_vm15 = vcmp.le.f32.partialorder %v1205_v50, -1.0  ;;  %2018 = vmatprep.subr.bf16.mxu0 %v10243_v14  ;;  %vm1252_vm11 = vcmp.le.f32.partialorder %v1204_v52, -1.0  ;;  %v1283_v25 = vsub.f32 %v1235_v20, %v1267_v48  ;;  %1573 = vmatprep.mubr.bf16.mxu0 %v1294_v12  ;;  %v10252_v20 = vld [vmem:[#allocation13 + $0x2e4] ss:$8 sps:$4 sm:$0xff]  }
 0x239   : > { %v1237_v59 = vsel %vm1221_vm14, 1.0, %v15939_v26  ;;  %v1269_v19 = vsel %vm1253_vm15, 1.0, %v15939_v26  ;;  %vm1222_vm8 = vcmp.ge.f32.partialorder %v1206_v3, 1.0  ;;  %vm1254_vm1 = vcmp.le.f32.partialorder %v1206_v3, -1.0  ;;  %1574 = vmatmul.mubr.bf16.gmra.mrb[52].mxu0 %v1293_v11  ;;  %v10250_v48 = vld [vmem:[#allocation13 + $0x2e0] ss:$8 sps:$4 sm:$0xff]  }
 0x23a   : > { %v1285_v47 = vsub.f32 %v1237_v59, %v1269_v19  ;;  %v1238_v16 = vsel %vm1222_vm8, 1.0, %v15939_v26  ;;  %v1270_v4 = vsel %vm1254_vm1, 1.0, %v15939_v26  ;;  %v1236_v18 = vsel %vm1220_vm2, 1.0, %v15939_v26  ;;  %v10253_v59 = vld [vmem:[#allocation13 + $0x2f0] ss:$8 sps:$4 sm:$0xff]  }
 0x23b   : > { %v1058_v37 = vpop.f32.mrb[28].mxu0  ;;  %2019 = vmatpush1.bf16.msra.mxu0 %v10241_v45  ;;  %v1268_v36 = vsel %vm1252_vm11, 1.0, %v15939_v26  ;;  %v1286_v42 = vsub.f32 %v1238_v16, %v1270_v4  ;;  %v10255_v45 = vld [vmem:[#allocation13 + $0x2f4] ss:$8 sps:$4 sm:$0xff]   ;;  %v12002_v3 = vsub.s32 0, %v11369_v15 }
 0x23c   : > { %v1207_v49 = vadd.f32 %v1191_v35, %v1058_v37  ;;  %v1060_v44 = vpop.f32.mrb[29].mxu0  ;;  %v1295_v8 = vpack.c.bf16 %v1285_v47, %v1283_v25  ;;  %2020 = vmatprep.subr.bf16.mxu0 %v10246_v2  ;;  %v1284_v54 = vsub.f32 %v1236_v18, %v1268_v36  ;;  %v12006_v2 = vld [vmem:[#allocation19 + $0x8] sm:$0xff] }
 0x23d   : > { %v1208_v51 = vadd.f32 %v1192_v9, %v1060_v44  ;;  %v1062_v29 = vpop.f32.mrb[30].mxu0  ;;  %15983 = vst [vmem:[#allocation83_spill] sm:$0xff] %v12002_v3  ;;  %v12004_v9 = vld [vmem:[#allocation19] sm:$0xff]  ;;  %v12014_v12 = vrot.slane %v12006_v2, %v12002_v3 }
 0x23e   : > { %vm1223_vm12 = vcmp.ge.f32.partialorder %v1207_v49, 1.0  ;;  %vm1255_vm14 = vcmp.le.f32.partialorder %v1207_v49, -1.0  ;;  %v1209_v24 = vadd.f32 %v1193_v6, %v1062_v29  ;;  %v1064_v31 = vpop.f32.mrb[31].mxu0  ;;  %v1296_v30 = vpack.c.bf16 %v1286_v42, %v1284_v54 }
 0x23f   : > { %vm1224_vm15 = vcmp.ge.f32.partialorder %v1208_v51, 1.0  ;;  %vm1256_vm8 = vcmp.le.f32.partialorder %v1208_v51, -1.0  ;;  %v1239_v58 = vsel %vm1223_vm12, 1.0, %v15939_v26  ;;  %v1271_v22 = vsel %vm1255_vm14, 1.0, %v15939_v26  ;;  %2021 = vmatpush1.bf16.msra.mxu0 %v10244_v7 }
 0x240   : > { %vm1225_vm2 = vcmp.ge.f32.partialorder %v1209_v24, 1.0  ;;  %vm1257_vm11 = vcmp.le.f32.partialorder %v1209_v24, -1.0  ;;  %v1210_v13 = vadd.f32 %v1194_v5, %v1064_v31  ;;  %2022 = vmatprep.subr.bf16.mxu0 %v10249_v57  ;;  %v1240_v52 = vsel %vm1224_vm15, 1.0, %v15939_v26  ;;  %1583 = vmatprep.mubr.bf16.mxu0 %v1296_v30 }
 0x241   : > { %v1241_v1 = vsel %vm1225_vm2, 1.0, %v15939_v26  ;;  %v1272_v17 = vsel %vm1256_vm8, 1.0, %v15939_v26  ;;  %v1273_v11 = vsel %vm1257_vm11, 1.0, %v15939_v26  ;;  %v1287_v23 = vsub.f32 %v1239_v58, %v1271_v22  ;;  %1584 = vmatmul.mubr.bf16.gmra.mrb[56].mxu0 %v1295_v8 }
 0x242   : > { %v1289_v14 = vsub.f32 %v1241_v1, %v1273_v11  ;;  %vm1226_vm1 = vcmp.ge.f32.partialorder %v1210_v13, 1.0  ;;  %vm1258_vm12 = vcmp.le.f32.partialorder %v1210_v13, -1.0  ;;  %v1288_v34 = vsub.f32 %v1240_v52, %v1272_v17 }
 0x243   : > { %v1242_v10 = vsel %vm1226_vm1, 1.0, %v15939_v26  ;;  %v1274_v50 = vsel %vm1258_vm12, 1.0, %v15939_v26  ;;  %2023 = vmatpush1.bf16.msra.mxu0 %v10247_v56  ;;  %v12010_v19 = vrot.slane %v12004_v9, %v12002_v3 }
 0x244   : > { %v1290_v55 = vsub.f32 %v1242_v10, %v1274_v50  ;;  %v1297_v35 = vpack.c.bf16 %v1289_v14, %v1287_v23  ;;  %2024 = vmatprep.subr.bf16.mxu0 %v10252_v20 }
 0x246   : > { %v1298_v60 = vpack.c.bf16 %v1290_v55, %v1288_v34 }
 0x247   : > { %2025 = vmatpush1.bf16.msra.mxu0 %v10250_v48 }
 0x248   : > { %1593 = vmatprep.mubr.bf16.mxu0 %v1298_v60  ;;  %2026 = vmatprep.subr.bf16.mxu0 %v10255_v45 }
 0x249   : > { %1594 = vmatmul.mubr.bf16.gmra.mrb[60].mxu0 %v1297_v35 }
 0x24b   : > { %2027 = vmatpush1.bf16.msra.mxu0 %v10253_v59 }
 0x2e1   : > { %v1525_v25 = vpop.f32.mrb[32].mxu0 }
 0x2e2   : > { %v1526_v47 = vadd.f32 %v1525_v25, %v12010_v19  ;;  %v1527_v37 = vpop.f32.mrb[33].mxu0 }
 0x2e3   : > { %v1528_v16 = vadd.f32 %v1527_v37, %v12014_v12  ;;  %v1529_v4 = vpop.f32.mrb[34].mxu0 }
 0x2e4   : > { %v12018_v49 = vmul.f32 0.5, %v1526_v47  ;;  %v1530_v44 = vadd.f32 %v1529_v4, %v12010_v19  ;;  %v1531_v6 = vpop.f32.mrb[35].mxu0 }
 0x2e5   : > { %v12021_v7 = vmul.f32 0.5, %v1528_v16  ;;  %v1532_v18 = vadd.f32 %v1531_v6, %v12014_v12 }
 0x2e6   : > { %v12024_v36 = vmul.f32 0.5, %v1530_v44  ;;  %vm1636_vm14 = vcmp.ge.f32.partialorder %v12018_v49, 1.0 }
 0x2e7   : > { %v12026_v51 = vmul.f32 0.5, %v1532_v18  ;;  %vm15734_vm8 = vcmp.ge.f32.partialorder %v12021_v7, 1.0  ;;  %v1652_v18 = vsel %vm1636_vm14, 1.0, %v15939_v26 }
 0x2e8   : > { %vm15733_vm15 = vcmp.ge.f32.partialorder %v12024_v36, 1.0  ;;  %vm15985_vm7 = vcmp.ge.f32.partialorder %v12024_v36, 1.0 }
 0x2e9   : > { %vm9271_vm2 = vmpackc.low %vm15733_vm15, %vm1636_vm14  ;;  %vm15732_vm11 = vcmp.ge.f32.partialorder %v12026_v51, 1.0  ;;  %v1535_v29 = vpop.f32.mrb[36].mxu0  ;;  %vm15986_vm6 = vcmp.ge.f32.partialorder %v12026_v51, 1.0 }
 0x2ea   : > { %v1536_v8 = vadd.f32 %v1535_v29, %v12010_v19  ;;  %v1537_v57 = vpop.f32.mrb[37].mxu0  ;;  %vm9269_vm1 = vmpackc.low %vm15732_vm11, %vm15734_vm8 }
 0x2eb   : > { %v1538_v42 = vadd.f32 %v1537_v57, %v12014_v12  ;;  %v1539_v24 = vpop.f32.mrb[38].mxu0  ;;  %9270 = vmatprep.mubr.msk.bf16.mxu0 %vm9269_vm1, %v15943_v53  ;;  %v1654_v57 = vsel %vm15985_vm7, 1.0, %v15939_v26 }
 0x2ec   : > { %v12043_v31 = vmul.f32 0.5, %v1536_v8  ;;  %v1540_v5 = vadd.f32 %v1539_v24, %v12010_v19  ;;  %v1541_v54 = vpop.f32.mrb[39].mxu0  ;;  %9272 = vmatmul.mubr.msk.bf16.vlgmr.msra.gmra.mrb[64].mxu0 %vm9271_vm2, %v15943_v53  ;;  %v1684_v8 = vsub.f32 1.0, %v1652_v18 }
 0x2ed   : > { %v12047_v58 = vmul.f32 0.5, %v1538_v42  ;;  %v1542_v22 = vadd.f32 %v1541_v54, %v12014_v12  ;;  %v1655_v42 = vsel %vm15986_vm6, 1.0, %v15939_v26 }
 0x2ee   : > { %v12050_v56 = vmul.f32 0.5, %v1540_v5  ;;  %vm15738_vm12 = vcmp.ge.f32.partialorder %v12043_v31, 1.0 }
 0x2ef   : > { %v12052_v1 = vmul.f32 0.5, %v1542_v22  ;;  %vm15737_vm1 = vcmp.ge.f32.partialorder %v12047_v58, 1.0  ;;  %v1686_v22 = vsub.f32 1.0, %v1654_v57 }
 0x2f0   : > { %vm15736_vm11 = vcmp.ge.f32.partialorder %v12050_v56, 1.0  ;;  %vm15989_vm6 = vcmp.ge.f32.partialorder %v12050_v56, 1.0 }
 0x2f1   : > { %vm15735_vm15 = vcmp.ge.f32.partialorder %v12052_v1, 1.0  ;;  %v1545_v13 = vpop.f32.mrb[40].mxu0  ;;  %vm9275_vm2 = vmpackc.low %vm15736_vm11, %vm15738_vm12  ;;  %vm15990_vm7 = vcmp.ge.f32.partialorder %v12052_v1, 1.0 }
 0x2f2   : > { %v1546_v52 = vadd.f32 %v1545_v13, %v12010_v19  ;;  %v1547_v17 = vpop.f32.mrb[41].mxu0  ;;  %vm9273_vm8 = vmpackc.low %vm15735_vm15, %vm15737_vm1  ;;  %v1687_v13 = vsub.f32 1.0, %v1655_v42 }
 0x2f3   : > { %v1548_v11 = vadd.f32 %v1547_v17, %v12014_v12  ;;  %v1549_v30 = vpop.f32.mrb[42].mxu0  ;;  %9274 = vmatprep.mubr.msk.bf16.mxu0 %vm9273_vm8, %v15943_v53 }
 0x2f4   : > { %v12069_v23 = vmul.f32 0.5, %v1546_v52  ;;  %v1550_v14 = vadd.f32 %v1549_v30, %v12010_v19  ;;  %v1551_v10 = vpop.f32.mrb[43].mxu0  ;;  %9276 = vmatmul.mubr.msk.bf16.gmra.mrb[68].mxu0 %vm9275_vm2, %v15943_v53  ;;  %v1700_v52 = vmul.f32 %v1684_v8, %v12018_v49  ;;  %v1702_v49 = vmul.f32 %v1686_v22, %v12024_v36 }
 0x2f5   : > { %v12073_v50 = vmul.f32 0.5, %v1548_v11  ;;  %v1552_v34 = vadd.f32 %v1551_v10, %v12014_v12  ;;  %v1659_v10 = vsel %vm15990_vm7, 1.0, %v15939_v26 }
 0x2f6   : > { %v12076_v55 = vmul.f32 0.5, %v1550_v14  ;;  %vm15742_vm15 = vcmp.ge.f32.partialorder %v12069_v23, 1.0  ;;  %v1658_v14 = vsel %vm15989_vm6, 1.0, %v15939_v26 }
 0x2f7   : > { %v12078_v35 = vmul.f32 0.5, %v1552_v34  ;;  %vm15741_vm8 = vcmp.ge.f32.partialorder %v12073_v50, 1.0  ;;  %v1690_v18 = vsub.f32 1.0, %v1658_v14 }
 0x2f8   : > { %vm15740_vm11 = vcmp.ge.f32.partialorder %v12076_v55, 1.0 }
 0x2f9   : > { %vm15739_vm1 = vcmp.ge.f32.partialorder %v12078_v35, 1.0  ;;  %v1555_v60 = vpop.f32.mrb[44].mxu0  ;;  %vm9279_vm2 = vmpackc.low %vm15740_vm11, %vm15742_vm15  ;;  %vm15984_vm15 = vcmp.ge.f32.partialorder %v12021_v7, 1.0 }
 0x2fa   : > { %v1556_v20 = vadd.f32 %v1555_v60, %v12010_v19  ;;  %v1557_v48 = vpop.f32.mrb[45].mxu0  ;;  %vm9277_vm12 = vmpackc.low %vm15739_vm1, %vm15741_vm8  ;;  %v1653_v29 = vsel %vm15984_vm15, 1.0, %v15939_v26  ;;  %vm15988_vm15 = vcmp.ge.f32.partialorder %v12047_v58, 1.0 }
 0x2fb   : > { %v1558_v45 = vadd.f32 %v1557_v48, %v12014_v12  ;;  %v1559_v59 = vpop.f32.mrb[46].mxu0  ;;  %9278 = vmatprep.mubr.msk.bf16.mxu0 %vm9277_vm12, %v15943_v53  ;;  %v1685_v5 = vsub.f32 1.0, %v1653_v29  ;;  %v1657_v54 = vsel %vm15988_vm15, 1.0, %v15939_v26  ;;  %v1691_v29 = vsub.f32 1.0, %v1659_v10 }
 0x2fc   : > { %v12095_v25 = vmul.f32 0.5, %v1556_v20  ;;  %v1560_v47 = vadd.f32 %v1559_v59, %v12010_v19  ;;  %v1561_v37 = vpop.f32.mrb[47].mxu0  ;;  %9280 = vmatmul.mubr.msk.bf16.gmra.mrb[72].mxu0 %vm9279_vm2, %v15943_v53  ;;  %v1689_v30 = vsub.f32 1.0, %v1657_v54  ;;  %v1703_v59 = vmul.f32 %v1687_v13, %v12026_v51 }
 0x2fd   : > { %v12099_v16 = vmul.f32 0.5, %v1558_v45  ;;  %v1562_v4 = vadd.f32 %v1561_v37, %v12014_v12  ;;  %v1701_v20 = vmul.f32 %v1685_v5, %v12021_v7  ;;  %vm15994_vm15 = vcmp.ge.f32.partialorder %v12078_v35, 1.0 }
 0x2fe   : > { %v12102_v44 = vmul.f32 0.5, %v1560_v47  ;;  %vm1648_vm12 = vcmp.ge.f32.partialorder %v12095_v25, 1.0  ;;  %v1705_v7 = vmul.f32 %v1689_v30, %v12047_v58  ;;  %v1707_v30 = vmul.f32 %v1691_v29, %v12052_v1 }
 0x2ff   : > { %v12104_v6 = vmul.f32 0.5, %v1562_v4  ;;  %vm1649_vm11 = vcmp.ge.f32.partialorder %v12099_v16, 1.0 }
 0x300   : > { %vm15747_vm1 = vcmp.ge.f32.partialorder %v12102_v44, 1.0 }
 0x301   : > { %vm1651_vm2 = vcmp.ge.f32.partialorder %v12104_v6, 1.0  ;;  %vm9283_vm8 = vmpackc.low %vm15747_vm1, %vm1648_vm12  ;;  %vm15987_vm1 = vcmp.ge.f32.partialorder %v12043_v31, 1.0 }
 0x302   : > { %vm9281_vm14 = vmpackc.low %vm1651_vm2, %vm1649_vm11  ;;  %v1656_v24 = vsel %vm15987_vm1, 1.0, %v15939_v26  ;;  %vm15991_vm1 = vcmp.ge.f32.partialorder %v12069_v23, 1.0 }
 0x303   : > { %9282 = vmatprep.mubr.msk.bf16.mxu0 %vm9281_vm14, %v15943_v53  ;;  %v1688_v17 = vsub.f32 1.0, %v1656_v24  ;;  %v1660_v36 = vsel %vm15991_vm1, 1.0, %v15939_v26  ;;  %vm15993_vm14 = vcmp.ge.f32.partialorder %v12076_v55, 1.0 }
 0x304   : > { %9284 = vmatmul.mubr.msk.bf16.gmra.mrb[76].mxu0 %vm9283_vm8, %v15943_v53  ;;  %v1565_v11 = vpop.f32.mrb[48].mxu0  ;;  %vm15992_vm8 = vcmp.ge.f32.partialorder %v12073_v50, 1.0  ;;  %v1662_v13 = vsel %vm15993_vm14, 1.0, %v15939_v26 }
 0x305   : > { %v1566_v34 = vadd.f32 %v1565_v11, %v12010_v19  ;;  %v1567_v60 = vpop.f32.mrb[49].mxu0  ;;  %v1704_v42 = vmul.f32 %v1688_v17, %v12043_v31  ;;  %v1661_v51 = vsel %vm15992_vm8, 1.0, %v15939_v26  ;;  %v1663_v31 = vsel %vm15994_vm15, 1.0, %v15939_v26 }
 0x306   : > { %v1568_v48 = vadd.f32 %v1567_v60, %v12014_v12  ;;  %v1569_v45 = vpop.f32.mrb[50].mxu0  ;;  %v1706_v11 = vmul.f32 %v1690_v18, %v12050_v56  ;;  %v1692_v60 = vsub.f32 1.0, %v1660_v36 }
 0x307   : > { %v1716_v47 = vsub.f32 %v1566_v34, %v1700_v52  ;;  %v1570_v37 = vadd.f32 %v1569_v45, %v12010_v19  ;;  %v1571_v4 = vpop.f32.mrb[51].mxu0 }
 0x308   : > { %v1717_v8 = vsub.f32 %v1568_v48, %v1701_v20  ;;  %v1572_v57 = vadd.f32 %v1571_v4, %v12014_v12  ;;  %v1693_v48 = vsub.f32 1.0, %v1661_v51  ;;  %v1694_v4 = vsub.f32 1.0, %v1662_v13 }
 0x309   : > { %v1732_v24 = vmul.f32 0.5, %v1716_v47  ;;  %v1718_v5 = vsub.f32 %v1570_v37, %v1702_v49 }
 0x30a   : > { %v1733_v54 = vmul.f32 0.5, %v1717_v8  ;;  %v1719_v22 = vsub.f32 %v1572_v57, %v1703_v59  ;;  %v1695_v8 = vsub.f32 1.0, %v1663_v31 }
 0x30b   : > { %v1734_v58 = vmul.f32 0.5, %v1718_v5  ;;  %v1748_v17 = vadd.f32 %v1732_v24, %v1700_v52 }
 0x30c   : > { %v1735_v14 = vmul.f32 0.5, %v1719_v22  ;;  %v1575_v10 = vpop.f32.mrb[52].mxu0  ;;  %v1749_v34 = vadd.f32 %v1733_v54, %v1701_v20  ;;  %v1710_v22 = vmul.f32 %v1694_v4, %v12076_v55  ;;  %v1711_v13 = vmul.f32 %v1695_v8, %v12078_v35 }
 0x30d   : > { %v1576_v45 = vadd.f32 %v1575_v10, %v12010_v19  ;;  %v1577_v47 = vpop.f32.mrb[53].mxu0  ;;  %v1750_v37 = vadd.f32 %v1734_v58, %v1702_v49  ;;  %vm1764_vm6 = vcmp.ge.f32.partialorder %v1748_v17, 1.0  ;;  %v1667_v35 = vsel %vm1651_vm2, 1.0, %v15939_v26 }
 0x30e   : > { %v1578_v57 = vadd.f32 %v1577_v47, %v12014_v12  ;;  %v1579_v3 = vpop.f32.mrb[54].mxu0  ;;  %v1751_v5 = vadd.f32 %v1735_v14, %v1703_v59  ;;  %vm1765_vm1 = vcmp.ge.f32.partialorder %v1749_v34, 1.0  ;;  %v1708_v59 = vmul.f32 %v1692_v60, %v12069_v23 }
 0x30f   : > { %v1720_v52 = vsub.f32 %v1576_v45, %v1704_v42  ;;  %v1580_v56 = vadd.f32 %v1579_v3, %v12010_v19  ;;  %v1581_v18 = vpop.f32.mrb[55].mxu0  ;;  %vm1766_vm7 = vcmp.ge.f32.partialorder %v1750_v37, 1.0  ;;  %v1709_v3 = vmul.f32 %v1693_v48, %v12073_v50 }
 0x310   : > { %v1721_v1 = vsub.f32 %v1578_v57, %v1705_v7  ;;  %v1582_v20 = vadd.f32 %v1581_v18, %v12014_v12  ;;  %vm1767_vm8 = vcmp.ge.f32.partialorder %v1751_v5, 1.0  ;;  %vm9287_vm14 = vmpackc.low %vm1766_vm7, %vm1764_vm6  ;;  %v1664_v14 = vsel %vm1648_vm12, 1.0, %v15939_v26 }
 0x311   : > { %v1736_v29 = vmul.f32 0.5, %v1720_v52  ;;  %v1722_v49 = vsub.f32 %v1580_v56, %v1706_v11  ;;  %vm9285_vm15 = vmpackc.low %vm1767_vm8, %vm1765_vm1  ;;  %v1665_v23 = vsel %vm1649_vm11, 1.0, %v15939_v26  ;;  %vm15995_vm6 = vcmp.ge.f32.partialorder %v12102_v44, 1.0 }
 0x312   : > { %v1737_v24 = vmul.f32 0.5, %v1721_v1  ;;  %v1723_v36 = vsub.f32 %v1582_v20, %v1707_v30  ;;  %9286 = vmatprep.mubr.msk.bf16.mxu0 %vm9285_vm15, %v15943_v53  ;;  %v1666_v55 = vsel %vm15995_vm6, 1.0, %v15939_v26  ;;  %v1696_v4 = vsub.f32 1.0, %v1664_v14 }
 0x313   : > { %v1738_v51 = vmul.f32 0.5, %v1722_v49  ;;  %9288 = vmatmul.mubr.msk.bf16.gmra.mrb[80].mxu0 %vm9287_vm14, %v15943_v53  ;;  %v1752_v54 = vadd.f32 %v1736_v29, %v1704_v42  ;;  %v1697_v8 = vsub.f32 1.0, %v1665_v23  ;;  %v1698_v52 = vsub.f32 1.0, %v1666_v55 }
 0x314   : > { %v1739_v31 = vmul.f32 0.5, %v1723_v36  ;;  %v1585_v58 = vpop.f32.mrb[56].mxu0  ;;  %v1753_v17 = vadd.f32 %v1737_v24, %v1705_v7  ;;  %v1699_v56 = vsub.f32 1.0, %v1667_v35  ;;  %v1712_v36 = vmul.f32 %v1696_v4, %v12095_v25 }
 0x315   : > { %v1586_v50 = vadd.f32 %v1585_v58, %v12010_v19  ;;  %v1587_v10 = vpop.f32.mrb[57].mxu0  ;;  %v1754_v34 = vadd.f32 %v1738_v51, %v1706_v11  ;;  %vm1768_vm11 = vcmp.ge.f32.partialorder %v1752_v54, 1.0  ;;  %v1713_v51 = vmul.f32 %v1697_v8, %v12099_v16 }
 0x316   : > { %v1588_v42 = vadd.f32 %v1587_v10, %v12014_v12  ;;  %v1589_v7 = vpop.f32.mrb[58].mxu0  ;;  %v1755_v60 = vadd.f32 %v1739_v31, %v1707_v30  ;;  %vm1769_vm7 = vcmp.ge.f32.partialorder %v1753_v17, 1.0  ;;  %v1714_v17 = vmul.f32 %v1698_v52, %v12102_v44 }
 0x317   : > { %v1724_v48 = vsub.f32 %v1586_v50, %v1708_v59  ;;  %v1590_v45 = vadd.f32 %v1589_v7, %v12010_v19  ;;  %v1591_v47 = vpop.f32.mrb[59].mxu0  ;;  %vm1770_vm12 = vcmp.ge.f32.partialorder %v1754_v34, 1.0  ;;  %v1715_v14 = vmul.f32 %v1699_v56, %v12104_v6 }
 0x318   : > { %v1725_v37 = vsub.f32 %v1588_v42, %v1709_v3  ;;  %v1592_v11 = vadd.f32 %v1591_v47, %v12014_v12  ;;  %vm1771_vm1 = vcmp.ge.f32.partialorder %v1755_v60, 1.0  ;;  %vm9291_vm8 = vmpackc.low %vm1770_vm12, %vm1768_vm11 }
 0x319   : > { %v1740_v57 = vmul.f32 0.5, %v1724_v48  ;;  %v1726_v5 = vsub.f32 %v1590_v45, %v1710_v22  ;;  %vm9289_vm2 = vmpackc.low %vm1771_vm1, %vm1769_vm7 }
 0x31a   : > { %v1741_v30 = vmul.f32 0.5, %v1725_v37  ;;  %v1727_v18 = vsub.f32 %v1592_v11, %v1711_v13  ;;  %9290 = vmatprep.mubr.msk.bf16.mxu0 %vm9289_vm2, %v15943_v53 }
 0x31b   : > { %v1742_v1 = vmul.f32 0.5, %v1726_v5  ;;  %9292 = vmatmul.mubr.msk.bf16.gmra.mrb[84].mxu0 %vm9291_vm8, %v15943_v53  ;;  %v1756_v20 = vadd.f32 %v1740_v57, %v1708_v59 }
 0x31c   : > { %v1743_v29 = vmul.f32 0.5, %v1727_v18  ;;  %v1595_v49 = vpop.f32.mrb[60].mxu0  ;;  %v1757_v24 = vadd.f32 %v1741_v30, %v1709_v3  ;;  %v10266_v18 = vld [vmem:[#allocation13 + $0x104] ss:$8 sps:$4 sm:$0xff]  }
 0x31d   : > { %v1596_v54 = vadd.f32 %v1595_v49, %v12010_v19  ;;  %v1597_v31 = vpop.f32.mrb[61].mxu0  ;;  %v1758_v58 = vadd.f32 %v1742_v1, %v1710_v22  ;;  %vm1772_vm14 = vcmp.ge.f32.partialorder %v1756_v20, 1.0  ;;  %v10269_v1 = vld [vmem:[#allocation13 + $0x114] ss:$8 sps:$4 sm:$0xff]   ;;  %2710 = vmatprep.subr.bf16.mxu0 %v10266_v18 }
 0x31e   : > { %v1598_v23 = vadd.f32 %v1597_v31, %v12014_v12  ;;  %v1599_v50 = vpop.f32.mrb[62].mxu0  ;;  %v1759_v10 = vadd.f32 %v1743_v29, %v1711_v13  ;;  %vm1773_vm6 = vcmp.ge.f32.partialorder %v1757_v24, 1.0  ;;  %v10267_v29 = vld [vmem:[#allocation13 + $0x110] ss:$8 sps:$4 sm:$0xff]   ;;  %v10272_v24 = vld [vmem:[#allocation13 + $0x124] ss:$8 sps:$4 sm:$0xff]  }
 0x31f   : > { %v1728_v59 = vsub.f32 %v1596_v54, %v1712_v36  ;;  %v1600_v34 = vadd.f32 %v1599_v50, %v12010_v19  ;;  %v1601_v3 = vpop.f32.mrb[63].mxu0  ;;  %vm1774_vm15 = vcmp.ge.f32.partialorder %v1758_v58, 1.0  ;;  %v10275_v50 = vld [vmem:[#allocation13 + $0x134] ss:$8 sps:$4 sm:$0xff]  }
 0x320   : > { %v1729_v25 = vsub.f32 %v1598_v23, %v1713_v51  ;;  %v1602_v16 = vadd.f32 %v1601_v3, %v12014_v12  ;;  %vm1775_vm11 = vcmp.ge.f32.partialorder %v1759_v10, 1.0  ;;  %vm9295_vm12 = vmpackc.low %vm1774_vm15, %vm1772_vm14  ;;  %v12209_v12 = vsub.s32 1, %v11369_v15  ;;  %v10287_v18 = vld [vmem:[#allocation13 + $0x174] ss:$8 sps:$4 sm:$0xff]  }
 0x321   : > { %v1744_v22 = vmul.f32 0.5, %v1728_v59  ;;  %v1730_v44 = vsub.f32 %v1600_v34, %v1714_v17  ;;  %vm9293_vm7 = vmpackc.low %vm1775_vm11, %vm1773_vm6  ;;  %v10273_v34 = vld [vmem:[#allocation13 + $0x130] ss:$8 sps:$4 sm:$0xff]  }
 0x322   : > { %v1745_v6 = vmul.f32 0.5, %v1729_v25  ;;  %v1731_v55 = vsub.f32 %v1602_v16, %v1715_v14  ;;  %9294 = vmatprep.mubr.msk.bf16.mxu0 %vm9293_vm7, %v15943_v53  ;;  %15996 = vst [vmem:[#allocation84_spill] sm:$0xff] %v12209_v12  ;;  %v12213_v48 = vrot.slane %v12004_v9, %v12209_v12  ;;  %v12217_v47 = vrot.slane %v12006_v2, %v12209_v12  ;;  %v10264_v9 = vld [vmem:[#allocation13 + $0x100] ss:$8 sps:$4 sm:$0xff]   ;;  %v10278_v25 = vld [vmem:[#allocation13 + $0x144] ss:$8 sps:$4 sm:$0xff]  }
 0x323   : > { %v1746_v13 = vmul.f32 0.5, %v1730_v44  ;;  %9296 = vmatmul.mubr.msk.bf16.gmra.mrb[88].mxu0 %vm9295_vm12, %v15943_v53  ;;  %v1760_v19 = vadd.f32 %v1744_v22, %v1712_v36 }
 0x324   : > { %v1747_v35 = vmul.f32 0.5, %v1731_v55  ;;  %v1761_v42 = vadd.f32 %v1745_v6, %v1713_v51  ;;  %2711 = vmatpush1.bf16.msra.mxu0 %v10264_v9 }
 0x325   : > { %v1762_v7 = vadd.f32 %v1746_v13, %v1714_v17  ;;  %vm1776_vm1 = vcmp.ge.f32.partialorder %v1760_v19, 1.0  ;;  %2712 = vmatprep.subr.bf16.mxu0 %v10269_v1  ;;  %v10276_v19 = vld [vmem:[#allocation13 + $0x140] ss:$8 sps:$4 sm:$0xff]   ;;  %v10285_v1 = vld [vmem:[#allocation13 + $0x170] ss:$8 sps:$4 sm:$0xff]  }
 0x326   : > { %v1763_v60 = vadd.f32 %v1747_v35, %v1715_v14  ;;  %vm1777_vm2 = vcmp.ge.f32.partialorder %v1761_v42, 1.0  ;;  %v10270_v14 = vld [vmem:[#allocation13 + $0x120] ss:$8 sps:$4 sm:$0xff]   ;;  %v10281_v42 = vld [vmem:[#allocation13 + $0x154] ss:$8 sps:$4 sm:$0xff]  }
 0x327   : > { %vm1778_vm8 = vcmp.ge.f32.partialorder %v1762_v7, 1.0 }
 0x328   : > { %vm1779_vm9 = vcmp.ge.f32.partialorder %v1763_v60, 1.0  ;;  %vm9299_vm14 = vmpackc.low %vm1778_vm8, %vm1776_vm1  ;;  %2713 = vmatpush1.bf16.msra.mxu0 %v10267_v29  ;;  %v10293_v29 = vld [vmem:[#allocation13 + $0x194] ss:$8 sps:$4 sm:$0xff]  }
 0x329   : > { %vm9297_vm15 = vmpackc.low %vm1779_vm9, %vm1777_vm2  ;;  %2714 = vmatprep.subr.bf16.mxu0 %v10272_v24 }
 0x32a   : > { %9298 = vmatprep.mubr.msk.bf16.mxu0 %vm9297_vm15, %v15943_v53 }
 0x32b   : > { %9300 = vmatmul.mubr.msk.bf16.gmra.mrb[92].mxu0 %vm9299_vm14, %v15943_v53  ;;  %vm15997_vm14 = vcmp.ge.f32.partialorder %v11728_v0, 1.0  ;;  %v16003_v0 = vld [vmem:[#allocation59_spill] sm:$0xff] }
 0x32c   : > { %2715 = vmatpush1.bf16.msra.mxu0 %v10270_v14  ;;  %v10294_v14 = vld [vmem:[#allocation13 + $0x1a0] ss:$8 sps:$4 sm:$0xff]   ;;  %v10327_v53 = vld [vmem:[#allocation13 + $0x350] ss:$8 sps:$4 sm:$0xff]  }
 0x32d   : > { %2716 = vmatprep.subr.bf16.mxu0 %v10275_v50 }
 0x330   : > { %2717 = vmatpush1.bf16.msra.mxu0 %v10273_v34 }
 0x331   : > { %2718 = vmatprep.subr.bf16.mxu0 %v10278_v25 }
 0x334   : > { %2719 = vmatpush1.bf16.msra.mxu0 %v10276_v19  ;;  %v10300_v19 = vld [vmem:[#allocation13 + $0x1c0] ss:$8 sps:$4 sm:$0xff]  }
 0x335   : > { %2720 = vmatprep.subr.bf16.mxu0 %v10281_v42 }
 0x3bf   : > { %v2030_v45 = vpop.f32.mrb[64].mxu0 }
 0x3c0   : > { %v2032_v37 = vpop.f32.mrb[65].mxu0  ;;  %v2031_v4 = vadd.f32 %v2030_v45, %v12213_v48  ;;  %v10279_v45 = vld [vmem:[#allocation13 + $0x150] ss:$8 sps:$4 sm:$0xff]  }
 0x3c1   : > { %v2034_v11 = vpop.f32.mrb[66].mxu0  ;;  %v2033_v5 = vadd.f32 %v2032_v37, %v12217_v47  ;;  %2721 = vmatpush1.bf16.msra.mxu0 %v10279_v45 }
 0x3c2   : > { %v2035_v8 = vadd.f32 %v2034_v11, %v12213_v48  ;;  %v2036_v57 = vpop.f32.mrb[67].mxu0  ;;  %v10284_v11 = vld [vmem:[#allocation13 + $0x164] ss:$8 sps:$4 sm:$0xff]  }
 0x3c3   : > { %v2037_v52 = vadd.f32 %v2036_v57, %v12217_v47  ;;  %2722 = vmatprep.subr.bf16.mxu0 %v10284_v11 }
 0x3c4   : > { %v2109_v56 = vpack.c.bf16 %v2035_v8, %v2031_v4 }
 0x3c5   : > { %v2110_v30 = vpack.c.bf16 %v2037_v52, %v2033_v5 }
 0x3c7   : > { %v2040_v20 = vpop.f32.mrb[68].mxu0  ;;  %2173 = vmatprep.subr.bf16.mxu1 %v2110_v30  ;;  %v10282_v30 = vld [vmem:[#allocation13 + $0x160] ss:$8 sps:$4 sm:$0xff]  }
 0x3c8   : > { %v2042_v2 = vpop.f32.mrb[69].mxu0  ;;  %2174 = vmatpush1.bf16.msra.mxu1 %v2109_v56  ;;  %v2041_v36 = vadd.f32 %v2040_v20, %v12213_v48  ;;  %2723 = vmatpush1.bf16.msra.mxu0 %v10282_v30  ;;  %v10290_v20 = vld [vmem:[#allocation13 + $0x184] ss:$8 sps:$4 sm:$0xff]  }
 0x3c9   : > { %v2044_v49 = vpop.f32.mrb[70].mxu0  ;;  %v2043_v31 = vadd.f32 %v2042_v2, %v12217_v47  ;;  %2724 = vmatprep.subr.bf16.mxu0 %v10287_v18  ;;  %v10288_v2 = vld [vmem:[#allocation13 + $0x180] ss:$8 sps:$4 sm:$0xff]  }
 0x3ca   : > { %v2045_v51 = vadd.f32 %v2044_v49, %v12213_v48  ;;  %v2046_v54 = vpop.f32.mrb[71].mxu0  ;;  %v10291_v49 = vld [vmem:[#allocation13 + $0x190] ss:$8 sps:$4 sm:$0xff]  }
 0x3cb   : > { %v2047_v58 = vadd.f32 %v2046_v54, %v12217_v47 }
 0x3cc   : > { %v2111_v17 = vpack.c.bf16 %v2045_v51, %v2041_v36  ;;  %2725 = vmatpush1.bf16.msra.mxu0 %v10285_v1  ;;  %v10296_v36 = vld [vmem:[#allocation13 + $0x1a4] ss:$8 sps:$4 sm:$0xff]  }
 0x3cd   : > { %v2112_v23 = vpack.c.bf16 %v2047_v58, %v2043_v31  ;;  %2726 = vmatprep.subr.bf16.mxu0 %v10290_v20 }
 0x3cf   : > { %v2050_v10 = vpop.f32.mrb[72].mxu0  ;;  %2175 = vmatprep.subr.bf16.mxu1 %v2112_v23 }
 0x3d0   : > { %v2052_v59 = vpop.f32.mrb[73].mxu0  ;;  %2176 = vmatpush1.bf16.msra.mxu1 %v2111_v17  ;;  %v2051_v16 = vadd.f32 %v2050_v10, %v12213_v48  ;;  %2727 = vmatpush1.bf16.msra.mxu0 %v10288_v2  ;;  %v10299_v10 = vld [vmem:[#allocation13 + $0x1b4] ss:$8 sps:$4 sm:$0xff]  }
 0x3d1   : > { %v2054_v3 = vpop.f32.mrb[74].mxu0  ;;  %v2053_v6 = vadd.f32 %v2052_v59, %v12217_v47  ;;  %2728 = vmatprep.subr.bf16.mxu0 %v10293_v29 }
 0x3d2   : > { %v2055_v22 = vadd.f32 %v2054_v3, %v12213_v48  ;;  %v2056_v44 = vpop.f32.mrb[75].mxu0  ;;  %v10297_v3 = vld [vmem:[#allocation13 + $0x1b0] ss:$8 sps:$4 sm:$0xff]  }
 0x3d3   : > { %v2057_v55 = vadd.f32 %v2056_v44, %v12217_v47 }
 0x3d4   : > { %v2113_v13 = vpack.c.bf16 %v2055_v22, %v2051_v16  ;;  %2729 = vmatpush1.bf16.msra.mxu0 %v10291_v49  ;;  %v10302_v16 = vld [vmem:[#allocation13 + $0x1c4] ss:$8 sps:$4 sm:$0xff]  }
 0x3d5   : > { %v2114_v35 = vpack.c.bf16 %v2057_v55, %v2053_v6  ;;  %2730 = vmatprep.subr.bf16.mxu0 %v10296_v36 }
 0x3d7   : > { %v2060_v7 = vpop.f32.mrb[76].mxu0  ;;  %2177 = vmatprep.subr.bf16.mxu1 %v2114_v35 }
 0x3d8   : > { %v2062_v60 = vpop.f32.mrb[77].mxu0  ;;  %2178 = vmatpush1.bf16.msra.mxu1 %v2113_v13  ;;  %v2061_v4 = vadd.f32 %v2060_v7, %v12213_v48  ;;  %2731 = vmatpush1.bf16.msra.mxu0 %v10294_v14  ;;  %v10305_v7 = vld [vmem:[#allocation13 + $0x1d4] ss:$8 sps:$4 sm:$0xff]  }
 0x3d9   : > { %v2064_v37 = vpop.f32.mrb[78].mxu0  ;;  %v2063_v5 = vadd.f32 %v2062_v60, %v12217_v47  ;;  %2732 = vmatprep.subr.bf16.mxu0 %v10299_v10  ;;  %v10258_v14 = vld [vmem:[#allocation11 + $0x50] sm:$0xff]   ;;  %v10263_v10 = vld [vmem:[#allocation11 + $0x78] sm:$0xff]  }
 0x3da   : > { %v2065_v8 = vadd.f32 %v2064_v37, %v12213_v48  ;;  %v2066_v57 = vpop.f32.mrb[79].mxu0  ;;  %v10303_v37 = vld [vmem:[#allocation13 + $0x1d0] ss:$8 sps:$4 sm:$0xff]  }
 0x3db   : > { %v2067_v52 = vadd.f32 %v2066_v57, %v12217_v47 }
 0x3dc   : > { %v2115_v56 = vpack.c.bf16 %v2065_v8, %v2061_v4  ;;  %2733 = vmatpush1.bf16.msra.mxu0 %v10297_v3  ;;  %v10311_v3 = vld [vmem:[#allocation13 + $0x1f4] ss:$8 sps:$4 sm:$0xff]  }
 0x3dd   : > { %v2116_v9 = vpack.c.bf16 %v2067_v52, %v2063_v5  ;;  %2734 = vmatprep.subr.bf16.mxu0 %v10302_v16  ;;  %v10314_v16 = vld [vmem:[#allocation13 + $0x304] ss:$8 sps:$4 sm:$0xff]  }
 0x3df   : > { %2179 = vmatprep.subr.bf16.mxu1 %v2116_v9 }
 0x3e0   : > { %2180 = vmatpush1.bf16.msra.mxu1 %v2115_v56  ;;  %2735 = vmatpush1.bf16.msra.mxu0 %v10300_v19 }
 0x3e1   : > { %2736 = vmatprep.subr.bf16.mxu0 %v10305_v7  ;;  %v10321_v7 = vld [vmem:[#allocation13 + $0x330] ss:$8 sps:$4 sm:$0xff]  }
 0x3e4   : > { %2737 = vmatpush1.bf16.msra.mxu0 %v10303_v37 }
 0x3e6   : > { %v2070_v24 = vpop.f32.mrb[80].mxu0 }
 0x3e7   : > { %v2072_v51 = vpop.f32.mrb[81].mxu0  ;;  %v2071_v31 = vadd.f32 %v2070_v24, %v12213_v48 }
 0x3e8   : > { %v2074_v54 = vpop.f32.mrb[82].mxu0  ;;  %v2073_v23 = vadd.f32 %v2072_v51, %v12217_v47 }
 0x3e9   : > { %v2075_v58 = vadd.f32 %v2074_v54, %v12213_v48  ;;  %v2076_v17 = vpop.f32.mrb[83].mxu0 }
 0x3ea   : > { %v2077_v50 = vadd.f32 %v2076_v17, %v12217_v47  ;;  %v10257_v17 = vld [vmem:[#allocation11 + $0x48] sm:$0xff]  }
 0x3eb   : > { %v2117_v59 = vpack.c.bf16 %v2075_v58, %v2071_v31  ;;  %v10256_v58 = vld [vmem:[#allocation11 + $0x40] sm:$0xff]  }
 0x3ec   : > { %v2118_v34 = vpack.c.bf16 %v2077_v50, %v2073_v23  ;;  %v10261_v23 = vld [vmem:[#allocation11 + $0x68] sm:$0xff]   ;;  %v10262_v50 = vld [vmem:[#allocation11 + $0x70] sm:$0xff]  }
 0x3ee   : > { %v2080_v25 = vpop.f32.mrb[84].mxu0  ;;  %2181 = vmatprep.subr.bf16.mxu1 %v2118_v34  ;;  %v10306_v34 = vld [vmem:[#allocation13 + $0x1e0] ss:$8 sps:$4 sm:$0xff]  }
 0x3ef   : > { %v2082_v22 = vpop.f32.mrb[85].mxu0  ;;  %2182 = vmatpush1.bf16.msra.mxu1 %v2117_v59  ;;  %v2081_v6 = vadd.f32 %v2080_v25, %v12213_v48  ;;  %v10308_v59 = vld [vmem:[#allocation13 + $0x1e4] ss:$8 sps:$4 sm:$0xff]   ;;  %v10309_v25 = vld [vmem:[#allocation13 + $0x1f0] ss:$8 sps:$4 sm:$0xff]  }
 0x3f0   : > { %v2084_v44 = vpop.f32.mrb[86].mxu0  ;;  %v2083_v35 = vadd.f32 %v2082_v22, %v12217_v47  ;;  %2738 = vmatprep.subr.bf16.mxu0 %v10308_v59  ;;  %v3330_v22 = vrot.slane %v11442_v39, 7 }
 0x3f1   : > { %v2085_v55 = vadd.f32 %v2084_v44, %v12213_v48  ;;  %v2086_v13 = vpop.f32.mrb[87].mxu0  ;;  %2739 = vmatpush1.bf16.msra.mxu0 %v10306_v34  ;;  %v15752_v44 = vrot.slane %v11453_v41, 7  ;;  %v10317_v34 = vld [vmem:[#allocation13 + $0x314] ss:$8 sps:$4 sm:$0xff]  }
 0x3f2   : > { %v2087_v42 = vadd.f32 %v2086_v13, %v12217_v47  ;;  %2740 = vmatprep.subr.bf16.mxu0 %v10311_v3 }
 0x3f3   : > { %v2119_v60 = vpack.c.bf16 %v2085_v55, %v2081_v6 }
 0x3f4   : > { %v2120_v45 = vpack.c.bf16 %v2087_v42, %v2083_v35 }
 0x3f5   : > { %2741 = vmatpush1.bf16.msra.mxu0 %v10309_v25 }
 0x3f6   : > { %v2090_v11 = vpop.f32.mrb[88].mxu0  ;;  %2183 = vmatprep.subr.bf16.mxu1 %v2120_v45  ;;  %2991 = vmatprep.subr.bf16.mxu0 %v10314_v16 }
 0x3f7   : > { %v2092_v4 = vpop.f32.mrb[89].mxu0  ;;  %2184 = vmatpush1.bf16.msra.mxu1 %v2119_v60  ;;  %v2091_v57 = vadd.f32 %v2090_v11, %v12213_v48 }
 0x3f8   : > { %v2094_v8 = vpop.f32.mrb[90].mxu0  ;;  %v2093_v56 = vadd.f32 %v2092_v4, %v12217_v47 }
 0x3f9   : > { %v2095_v5 = vadd.f32 %v2094_v8, %v12213_v48  ;;  %v2096_v52 = vpop.f32.mrb[91].mxu0 }
 0x3fa   : > { %v2097_v30 = vadd.f32 %v2096_v52, %v12217_v47 }
 0x3fb   : > { %v2121_v9 = vpack.c.bf16 %v2095_v5, %v2091_v57 }
 0x3fc   : > { %v2122_v18 = vpack.c.bf16 %v2097_v30, %v2093_v56 }
 0x3fe   : > { %v2100_v1 = vpop.f32.mrb[92].mxu0  ;;  %2185 = vmatprep.subr.bf16.mxu1 %v2122_v18 }
 0x3ff   : > { %v2102_v20 = vpop.f32.mrb[93].mxu0  ;;  %2186 = vmatpush1.bf16.msra.mxu1 %v2121_v9  ;;  %v2101_v29 = vadd.f32 %v2100_v1, %v12213_v48 }
 0x400   : > { %v2104_v2 = vpop.f32.mrb[94].mxu0  ;;  %v2103_v36 = vadd.f32 %v2102_v20, %v12217_v47 }
 0x401   : > { %v2105_v49 = vadd.f32 %v2104_v2, %v12213_v48  ;;  %v2106_v24 = vpop.f32.mrb[95].mxu0  ;;  %v10259_v48 = vld [vmem:[#allocation11 + $0x58] sm:$0xff]  }
 0x402   : > { %v2107_v51 = vadd.f32 %v2106_v24, %v12217_v47  ;;  %v10260_v47 = vld [vmem:[#allocation11 + $0x60] sm:$0xff]  }
 0x403   : > { %v2123_v54 = vpack.c.bf16 %v2105_v49, %v2101_v29  ;;  %v12301_v29 = vsel %vm15997_vm14, 1.0, %v15939_v26 }
 0x404   : > { %v2124_v31 = vpack.c.bf16 %v2107_v51, %v2103_v36  ;;  %15998 = vst [vmem:[#allocation85_spill] sm:$0xff] %v12301_v29  ;;  %v15999_v51 = vld [vmem:[#allocation66_spill] sm:$0xff] }
 0x406   : > { %2187 = vmatprep.subr.bf16.mxu1 %v2124_v31  ;;  %v16000_v31 = vld [vmem:[#allocation58_spill] sm:$0xff] }
 0x407   : > { %2188 = vmatpush1.bf16.msra.mxu1 %v2123_v54  ;;  %vm16001_vm15 = vcmp.ge.f32.partialorder %v16000_v31, 1.0 }
 0x40a   : > { %2206 = vmatmul.mubr.bf16.vlgmr.msra.gmra.mrb[0].mxu1 %v10256_v58  ;;  %v12312_v58 = vsel %vm16001_vm15, 1.0, %v15939_v26 }
 0x40b   : > { %2215 = vmatprep.mubr.bf16.mxu1 %v15982_v46  ;;  %16002 = vst [vmem:[#allocation66_spill] sm:$0xff] %v12312_v58 }
 0x412   : > { %2216 = vmatmul.mubr.bf16.gmra.mrb[4].mxu1 %v10257_v17 }
 0x413   : > { %2225 = vmatprep.mubr.bf16.mxu1 %v15982_v46 }
 0x41a   : > { %2226 = vmatmul.mubr.bf16.gmra.mrb[8].mxu1 %v10258_v14 }
 0x41b   : > { %2235 = vmatprep.mubr.bf16.mxu1 %v15982_v46 }
 0x422   : > { %2236 = vmatmul.mubr.bf16.gmra.mrb[12].mxu1 %v10259_v48 }
 0x423   : > { %2245 = vmatprep.mubr.bf16.mxu1 %v15982_v46 }
 0x42a   : > { %2246 = vmatmul.mubr.bf16.gmra.mrb[16].mxu1 %v10260_v47 }
 0x42b   : > { %2255 = vmatprep.mubr.bf16.mxu1 %v15982_v46 }
 0x432   : > { %2256 = vmatmul.mubr.bf16.gmra.mrb[20].mxu1 %v10261_v23 }
 0x433   : > { %2265 = vmatprep.mubr.bf16.mxu1 %v15982_v46 }
 0x43a   : > { %2266 = vmatmul.mubr.bf16.gmra.mrb[24].mxu1 %v10262_v50  ;;  %v10312_v50 = vld [vmem:[#allocation13 + $0x300] ss:$8 sps:$4 sm:$0xff]  }
 0x43b   : > { %2275 = vmatprep.mubr.bf16.mxu1 %v15982_v46  ;;  %v16021_v46 = vld [vmem:[#allocation67_spill] sm:$0xff] }
 0x442   : > { %2276 = vmatmul.mubr.bf16.gmra.mrb[28].mxu1 %v10263_v10  ;;  %v15751_v10 = vrot.slane %v12301_v29, 7 }
 0x4dd   : > { %v12263_v13 = vpop.f32.mrb[0].mxu1 }
 0x4de   : > { %vm2302_vm9 = vcmp.ge.f32.partialorder %v12263_v13, 1.0  ;;  %vm2334_vm6 = vcmp.le.f32.partialorder %v12263_v13, -1.0  ;;  %v12269_v42 = vpop.f32.mrb[1].mxu1 }
 0x4df   : > { %vm2303_vm11 = vcmp.ge.f32.partialorder %v12269_v42, 1.0  ;;  %vm2335_vm12 = vcmp.le.f32.partialorder %v12269_v42, -1.0  ;;  %v12275_v45 = vpop.f32.mrb[2].mxu1  ;;  %v2318_v37 = vsel %vm2302_vm9, 1.0, %v15939_v26  ;;  %v2350_v11 = vsel %vm2334_vm6, 1.0, %v15939_v26 }
 0x4e0   : > { %v2319_v4 = vsel %vm2303_vm11, 1.0, %v15939_v26  ;;  %vm2304_vm7 = vcmp.ge.f32.partialorder %v12275_v45, 1.0  ;;  %v12281_v8 = vpop.f32.mrb[3].mxu1  ;;  %v2351_v57 = vsel %vm2335_vm12, 1.0, %v15939_v26  ;;  %vm2336_vm1 = vcmp.le.f32.partialorder %v12275_v45, -1.0 }
 0x4e1   : > { %v2320_v5 = vsel %vm2304_vm7, 1.0, %v15939_v26  ;;  %vm2305_vm8 = vcmp.ge.f32.partialorder %v12281_v8, 1.0  ;;  %v2352_v56 = vsel %vm2336_vm1, 1.0, %v15939_v26  ;;  %vm2337_vm2 = vcmp.le.f32.partialorder %v12281_v8, -1.0 }
 0x4e2   : > { %v2321_v30 = vsel %vm2305_vm8, 1.0, %v15939_v26  ;;  %v12292_v18 = vsub.f32 %v2318_v37, %v2350_v11  ;;  %v12294_v1 = vsub.f32 %v2320_v5, %v2352_v56  ;;  %v2353_v20 = vsel %vm2337_vm2, 1.0, %v15939_v26 }
 0x4e3   : > { %v12303_v49 = vsub.f32 %v2319_v4, %v2351_v57  ;;  %v12305_v24 = vsub.f32 %v2321_v30, %v2353_v20  ;;  %vm16004_vm9 = vcmp.ge.f32.partialorder %v16003_v0, 1.0  ;;  %v10315_v30 = vld [vmem:[#allocation13 + $0x310] ss:$8 sps:$4 sm:$0xff]   ;;  %v10320_v57 = vld [vmem:[#allocation13 + $0x324] ss:$8 sps:$4 sm:$0xff]  }
 0x4e4   : > { %v2382_v17 = vpack.c.bf16 %v12294_v1, %v12292_v18  ;;  %v12321_v48 = vsel %vm16004_vm9, 1.0, %v15939_v26  ;;  %v16005_v20 = vld [vmem:[#allocation60_spill] sm:$0xff]  ;;  %vm16008_vm9 = vcmp.lt.s32.totalorder %v11369_v15, 1 }
 0x4e5   : > { %v12316_v14 = vpop.f32.mrb[4].mxu1  ;;  %v2383_v23 = vpack.c.bf16 %v12305_v24, %v12303_v49  ;;  %vm16006_vm15 = vcmp.ge.f32.partialorder %v16005_v20, 1.0 }
 0x4e6   : > { %vm2306_vm6 = vcmp.ge.f32.partialorder %v12316_v14, 1.0  ;;  %vm2338_vm11 = vcmp.le.f32.partialorder %v12316_v14, -1.0  ;;  %v12325_v47 = vpop.f32.mrb[5].mxu1  ;;  %v12351_v31 = vsel %vm16006_vm15, 1.0, %v15939_v26 }
 0x4e7   : > { %vm2307_vm12 = vcmp.ge.f32.partialorder %v12325_v47, 1.0  ;;  %vm2339_vm7 = vcmp.le.f32.partialorder %v12325_v47, -1.0  ;;  %v12332_v59 = vpop.f32.mrb[6].mxu1  ;;  %v2322_v3 = vsel %vm2306_vm6, 1.0, %v15939_v26  ;;  %v2354_v25 = vsel %vm2338_vm11, 1.0, %v15939_v26  ;;  %2742 = vmatprep.mubr.bf16.mxu0 %v2383_v23  ;;  %16007 = vst [vmem:[#allocation58_spill] sm:$0xff] %v12351_v31  ;;  %vm16010_vm6 = vmmov %vm16008_vm9 }
 0x4e8   : > { %v2323_v16 = vsel %vm2307_vm12, 1.0, %v15939_v26  ;;  %vm2308_vm1 = vcmp.ge.f32.partialorder %v12332_v59, 1.0  ;;  %v12338_v37 = vpop.f32.mrb[7].mxu1  ;;  %v2355_v11 = vsel %vm2339_vm7, 1.0, %v15939_v26  ;;  %vm2340_vm8 = vcmp.le.f32.partialorder %v12332_v59, -1.0  ;;  %2743 = vmatmul.mubr.bf16.vlgmr.msra.gmra.mrb[96].mxu0 %v2382_v17 }
 0x4e9   : > { %v2324_v4 = vsel %vm2308_vm1, 1.0, %v15939_v26  ;;  %vm2309_vm2 = vcmp.ge.f32.partialorder %v12338_v37, 1.0  ;;  %v2356_v5 = vsel %vm2340_vm8, 1.0, %v15939_v26  ;;  %vm2341_vm14 = vcmp.le.f32.partialorder %v12338_v37, -1.0  ;;  %2992 = vmatpush1.bf16.msra.mxu0 %v10312_v50 }
 0x4ea   : > { %v2325_v56 = vsel %vm2309_vm2, 1.0, %v15939_v26  ;;  %v12353_v0 = vsub.f32 %v2322_v3, %v2354_v25  ;;  %v12355_v23 = vsub.f32 %v2324_v4, %v2356_v5  ;;  %v2357_v17 = vsel %vm2341_vm14, 1.0, %v15939_v26  ;;  %2993 = vmatprep.subr.bf16.mxu0 %v10317_v34  ;;  %v16012_v25 = vld [vmem:[#allocation61_spill] sm:$0xff] }
 0x4eb   : > { %v12358_v36 = vsub.f32 %v2323_v16, %v2355_v11  ;;  %v12360_v54 = vsub.f32 %v2325_v56, %v2357_v17  ;;  %v12368_v50 = vsel %vm16008_vm9, %v3330_v22, %v15752_v44  ;;  %v12376_v34 = vsel %vm16010_vm6, %v15751_v10, %v3330_v22  ;;  %v10318_v17 = vld [vmem:[#allocation13 + $0x320] ss:$8 sps:$4 sm:$0xff]   ;;  %v10323_v56 = vld [vmem:[#allocation13 + $0x334] ss:$8 sps:$4 sm:$0xff]  }
 0x4ec   : > { %16009 = vst [vmem:[#allocation59_spill] sm:$0xff] %v12368_v50  ;;  %16011 = vst [vmem:[#allocation60_spill] sm:$0xff] %v12376_v34  ;;  %vm16013_vm11 = vcmp.ge.f32.partialorder %v16012_v25, 1.0  ;;  %v2384_v4 = vpack.c.bf16 %v12355_v23, %v12353_v0  ;;  %v16015_v25 = vld [vmem:[#allocation64_spill] sm:$0xff] }
 0x4ed   : > { %v12382_v16 = vsel %vm16013_vm11, 1.0, %v15939_v26  ;;  %v12384_v11 = vpop.f32.mrb[8].mxu1  ;;  %2994 = vmatpush1.bf16.msra.mxu0 %v10315_v30  ;;  %v2385_v20 = vpack.c.bf16 %v12360_v54, %v12358_v36  ;;  %vm16016_vm1 = vcmp.ge.f32.partialorder %v16015_v25, 1.0 }
 0x4ee   : > { %16014 = vst [vmem:[#allocation61_spill] sm:$0xff] %v12382_v16  ;;  %vm2310_vm12 = vcmp.ge.f32.partialorder %v12384_v11, 1.0  ;;  %vm2342_vm7 = vcmp.le.f32.partialorder %v12384_v11, -1.0  ;;  %v12393_v22 = vpop.f32.mrb[9].mxu1  ;;  %v12400_v10 = vsel %vm16016_vm1, 1.0, %v15939_v26  ;;  %2995 = vmatprep.subr.bf16.mxu0 %v10320_v57  ;;  %v16018_v57 = vld [vmem:[#allocation65_spill] sm:$0xff] }
 0x4ef   : > { %16017 = vst [vmem:[#allocation64_spill] sm:$0xff] %v12400_v10  ;;  %vm2311_vm8 = vcmp.ge.f32.partialorder %v12393_v22, 1.0  ;;  %vm2343_vm2 = vcmp.le.f32.partialorder %v12393_v22, -1.0  ;;  %v12404_v5 = vpop.f32.mrb[10].mxu1  ;;  %v2326_v3 = vsel %vm2310_vm12, 1.0, %v15939_v26  ;;  %v2358_v30 = vsel %vm2342_vm7, 1.0, %v15939_v26  ;;  %2752 = vmatprep.mubr.bf16.mxu0 %v2385_v20 }
 0x4f0   : > { %v2327_v9 = vsel %vm2311_vm8, 1.0, %v15939_v26  ;;  %vm2312_vm14 = vcmp.ge.f32.partialorder %v12404_v5, 1.0  ;;  %v12410_v25 = vpop.f32.mrb[11].mxu1  ;;  %v2359_v2 = vsel %vm2343_vm2, 1.0, %v15939_v26  ;;  %vm2344_vm15 = vcmp.le.f32.partialorder %v12404_v5, -1.0  ;;  %2753 = vmatmul.mubr.bf16.gmra.mrb[100].mxu0 %v2384_v4 }
 0x4f1   : > { %v2328_v60 = vsel %vm2312_vm14, 1.0, %v15939_v26  ;;  %vm2313_vm9 = vcmp.ge.f32.partialorder %v12410_v25, 1.0  ;;  %vm16019_vm6 = vcmp.ge.f32.partialorder %v16018_v57, 1.0  ;;  %v2360_v35 = vsel %vm2344_vm15, 1.0, %v15939_v26  ;;  %2996 = vmatpush1.bf16.msra.mxu0 %v10318_v17  ;;  %v10326_v57 = vld [vmem:[#allocation13 + $0x344] ss:$8 sps:$4 sm:$0xff]  }
 0x4f2   : > { %v12419_v52 = vsel %vm16019_vm6, 1.0, %v15939_v26  ;;  %v2329_v20 = vsel %vm2313_vm9, 1.0, %v15939_v26  ;;  %vm2345_vm11 = vcmp.le.f32.partialorder %v12410_v25, -1.0  ;;  %v12425_v19 = vsub.f32 %v2326_v3, %v2358_v30  ;;  %2997 = vmatprep.subr.bf16.mxu0 %v10323_v56 }
 0x4f3   : > { %16020 = vst [vmem:[#allocation65_spill] sm:$0xff] %v12419_v52  ;;  %v12427_v44 = vsub.f32 %v2328_v60, %v2360_v35  ;;  %v2361_v4 = vsel %vm2345_vm11, 1.0, %v15939_v26  ;;  %vm16022_vm12 = vcmp.ge.f32.partialorder %v16021_v46, 1.0  ;;  %v12436_v34 = vsub.f32 %v2327_v9, %v2359_v2 }
 0x4f4   : > { %v12434_v12 = vsel %vm16022_vm12, 1.0, %v15939_v26  ;;  %v12438_v17 = vsub.f32 %v2329_v20, %v2361_v4  ;;  %v16024_v60 = vrot.slane %v11515_v62, 7  ;;  %v16025_v56 = vrot.slane %v11510_v61, 7  ;;  %v16030_v4 = vld [vmem:[#allocation68_spill] sm:$0xff] }
 0x4f5   : > { %16023 = vst [vmem:[#allocation67_spill] sm:$0xff] %v12434_v12  ;;  %v12441_v30 = vpop.f32.mrb[12].mxu1  ;;  %v2386_v35 = vpack.c.bf16 %v12427_v44, %v12425_v19  ;;  %vm16026_vm7 = vcmp.lt.s32.totalorder %v11369_v15, 1  ;;  %v16028_v2 = vrot.slane %v11453_v41, 7  ;;  %vm16031_vm8 = vcmp.ge.f32.partialorder %v16030_v4, 1.0  ;;  %2998 = vmatpush1.bf16.msra.mxu0 %v10321_v7 }
 0x4f6   : > { %v12451_v46 = vsel %vm16026_vm7, %v16025_v56, %v16024_v60  ;;  %v16027_v9 = vmov %v16025_v56  ;;  %vm16029_vm1 = vmmov %vm16026_vm7  ;;  %v12464_v6 = vsel %vm16031_vm8, 1.0, %v15939_v26  ;;  %vm2314_vm2 = vcmp.ge.f32.partialorder %v12441_v30, 1.0  ;;  %v12468_v3 = vpop.f32.mrb[13].mxu1  ;;  %v10324_v56 = vld [vmem:[#allocation13 + $0x340] ss:$8 sps:$4 sm:$0xff]   ;;  %2999 = vmatprep.subr.bf16.mxu0 %v10326_v57  ;;  %v16032_v57 = vld [vmem:[#allocation71_spill] sm:$0xff] }
 0x4f7   : > { %v12459_v20 = vsel %vm16029_vm1, %v16028_v2, %v16027_v9  ;;  %vm2346_vm14 = vcmp.le.f32.partialorder %v12441_v30, -1.0  ;;  %v2387_v60 = vpack.c.bf16 %v12438_v17, %v12436_v34  ;;  %vm2315_vm15 = vcmp.ge.f32.partialorder %v12468_v3, 1.0  ;;  %v12475_v9 = vpop.f32.mrb[14].mxu1  ;;  %v10329_v2 = vld [vmem:[#allocation13 + $0x354] ss:$8 sps:$4 sm:$0xff]  }
 0x4f8   : > { %vm2347_vm9 = vcmp.le.f32.partialorder %v12468_v3, -1.0  ;;  %v2330_v4 = vsel %vm2314_vm2, 1.0, %v15939_v26  ;;  %v2362_v50 = vsel %vm2346_vm14, 1.0, %v15939_v26  ;;  %v2331_v7 = vsel %vm2315_vm15, 1.0, %v15939_v26  ;;  %v12481_v61 = vpop.f32.mrb[15].mxu1 }
 0x4f9   : > { %vm2316_vm6 = vcmp.ge.f32.partialorder %v12475_v9, 1.0  ;;  %2762 = vmatprep.mubr.bf16.mxu0 %v2387_v60  ;;  %v2363_v55 = vsel %vm2347_vm9, 1.0, %v15939_v26  ;;  %vm2348_vm11 = vcmp.le.f32.partialorder %v12475_v9, -1.0  ;;  %vm2317_vm12 = vcmp.ge.f32.partialorder %v12481_v61, 1.0  ;;  %3000 = vmatpush1.bf16.msra.mxu0 %v10324_v56 }
 0x4fa   : > { %v2332_v41 = vsel %vm2316_vm6, 1.0, %v15939_v26  ;;  %2763 = vmatmul.mubr.bf16.gmra.mrb[104].mxu0 %v2386_v35  ;;  %vm16033_vm7 = vcmp.ge.f32.partialorder %v16032_v57, 1.0  ;;  %v2364_v29 = vsel %vm2348_vm11, 1.0, %v15939_v26  ;;  %v2333_v60 = vsel %vm2317_vm12, 1.0, %v15939_v26  ;;  %3001 = vmatprep.subr.bf16.mxu0 %v10329_v2  ;;  %v10332_v57 = vld [vmem:[#allocation13 + $0x364] ss:$8 sps:$4 sm:$0xff]  }
 0x4fb   : > { %v12490_v39 = vsel %vm16033_vm7, 1.0, %v15939_v26  ;;  %vm2349_vm1 = vcmp.le.f32.partialorder %v12481_v61, -1.0  ;;  %v12495_v12 = vsub.f32 %v2330_v4, %v2362_v50  ;;  %v12497_v10 = vsub.f32 %v2332_v41, %v2364_v29  ;;  %v16038_v2 = vld [vmem:[#allocation44_spill] sm:$0xff]  ;;  %v10330_v29 = vld [vmem:[#allocation13 + $0x360] ss:$8 sps:$4 sm:$0xff]  }
 0x4fc   : > { %v2365_v52 = vsel %vm2349_vm1, 1.0, %v15939_v26  ;;  %v2398_v35 = vsub.f32 %v12263_v13, %v12292_v18  ;;  %v12502_v31 = vsub.f32 %v2331_v7, %v2363_v55  ;;  %v16034_v56 = vrot.slane %v11523_v63, 7 }
 0x4fd   : > { %v12504_v16 = vsub.f32 %v2333_v60, %v2365_v52  ;;  %v16035_v50 = vrot.slane %v11445_v40, 7  ;;  %vm16036_vm8 = vcmp.lt.s32.totalorder %v11369_v15, 1  ;;  %v2247_v13 = vpop.f32.mrb[16].mxu1  ;;  %v2399_v55 = vsub.f32 %v12269_v42, %v12303_v49  ;;  %v16041_v60 = vld [vmem:[#allocation72_spill] sm:$0xff]  ;;  %3002 = vmatpush1.bf16.msra.mxu0 %v10327_v53 }
 0x4fe   : > { %v2388_v52 = vpack.c.bf16 %v12497_v10, %v12495_v12  ;;  %v16039_v4 = vrot.slane %v16038_v2, 7  ;;  %vm16040_vm2 = vmmov %vm16036_vm8  ;;  %vm16042_vm14 = vcmp.ge.f32.partialorder %v16041_v60, 1.0  ;;  %v2249_v58 = vpop.f32.mrb[17].mxu1  ;;  %v2400_v42 = vsub.f32 %v12275_v45, %v12294_v1  ;;  %3003 = vmatprep.subr.bf16.mxu0 %v10332_v57  ;;  %v10335_v60 = vld [vmem:[#allocation13 + $0x374] ss:$8 sps:$4 sm:$0xff]  }
 0x4ff   : > { %v12514_v41 = vsel %vm16036_vm8, %v16035_v50, %v16034_v56  ;;  %v16037_v18 = vmov %v16035_v50  ;;  %v12532_v56 = vsel %vm16042_vm14, 1.0, %v15939_v26  ;;  %v2414_v50 = vadd.f32 %v2398_v35, %v2247_v13  ;;  %vm16045_vm6 = vmmov %vm16040_vm2 }
 0x500   : > { %v12527_v7 = vsel %vm16040_vm2, %v16039_v4, %v16037_v18  ;;  %v2389_v49 = vpack.c.bf16 %v12504_v16, %v12502_v31  ;;  %v2415_v40 = vadd.f32 %v2399_v55, %v2249_v58  ;;  %v2251_v18 = vpop.f32.mrb[18].mxu1  ;;  %v2401_v4 = vsub.f32 %v12281_v8, %v12305_v24  ;;  %vm16048_vm8 = vmmov %vm16040_vm2 }
 0x501   : > { %vm2430_vm15 = vcmp.ge.f32.partialorder %v2414_v50, 1.0  ;;  %vm2462_vm9 = vcmp.le.f32.partialorder %v2414_v50, -1.0  ;;  %v2416_v53 = vadd.f32 %v2400_v42, %v2251_v18  ;;  %v2253_v45 = vpop.f32.mrb[19].mxu1  ;;  %v16043_v1 = vrot.slane %v11574_v43, 7  ;;  %3004 = vmatpush1.bf16.msra.mxu0 %v10330_v29  ;;  %v10333_v50 = vld [vmem:[#allocation13 + $0x370] ss:$8 sps:$4 sm:$0xff]  }
 0x502   : > { %2772 = vmatprep.mubr.bf16.mxu0 %v2389_v49  ;;  %v16044_v13 = vrot.slane %v11569_v38, 7  ;;  %v2446_v8 = vsel %vm2430_vm15, 1.0, %v15939_v26  ;;  %v2478_v24 = vsel %vm2462_vm9, 1.0, %v15939_v26  ;;  %v2402_v57 = vsub.f32 %v12316_v14, %v12353_v0  ;;  %3005 = vmatprep.subr.bf16.mxu0 %v10335_v60  ;;  %v10338_v0 = vld [vmem:[#allocation13 + $0x384] ss:$8 sps:$4 sm:$0xff]  }
 0x503   : > { %2773 = vmatmul.mubr.bf16.gmra.mrb[108].mxu0 %v2388_v52  ;;  %v2403_v55 = vsub.f32 %v12325_v47, %v12358_v36  ;;  %vm2432_vm11 = vcmp.ge.f32.partialorder %v2416_v53, 1.0  ;;  %v2404_v42 = vsub.f32 %v12332_v59, %v12355_v23  ;;  %v2405_v49 = vsub.f32 %v12338_v37, %v12360_v54 }
 0x504   : > { %v12549_v58 = vsel %vm16045_vm6, %v16044_v13, %v16043_v1  ;;  %v2406_v18 = vsub.f32 %v12384_v11, %v12425_v19  ;;  %vm2431_vm12 = vcmp.ge.f32.partialorder %v2415_v40, 1.0  ;;  %v2448_v52 = vsel %vm2432_vm11, 1.0, %v15939_v26 }
 0x505   : > { %vm2464_vm7 = vcmp.le.f32.partialorder %v2416_v53, -1.0  ;;  %v2417_v14 = vadd.f32 %v2401_v4, %v2253_v45  ;;  %v2494_v36 = vsub.f32 %v2446_v8, %v2478_v24  ;;  %vm2463_vm1 = vcmp.le.f32.partialorder %v2415_v40, -1.0  ;;  %v2257_v23 = vpop.f32.mrb[20].mxu1  ;;  %3006 = vmatpush1.bf16.msra.mxu0 %v10333_v50 }
 0x506   : > { %v2480_v47 = vsel %vm2464_vm7, 1.0, %v15939_v26  ;;  %v16046_v29 = vmov %v16044_v13  ;;  %v16047_v59 = vrot.slane %v11515_v62, 7  ;;  %v2447_v60 = vsel %vm2431_vm12, 1.0, %v15939_v26  ;;  %v2259_v1 = vpop.f32.mrb[21].mxu1  ;;  %v10336_v13 = vld [vmem:[#allocation13 + $0x380] ss:$8 sps:$4 sm:$0xff]   ;;  %3007 = vmatprep.subr.bf16.mxu0 %v10338_v0 }
 0x507   : > { %v2496_v37 = vsub.f32 %v2448_v52, %v2480_v47  ;;  %vm2433_vm2 = vcmp.ge.f32.partialorder %v2417_v14, 1.0  ;;  %vm2465_vm14 = vcmp.le.f32.partialorder %v2417_v14, -1.0  ;;  %v2418_v45 = vadd.f32 %v2402_v57, %v2257_v23  ;;  %v2261_v47 = vpop.f32.mrb[22].mxu1 }
 0x508   : > { %v12571_v54 = vsel %vm16048_vm8, %v16047_v59, %v16046_v29  ;;  %v2449_v40 = vsel %vm2433_vm2, 1.0, %v15939_v26  ;;  %v2481_v53 = vsel %vm2465_vm14, 1.0, %v15939_v26  ;;  %v2479_v8 = vsel %vm2463_vm1, 1.0, %v15939_v26  ;;  %v10341_v29 = vld [vmem:[#allocation13 + $0x394] ss:$8 sps:$4 sm:$0xff]   ;;  %v2263_v4 = vpop.f32.mrb[23].mxu1  ;;  %vm16053_vm8 = vmmov %vm16045_vm6 }
 0x509   : > { %v2497_v24 = vsub.f32 %v2449_v40, %v2481_v53  ;;  %v2419_v52 = vadd.f32 %v2403_v55, %v2259_v1  ;;  %v2510_v14 = vpack.c.bf16 %v2496_v37, %v2494_v36  ;;  %vm2434_vm15 = vcmp.ge.f32.partialorder %v2418_v45, 1.0  ;;  %3008 = vmatpush1.bf16.msra.mxu0 %v10336_v13  ;;  %v10339_v37 = vld [vmem:[#allocation13 + $0x390] ss:$8 sps:$4 sm:$0xff]   ;;  %v10344_v40 = vld [vmem:[#allocation13 + $0x3a4] ss:$8 sps:$4 sm:$0xff]  }
 0x50a   : > { %vm2466_vm9 = vcmp.le.f32.partialorder %v2418_v45, -1.0  ;;  %v2420_v59 = vadd.f32 %v2404_v42, %v2261_v47  ;;  %v16049_v35 = vrot.slane %v11597_v28, 7  ;;  %v16050_v2 = vrot.slane %v11592_v27, 7  ;;  %3009 = vmatprep.subr.bf16.mxu0 %v10341_v29 }
 0x50b   : > { %v2450_v50 = vsel %vm2434_vm15, 1.0, %v15939_v26  ;;  %v2482_v55 = vsel %vm2466_vm9, 1.0, %v15939_v26  ;;  %v2407_v0 = vsub.f32 %v12393_v22, %v12436_v34  ;;  %v2408_v36 = vsub.f32 %v12404_v5, %v12427_v44 }
 0x50c   : > { %v12585_v57 = vsel %vm16045_vm6, %v16050_v2, %v16049_v35  ;;  %v2495_v42 = vsub.f32 %v2447_v60, %v2479_v8  ;;  %vm2435_vm11 = vcmp.ge.f32.partialorder %v2419_v52, 1.0  ;;  %vm2436_vm12 = vcmp.ge.f32.partialorder %v2420_v59, 1.0  ;;  %v10342_v8 = vld [vmem:[#allocation13 + $0x3a0] ss:$8 sps:$4 sm:$0xff]  }
 0x50d   : > { %v2409_v23 = vsub.f32 %v12410_v25, %v12438_v17  ;;  %vm2467_vm7 = vcmp.le.f32.partialorder %v2419_v52, -1.0  ;;  %v2452_v2 = vsel %vm2436_vm12, 1.0, %v15939_v26  ;;  %vm2468_vm1 = vcmp.le.f32.partialorder %v2420_v59, -1.0  ;;  %v2267_v17 = vpop.f32.mrb[24].mxu1  ;;  %3010 = vmatpush1.bf16.msra.mxu0 %v10339_v37 }
 0x50e   : > { %v2421_v35 = vadd.f32 %v2405_v49, %v2263_v4  ;;  %v2498_v53 = vsub.f32 %v2450_v50, %v2482_v55  ;;  %v2484_v34 = vsel %vm2468_vm1, 1.0, %v15939_v26  ;;  %v2511_v22 = vpack.c.bf16 %v2497_v24, %v2495_v42  ;;  %v2269_v13 = vpop.f32.mrb[25].mxu1  ;;  %3011 = vmatprep.subr.bf16.mxu0 %v10344_v40  ;;  %v10347_v42 = vld [vmem:[#allocation13 + $0x3b4] ss:$8 sps:$4 sm:$0xff]   ;;  %v10350_v40 = vld [vmem:[#allocation13 + $0x3c4] ss:$8 sps:$4 sm:$0xff]  }
 0x50f   : > { %v16051_v44 = vrot.slane %v11592_v27, 7  ;;  %v16052_v5 = vrot.slane %v11523_v63, 7  ;;  %v2500_v25 = vsub.f32 %v2452_v2, %v2484_v34  ;;  %v2422_v1 = vadd.f32 %v2406_v18, %v2267_v17  ;;  %v2271_v50 = vpop.f32.mrb[26].mxu1  ;;  %v10348_v17 = vld [vmem:[#allocation13 + $0x3c0] ss:$8 sps:$4 sm:$0xff]  }
 0x510   : > { %vm2437_vm2 = vcmp.ge.f32.partialorder %v2421_v35, 1.0  ;;  %vm2469_vm14 = vcmp.le.f32.partialorder %v2421_v35, -1.0  ;;  %2782 = vmatprep.mubr.bf16.mxu0 %v2511_v22  ;;  %v2410_v24 = vsub.f32 %v12441_v30, %v12495_v12  ;;  %v2451_v47 = vsel %vm2435_vm11, 1.0, %v15939_v26  ;;  %v2273_v18 = vpop.f32.mrb[27].mxu1 }
 0x511   : > { %v12603_v60 = vsel %vm16053_vm8, %v16052_v5, %v16051_v44  ;;  %v2453_v4 = vsel %vm2437_vm2, 1.0, %v15939_v26  ;;  %v2485_v45 = vsel %vm2469_vm14, 1.0, %v15939_v26  ;;  %v2483_v29 = vsel %vm2467_vm7, 1.0, %v15939_v26  ;;  %2783 = vmatmul.mubr.bf16.gmra.mrb[112].mxu0 %v2510_v14  ;;  %v10345_v14 = vld [vmem:[#allocation13 + $0x3b0] ss:$8 sps:$4 sm:$0xff]  }
 0x512   : > { %v2423_v59 = vadd.f32 %v2407_v0, %v2269_v13  ;;  %v2512_v55 = vpack.c.bf16 %v2500_v25, %v2498_v53  ;;  %v2501_v19 = vsub.f32 %v2453_v4, %v2485_v45  ;;  %vm2438_vm15 = vcmp.ge.f32.partialorder %v2422_v1, 1.0  ;;  %3012 = vmatpush1.bf16.msra.mxu0 %v10342_v8 }
 0x513   : > { %vm2470_vm9 = vcmp.le.f32.partialorder %v2422_v1, -1.0  ;;  %v2424_v11 = vadd.f32 %v2408_v36, %v2271_v50  ;;  %v2454_v37 = vsel %vm2438_vm15, 1.0, %v15939_v26  ;;  %v2411_v30 = vsub.f32 %v12468_v3, %v12502_v31  ;;  %3013 = vmatprep.subr.bf16.mxu0 %v10347_v42  ;;  %v10353_v50 = vld [vmem:[#allocation13 + $0x3d4] ss:$8 sps:$4 sm:$0xff]  }
 0x514   : > { %v2486_v12 = vsel %vm2470_vm9, 1.0, %v15939_v26  ;;  %vm2439_vm6 = vcmp.ge.f32.partialorder %v2423_v59, 1.0  ;;  %v2499_v52 = vsub.f32 %v2451_v47, %v2483_v29  ;;  %v2412_v0 = vsub.f32 %v12475_v9, %v12497_v10 }
 0x515   : > { %vm2440_vm11 = vcmp.ge.f32.partialorder %v2424_v11, 1.0  ;;  %v2413_v2 = vsub.f32 %v12481_v61, %v12504_v16  ;;  %vm2471_vm12 = vcmp.le.f32.partialorder %v2423_v59, -1.0  ;;  %vm2472_vm7 = vcmp.le.f32.partialorder %v2424_v11, -1.0  ;;  %v2277_v10 = vpop.f32.mrb[28].mxu1 }
 0x516   : > { %v2456_v36 = vsel %vm2440_vm11, 1.0, %v15939_v26  ;;  %v2425_v35 = vadd.f32 %v2409_v23, %v2273_v18  ;;  %v2502_v53 = vsub.f32 %v2454_v37, %v2486_v12  ;;  %v2455_v31 = vsel %vm2439_vm6, 1.0, %v15939_v26  ;;  %v2279_v25 = vpop.f32.mrb[29].mxu1  ;;  %3014 = vmatpush1.bf16.msra.mxu0 %v10345_v14 }
 0x517   : > { %v2488_v3 = vsel %vm2472_vm7, 1.0, %v15939_v26  ;;  %v2513_v34 = vpack.c.bf16 %v2501_v19, %v2499_v52  ;;  %v16054_v9 = vrot.slane %v11641_v32, 7  ;;  %v16055_v61 = vrot.slane %v11636_v21, 7  ;;  %v2281_v29 = vpop.f32.mrb[30].mxu1  ;;  %3015 = vmatprep.subr.bf16.mxu0 %v10350_v40 }
 0x518   : > { %v2504_v22 = vsub.f32 %v2456_v36, %v2488_v3  ;;  %vm2441_vm1 = vcmp.ge.f32.partialorder %v2425_v35, 1.0  ;;  %vm2473_vm8 = vcmp.le.f32.partialorder %v2425_v35, -1.0  ;;  %vm16056_vm2 = vcmp.lt.s32.totalorder %v11369_v15, 1  ;;  %v2283_v19 = vpop.f32.mrb[31].mxu1  ;;  %v10356_v36 = vld [vmem:[#allocation13 + $0x3e4] ss:$8 sps:$4 sm:$0xff]  }
 0x519   : > { %v12635_v16 = vsel %vm16056_vm2, %v16055_v61, %v16054_v9  ;;  %v2457_v23 = vsel %vm2441_vm1, 1.0, %v15939_v26  ;;  %v2489_v44 = vsel %vm2473_vm8, 1.0, %v15939_v26  ;;  %2792 = vmatprep.mubr.bf16.mxu0 %v2513_v34  ;;  %v2426_v5 = vadd.f32 %v2410_v24, %v2277_v10  ;;  %vm16059_vm14 = vmmov %vm16056_vm2 }
 0x51a   : > { %v16057_v4 = vmov %v16055_v61  ;;  %v16058_v45 = vrot.slane %v11574_v43, 7  ;;  %v2487_v13 = vsel %vm2471_vm12, 1.0, %v15939_v26  ;;  %v2505_v8 = vsub.f32 %v2457_v23, %v2489_v44  ;;  %2793 = vmatmul.mubr.bf16.gmra.mrb[116].mxu0 %v2512_v55  ;;  %vm16062_vm1 = vmmov %vm16056_vm2  ;;  %v16066_v61 = vld [vmem:[#allocation73_spill] sm:$0xff] }
 0x51b   : > { %v2427_v47 = vadd.f32 %v2411_v30, %v2279_v25  ;;  %v2514_v24 = vpack.c.bf16 %v2504_v22, %v2502_v53  ;;  %vm2442_vm15 = vcmp.ge.f32.partialorder %v2426_v5, 1.0  ;;  %vm2474_vm9 = vcmp.le.f32.partialorder %v2426_v5, -1.0  ;;  %3016 = vmatpush1.bf16.msra.mxu0 %v10348_v17  ;;  %v10351_v30 = vld [vmem:[#allocation13 + $0x3d0] ss:$8 sps:$4 sm:$0xff]   ;;  %vm16065_vm8 = vmmov %vm16062_vm1  ;;  %v10354_v17 = vld [vmem:[#allocation13 + $0x3e0] ss:$8 sps:$4 sm:$0xff]  }
 0x51c   : > { %v12645_v1 = vsel %vm16059_vm14, %v16058_v45, %v16057_v4  ;;  %v2428_v42 = vadd.f32 %v2412_v0, %v2281_v29  ;;  %v2458_v18 = vsel %vm2442_vm15, 1.0, %v15939_v26  ;;  %v2490_v37 = vsel %vm2474_vm9, 1.0, %v15939_v26  ;;  %3017 = vmatprep.subr.bf16.mxu0 %v10353_v50  ;;  %v16068_v4 = vld [vmem:[#allocation74_spill] sm:$0xff] }
 0x51d   : > { %vm2443_vm6 = vcmp.ge.f32.partialorder %v2427_v47, 1.0  ;;  %vm2475_vm11 = vcmp.le.f32.partialorder %v2427_v47, -1.0  ;;  %v2503_v59 = vsub.f32 %v2455_v31, %v2487_v13  ;;  %v2506_v55 = vsub.f32 %v2458_v18, %v2490_v37  ;;  %v10359_v47 = vld [vmem:[#allocation13 + $0x3f4] ss:$8 sps:$4 sm:$0xff]   ;;  %v16071_v50 = vld [vmem:[#allocation66_spill] sm:$0xff] }
 0x51e   : > { %v2459_v12 = vsel %vm2443_vm6, 1.0, %v15939_v26  ;;  %vm2444_vm12 = vcmp.ge.f32.partialorder %v2428_v42, 1.0  ;;  %v2491_v52 = vsel %vm2475_vm11, 1.0, %v15939_v26  ;;  %vm2476_vm7 = vcmp.le.f32.partialorder %v2428_v42, -1.0  ;;  %vm16073_vm6 = vmmov %vm16062_vm1  ;;  %v16074_v37 = vld [vmem:[#allocation76_spill] sm:$0xff] }
 0x51f   : > { %v2460_v14 = vsel %vm2444_vm12, 1.0, %v15939_v26  ;;  %v2429_v0 = vadd.f32 %v2413_v2, %v2283_v19  ;;  %v2492_v35 = vsel %vm2476_vm7, 1.0, %v15939_v26  ;;  %v2515_v40 = vpack.c.bf16 %v2505_v8, %v2503_v59  ;;  %3018 = vmatpush1.bf16.msra.mxu0 %v10351_v30  ;;  %vm16078_vm12 = vmmov %vm16062_vm1  ;;  %v16079_v30 = vld [vmem:[#allocation61_spill] sm:$0xff] }
 0x520   : > { %v16060_v53 = vrot.slane %v15999_v51, 7  ;;  %v16061_v31 = vrot.slane %v11646_v33, 7  ;;  %v16064_v22 = vrot.slane %v11597_v28, 7  ;;  %v2508_v10 = vsub.f32 %v2460_v14, %v2492_v35  ;;  %3019 = vmatprep.subr.bf16.mxu0 %v10356_v36  ;;  %v16081_v14 = vld [vmem:[#allocation58_spill] sm:$0xff]  ;;  %vm16083_vm7 = vmmov %vm16062_vm1 }
 0x521   : > { %vm2445_vm2 = vcmp.ge.f32.partialorder %v2429_v0, 1.0  ;;  %vm2477_vm14 = vcmp.le.f32.partialorder %v2429_v0, -1.0  ;;  %vm16067_vm15 = vcmp.ge.f32.partialorder %v16066_v61, 1.0  ;;  %v2507_v44 = vsub.f32 %v2459_v12, %v2491_v52  ;;  %2802 = vmatprep.mubr.bf16.mxu0 %v2515_v40  ;;  %v16084_v35 = vld [vmem:[#allocation78_spill] sm:$0xff] }
 0x522   : > { %v12663_v3 = vsel %vm16062_vm1, %v16061_v31, %v16060_v53  ;;  %v16063_v34 = vmov %v16061_v31  ;;  %v12678_v23 = vsel %vm16067_vm15, 1.0, %v15939_v26  ;;  %v2461_v5 = vsel %vm2445_vm2, 1.0, %v15939_v26  ;;  %2803 = vmatmul.mubr.bf16.gmra.mrb[120].mxu0 %v2514_v24  ;;  %vm16093_vm2 = vmmov %vm16073_vm6 }
 0x523   : > { %v12671_v2 = vsel %vm16065_vm8, %v16064_v22, %v16063_v34  ;;  %v2493_v25 = vsel %vm2477_vm14, 1.0, %v15939_v26  ;;  %vm16069_vm9 = vcmp.ge.f32.partialorder %v16068_v4, 1.0  ;;  %v2516_v8 = vpack.c.bf16 %v2508_v10, %v2506_v55  ;;  %vm16088_vm8 = vmmov %vm16073_vm6  ;;  %3020 = vmatpush1.bf16.msra.mxu0 %v10354_v17  ;;  %v16089_v4 = vld [vmem:[#allocation65_spill] sm:$0xff] }
 0x524   : > { %v12685_v45 = vsel %vm16069_vm9, 1.0, %v15939_v26  ;;  %v2509_v13 = vsub.f32 %v2461_v5, %v2493_v25  ;;  %v16070_v29 = vrot.slane %v12321_v48, 7  ;;  %v16072_v42 = vrot.slane %v16071_v50, 7  ;;  %v10357_v25 = vld [vmem:[#allocation13 + $0x3f0] ss:$8 sps:$4 sm:$0xff]   ;;  %3021 = vmatprep.subr.bf16.mxu0 %v10359_v47  ;;  %vm16096_vm14 = vmmov %vm16093_vm2 }
 0x525   : > { %v3356_v18 = vrot.slane %v12532_v56, 7  ;;  %vm16075_vm11 = vcmp.ge.f32.partialorder %v16074_v37, 1.0  ;;  %v16077_v55 = vmov %v16054_v9  ;;  %v16080_v52 = vrot.slane %v16079_v30, 7  ;;  %vm16100_vm15 = vmmov %vm16093_vm2 }
 0x526   : > { %v12693_v19 = vsel %vm16073_vm6, %v16072_v42, %v16070_v29  ;;  %v12699_v59 = vsel %vm16075_vm11, 1.0, %v15939_v26  ;;  %v16076_v24 = vmov %v16072_v42  ;;  %v16082_v0 = vrot.slane %v16081_v14, 7  ;;  %v16091_v29 = vld [vmem:[#allocation64_spill] sm:$0xff]  ;;  %vm16103_vm9 = vmmov %vm16093_vm2 }
 0x527   : > { %v12707_v12 = vsel %vm16078_vm12, %v16077_v55, %v16076_v24  ;;  %vm16085_vm1 = vcmp.ge.f32.partialorder %v16084_v35, 1.0  ;;  %v2517_v53 = vpack.c.bf16 %v2509_v13, %v2507_v44  ;;  %v16087_v22 = vrot.slane %v15999_v51, 7  ;;  %v10362_v24 = vld [vmem:[#allocation14 + $0x4] ss:$8 sps:$4 sm:$0xff]   ;;  %v16098_v35 = vld [vmem:[#allocation67_spill] sm:$0xff]  ;;  %vm16106_vm6 = vmmov %vm16093_vm2  ;;  %3022 = vmatpush1.bf16.msra.mxu0 %v10357_v25 }
 0x528   : > { %v12715_v36 = vsel %vm16083_vm7, %v16082_v0, %v16080_v52  ;;  %v12720_v40 = vsel %vm16085_vm1, 1.0, %v15939_v26  ;;  %v16086_v34 = vmov %v16082_v0  ;;  %v3353_v61 = vrot.slane %v12678_v23, 7  ;;  %vm16110_vm11 = vmmov %vm16093_vm2  ;;  %4155 = vmatprep.subr.bf16.mxu0 %v10362_v24  ;;  %v10360_v25 = vld [vmem:[#allocation14] ss:$8 sps:$4 sm:$0xff]   ;;  %v10368_v24 = vld [vmem:[#allocation14 + $0x24] ss:$8 sps:$4 sm:$0xff]  }
 0x529   : > { %v12730_v10 = vsel %vm16088_vm8, %v16087_v22, %v16086_v34  ;;  %v3355_v5 = vrot.slane %v12685_v45, 7  ;;  %v16090_v13 = vrot.slane %v16089_v4, 7  ;;  %v16092_v42 = vrot.slane %v16091_v29, 7  ;;  %2812 = vmatprep.mubr.bf16.mxu0 %v2517_v53  ;;  %vm16112_vm12 = vmmov %vm16093_vm2 }
 0x52a   : > { %v16095_v52 = vrot.slane %v12321_v48, 7  ;;  %v16097_v0 = vrot.slane %v12464_v6, 7  ;;  %v16099_v34 = vrot.slane %v16098_v35, 7  ;;  %v16102_v47 = vrot.slane %v16079_v30, 7  ;;  %vm16115_vm7 = vmmov %vm16093_vm2  ;;  %2813 = vmatmul.mubr.bf16.gmra.mrb[124].mxu0 %v2516_v8 }
 0x52b   : > { %v12742_v37 = vsel %vm16093_vm2, %v16092_v42, %v16090_v13  ;;  %v16094_v55 = vmov %v16092_v42  ;;  %v3358_v42 = vrot.slane %v12699_v59, 7  ;;  %v12792_v44 = vsel %vm16112_vm12, %v3353_v61, %v3355_v5  ;;  %vm16121_vm1 = vmmov %vm16093_vm2 }
 0x52c   : > { %v12750_v17 = vsel %vm16096_vm14, %v16095_v52, %v16094_v55  ;;  %v12758_v22 = vsel %vm16100_vm15, %v16099_v34, %v16097_v0  ;;  %v16101_v53 = vmov %v16099_v34  ;;  %v3357_v55 = vrot.slane %v12720_v40, 7  ;;  %16113 = vst [vmem:[#allocation72_spill] sm:$0xff] %v12792_v44  ;;  %v16119_v52 = vld [vmem:[#allocation85_spill] sm:$0xff]  ;;  %vm16123_vm8 = vmmov %vm16121_vm1 }
 0x52d   : > { %v12766_v13 = vsel %vm16103_vm9, %v16102_v47, %v16101_v53  ;;  %v16105_v0 = vrot.slane %v12490_v39, 7  ;;  %v16109_v53 = vrot.slane %v16089_v4, 7  ;;  %v16114_v9 = vrot.slane %v12464_v6, 7  ;;  %vm16127_vm2 = vmmov %vm16121_vm1 }
 0x52e   : > { %16104 = vst [vmem:[#allocation68_spill] sm:$0xff] %v12766_v13  ;;  %v16120_v11 = vrot.slane %v16119_v52, 7  ;;  %v12813_v26 = vsel %vm16123_vm8, %v3356_v18, %v3358_v42  ;;  %vm16129_vm14 = vmmov %vm16121_vm1 }
 0x52f   : > { %v12778_v34 = vsel %vm16106_vm6, %v16105_v0, %v3356_v18  ;;  %v16108_v31 = vmov %v16105_v0  ;;  %v12798_v0 = vsel %vm16115_vm7, %v16114_v9, %v3353_v61  ;;  %16124 = vst [vmem:[#allocation66_spill] sm:$0xff] %v12813_v26  ;;  %v16125_v9 = vld [vmem:[#allocation80_spill] sm:$0xff]  ;;  %v10378_v18 = vld [vmem:[#allocation14 + $0x60] ss:$8 sps:$4 sm:$0xff]   ;;  %v10410_v26 = vld [vmem:[#allocation14 + $0x104] ss:$8 sps:$4 sm:$0xff]  }
 0x530   : > { %16107 = vst [vmem:[#allocation71_spill] sm:$0xff] %v12778_v34  ;;  %v12786_v47 = vsel %vm16110_vm11, %v16109_v53, %v16108_v31  ;;  %16116 = vst [vmem:[#allocation73_spill] sm:$0xff] %v12798_v0  ;;  %v16117_v53 = vmov 1.0|1.0   ;;  %v12809_v49 = vsel %vm16121_vm1, %v3358_v42, %v16120_v11  ;;  %v16126_v8 = vrot.slane %v16125_v9, 7  ;;  %v16136_v11 = vld [vmem:[#allocation56_spill] sm:$0xff] }
 0x531   : > { %16111 = vst [vmem:[#allocation44_spill] sm:$0xff] %v12786_v47  ;;  %9302 = vmatprep.mubr.msk.bf16.mxu0 %vm11357_vm3, %v16117_v53  ;;  %16122 = vst [vmem:[#allocation74_spill] sm:$0xff] %v12809_v49  ;;  %v12825_v31 = vsel %vm16129_vm14, %v3355_v5, %v3357_v55  ;;  %v10365_v0 = vld [vmem:[#allocation14 + $0x14] ss:$8 sps:$4 sm:$0xff]   ;;  %v10363_v42 = vld [vmem:[#allocation14 + $0x10] ss:$8 sps:$4 sm:$0xff]   ;;  %vm16137_vm15 = vnez %v16136_v11 }
 0x532   : > { %v12819_v61 = vsel %vm16127_vm2, %v3357_v55, %v16126_v8  ;;  %16130 = vst [vmem:[#allocation61_spill] sm:$0xff] %v12825_v31  ;;  %9304 = vmatmul.mubr.msk.bf16.vlgmr.msra.gmra.mrb[96].mxu0 %vm11365_vm5, %v16117_v53  ;;  %v10366_v5 = vld [vmem:[#allocation14 + $0x20] ss:$8 sps:$4 sm:$0xff]   ;;  %v10371_v55 = vld [vmem:[#allocation14 + $0x34] ss:$8 sps:$4 sm:$0xff]  }
 0x533   : > { %16128 = vst [vmem:[#allocation76_spill] sm:$0xff] %v12819_v61  ;;  %4156 = vmatpush1.bf16.msra.mxu0 %v10360_v25  ;;  %9306 = vmatprep.mubr.msk.bf16.mxu0 %vm11416_vm10, %v16117_v53  ;;  %v10369_v31 = vld [vmem:[#allocation14 + $0x30] ss:$8 sps:$4 sm:$0xff]   ;;  %v10374_v25 = vld [vmem:[#allocation14 + $0x44] ss:$8 sps:$4 sm:$0xff]  }
 0x534   : > { %4157 = vmatprep.subr.bf16.mxu0 %v10365_v0  ;;  %v10372_v8 = vld [vmem:[#allocation14 + $0x40] ss:$8 sps:$4 sm:$0xff]   ;;  %v10377_v0 = vld [vmem:[#allocation14 + $0x54] ss:$8 sps:$4 sm:$0xff]   ;;  %v10404_v61 = vld [vmem:[#allocation14 + $0xe4] ss:$8 sps:$4 sm:$0xff]  }
 0x535   : > { %v10384_v11 = vld [vmem:[#allocation14 + $0x80] ss:$8 sps:$4 sm:$0xff]   ;;  %v16162_v49 = vld [vmem:[#allocation51_spill] sm:$0xff]  ;;  %v16167_v34 = vld [vmem:[#allocation60_spill] sm:$0xff] }
 0x536   : > { %v3445_v44 = vrot.slane %v16162_v49, 1  ;;  %v16163_v9 = vld [vmem:[#allocation55_spill] sm:$0xff] }
 0x537   : > { %4158 = vmatpush1.bf16.msra.mxu0 %v10363_v42  ;;  %v16140_v42 = vld [vmem:[#allocation62_spill] sm:$0xff]  ;;  %v3447_v52 = vrot.slane %v16163_v9, 1  ;;  %v16166_v47 = vld [vmem:[#allocation59_spill] sm:$0xff] }
 0x538   : > { %4159 = vmatprep.subr.bf16.mxu0 %v10368_v24  ;;  %v10375_v24 = vld [vmem:[#allocation14 + $0x50] ss:$8 sps:$4 sm:$0xff]   ;;  %vm16141_vm6 = vnez %v16140_v42  ;;  %v10390_v42 = vld [vmem:[#allocation14 + $0xa0] ss:$8 sps:$4 sm:$0xff]   ;;  %v16168_v13 = vpack.c.bf16 %v16166_v47, %v16167_v34  ;;  %v12927_v34 = vadd.s32 32, %v11369_v15  ;;  %v12930_v47 = vadd.s32 40, %v11369_v15 }
 0x539   : > { %v10422_v9 = vld [vmem:[#allocation14 + $0x144] ss:$8 sps:$4 sm:$0xff]  }
 0x53a   : > { %9308 = vmatmul.mubr.msk.bf16.gmra.mrb[100].mxu0 %vm11430_vm13, %v16117_v53 }
 0x53b   : > { %4160 = vmatpush1.bf16.msra.mxu0 %v10366_v5  ;;  %9310 = vmatprep.mubr.msk.bf16.mxu0 %vm11463_vm0, %v16117_v53  ;;  %v10380_v5 = vld [vmem:[#allocation14 + $0x64] ss:$8 sps:$4 sm:$0xff]  }
 0x53c   : > { %4161 = vmatprep.subr.bf16.mxu0 %v10371_v55  ;;  %v10383_v55 = vld [vmem:[#allocation14 + $0x74] ss:$8 sps:$4 sm:$0xff]  }
 0x53f   : > { %4162 = vmatpush1.bf16.msra.mxu0 %v10369_v31  ;;  %v16138_v31 = vld [vmem:[#allocation57_spill] sm:$0xff] }
 0x540   : > { %4163 = vmatprep.subr.bf16.mxu0 %v10374_v25  ;;  %vm16139_vm9 = vnez %v16138_v31  ;;  %v10381_v25 = vld [vmem:[#allocation14 + $0x70] ss:$8 sps:$4 sm:$0xff]   ;;  %v16144_v31 = vld [vmem:[#allocation69_spill] sm:$0xff] }
 0x541   : > { %vm16145_vm12 = vnez %v16144_v31  ;;  %v12866_v31 = vadd.s32 8, %v11369_v15 }
 0x542   : > { %9312 = vmatmul.mubr.msk.bf16.gmra.mrb[104].mxu0 %vm11499_vm4, %v16117_v53 }
 0x543   : > { %4164 = vmatpush1.bf16.msra.mxu0 %v10372_v8  ;;  %9314 = vmatprep.mubr.msk.bf16.mxu0 %vm16137_vm15, %v16117_v53  ;;  %v10386_v8 = vld [vmem:[#allocation14 + $0x84] ss:$8 sps:$4 sm:$0xff]   ;;  %16150 = vst [vmem:[#allocation58_spill] sm:$0xff] %v12866_v31 }
 0x544   : > { %4165 = vmatprep.subr.bf16.mxu0 %v10377_v0  ;;  %v10389_v0 = vld [vmem:[#allocation14 + $0x94] ss:$8 sps:$4 sm:$0xff]  }
 0x547   : > { %4166 = vmatpush1.bf16.msra.mxu0 %v10375_v24  ;;  %v16142_v24 = vld [vmem:[#allocation63_spill] sm:$0xff] }
 0x548   : > { %4167 = vmatprep.subr.bf16.mxu0 %v10380_v5  ;;  %vm16143_vm11 = vnez %v16142_v24  ;;  %v10387_v5 = vld [vmem:[#allocation14 + $0x90] ss:$8 sps:$4 sm:$0xff]  }
 0x549   : > { %v16148_v24 = vld [vmem:[#allocation75_spill] sm:$0xff] }
 0x54a   : > { %9316 = vmatmul.mubr.msk.bf16.gmra.mrb[108].mxu0 %vm16139_vm9, %v16117_v53  ;;  %vm16149_vm1 = vnez %v16148_v24  ;;  %v10399_v24 = vld [vmem:[#allocation14 + $0xd0] ss:$8 sps:$4 sm:$0xff]  }
 0x54b   : > { %4168 = vmatpush1.bf16.msra.mxu0 %v10378_v18  ;;  %9318 = vmatprep.mubr.msk.bf16.mxu0 %vm16141_vm6, %v16117_v53  ;;  %v10392_v18 = vld [vmem:[#allocation14 + $0xa4] ss:$8 sps:$4 sm:$0xff]  }
 0x54c   : > { %4169 = vmatprep.subr.bf16.mxu0 %v10383_v55  ;;  %v10395_v55 = vld [vmem:[#allocation14 + $0xb4] ss:$8 sps:$4 sm:$0xff]  }
 0x54f   : > { %4170 = vmatpush1.bf16.msra.mxu0 %v10381_v25  ;;  %v16146_v25 = vld [vmem:[#allocation70_spill] sm:$0xff] }
 0x550   : > { %4171 = vmatprep.subr.bf16.mxu0 %v10386_v8  ;;  %vm16147_vm7 = vnez %v16146_v25  ;;  %v10393_v8 = vld [vmem:[#allocation14 + $0xb0] ss:$8 sps:$4 sm:$0xff]   ;;  %v15780_v25 = vand.u32 7, %v12866_v31  ;;  %v16161_v31 = vld [vmem:[#allocation49_spill] sm:$0xff] }
 0x552   : > { %9320 = vmatmul.mubr.msk.bf16.gmra.mrb[112].mxu0 %vm16143_vm11, %v16117_v53  ;;  %vm16180_vm11 = vcmp.lt.s32.totalorder %v11369_v15, 7 }
 0x553   : > { %4172 = vmatpush1.bf16.msra.mxu0 %v10384_v11  ;;  %9322 = vmatprep.mubr.msk.bf16.mxu0 %vm16145_vm12, %v16117_v53  ;;  %v10398_v11 = vld [vmem:[#allocation14 + $0xc4] ss:$8 sps:$4 sm:$0xff]   ;;  %vm16181_vm6 = vmmov %vm16180_vm11 }
 0x554   : > { %4173 = vmatprep.subr.bf16.mxu0 %v10389_v0  ;;  %v10396_v0 = vld [vmem:[#allocation14 + $0xc0] ss:$8 sps:$4 sm:$0xff]  }
 0x557   : > { %4174 = vmatpush1.bf16.msra.mxu0 %v10387_v5  ;;  %v10401_v5 = vld [vmem:[#allocation14 + $0xd4] ss:$8 sps:$4 sm:$0xff]  }
 0x558   : > { %4175 = vmatprep.subr.bf16.mxu0 %v10392_v18  ;;  %v15781_v18 = vand.u32 7, %v11369_v15 }
 0x55a   : > { %9324 = vmatmul.mubr.msk.bf16.gmra.mrb[116].mxu0 %vm16147_vm7, %v16117_v53  ;;  %vm12878_vm14 = vcmp.ne.s32.totalorder %v15781_v18, 0 }
 0x55b   : > { %4176 = vmatpush1.bf16.msra.mxu0 %v10390_v42  ;;  %9326 = vmatprep.mubr.msk.bf16.mxu0 %vm16149_vm1, %v16117_v53  ;;  %v16151_v42 = vld [vmem:[#allocation77_spill] sm:$0xff]  ;;  %vm12884_vm1 = vcmp.ne.s32.totalorder %v15780_v25, 0 }
 0x55c   : > { %4177 = vmatprep.subr.bf16.mxu0 %v10395_v55  ;;  %vm16152_vm8 = vnez %v16151_v42  ;;  %v16153_v55 = vld [vmem:[#allocation79_spill] sm:$0xff] }
 0x55d   : > { %vm16154_vm2 = vnez %v16153_v55  ;;  %v12892_v55 = vadd.s32 24, %v11369_v15  ;;  %v10407_v42 = vld [vmem:[#allocation14 + $0xf4] ss:$8 sps:$4 sm:$0xff]  }
 0x55f   : > { %4178 = vmatpush1.bf16.msra.mxu0 %v10393_v8  ;;  %16160 = vst [vmem:[#allocation65_spill] sm:$0xff] %v12892_v55  ;;  %v15791_v18 = vand.u32 7, %v12892_v55  ;;  %v3448_v55 = vrot.slane %v11523_v63, 1  ;;  %v16177_v63 = vld [vmem:[#allocation82_spill] sm:$0xff] }
 0x560   : > { %4179 = vmatprep.subr.bf16.mxu0 %v10398_v11 }
 0x562   : > { %9328 = vmatmul.mubr.msk.bf16.gmra.mrb[120].mxu0 %vm16152_vm8, %v16117_v53 }
 0x563   : > { %4180 = vmatpush1.bf16.msra.mxu0 %v10396_v0  ;;  %9330 = vmatprep.mubr.msk.bf16.mxu0 %vm16154_vm2, %v16117_v53  ;;  %v12889_v0 = vadd.s32 16, %v11369_v15  ;;  %vm15789_vm2 = vmpackc.low %vm12884_vm1, %vm12878_vm14 }
 0x564   : > { %4181 = vmatprep.subr.bf16.mxu0 %v10401_v5  ;;  %v10402_v5 = vld [vmem:[#allocation14 + $0xe0] ss:$8 sps:$4 sm:$0xff]  }
 0x565   : > { %16159 = vst [vmem:[#allocation78_spill] sm:$0xff] %v12889_v0  ;;  %v15790_v25 = vand.u32 7, %v12889_v0  ;;  %v3450_v0 = vrot.slane %v11592_v27, 1 }
 0x567   : > { %4182 = vmatpush1.bf16.msra.mxu0 %v10399_v24  ;;  %v16164_v24 = vld [vmem:[#allocation81_spill] sm:$0xff]  ;;  %vm12916_vm7 = vcmp.ne.s32.totalorder %v15790_v25, 0  ;;  %v16174_v25 = vrot.slane %v16161_v31, 1 }
 0x568   : > { %4183 = vmatprep.subr.bf16.mxu0 %v10404_v61  ;;  %vm16165_vm8 = vnez %v16164_v24  ;;  %v10405_v61 = vld [vmem:[#allocation14 + $0xf0] ss:$8 sps:$4 sm:$0xff]   ;;  %v10408_v24 = vld [vmem:[#allocation14 + $0x100] ss:$8 sps:$4 sm:$0xff]  }
 0x56a   : > { %9332 = vmatmul.mubr.msk.bf16.gmra.mrb[124].mxu0 %vm16165_vm8, %v16117_v53  ;;  %vm12922_vm8 = vcmp.ne.s32.totalorder %v15791_v18, 0  ;;  %v15797_v53 = vand.u32 7, %v12927_v34 }
 0x56b   : > { %4184 = vmatpush1.bf16.msra.mxu0 %v10402_v5  ;;  %8829 = vmatprep.mubr.msk.bf16.mxu0 %vm15789_vm2, %v16168_v13  ;;  %v3449_v13 = vrot.slane %v11515_v62, 1  ;;  %vm16173_vm2 = vcmp.lt.s32.totalorder %v11369_v15, 7  ;;  %v16182_v62 = vpack.c.bf16 %v12451_v46, %v12459_v20  ;;  %v10416_v46 = vld [vmem:[#allocation14 + $0x124] ss:$8 sps:$4 sm:$0xff]   ;;  %v10414_v20 = vld [vmem:[#allocation14 + $0x120] ss:$8 sps:$4 sm:$0xff]  }
 0x56c   : > { %4185 = vmatprep.subr.bf16.mxu0 %v10407_v42  ;;  %v3451_v42 = vrot.slane %v11569_v38, 1  ;;  %v12936_v5 = vsel %vm16173_vm2, %v3445_v44, %v3447_v52  ;;  %vm16175_vm12 = vmmov %vm16173_vm2  ;;  %v10413_v38 = vld [vmem:[#allocation14 + $0x114] ss:$8 sps:$4 sm:$0xff]  }
 0x56d   : > { %v12942_v18 = vsel %vm16175_vm12, %v16174_v25, %v3445_v44  ;;  %vm8833_vm2 = vmpackc.low %vm12922_vm8, %vm12916_vm7  ;;  %v15796_v44 = vand.u32 7, %v12930_v47  ;;  %v16176_v25 = vld [vmem:[#allocation45_spill] sm:$0xff]  ;;  %v12968_v27 = vsel %vm16181_vm6, %v3447_v52, %v3449_v13  ;;  %v16184_v52 = vld [vmem:[#allocation50_spill] sm:$0xff] }
 0x56e   : > { %v16178_v31 = vpack.c.bf16 %v16176_v25, %v16177_v63  ;;  %vm16179_vm12 = vmpackc.low %vm12884_vm1, %vm12878_vm14  ;;  %v16185_v11 = vrot.slane %v16184_v52, 1  ;;  %vm12994_vm1 = vcmp.ne.s32.totalorder %v15797_v53, 0  ;;  %v3453_v25 = vrot.slane %v11574_v43, 1 }
 0x56f   : > { %4186 = vmatpush1.bf16.msra.mxu0 %v10405_v61  ;;  %v10411_v61 = vld [vmem:[#allocation14 + $0x110] ss:$8 sps:$4 sm:$0xff]   ;;  %vm13000_vm14 = vcmp.ne.s32.totalorder %v15796_v44, 0  ;;  %v3455_v63 = vrot.slane %v11636_v21, 1  ;;  %v3452_v52 = vrot.slane %v11597_v28, 1  ;;  %v16190_v43 = vpack.c.bf16 %v12514_v41, %v12527_v7  ;;  %vm16193_vm7 = vmmov %vm16181_vm6 }
 0x570   : > { %4268 = vmatprep.subr.bf16.mxu0 %v10410_v26  ;;  %v12964_v26 = vsel %vm16180_vm11, %v3449_v13, %v3451_v42  ;;  %vm16183_vm11 = vmmov %vm16181_vm6  ;;  %v10419_v44 = vld [vmem:[#allocation14 + $0x134] ss:$8 sps:$4 sm:$0xff]   ;;  %v13034_v21 = vsel %vm16181_vm6, %v3451_v42, %v3453_v25  ;;  %v10434_v42 = vld [vmem:[#allocation14 + $0x184] ss:$8 sps:$4 sm:$0xff]  }
 0x571   : > { %v12982_v8 = vsel %vm16183_vm11, %v3448_v55, %v3450_v0  ;;  %vm16191_vm11 = vmmov %vm16181_vm6 }
 0x572   : > { %8832 = vmatmul.mubr.msk.bf16.vlgmr.msra.gmra.mrb[96].mxu0 %vm16179_vm12, %v16178_v31  ;;  %vm8839_vm12 = vmpackc.low %vm13000_vm14, %vm12994_vm1  ;;  %v13030_v28 = vsel %vm16191_vm11, %v3453_v25, %v3455_v63  ;;  %v3456_v25 = vrot.slane %v15999_v51, 1 }
 0x573   : > { %4269 = vmatpush1.bf16.msra.mxu0 %v10408_v24  ;;  %8835 = vmatprep.mubr.msk.bf16.mxu0 %vm8833_vm2, %v16182_v62  ;;  %v12988_v24 = vsel %vm16181_vm6, %v16185_v11, %v3448_v55  ;;  %v13005_v55 = vadd.s32 48, %v11369_v15  ;;  %v3454_v11 = vrot.slane %v11646_v33, 1  ;;  %v10417_v33 = vld [vmem:[#allocation14 + $0x130] ss:$8 sps:$4 sm:$0xff]   ;;  %v8888_v41 = vpack.c.bf16 %v13030_v28, %v13034_v21  ;;  %vm16194_vm8 = vmmov %vm16181_vm6  ;;  %v10428_v62 = vld [vmem:[#allocation14 + $0x164] ss:$8 sps:$4 sm:$0xff]  }
 0x574   : > { %4270 = vmatprep.subr.bf16.mxu0 %v10413_v38  ;;  %v13008_v38 = vadd.s32 56, %v11369_v15  ;;  %v13052_v49 = vsel %vm16194_vm8, %v3450_v0, %v3452_v52  ;;  %v13069_v0 = vadd.s32 64, %v11369_v15  ;;  %vm16200_vm8 = vmmov %vm16193_vm7 }
 0x575   : > { %v15807_v53 = vand.u32 7, %v13005_v55  ;;  %v13048_v7 = vsel %vm16193_vm7, %v3452_v52, %v3454_v11  ;;  %v3458_v52 = vrot.slane %v16081_v14, 1  ;;  %v10423_v14 = vld [vmem:[#allocation14 + $0x150] ss:$8 sps:$4 sm:$0xff]   ;;  %vm16202_vm1 = vmmov %vm16193_vm7 }
 0x576   : > { %v15798_v31 = vand.u32 7, %v13008_v38  ;;  %vm16203_vm14 = vmmov %vm16202_vm1 }
 0x577   : > { %4271 = vmatpush1.bf16.msra.mxu0 %v10411_v61  ;;  %v16192_v61 = vpack.c.bf16 %v12549_v58, %v12571_v54  ;;  %v15806_v58 = vand.u32 7, %v13069_v0  ;;  %v13116_v13 = vsel %vm16203_vm14, %v3454_v11, %v3456_v25  ;;  %v13133_v11 = vadd.s32 80, %v11369_v15  ;;  %vm16209_vm14 = vmmov %vm16202_vm1 }
 0x578   : > { %4272 = vmatprep.subr.bf16.mxu0 %v10416_v46  ;;  %vm13064_vm11 = vcmp.ne.s32.totalorder %v15798_v31, 0  ;;  %v3457_v46 = vrot.slane %v11641_v32, 1  ;;  %v16199_v32 = vpack.c.bf16 %v12585_v57, %v12603_v60  ;;  %v13112_v60 = vsel %vm16202_vm1, %v3456_v25, %v3458_v52  ;;  %v4870_v57 = vld [vmem:[#allocation16 + $0xc0] sm:$0xff] }
 0x579   : > { %v3463_v25 = vrot.slane %v16091_v29, 1 }
 0x57a   : > { %8838 = vmatmul.mubr.msk.bf16.gmra.mrb[100].mxu0 %vm8833_vm2, %v16190_v43  ;;  %vm13058_vm2 = vcmp.ne.s32.totalorder %v15807_v53, 0  ;;  %v10420_v43 = vld [vmem:[#allocation14 + $0x140] ss:$8 sps:$4 sm:$0xff]   ;;  %v10467_v53 = vld [vmem:[#allocation14 + $0x234] ss:$8 sps:$4 sm:$0xff]  }
 0x57b   : > { %4273 = vmatpush1.bf16.msra.mxu0 %v10414_v20  ;;  %8841 = vmatprep.mubr.msk.bf16.mxu0 %vm8839_vm12, %v16192_v61  ;;  %v3459_v20 = vrot.slane %v16071_v50, 1  ;;  %v10425_v61 = vld [vmem:[#allocation14 + $0x154] ss:$8 sps:$4 sm:$0xff]   ;;  %vm8845_vm6 = vmpackc.low %vm13064_vm11, %vm13058_vm2  ;;  %v13098_v50 = vsel %vm16200_vm8, %v3455_v63, %v3457_v46  ;;  %v10440_v63 = vld [vmem:[#allocation14 + $0x1a4] ss:$8 sps:$4 sm:$0xff]  }
 0x57c   : > { %4274 = vmatprep.subr.bf16.mxu0 %v10419_v44  ;;  %v13072_v44 = vadd.s32 72, %v11369_v15  ;;  %vm16211_vm2 = vmmov %vm16202_vm1 }
 0x57d   : > { %v13094_v51 = vsel %vm16193_vm7, %v3457_v46, %v3459_v20  ;;  %v3461_v46 = vrot.slane %v12321_v48, 1  ;;  %v16208_v48 = vpack.c.bf16 %v12663_v3, %v12671_v2  ;;  %vm16212_vm11 = vmmov %vm16202_vm1  ;;  %v10456_v3 = vld [vmem:[#allocation14 + $0x200] ss:$8 sps:$4 sm:$0xff]  }
 0x57e   : > { %v15799_v31 = vand.u32 7, %v13072_v44 }
 0x57f   : > { %4275 = vmatpush1.bf16.msra.mxu0 %v10417_v33  ;;  %v16201_v33 = vpack.c.bf16 %v12635_v16, %v12645_v1  ;;  %v15805_v16 = vand.u32 7, %v13133_v11  ;;  %v13162_v29 = vsel %vm16209_vm14, %v3459_v20, %v3461_v46 }
 0x580   : > { %4276 = vmatprep.subr.bf16.mxu0 %v10422_v9  ;;  %vm13128_vm7 = vcmp.ne.s32.totalorder %v15799_v31, 0  ;;  %v13136_v9 = vadd.s32 88, %v11369_v15 }
 0x582   : > { %8844 = vmatmul.mubr.msk.bf16.gmra.mrb[104].mxu0 %vm8839_vm12, %v16199_v32  ;;  %vm13122_vm12 = vcmp.ne.s32.totalorder %v15806_v58, 0  ;;  %v10426_v32 = vld [vmem:[#allocation14 + $0x160] ss:$8 sps:$4 sm:$0xff]   ;;  %v15800_v31 = vand.u32 7, %v13136_v9  ;;  %v16309_v28 = vand.u32 7, %v13136_v9 }
 0x583   : > { %4277 = vmatpush1.bf16.msra.mxu0 %v10420_v43  ;;  %8847 = vmatprep.mubr.msk.bf16.mxu0 %vm8845_vm6, %v16201_v33  ;;  %v3460_v43 = vrot.slane %v16079_v30, 1  ;;  %v10431_v33 = vld [vmem:[#allocation14 + $0x174] ss:$8 sps:$4 sm:$0xff]   ;;  %vm8851_vm8 = vmpackc.low %vm13128_vm7, %vm13122_vm12  ;;  %v13158_v30 = vsel %vm16202_vm1, %v3461_v46, %v3463_v25  ;;  %v3465_v46 = vrot.slane %v16089_v4, 1  ;;  %v10435_v4 = vld [vmem:[#allocation14 + $0x190] ss:$8 sps:$4 sm:$0xff]  }
 0x584   : > { %4278 = vmatprep.subr.bf16.mxu0 %v10425_v61  ;;  %v3462_v61 = vrot.slane %v16098_v35, 1  ;;  %v10429_v35 = vld [vmem:[#allocation14 + $0x170] ss:$8 sps:$4 sm:$0xff]   ;;  %vm13192_vm1 = vcmp.ne.s32.totalorder %v15800_v31, 0  ;;  %vm16220_vm12 = vmmov %vm16211_vm2  ;;  %v4950_v9 = vld [vmem:[#allocation16 + $0x340] sm:$0xff] }
 0x585   : > { %v13180_v54 = vsel %vm16212_vm11, %v3458_v52, %v3460_v43  ;;  %v13197_v52 = vadd.s32 96, %v11369_v15  ;;  %vm16218_vm11 = vmmov %vm16211_vm2 }
 0x586   : > { %v13176_v2 = vsel %vm16211_vm2, %v3460_v43, %v3462_v61  ;;  %v3467_v43 = vrot.slane %v12490_v39, 1  ;;  %v16217_v39 = vpack.c.bf16 %v12715_v36, %v12730_v10  ;;  %vm16221_vm7 = vmmov %vm16211_vm2 }
 0x587   : > { %4279 = vmatpush1.bf16.msra.mxu0 %v10423_v14  ;;  %v16210_v14 = vpack.c.bf16 %v12693_v19, %v12707_v12  ;;  %v15802_v19 = vand.u32 7, %v13197_v52  ;;  %v16310_v21 = vpack.c.bf16 %v13176_v2, %v13180_v54  ;;  %v4958_v54 = vld [vmem:[#allocation16 + $0x380] sm:$0xff] }
 0x588   : > { %4280 = vmatprep.subr.bf16.mxu0 %v10428_v62  ;;  %v13200_v62 = vadd.s32 104, %v11369_v15 }
 0x58a   : > { %8850 = vmatmul.mubr.msk.bf16.gmra.mrb[108].mxu0 %vm8845_vm6, %v16208_v48  ;;  %vm13186_vm6 = vcmp.ne.s32.totalorder %v15805_v16, 0  ;;  %v10432_v48 = vld [vmem:[#allocation14 + $0x180] ss:$8 sps:$4 sm:$0xff]   ;;  %v15801_v31 = vand.u32 7, %v13200_v62 }
 0x58b   : > { %4281 = vmatpush1.bf16.msra.mxu0 %v10426_v32  ;;  %8853 = vmatprep.mubr.msk.bf16.mxu0 %vm8851_vm8, %v16210_v14  ;;  %v3464_v32 = vrot.slane %v12464_v6, 1  ;;  %v10437_v14 = vld [vmem:[#allocation14 + $0x194] ss:$8 sps:$4 sm:$0xff]   ;;  %vm8857_vm14 = vmpackc.low %vm13192_vm1, %vm13186_vm6  ;;  %v13222_v6 = vsel %vm16211_vm2, %v3465_v46, %v3467_v43  ;;  %v4858_v16 = vld [vmem:[#allocation16 + $0x60] sm:$0xff] }
 0x58c   : > { %4282 = vmatprep.subr.bf16.mxu0 %v10431_v33  ;;  %v3466_v33 = vrot.slane %v12678_v23, 1  ;;  %v13226_v23 = vsel %vm16218_vm11, %v3463_v25, %v3465_v46  ;;  %vm13256_vm2 = vcmp.ne.s32.totalorder %v15801_v31, 0  ;;  %v3469_v46 = vrot.slane %v12532_v56, 1  ;;  %v16226_v56 = vld [vmem:[#allocation68_spill] sm:$0xff]  ;;  %vm16232_vm6 = vmmov %vm16221_vm7  ;;  %v16250_v25 = vld [vmem:[#allocation43_spill] sm:$0xff] }
 0x58d   : > { %v13244_v1 = vsel %vm16221_vm7, %v3462_v61, %v3464_v32  ;;  %v13261_v61 = vadd.s32 112, %v11369_v15  ;;  %vm16233_vm1 = vmmov %vm16232_vm6 }
 0x58e   : > { %v13240_v10 = vsel %vm16220_vm12, %v3464_v32, %v3466_v33  ;;  %v3471_v32 = vrot.slane %v12699_v59, 1  ;;  %v16227_v59 = vpack.c.bf16 %v12758_v22, %v16226_v56  ;;  %vm16228_vm12 = vmmov %vm16221_vm7  ;;  %v10444_v56 = vld [vmem:[#allocation14 + $0x1c0] ss:$8 sps:$4 sm:$0xff]  }
 0x58f   : > { %4283 = vmatpush1.bf16.msra.mxu0 %v10429_v35  ;;  %v16219_v35 = vpack.c.bf16 %v12742_v37, %v12750_v17  ;;  %v15803_v37 = vand.u32 7, %v13261_v61  ;;  %v16246_v22 = vld [vmem:[#allocation74_spill] sm:$0xff] }
 0x590   : > { %4284 = vmatprep.subr.bf16.mxu0 %v10434_v42  ;;  %v13264_v42 = vadd.s32 120, %v11369_v15 }
 0x592   : > { %8856 = vmatmul.mubr.msk.bf16.gmra.mrb[112].mxu0 %vm8851_vm8, %v16217_v39  ;;  %vm13250_vm8 = vcmp.ne.s32.totalorder %v15802_v19, 0  ;;  %v10438_v39 = vld [vmem:[#allocation14 + $0x1a0] ss:$8 sps:$4 sm:$0xff]   ;;  %v15804_v31 = vand.u32 7, %v13264_v42  ;;  %v16230_v19 = vld [vmem:[#allocation44_spill] sm:$0xff] }
 0x593   : > { %4285 = vmatpush1.bf16.msra.mxu0 %v10432_v48  ;;  %8859 = vmatprep.mubr.msk.bf16.mxu0 %vm8857_vm14, %v16219_v35  ;;  %v3468_v48 = vrot.slane %v12685_v45, 1  ;;  %v10443_v35 = vld [vmem:[#allocation14 + $0x1b4] ss:$8 sps:$4 sm:$0xff]   ;;  %vm8863_vm11 = vmpackc.low %vm13256_vm2, %vm13250_vm8  ;;  %v13286_v45 = vsel %vm16228_vm12, %v3469_v46, %v3471_v32 }
 0x594   : > { %4286 = vmatprep.subr.bf16.mxu0 %v10437_v14  ;;  %v3470_v14 = vrot.slane %v12720_v40, 1  ;;  %v13290_v40 = vsel %vm16221_vm7, %v3467_v43, %v3469_v46  ;;  %v10446_v43 = vld [vmem:[#allocation14 + $0x1c4] ss:$8 sps:$4 sm:$0xff]   ;;  %vm13320_vm12 = vcmp.ne.s32.totalorder %v15804_v31, 0  ;;  %v10447_v31 = vld [vmem:[#allocation14 + $0x1d0] ss:$8 sps:$4 sm:$0xff]   ;;  %vm16249_vm8 = vmmov %vm16233_vm1 }
 0x595   : > { %v13308_v20 = vsel %vm16233_vm1, %v3466_v33, %v3468_v48  ;;  %vm16252_vm2 = vmmov %vm16233_vm1  ;;  %v4862_v46 = vld [vmem:[#allocation16 + $0x80] sm:$0xff] }
 0x596   : > { %v13304_v12 = vsel %vm16232_vm6, %v3468_v48, %v3470_v14  ;;  %v16239_v48 = vld [vmem:[#allocation80_spill] sm:$0xff]  ;;  %vm16243_vm6 = vmmov %vm16233_vm1 }
 0x597   : > { %4287 = vmatpush1.bf16.msra.mxu0 %v10435_v4  ;;  %v10441_v4 = vld [vmem:[#allocation14 + $0x1b0] ss:$8 sps:$4 sm:$0xff]  }
 0x598   : > { %4288 = vmatprep.subr.bf16.mxu0 %v10440_v63  ;;  %v16229_v63 = vld [vmem:[#allocation71_spill] sm:$0xff] }
 0x599   : > { %v16231_v36 = vpack.c.bf16 %v16229_v63, %v16230_v19  ;;  %v16240_v63 = vld [vmem:[#allocation72_spill] sm:$0xff]  ;;  %v16241_v19 = vld [vmem:[#allocation73_spill] sm:$0xff] }
 0x59a   : > { %8862 = vmatmul.mubr.msk.bf16.gmra.mrb[116].mxu0 %vm8857_vm14, %v16227_v59  ;;  %vm13314_vm14 = vcmp.ne.s32.totalorder %v15803_v37, 0  ;;  %v10449_v59 = vld [vmem:[#allocation14 + $0x1d4] ss:$8 sps:$4 sm:$0xff]   ;;  %v16242_v37 = vpack.c.bf16 %v16240_v63, %v16241_v19  ;;  %v16247_v19 = vld [vmem:[#allocation66_spill] sm:$0xff] }
 0x59b   : > { %4289 = vmatpush1.bf16.msra.mxu0 %v10438_v39  ;;  %8865 = vmatprep.mubr.msk.bf16.mxu0 %vm8863_vm11, %v16231_v36  ;;  %v16238_v39 = vld [vmem:[#allocation85_spill] sm:$0xff]  ;;  %vm8869_vm7 = vmpackc.low %vm13320_vm12, %vm13314_vm14  ;;  %v16248_v63 = vpack.c.bf16 %v16246_v22, %v16247_v19  ;;  %v16253_v19 = vld [vmem:[#allocation76_spill] sm:$0xff] }
 0x59c   : > { %4290 = vmatprep.subr.bf16.mxu0 %v10443_v35  ;;  %v3473_v33 = vrot.slane %v16238_v39, 1  ;;  %v3472_v35 = vrot.slane %v16239_v48, 1  ;;  %v10452_v22 = vld [vmem:[#allocation14 + $0x1e4] ss:$8 sps:$4 sm:$0xff]  }
 0x59d   : > { %v4866_v36 = vld [vmem:[#allocation16 + $0xa0] sm:$0xff] }
 0x59e   : > { %v13360_v17 = vsel %vm16249_vm8, %v3470_v14, %v3472_v35  ;;  %v4846_v14 = vld [vmem:[#allocation16] sm:$0xff]  ;;  %v8956_v58 = vcombine.high %v4862_v46, %v4866_v36 }
 0x59f   : > { %4291 = vmatpush1.bf16.msra.mxu0 %v10441_v4  ;;  %v13340_v4 = vsel %vm16243_vm6, %v3471_v32, %v3473_v33  ;;  %v16251_v32 = vrot.slane %v16250_v25, 1  ;;  %v10453_v25 = vld [vmem:[#allocation14 + $0x1f0] ss:$8 sps:$4 sm:$0xff]  }
 0x5a0   : > { %4292 = vmatprep.subr.bf16.mxu0 %v10446_v43  ;;  %v16244_v43 = vld [vmem:[#allocation49_spill] sm:$0xff] }
 0x5a1   : > { %v16245_v39 = vrot.slane %v16244_v43, 1  ;;  %v10450_v43 = vld [vmem:[#allocation14 + $0x1e0] ss:$8 sps:$4 sm:$0xff]  }
 0x5a2   : > { %8868 = vmatmul.mubr.msk.bf16.gmra.mrb[120].mxu0 %vm8863_vm11, %v16242_v37 }
 0x5a3   : > { %v13346_v48 = vsel %vm16233_vm1, %v3473_v33, %v16245_v39  ;;  %4293 = vmatpush1.bf16.msra.mxu0 %v10444_v56  ;;  %8871 = vmatprep.mubr.msk.bf16.mxu0 %vm8869_vm7, %v16248_v63  ;;  %v13366_v33 = vsel %vm16252_vm2, %v3472_v35, %v16251_v32  ;;  %v10455_v39 = vld [vmem:[#allocation14 + $0x1f4] ss:$8 sps:$4 sm:$0xff]   ;;  %v16254_v63 = vld [vmem:[#allocation61_spill] sm:$0xff]  ;;  %v16256_v32 = vmov 1.0|1.0  }
 0x5a4   : > { %4294 = vmatprep.subr.bf16.mxu0 %v10449_v59  ;;  %v16255_v37 = vpack.c.bf16 %v16253_v19, %v16254_v63  ;;  %v4850_v35 = vld [vmem:[#allocation16 + $0x20] sm:$0xff] }
 0x5a5   : > { %v4854_v59 = vld [vmem:[#allocation16 + $0x40] sm:$0xff] }
 0x5a6   : > { %v10458_v19 = vld [vmem:[#allocation14 + $0x204] ss:$8 sps:$4 sm:$0xff]   ;;  %v8948_v63 = vcombine.high %v4854_v59, %v4858_v16 }
 0x5a7   : > { %4295 = vmatpush1.bf16.msra.mxu0 %v10447_v31  ;;  %v8939_v31 = vcombine.low %v4846_v14, %v4850_v35  ;;  %v4874_v56 = vld [vmem:[#allocation16 + $0xe0] sm:$0xff] }
 0x5a8   : > { %4296 = vmatprep.subr.bf16.mxu0 %v10452_v22  ;;  %v8940_v22 = vcombine.high %v4846_v14, %v4850_v35  ;;  %v10459_v14 = vld [vmem:[#allocation14 + $0x210] ss:$8 sps:$4 sm:$0xff]  }
 0x5aa   : > { %8874 = vmatmul.mubr.msk.bf16.gmra.mrb[124].mxu0 %vm8869_vm7, %v16255_v37  ;;  %5656 = vmatprep.subr.bf16.mxu1 %v8940_v22  ;;  %v8947_v37 = vcombine.low %v4854_v59, %v4858_v16  ;;  %v8964_v16 = vcombine.high %v4870_v57, %v4874_v56  ;;  %v10464_v59 = vld [vmem:[#allocation14 + $0x224] ss:$8 sps:$4 sm:$0xff]   ;;  %v8963_v22 = vcombine.low %v4870_v57, %v4874_v56 }
 0x5ab   : > { %4297 = vmatpush1.bf16.msra.mxu0 %v10450_v43  ;;  %9334 = vmatprep.mubr.msk.bf16.mxu0 %vm11357_vm3, %v16256_v32  ;;  %v10461_v43 = vld [vmem:[#allocation14 + $0x214] ss:$8 sps:$4 sm:$0xff]   ;;  %v10470_v56 = vld [vmem:[#allocation14 + $0x244] ss:$8 sps:$4 sm:$0xff]  }
 0x5ac   : > { %4298 = vmatprep.subr.bf16.mxu0 %v10455_v39  ;;  %5657 = vmatpush1.bf16.msra.mxu1 %v8939_v31  ;;  %v8955_v39 = vcombine.low %v4862_v46, %v4866_v36  ;;  %v4882_v31 = vld [vmem:[#allocation16 + $0x120] sm:$0xff] }
 0x5ad   : > { %5658 = vmatprep.subr.bf16.mxu1 %v8948_v63  ;;  %v4890_v46 = vld [vmem:[#allocation16 + $0x160] sm:$0xff] }
 0x5af   : > { %4299 = vmatpush1.bf16.msra.mxu0 %v10453_v25  ;;  %v4878_v25 = vld [vmem:[#allocation16 + $0x100] sm:$0xff] }
 0x5b0   : > { %4381 = vmatprep.subr.bf16.mxu0 %v10458_v19  ;;  %5659 = vmatpush1.bf16.msra.mxu1 %v8947_v37  ;;  %v10462_v19 = vld [vmem:[#allocation14 + $0x220] ss:$8 sps:$4 sm:$0xff]   ;;  %v8972_v63 = vcombine.high %v4878_v25, %v4882_v31  ;;  %v8971_v37 = vcombine.low %v4878_v25, %v4882_v31 }
 0x5b1   : > { %5660 = vmatprep.subr.bf16.mxu1 %v8956_v58  ;;  %v10465_v58 = vld [vmem:[#allocation14 + $0x230] ss:$8 sps:$4 sm:$0xff]   ;;  %v4902_v31 = vld [vmem:[#allocation16 + $0x1c0] sm:$0xff] }
 0x5b2   : > { %9336 = vmatmul.mubr.msk.bf16.vlgmr.msra.gmra.mrb[96].mxu0 %vm11365_vm5, %v16256_v32 }
 0x5b3   : > { %4382 = vmatpush1.bf16.msra.mxu0 %v10456_v3  ;;  %9338 = vmatprep.mubr.msk.bf16.mxu0 %vm11416_vm10, %v16256_v32  ;;  %v4886_v3 = vld [vmem:[#allocation16 + $0x140] sm:$0xff] }
 0x5b4   : > { %4383 = vmatprep.subr.bf16.mxu0 %v10461_v43  ;;  %5661 = vmatpush1.bf16.msra.mxu1 %v8955_v39  ;;  %v8980_v57 = vcombine.high %v4886_v3, %v4890_v46  ;;  %v4894_v39 = vld [vmem:[#allocation16 + $0x180] sm:$0xff]  ;;  %v8979_v35 = vcombine.low %v4886_v3, %v4890_v46 }
 0x5b5   : > { %5662 = vmatprep.subr.bf16.mxu1 %v8964_v16  ;;  %v10468_v16 = vld [vmem:[#allocation14 + $0x240] ss:$8 sps:$4 sm:$0xff]   ;;  %v10476_v46 = vld [vmem:[#allocation14 + $0x264] ss:$8 sps:$4 sm:$0xff]  }
 0x5b7   : > { %4384 = vmatpush1.bf16.msra.mxu0 %v10459_v14  ;;  %v4898_v14 = vld [vmem:[#allocation16 + $0x1a0] sm:$0xff] }
 0x5b8   : > { %4385 = vmatprep.subr.bf16.mxu0 %v10464_v59  ;;  %5663 = vmatpush1.bf16.msra.mxu1 %v8963_v22  ;;  %v10473_v59 = vld [vmem:[#allocation14 + $0x254] ss:$8 sps:$4 sm:$0xff]   ;;  %v8988_v25 = vcombine.high %v4894_v39, %v4898_v14  ;;  %v4906_v22 = vld [vmem:[#allocation16 + $0x1e0] sm:$0xff] }
 0x5b9   : > { %5664 = vmatprep.subr.bf16.mxu1 %v8972_v63  ;;  %v10471_v63 = vld [vmem:[#allocation14 + $0x250] ss:$8 sps:$4 sm:$0xff]   ;;  %v8996_v3 = vcombine.high %v4902_v31, %v4906_v22  ;;  %v8995_v43 = vcombine.low %v4902_v31, %v4906_v22  ;;  %v10482_v22 = vld [vmem:[#allocation14 + $0x284] ss:$8 sps:$4 sm:$0xff]  }
 0x5ba   : > { %9340 = vmatmul.mubr.msk.bf16.gmra.mrb[100].mxu0 %vm11430_vm13, %v16256_v32 }
 0x5bb   : > { %4386 = vmatpush1.bf16.msra.mxu0 %v10462_v19  ;;  %9342 = vmatprep.mubr.msk.bf16.mxu0 %vm11463_vm0, %v16256_v32  ;;  %v16265_v19 = vld [vmem:[#allocation62_spill] sm:$0xff] }
 0x5bc   : > { %4387 = vmatprep.subr.bf16.mxu0 %v10467_v53  ;;  %5665 = vmatpush1.bf16.msra.mxu1 %v8971_v37  ;;  %v8987_v53 = vcombine.low %v4894_v39, %v4898_v14  ;;  %v4910_v37 = vld [vmem:[#allocation16 + $0x200] sm:$0xff]  ;;  %vm16266_vm3 = vnez %v16265_v19 }
 0x5bd   : > { %5666 = vmatprep.subr.bf16.mxu1 %v8980_v57  ;;  %v10474_v57 = vld [vmem:[#allocation14 + $0x260] ss:$8 sps:$4 sm:$0xff]  }
 0x5be   : > { %v4918_v14 = vld [vmem:[#allocation16 + $0x240] sm:$0xff] }
 0x5bf   : > { %4388 = vmatpush1.bf16.msra.mxu0 %v10465_v58  ;;  %v4914_v58 = vld [vmem:[#allocation16 + $0x220] sm:$0xff] }
 0x5c0   : > { %4389 = vmatprep.subr.bf16.mxu0 %v10470_v56  ;;  %5667 = vmatpush1.bf16.msra.mxu1 %v8979_v35  ;;  %v10479_v56 = vld [vmem:[#allocation14 + $0x274] ss:$8 sps:$4 sm:$0xff]   ;;  %v9004_v39 = vcombine.high %v4910_v37, %v4914_v58  ;;  %v4922_v35 = vld [vmem:[#allocation16 + $0x260] sm:$0xff] }
 0x5c1   : > { %5668 = vmatprep.subr.bf16.mxu1 %v8988_v25  ;;  %v10477_v25 = vld [vmem:[#allocation14 + $0x270] ss:$8 sps:$4 sm:$0xff]   ;;  %v9012_v31 = vcombine.high %v4918_v14, %v4922_v35  ;;  %v9011_v36 = vcombine.low %v4918_v14, %v4922_v35  ;;  %v10488_v35 = vld [vmem:[#allocation14 + $0x2a4] ss:$8 sps:$4 sm:$0xff]  }
 0x5c2   : > { %9344 = vmatmul.mubr.msk.bf16.gmra.mrb[104].mxu0 %vm11499_vm4, %v16256_v32 }
 0x5c3   : > { %4390 = vmatpush1.bf16.msra.mxu0 %v10468_v16  ;;  %9346 = vmatprep.mubr.msk.bf16.mxu0 %vm16137_vm15, %v16256_v32  ;;  %v16269_v16 = vld [vmem:[#allocation69_spill] sm:$0xff] }
 0x5c4   : > { %4391 = vmatprep.subr.bf16.mxu0 %v10473_v59  ;;  %5669 = vmatpush1.bf16.msra.mxu1 %v8987_v53  ;;  %v9003_v59 = vcombine.low %v4910_v37, %v4914_v58  ;;  %v4926_v53 = vld [vmem:[#allocation16 + $0x280] sm:$0xff]  ;;  %vm16270_vm10 = vnez %v16269_v16 }
 0x5c5   : > { %5670 = vmatprep.subr.bf16.mxu1 %v8996_v3  ;;  %v10480_v3 = vld [vmem:[#allocation14 + $0x280] ss:$8 sps:$4 sm:$0xff]   ;;  %v10500_v16 = vld [vmem:[#allocation14 + $0x2e4] ss:$8 sps:$4 sm:$0xff]  }
 0x5c6   : > { %v4934_v58 = vld [vmem:[#allocation16 + $0x2c0] sm:$0xff] }
 0x5c7   : > { %4392 = vmatpush1.bf16.msra.mxu0 %v10471_v63  ;;  %v4930_v63 = vld [vmem:[#allocation16 + $0x2a0] sm:$0xff] }
 0x5c8   : > { %4393 = vmatprep.subr.bf16.mxu0 %v10476_v46  ;;  %5671 = vmatpush1.bf16.msra.mxu1 %v8995_v43  ;;  %v10485_v46 = vld [vmem:[#allocation14 + $0x294] ss:$8 sps:$4 sm:$0xff]   ;;  %v9020_v37 = vcombine.high %v4926_v53, %v4930_v63  ;;  %v4938_v43 = vld [vmem:[#allocation16 + $0x2e0] sm:$0xff] }
 0x5c9   : > { %5672 = vmatprep.subr.bf16.mxu1 %v9004_v39  ;;  %v10483_v39 = vld [vmem:[#allocation14 + $0x290] ss:$8 sps:$4 sm:$0xff]   ;;  %v9028_v14 = vcombine.high %v4934_v58, %v4938_v43  ;;  %v9027_v19 = vcombine.low %v4934_v58, %v4938_v43  ;;  %v10492_v58 = vld [vmem:[#allocation14 + $0x2c0] ss:$8 sps:$4 sm:$0xff]   ;;  %v10497_v43 = vld [vmem:[#allocation14 + $0x2d4] ss:$8 sps:$4 sm:$0xff]  }
 0x5ca   : > { %9348 = vmatmul.mubr.msk.bf16.gmra.mrb[108].mxu0 %vm16139_vm9, %v16256_v32 }
 0x5cb   : > { %4394 = vmatpush1.bf16.msra.mxu0 %v10474_v57  ;;  %9350 = vmatprep.mubr.msk.bf16.mxu0 %vm16266_vm3, %v16256_v32  ;;  %v16267_v57 = vld [vmem:[#allocation63_spill] sm:$0xff] }
 0x5cc   : > { %4395 = vmatprep.subr.bf16.mxu0 %v10479_v56  ;;  %5673 = vmatpush1.bf16.msra.mxu1 %v9003_v59  ;;  %vm16268_vm5 = vnez %v16267_v57  ;;  %v9019_v56 = vcombine.low %v4926_v53, %v4930_v63  ;;  %v4942_v59 = vld [vmem:[#allocation16 + $0x300] sm:$0xff]  ;;  %v16271_v63 = vld [vmem:[#allocation70_spill] sm:$0xff] }
 0x5cd   : > { %5674 = vmatprep.subr.bf16.mxu1 %v9012_v31  ;;  %v10486_v31 = vld [vmem:[#allocation14 + $0x2a0] ss:$8 sps:$4 sm:$0xff]   ;;  %vm16272_vm13 = vnez %v16271_v63  ;;  %v10501_v63 = vld [vmem:[#allocation14 + $0x2f0] ss:$8 sps:$4 sm:$0xff]  }
 0x5ce   : > { %v16275_v57 = vld [vmem:[#allocation77_spill] sm:$0xff] }
 0x5cf   : > { %4396 = vmatpush1.bf16.msra.mxu0 %v10477_v25  ;;  %v4946_v25 = vld [vmem:[#allocation16 + $0x320] sm:$0xff]  ;;  %vm16276_vm4 = vnez %v16275_v57  ;;  %v16294_v57 = vld [vmem:[#allocation46_spill] sm:$0xff] }
 0x5d0   : > { %4397 = vmatprep.subr.bf16.mxu0 %v10482_v22  ;;  %5675 = vmatpush1.bf16.msra.mxu1 %v9011_v36  ;;  %v10491_v22 = vld [vmem:[#allocation14 + $0x2b4] ss:$8 sps:$4 sm:$0xff]   ;;  %v9036_v53 = vcombine.high %v4942_v59, %v4946_v25  ;;  %v9035_v36 = vcombine.low %v4942_v59, %v4946_v25  ;;  %v16282_v59 = vld [vmem:[#allocation58_spill] sm:$0xff] }
 0x5d1   : > { %5676 = vmatprep.subr.bf16.mxu1 %v9020_v37  ;;  %v10494_v37 = vld [vmem:[#allocation14 + $0x2c4] ss:$8 sps:$4 sm:$0xff]   ;;  %v16283_v25 = vand.u32 7, %v16282_v59 }
 0x5d2   : > { %9352 = vmatmul.mubr.msk.bf16.gmra.mrb[112].mxu0 %vm16268_vm5, %v16256_v32  ;;  %v10697_v59 = vld [vmem:[#allocation19 + $0x8] sm:$0xff] }
 0x5d3   : > { %4398 = vmatpush1.bf16.msra.mxu0 %v10480_v3  ;;  %9354 = vmatprep.mubr.msk.bf16.mxu0 %vm16270_vm10, %v16256_v32  ;;  %v10489_v3 = vld [vmem:[#allocation14 + $0x2b0] ss:$8 sps:$4 sm:$0xff]   ;;  %vm13431_vm11 = vcmp.ne.s32.totalorder %v16283_v25, 7 }
 0x5d4   : > { %4399 = vmatprep.subr.bf16.mxu0 %v10485_v46  ;;  %5677 = vmatpush1.bf16.msra.mxu1 %v9019_v56  ;;  %v16273_v46 = vld [vmem:[#allocation75_spill] sm:$0xff] }
 0x5d5   : > { %5678 = vmatprep.subr.bf16.mxu1 %v9028_v14  ;;  %vm16274_vm0 = vnez %v16273_v46  ;;  %v10495_v56 = vld [vmem:[#allocation14 + $0x2d0] ss:$8 sps:$4 sm:$0xff]   ;;  %v16279_v14 = vand.u32 7, %v11369_v15 }
 0x5d7   : > { %4400 = vmatpush1.bf16.msra.mxu0 %v10483_v39  ;;  %v16277_v39 = vld [vmem:[#allocation79_spill] sm:$0xff]  ;;  %vm13425_vm9 = vcmp.ne.s32.totalorder %v16279_v14, 7  ;;  %v16300_v14 = vand.u32 7, %v13005_v55  ;;  %v16307_v55 = vpack.c.bf16 %v13158_v30, %v13162_v29  ;;  %v4954_v30 = vld [vmem:[#allocation16 + $0x360] sm:$0xff] }
 0x5d8   : > { %4401 = vmatprep.subr.bf16.mxu0 %v10488_v35  ;;  %5679 = vmatpush1.bf16.msra.mxu1 %v9027_v19  ;;  %vm16278_vm15 = vnez %v16277_v39  ;;  %vm8875_vm14 = vmpackc.low %vm13431_vm11, %vm13425_vm9  ;;  %v16296_v39 = vpack.c.bf16 %v12964_v26, %v12968_v27  ;;  %v16301_v26 = vand.u32 7, %v13008_v38  ;;  %v16304_v27 = vand.u32 7, %v13069_v0 }
 0x5d9   : > { %5680 = vmatprep.subr.bf16.mxu1 %v9036_v53  ;;  %v16286_v53 = vld [vmem:[#allocation81_spill] sm:$0xff]  ;;  %vm3432_vm5 = vcmp.ne.s32.totalorder %v16300_v14, 7  ;;  %v16308_v38 = vand.u32 7, %v13133_v11  ;;  %vm3437_vm11 = vcmp.ne.s32.totalorder %v16309_v28, 7  ;;  %v16314_v0 = vpack.c.bf16 %v13240_v10, %v13244_v1 }
 0x5da   : > { %9356 = vmatmul.mubr.msk.bf16.gmra.mrb[116].mxu0 %vm16272_vm13, %v16256_v32  ;;  %vm16287_vm12 = vnez %v16286_v53  ;;  %vm3433_vm10 = vcmp.ne.s32.totalorder %v16301_v26, 7  ;;  %v16320_v11 = vpack.c.bf16 %v13366_v33, %v13360_v17  ;;  %v9044_v29 = vcombine.high %v4950_v9, %v4954_v30  ;;  %v4970_v10 = vld [vmem:[#allocation16 + $0x3e0] sm:$0xff]  ;;  %v4561_v26 = vld [vmem:[%s11312_s18 + $0x18] sm:$0xff] }
 0x5db   : > { %4402 = vmatpush1.bf16.msra.mxu0 %v10486_v31  ;;  %9358 = vmatprep.mubr.msk.bf16.mxu0 %vm16274_vm0, %v16256_v32  ;;  %v10498_v31 = vld [vmem:[#allocation14 + $0x2e0] ss:$8 sps:$4 sm:$0xff]   ;;  %vm8893_vm13 = vmpackc.low %vm3433_vm10, %vm3432_vm5  ;;  %vm3434_vm0 = vcmp.ne.s32.totalorder %v16304_v27, 7  ;;  %vm3436_vm9 = vcmp.ne.s32.totalorder %v16308_v38, 7  ;;  %v9043_v2 = vcombine.low %v4950_v9, %v4954_v30  ;;  %v13535_v35 = vsub.s32 4, %v11369_v15 }
 0x5dc   : > { %4403 = vmatprep.subr.bf16.mxu0 %v10491_v22  ;;  %5681 = vmatpush1.bf16.msra.mxu1 %v9035_v36  ;;  %v10503_v22 = vld [vmem:[#allocation14 + $0x2f4] ss:$8 sps:$4 sm:$0xff]   ;;  %v16288_v36 = vpack.c.bf16 %v12936_v5, %v12942_v18  ;;  %v16297_v18 = vand.u32 7, %v12927_v34  ;;  %v16298_v5 = vand.u32 7, %v12930_v47  ;;  %v16302_v34 = vpack.c.bf16 %v13048_v7, %v13052_v49 }
 0x5dd   : > { %v16303_v47 = vpack.c.bf16 %v13094_v51, %v13098_v50  ;;  %v16312_v7 = vand.u32 7, %v13197_v52  ;;  %v16313_v49 = vand.u32 7, %v13200_v62  ;;  %v16316_v51 = vand.u32 7, %v13261_v61  ;;  %5682 = vmatprep.subr.bf16.mxu1 %v9044_v29  ;;  %v4962_v52 = vld [vmem:[#allocation16 + $0x3a0] sm:$0xff]  ;;  %16323 = vst [vmem:[#allocation51_spill] sm:$0xff] %v13535_v35  ;;  %v4565_v29 = vld [vmem:[%s11312_s18 + $0x38] sm:$0xff] }
 0x5de   : > { %vm3430_vm8 = vcmp.ne.s32.totalorder %v16297_v18, 7  ;;  %vm3431_vm2 = vcmp.ne.s32.totalorder %v16298_v5, 7  ;;  %v16317_v50 = vand.u32 7, %v13264_v42  ;;  %v9052_v62 = vcombine.high %v4958_v54, %v4962_v52  ;;  %v13518_v42 = vld [vmem:[#allocation16 + $0x8] sm:$0xff]  ;;  %v4560_v18 = vld [vmem:[%s11312_s18 + $0x10] sm:$0xff] }
 0x5df   : > { %4404 = vmatpush1.bf16.msra.mxu0 %v10489_v3  ;;  %v16289_v3 = vld [vmem:[#allocation78_spill] sm:$0xff]  ;;  %vm8887_vm3 = vmpackc.low %vm3431_vm2, %vm3430_vm8  ;;  %v3674_v53 = vrot.slane %v10697_v59, %v13535_v35 }
 0x5e0   : > { %4405 = vmatprep.subr.bf16.mxu0 %v10494_v37  ;;  %v16290_v46 = vand.u32 7, %v16289_v3  ;;  %v16291_v37 = vld [vmem:[#allocation65_spill] sm:$0xff]  ;;  %vm3441_vm8 = vcmp.ne.s32.totalorder %v16317_v50, 7  ;;  %5683 = vmatpush1.bf16.msra.mxu1 %v9043_v2 }
 0x5e1   : > { %5684 = vmatprep.subr.bf16.mxu1 %v9052_v62  ;;  %v10512_v2 = vld [vmem:[#allocation17 + $0x24] ss:$8 sps:$4 sm:$0xff]   ;;  %v10513_v62 = vld [vmem:[#allocation17 + $0x30] ss:$8 sps:$4 sm:$0xff]  }
 0x5e2   : > { %9360 = vmatmul.mubr.msk.bf16.gmra.mrb[120].mxu0 %vm16276_vm4, %v16256_v32  ;;  %vm3428_vm7 = vcmp.ne.s32.totalorder %v16290_v46, 7 }
 0x5e3   : > { %4406 = vmatpush1.bf16.msra.mxu0 %v10492_v58  ;;  %9362 = vmatprep.mubr.msk.bf16.mxu0 %vm16278_vm15, %v16256_v32  ;;  %v16292_v58 = vand.u32 7, %v16291_v37  ;;  %v4558_v37 = vld [vmem:[%s11312_s18] sm:$0xff] }
 0x5e4   : > { %4407 = vmatprep.subr.bf16.mxu0 %v10497_v43  ;;  %v16293_v43 = vld [vmem:[#allocation53_spill] sm:$0xff] }
 0x5e5   : > { %vm3429_vm6 = vcmp.ne.s32.totalorder %v16292_v58, 7 }
 0x5e6   : > { %vm8881_vm1 = vmpackc.low %vm3429_vm6, %vm3428_vm7  ;;  %vm3439_vm7 = vcmp.ne.s32.totalorder %v16313_v49, 7  ;;  %v4859_v49 = vld [vmem:[#allocation16 + $0x68] sm:$0xff] }
 0x5e7   : > { %4408 = vmatpush1.bf16.msra.mxu0 %v10495_v56  ;;  %v16295_v56 = vpack.c.bf16 %v16293_v43, %v16294_v57  ;;  %v4559_v57 = vld [vmem:[%s11312_s18 + $0x8] sm:$0xff] }
 0x5e8   : > { %4409 = vmatprep.subr.bf16.mxu0 %v10500_v16  ;;  %v16299_v16 = vpack.c.bf16 %v12982_v8, %v12988_v24  ;;  %v16305_v8 = vand.u32 7, %v13072_v44  ;;  %v16306_v24 = vpack.c.bf16 %v13112_v60, %v13116_v13  ;;  %v16315_v44 = vpack.c.bf16 %v13286_v45, %v13290_v40  ;;  %v13520_v45 = vld [vmem:[#allocation16 + $0x28] sm:$0xff] }
 0x5e9   : > { %v16318_v60 = vpack.c.bf16 %v13304_v12, %v13308_v20  ;;  %v16319_v13 = vpack.c.bf16 %v13346_v48, %v13340_v4  ;;  %v8942_v40 = vcombine.high %v13518_v42, %v13520_v45  ;;  %v8941_v12 = vcombine.low %v13518_v42, %v13520_v45  ;;  %v10696_v48 = vld [vmem:[#allocation19] sm:$0xff] }
 0x5ea   : > { %9364 = vmatmul.mubr.msk.bf16.gmra.mrb[124].mxu0 %vm16287_vm12, %v16256_v32  ;;  %vm3435_vm4 = vcmp.ne.s32.totalorder %v16305_v8, 7  ;;  %vm3438_vm12 = vcmp.ne.s32.totalorder %v16312_v7, 7  ;;  %v13527_v20 = vsub.s32 2, %v11369_v15  ;;  %v13530_v4 = vsub.s32 3, %v11369_v15  ;;  %v13574_v7 = vld [vmem:[#allocation16 + $0x48] sm:$0xff] }
 0x5eb   : > { %4410 = vmatpush1.bf16.msra.mxu0 %v10498_v31  ;;  %8877 = vmatprep.mubr.msk.bf16.mxu0 %vm8875_vm14, %v16288_v36  ;;  %vm8899_vm15 = vmpackc.low %vm3435_vm4, %vm3434_vm0  ;;  %v3670_v31 = vrot.slane %v10696_v48, %v13535_v35  ;;  %v8926_v35 = vld [vmem:[%s11312_s18 + $0x98] sm:$0xff]  ;;  %v8928_v15 = vld [vmem:[%s11312_s18 + $0xa8] sm:$0xff] }
 0x5ec   : > { %4411 = vmatprep.subr.bf16.mxu0 %v10503_v22  ;;  %vm8911_vm6 = vmpackc.low %vm3439_vm7, %vm3438_vm12  ;;  %16321 = vst [vmem:[#allocation64_spill] sm:$0xff] %v13527_v20  ;;  %v2545_v17 = vrot.slane %v10696_v48, %v13527_v20  ;;  %v2826_v33 = vrot.slane %v10696_v48, %v13530_v4  ;;  %v2549_v25 = vrot.slane %v10697_v59, %v13527_v20  ;;  %v13624_v48 = vld [vmem:[#allocation16 + $0x108] sm:$0xff] }
 0x5ed   : > { %16322 = vst [vmem:[#allocation67_spill] sm:$0xff] %v13530_v4  ;;  %v2830_v19 = vrot.slane %v10697_v59, %v13530_v4 }
 0x5ee   : > { %v9653_v22 = vadd.f32 %v2826_v33, %v2545_v17  ;;  %v13626_v17 = vld [vmem:[#allocation16 + $0x128] sm:$0xff] }
 0x5ef   : > { %4412 = vmatpush1.bf16.msra.mxu0 %v10501_v63  ;;  %v9656_v63 = vadd.f32 %v2830_v19, %v2549_v25  ;;  %v8949_v25 = vcombine.low %v13574_v7, %v4859_v49  ;;  %v13637_v19 = vld [vmem:[#allocation16 + $0x148] sm:$0xff] }
 0x5f0   : > { %v13541_v36 = vadd.f32 %v9653_v22, %v3670_v31  ;;  %v13639_v31 = vld [vmem:[#allocation16 + $0x168] sm:$0xff] }
 0x5f1   : > { %v13543_v3 = vadd.f32 %v9656_v63, %v3674_v53  ;;  %v4566_v63 = vld [vmem:[%s11312_s18 + $0x40] sm:$0xff] }
 0x5f2   : > { %8880 = vmatmul.mubr.msk.bf16.vlgmr.msra.gmra.mrb[96].mxu0 %vm8875_vm14, %v16295_v56  ;;  %vm8905_vm14 = vmpackc.low %vm3437_vm11, %vm3436_vm9 }
 0x5f3   : > { %8883 = vmatprep.mubr.msk.bf16.mxu0 %vm8881_vm1, %v16296_v39 }
 0x5fa   : > { %8886 = vmatmul.mubr.msk.bf16.gmra.mrb[100].mxu0 %vm8881_vm1, %v16299_v16  ;;  %vm3440_vm1 = vcmp.ne.s32.totalorder %v16316_v51, 7  ;;  %v4563_v51 = vld [vmem:[%s11312_s18 + $0x28] sm:$0xff] }
 0x5fb   : > { %8889 = vmatprep.mubr.msk.bf16.mxu0 %vm8887_vm3, %v8888_v41  ;;  %v16311_v41 = vpack.c.bf16 %v13222_v6, %v13226_v23  ;;  %vm8917_vm2 = vmpackc.low %vm3441_vm8, %vm3440_vm1  ;;  %v9051_v6 = vcombine.low %v4958_v54, %v4962_v52  ;;  %v4966_v23 = vld [vmem:[#allocation16 + $0x3c0] sm:$0xff]  ;;  %v8950_v54 = vcombine.high %v13574_v7, %v4859_v49  ;;  %v13597_v52 = vld [vmem:[#allocation16 + $0x88] sm:$0xff] }
 0x5fc   : > { %v9060_v1 = vcombine.high %v4966_v23, %v4970_v10  ;;  %v9059_v61 = vcombine.low %v4966_v23, %v4970_v10  ;;  %v13613_v10 = vld [vmem:[#allocation16 + $0xa8] sm:$0xff] }
 0x5fd   : > { %5685 = vmatpush1.bf16.msra.mxu1 %v9051_v6  ;;  %v8958_v42 = vcombine.high %v13597_v52, %v13613_v10 }
 0x5fe   : > { %5686 = vmatprep.subr.bf16.mxu1 %v9060_v1  ;;  %v13615_v1 = vld [vmem:[#allocation16 + $0xc8] sm:$0xff] }
 0x601   : > { %5687 = vmatpush1.bf16.msra.mxu1 %v9059_v61 }
 0x602   : > { %8892 = vmatmul.mubr.msk.bf16.gmra.mrb[104].mxu0 %vm8887_vm3, %v16302_v34  ;;  %5769 = vmatprep.subr.bf16.mxu1 %v8942_v40  ;;  %v13622_v40 = vld [vmem:[#allocation16 + $0xe8] sm:$0xff] }
 0x603   : > { %8895 = vmatprep.mubr.msk.bf16.mxu0 %vm8893_vm13, %v16303_v47 }
 0x60a   : > { %8898 = vmatmul.mubr.msk.bf16.gmra.mrb[108].mxu0 %vm8893_vm13, %v16306_v24 }
 0x60b   : > { %8901 = vmatprep.mubr.msk.bf16.mxu0 %vm8899_vm15, %v16307_v55 }
 0x612   : > { %8904 = vmatmul.mubr.msk.bf16.gmra.mrb[112].mxu0 %vm8899_vm15, %v16310_v21 }
 0x613   : > { %8907 = vmatprep.mubr.msk.bf16.mxu0 %vm8905_vm14, %v16311_v41  ;;  %v4562_v41 = vld [vmem:[%s11312_s18 + $0x20] sm:$0xff] }
 0x61a   : > { %8910 = vmatmul.mubr.msk.bf16.gmra.mrb[116].mxu0 %vm8905_vm14, %v16314_v0 }
 0x61b   : > { %8913 = vmatprep.mubr.msk.bf16.mxu0 %vm8911_vm6, %v16315_v44 }
 0x622   : > { %8916 = vmatmul.mubr.msk.bf16.gmra.mrb[120].mxu0 %vm8911_vm6, %v16318_v60 }
 0x623   : > { %8919 = vmatprep.mubr.msk.bf16.mxu0 %vm8917_vm2, %v16319_v13  ;;  %v4564_v13 = vld [vmem:[%s11312_s18 + $0x30] sm:$0xff] }
 0x62a   : > { %8922 = vmatmul.mubr.msk.bf16.gmra.mrb[124].mxu0 %vm8917_vm2, %v16320_v11 }
 0x6c5   : > { %v4415_v46 = vpop.f32.mrb[96].mxu0 }
 0x6c6   : > { %v9655_v58 = vadd.f32 %v13541_v36, %v4415_v46  ;;  %v4417_v43 = vpop.f32.mrb[97].mxu0  ;;  %v8957_v46 = vcombine.low %v13597_v52, %v13613_v10  ;;  %v13703_v52 = vld [vmem:[#allocation16 + $0x268] sm:$0xff] }
 0x6c7   : > { %v9658_v56 = vadd.f32 %v13543_v3, %v4417_v43  ;;  %v4419_v39 = vpop.f32.mrb[98].mxu0  ;;  %v8966_v43 = vcombine.high %v13615_v1, %v13622_v40 }
 0x6c8   : > { %v13550_v5 = vadd.f32 %v9655_v58, %v4558_v37  ;;  %v9661_v16 = vadd.f32 %v13541_v36, %v4419_v39  ;;  %v4421_v14 = vpop.f32.mrb[99].mxu0  ;;  %v4567_v37 = vld [vmem:[%s11312_s18 + $0x48] sm:$0xff] }
 0x6c9   : > { %v13554_v34 = vadd.f32 %v9658_v56, %v4559_v57  ;;  %v9664_v47 = vadd.f32 %v13543_v3, %v4421_v14  ;;  %v13662_v56 = vld [vmem:[#allocation16 + $0x188] sm:$0xff]  ;;  %v4568_v14 = vld [vmem:[%s11312_s18 + $0x50] sm:$0xff] }
 0x6ca   : > { %16324 = vst [vmem:[#allocation55_spill] sm:$0xff] %v13550_v5  ;;  %v13557_v27 = vadd.f32 %v9661_v16, %v4560_v18  ;;  %v13565_v55 = vmul.f32 0.5, %v13550_v5  ;;  %v13664_v39 = vld [vmem:[#allocation16 + $0x1a8] sm:$0xff] }
 0x6cb   : > { %16325 = vst [vmem:[#allocation59_spill] sm:$0xff] %v13554_v34  ;;  %v13560_v8 = vmul.f32 0.5, %v13554_v34  ;;  %v13562_v24 = vadd.f32 %v9664_v47, %v4561_v26  ;;  %v13786_v57 = vld [vmem:[#allocation16 + $0x308] sm:$0xff] }
 0x6cc   : > { %16326 = vst [vmem:[#allocation60_spill] sm:$0xff] %v13557_v27  ;;  %v13568_v38 = vmul.f32 0.5, %v13557_v27  ;;  %vm4622_vm13 = vcmp.ge.f32.partialorder %v13565_v55, 1.0 }
 0x6cd   : > { %16327 = vst [vmem:[#allocation45_spill] sm:$0xff] %v13562_v24  ;;  %v13571_v28 = vmul.f32 0.5, %v13562_v24  ;;  %v4425_v21 = vpop.f32.mrb[100].mxu0  ;;  %vm4623_vm5 = vcmp.ge.f32.partialorder %v13560_v8, 1.0 }
 0x6ce   : > { %vm4624_vm3 = vcmp.ge.f32.partialorder %v13568_v38, 1.0  ;;  %v9667_v0 = vadd.f32 %v13541_v36, %v4425_v21  ;;  %v4427_v44 = vpop.f32.mrb[101].mxu0  ;;  %v13673_v21 = vld [vmem:[#allocation16 + $0x1c8] sm:$0xff] }
 0x6cf   : > { %v9670_v50 = vadd.f32 %v13543_v3, %v4427_v44  ;;  %v4429_v60 = vpop.f32.mrb[102].mxu0  ;;  %vm4625_vm10 = vcmp.ge.f32.partialorder %v13571_v28, 1.0  ;;  %vm13603_vm4 = vmpackc.low %vm4624_vm3, %vm4622_vm13 }
 0x6d0   : > { %v13584_v11 = vadd.f32 %v9667_v0, %v4562_v41  ;;  %v9673_v9 = vadd.f32 %v13541_v36, %v4429_v60  ;;  %v4431_v30 = vpop.f32.mrb[103].mxu0  ;;  %vm13592_vm0 = vmpackc.low %vm4625_vm10, %vm4623_vm5  ;;  %v13675_v41 = vld [vmem:[#allocation16 + $0x1e8] sm:$0xff]  ;;  %v4569_v0 = vld [vmem:[%s11312_s18 + $0x58] sm:$0xff] }
 0x6d1   : > { %v13607_v6 = vadd.f32 %v9670_v50, %v4563_v51  ;;  %v9676_v23 = vadd.f32 %v13543_v3, %v4431_v30  ;;  %9366 = vmatprep.mubr.msk.bf16.mxu1 %vm13592_vm0, %v16256_v32  ;;  %v13683_v51 = vld [vmem:[#allocation16 + $0x208] sm:$0xff]  ;;  %v16369_v20 = vcombine.low %v13673_v21, %v13675_v41  ;;  %v14288_v30 = vld [vmem:[#allocation20] sm:$0xff] }
 0x6d2   : > { %16328 = vst [vmem:[#allocation82_spill] sm:$0xff] %v13584_v11  ;;  %v13617_v61 = vadd.f32 %v9673_v9, %v4564_v13  ;;  %9368 = vmatmul.mubr.msk.bf16.vlgmr.msra.gmra.mrb[32].mxu1 %vm13603_vm4, %v16256_v32  ;;  %v13642_v22 = vmul.f32 0.5, %v13584_v11  ;;  %v13685_v50 = vld [vmem:[#allocation16 + $0x228] sm:$0xff] }
 0x6d3   : > { %16333 = vst [vmem:[#allocation50_spill] sm:$0xff] %v13607_v6  ;;  %v13629_v33 = vmul.f32 0.5, %v13607_v6  ;;  %v13631_v59 = vadd.f32 %v9676_v23, %v4565_v29  ;;  %5770 = vmatpush1.bf16.msra.mxu1 %v8941_v12  ;;  %v4573_v6 = vld [vmem:[%s11312_s18 + $0x78] sm:$0xff] }
 0x6d4   : > { %16334 = vst [vmem:[#allocation68_spill] sm:$0xff] %v13617_v61  ;;  %v13645_v53 = vmul.f32 0.5, %v13617_v61  ;;  %5771 = vmatprep.subr.bf16.mxu1 %v8950_v54  ;;  %vm4626_vm12 = vcmp.ge.f32.partialorder %v13642_v22, 1.0  ;;  %v13701_v54 = vld [vmem:[#allocation16 + $0x248] sm:$0xff] }
 0x6d5   : > { %16335 = vst [vmem:[#allocation71_spill] sm:$0xff] %v13631_v59  ;;  %v13653_v45 = vmul.f32 0.5, %v13631_v59  ;;  %v4435_v12 = vpop.f32.mrb[104].mxu0  ;;  %vm4627_vm9 = vcmp.ge.f32.partialorder %v13629_v33, 1.0 }
 0x6d6   : > { %v9679_v18 = vadd.f32 %v13541_v36, %v4435_v12  ;;  %v4437_v16 = vpop.f32.mrb[105].mxu0  ;;  %vm4628_vm15 = vcmp.ge.f32.partialorder %v13645_v53, 1.0  ;;  %v13723_v12 = vld [vmem:[#allocation16 + $0x288] sm:$0xff] }
 0x6d7   : > { %v9682_v7 = vadd.f32 %v13543_v3, %v4437_v16  ;;  %v4439_v49 = vpop.f32.mrb[106].mxu0  ;;  %vm4629_vm11 = vcmp.ge.f32.partialorder %v13653_v45, 1.0  ;;  %5772 = vmatpush1.bf16.msra.mxu1 %v8949_v25  ;;  %vm13715_vm7 = vmpackc.low %vm4628_vm15, %vm4626_vm12  ;;  %v4570_v16 = vld [vmem:[%s11312_s18 + $0x60] sm:$0xff] }
 0x6d8   : > { %v13687_v60 = vadd.f32 %v9679_v18, %v4566_v63  ;;  %v9685_v13 = vadd.f32 %v13541_v36, %v4439_v49  ;;  %v4441_v9 = vpop.f32.mrb[107].mxu0  ;;  %vm13694_vm14 = vmpackc.low %vm4629_vm11, %vm4627_vm9  ;;  %5773 = vmatprep.subr.bf16.mxu1 %v8958_v42  ;;  %v13736_v49 = vld [vmem:[#allocation16 + $0x2a8] sm:$0xff] }
 0x6d9   : > { %v13705_v23 = vadd.f32 %v9682_v7, %v4567_v37  ;;  %v9688_v10 = vadd.f32 %v13543_v3, %v4441_v9  ;;  %9370 = vmatprep.mubr.msk.bf16.mxu1 %vm13694_vm14, %v16256_v32  ;;  %v13738_v9 = vld [vmem:[#allocation16 + $0x2c8] sm:$0xff] }
 0x6da   : > { %16336 = vst [vmem:[#allocation44_spill] sm:$0xff] %v13687_v60  ;;  %v13725_v37 = vadd.f32 %v9685_v13, %v4568_v14  ;;  %9372 = vmatmul.mubr.msk.bf16.gmra.mrb[36].mxu1 %vm13715_vm7, %v16256_v32  ;;  %v13740_v14 = vld [vmem:[#allocation16 + $0x2e8] sm:$0xff]  ;;  %v16343_v13 = vmov 0.0   ;;  %v13756_v29 = vmul.f32 0.5, %v13687_v60 }
 0x6db   : > { %16339 = vst [vmem:[#allocation85_spill] sm:$0xff] %v13705_v23  ;;  %v4638_v42 = vsel %vm4622_vm13, 1.0, %v16343_v13  ;;  %v13746_v63 = vmul.f32 0.5, %v13705_v23  ;;  %v13748_v18 = vadd.f32 %v9688_v10, %v4569_v0  ;;  %5774 = vmatpush1.bf16.msra.mxu1 %v8957_v46  ;;  %v4639_v7 = vsel %vm4623_vm5, 1.0, %v16343_v13  ;;  %v4572_v23 = vld [vmem:[%s11312_s18 + $0x70] sm:$0xff] }
 0x6dc   : > { %16342 = vst [vmem:[#allocation80_spill] sm:$0xff] %v13725_v37  ;;  %v13759_v44 = vmul.f32 0.5, %v13725_v37  ;;  %5775 = vmatprep.subr.bf16.mxu1 %v8966_v43  ;;  %v4670_v58 = vsub.f32 1.0, %v4638_v42  ;;  %v4640_v43 = vsel %vm4624_vm3, 1.0, %v16343_v13  ;;  %v4571_v37 = vld [vmem:[%s11312_s18 + $0x68] sm:$0xff]  ;;  %v4671_v47 = vsub.f32 1.0, %v4639_v7 }
 0x6dd   : > { %16344 = vst [vmem:[#allocation72_spill] sm:$0xff] %v13748_v18  ;;  %v13764_v46 = vmul.f32 0.5, %v13748_v18  ;;  %v4445_v10 = vpop.f32.mrb[108].mxu0  ;;  %vm4631_vm1 = vcmp.ge.f32.partialorder %v13746_v63, 1.0  ;;  %v16345_v42 = vcombine.low %v13615_v1, %v13622_v40  ;;  %v4641_v59 = vsel %vm4625_vm10, 1.0, %v16343_v13 }
 0x6de   : > { %v9691_v0 = vadd.f32 %v13541_v36, %v4445_v10  ;;  %v4447_v18 = vpop.f32.mrb[109].mxu0  ;;  %vm4632_vm6 = vcmp.ge.f32.partialorder %v13759_v44, 1.0  ;;  %v13788_v10 = vld [vmem:[#allocation16 + $0x328] sm:$0xff]  ;;  %vm4630_vm3 = vcmp.ge.f32.partialorder %v13756_v29, 1.0  ;;  %v16349_v40 = vcombine.high %v13624_v48, %v13626_v17 }
 0x6df   : > { %v9694_v60 = vadd.f32 %v13543_v3, %v4447_v18  ;;  %v4449_v26 = vpop.f32.mrb[110].mxu0  ;;  %vm4633_vm8 = vcmp.ge.f32.partialorder %v13764_v46, 1.0  ;;  %5776 = vmatpush1.bf16.msra.mxu1 %v16345_v42  ;;  %vm13819_vm5 = vmpackc.low %vm4632_vm6, %vm4630_vm3  ;;  %v4673_v11 = vsub.f32 1.0, %v4641_v59  ;;  %v13858_v27 = vmul.f32 %v4671_v47, %v13560_v8  ;;  %v10516_v25 = vld [vmem:[#allocation17 + $0x40] ss:$8 sps:$4 sm:$0xff]  }
 0x6e0   : > { %v13793_v7 = vadd.f32 %v9691_v0, %v4570_v16  ;;  %v9697_v18 = vadd.f32 %v13541_v36, %v4449_v26  ;;  %v4451_v61 = vpop.f32.mrb[111].mxu0  ;;  %vm13801_vm2 = vmpackc.low %vm4633_vm8, %vm4631_vm1  ;;  %5777 = vmatprep.subr.bf16.mxu1 %v16349_v40  ;;  %v4672_v16 = vsub.f32 1.0, %v4640_v43  ;;  %v4643_v40 = vsel %vm4627_vm9, 1.0, %v16343_v13 }
 0x6e1   : > { %v13809_v0 = vadd.f32 %v9694_v60, %v4571_v37  ;;  %v9700_v26 = vadd.f32 %v13543_v3, %v4451_v61  ;;  %9374 = vmatprep.mubr.msk.bf16.mxu1 %vm13801_vm2, %v16256_v32  ;;  %v4642_v60 = vsel %vm4626_vm12, 1.0, %v16343_v13  ;;  %v13849_v37 = vmul.f32 %v4670_v58, %v13565_v55 }
 0x6e2   : > { %16346 = vst [vmem:[#allocation73_spill] sm:$0xff] %v13793_v7  ;;  %v13828_v61 = vadd.f32 %v9697_v18, %v4572_v23  ;;  %9376 = vmatmul.mubr.msk.bf16.gmra.mrb[40].mxu1 %vm13819_vm5, %v16256_v32  ;;  %v16355_v18 = vcombine.low %v13624_v48, %v13626_v17  ;;  %v13852_v43 = vmul.f32 0.5, %v13793_v7  ;;  %v13864_v48 = vmul.f32 %v4672_v16, %v13568_v38  ;;  %v8924_v16 = vld [vmem:[%s11312_s18 + $0x88] sm:$0xff] }
 0x6e3   : > { %16350 = vst [vmem:[#allocation49_spill] sm:$0xff] %v13809_v0  ;;  %v13841_v24 = vmul.f32 0.5, %v13809_v0  ;;  %v13843_v23 = vadd.f32 %v9700_v26, %v4573_v6  ;;  %v16356_v6 = vcombine.high %v13637_v19, %v13639_v31  ;;  %v4644_v55 = vsel %vm4628_vm15, 1.0, %v16343_v13  ;;  %v8925_v0 = vld [vmem:[%s11312_s18 + $0x90] sm:$0xff] }
 0x6e4   : > { %16353 = vst [vmem:[#allocation74_spill] sm:$0xff] %v13828_v61  ;;  %5778 = vmatpush1.bf16.msra.mxu1 %v16355_v18  ;;  %v13855_v59 = vmul.f32 0.5, %v13828_v61  ;;  %v4674_v17 = vsub.f32 1.0, %v4642_v60  ;;  %v8923_v18 = vld [vmem:[%s11312_s18 + $0x80] sm:$0xff]  ;;  %v4645_v8 = vsel %vm4629_vm11, 1.0, %v16343_v13  ;;  %v4675_v47 = vsub.f32 1.0, %v4643_v40 }
 0x6e5   : > { %16354 = vst [vmem:[#allocation66_spill] sm:$0xff] %v13843_v23  ;;  %5779 = vmatprep.subr.bf16.mxu1 %v16356_v6  ;;  %v13870_v58 = vmul.f32 0.5, %v13843_v23  ;;  %v4455_v26 = vpop.f32.mrb[112].mxu0  ;;  %v4689_v23 = vmul.f32 %v4673_v11, %v13571_v28  ;;  %vm4635_vm13 = vcmp.ge.f32.partialorder %v13841_v24, 1.0  ;;  %v16357_v40 = vcombine.low %v13637_v19, %v13639_v31  ;;  %v10522_v28 = vld [vmem:[#allocation17 + $0x60] ss:$8 sps:$4 sm:$0xff]  }
 0x6e6   : > { %v9703_v6 = vadd.f32 %v13541_v36, %v4455_v26  ;;  %v4457_v38 = vpop.f32.mrb[113].mxu0  ;;  %vm4636_vm10 = vcmp.ge.f32.partialorder %v13855_v59, 1.0  ;;  %v4676_v7 = vsub.f32 1.0, %v4644_v55  ;;  %vm4634_vm11 = vcmp.ge.f32.partialorder %v13852_v43, 1.0 }
 0x6e7   : > { %v9706_v61 = vadd.f32 %v13543_v3, %v4457_v38  ;;  %v4459_v60 = vpop.f32.mrb[114].mxu0  ;;  %vm4637_vm15 = vcmp.ge.f32.partialorder %v13870_v58, 1.0  ;;  %v16361_v11 = vcombine.high %v13662_v56, %v13664_v39  ;;  %v4677_v19 = vsub.f32 1.0, %v4645_v8  ;;  %vm13913_vm12 = vmpackc.low %vm4636_vm10, %vm4634_vm11 }
 0x6e8   : > { %5780 = vmatpush1.bf16.msra.mxu1 %v16357_v40  ;;  %v13887_v26 = vadd.f32 %v9703_v6, %v8923_v18  ;;  %v9709_v34 = vadd.f32 %v13541_v36, %v4459_v60  ;;  %v4461_v5 = vpop.f32.mrb[115].mxu0  ;;  %vm13895_vm9 = vmpackc.low %vm4637_vm15, %vm4635_vm13  ;;  %v13918_v6 = vmul.f32 %v4674_v17, %v13642_v22  ;;  %v13931_v38 = vmul.f32 %v4675_v47, %v13629_v33 }
 0x6e9   : > { %5781 = vmatprep.subr.bf16.mxu1 %v16361_v11  ;;  %v13903_v31 = vadd.f32 %v9706_v61, %v8924_v16  ;;  %v9712_v55 = vadd.f32 %v13543_v3, %v4461_v5  ;;  %9378 = vmatprep.mubr.msk.bf16.mxu1 %vm13895_vm9, %v16256_v32  ;;  %v4646_v61 = vsel %vm4630_vm3, 1.0, %v16343_v13  ;;  %v4647_v22 = vsel %vm4631_vm1, 1.0, %v16343_v13 }
 0x6ea   : > { %16358 = vst [vmem:[#allocation43_spill] sm:$0xff] %v13887_v26  ;;  %v4734_v5 = vsub.f32 %v13887_v26, %v13849_v37  ;;  %v13925_v8 = vadd.f32 %v9709_v34, %v8925_v0  ;;  %9380 = vmatmul.mubr.msk.bf16.gmra.mrb[44].mxu1 %vm13913_vm12, %v16256_v32  ;;  %v4648_v17 = vsel %vm4632_vm6, 1.0, %v16343_v13  ;;  %v16367_v16 = vcombine.low %v13662_v56, %v13664_v39 }
 0x6eb   : > { %16362 = vst [vmem:[#allocation76_spill] sm:$0xff] %v13903_v31  ;;  %v4735_v34 = vsub.f32 %v13903_v31, %v13858_v27  ;;  %v13941_v0 = vadd.f32 %v9712_v55, %v8926_v35  ;;  %v13949_v33 = vsel %vm4633_vm8, 1.0, %v16343_v13  ;;  %v13954_v40 = vmul.f32 %v4676_v7, %v13645_v53 }
 0x6ec   : > { %16365 = vst [vmem:[#allocation61_spill] sm:$0xff] %v13925_v8  ;;  %5782 = vmatpush1.bf16.msra.mxu1 %v16367_v16  ;;  %v4750_v47 = vmul.f32 0.5, %v4734_v5  ;;  %v4736_v60 = vsub.f32 %v13925_v8, %v13864_v48  ;;  %v16368_v35 = vcombine.high %v13673_v21, %v13675_v41  ;;  %v4678_v11 = vsub.f32 1.0, %v4646_v61  ;;  %v8927_v16 = vld [vmem:[%s11312_s18 + $0xa0] sm:$0xff] }
 0x6ed   : > { %16366 = vst [vmem:[#allocation40_spill] sm:$0xff] %v13941_v0  ;;  %v4751_v56 = vmul.f32 0.5, %v4735_v34  ;;  %v4737_v39 = vsub.f32 %v13941_v0, %v4689_v23  ;;  %v4465_v55 = vpop.f32.mrb[116].mxu0  ;;  %v13962_v31 = vmul.f32 %v4677_v19, %v13653_v45  ;;  %v4679_v5 = vsub.f32 1.0, %v4647_v22  ;;  %v8929_v0 = vld [vmem:[%s11312_s18 + $0xb0] sm:$0xff] }
 0x6ee   : > { %5783 = vmatprep.subr.bf16.mxu1 %v16368_v35  ;;  %v4680_v8 = vsub.f32 1.0, %v4648_v17  ;;  %v4752_v26 = vmul.f32 0.5, %v4736_v60  ;;  %v9715_v53 = vadd.f32 %v13541_v36, %v4465_v55  ;;  %v4467_v7 = vpop.f32.mrb[117].mxu0  ;;  %v4681_v35 = vsub.f32 1.0, %v13949_v33  ;;  %v8930_v60 = vld [vmem:[%s11312_s18 + $0xb8] sm:$0xff] }
 0x6ef   : > { %v4753_v61 = vmul.f32 0.5, %v4737_v39  ;;  %v9718_v34 = vadd.f32 %v13543_v3, %v4467_v7  ;;  %v4469_v4 = vpop.f32.mrb[118].mxu0  ;;  %v4767_v45 = vadd.f32 %v4751_v56, %v13858_v27  ;;  %v16370_v33 = vcombine.high %v13683_v51, %v13685_v50 }
 0x6f0   : > { %5784 = vmatpush1.bf16.msra.mxu1 %v16369_v20  ;;  %v13973_v19 = vadd.f32 %v9715_v53, %v8927_v16  ;;  %v9721_v22 = vadd.f32 %v13541_v36, %v4469_v4  ;;  %v4471_v17 = vpop.f32.mrb[119].mxu0  ;;  %v4766_v39 = vadd.f32 %v4750_v47, %v13849_v37  ;;  %v4768_v55 = vadd.f32 %v4752_v26, %v13864_v48  ;;  %v8931_v16 = vld [vmem:[%s11312_s18 + $0xc0] sm:$0xff] }
 0x6f1   : > { %5785 = vmatprep.subr.bf16.mxu1 %v16370_v33  ;;  %v13982_v7 = vadd.f32 %v9718_v34, %v8928_v15  ;;  %v9724_v20 = vadd.f32 %v13543_v3, %v4471_v17  ;;  %v13986_v27 = vmul.f32 %v4678_v11, %v13756_v29  ;;  %v4769_v21 = vadd.f32 %v4753_v61, %v4689_v23  ;;  %v8932_v33 = vld [vmem:[%s11312_s18 + $0xc8] sm:$0xff]  ;;  %v10632_v61 = vld [vmem:[#allocation17 + $0x314] ss:$8 sps:$4 sm:$0xff]  }
 0x6f2   : > { %v13991_v4 = vsel %vm4634_vm11, 1.0, %v16343_v13  ;;  %v4738_v41 = vsub.f32 %v13973_v19, %v13918_v6  ;;  %v13995_v56 = vadd.f32 %v9721_v22, %v8929_v0  ;;  %vm4784_vm6 = vcmp.ge.f32.partialorder %v4768_v55, 1.0  ;;  %v8933_v55 = vld [vmem:[%s11312_s18 + $0xd0] sm:$0xff]  ;;  %v10528_v0 = vld [vmem:[#allocation17 + $0x80] ss:$8 sps:$4 sm:$0xff]  }
 0x6f3   : > { %v4739_v15 = vsub.f32 %v13982_v7, %v13931_v38  ;;  %v13999_v37 = vadd.f32 %v9724_v20, %v8930_v60  ;;  %vm4783_vm1 = vcmp.ge.f32.partialorder %v4767_v45, 1.0  ;;  %vm4785_vm8 = vcmp.ge.f32.partialorder %v4769_v21, 1.0 }
 0x6f4   : > { %v16371_v29 = vcombine.low %v13683_v51, %v13685_v50  ;;  %v14007_v23 = vsel %vm4635_vm13, 1.0, %v16343_v13  ;;  %v4754_v48 = vmul.f32 0.5, %v4738_v41  ;;  %v4740_v26 = vsub.f32 %v13995_v56, %v13954_v40  ;;  %vm14011_vm3 = vmpackc.low %vm4785_vm8, %vm4783_vm1 }
 0x6f5   : > { %vm4782_vm11 = vcmp.ge.f32.partialorder %v4766_v39, 1.0  ;;  %v16374_v47 = vcombine.high %v13701_v54, %v13703_v52  ;;  %v4755_v51 = vmul.f32 0.5, %v4739_v15  ;;  %v4741_v50 = vsub.f32 %v13999_v37, %v13962_v31  ;;  %v4475_v11 = vpop.f32.mrb[120].mxu0  ;;  %9382 = vmatprep.mubr.msk.bf16.mxu1 %vm14011_vm3, %v16256_v32 }
 0x6f6   : > { %5786 = vmatpush1.bf16.msra.mxu1 %v16371_v29  ;;  %v14025_v53 = vmul.f32 %v4679_v5, %v13746_v63  ;;  %vm14028_vm13 = vmpackc.low %vm4784_vm6, %vm4782_vm11  ;;  %v14033_v34 = vmul.f32 %v4680_v8, %v13759_v44  ;;  %v4682_v45 = vsub.f32 1.0, %v13991_v4  ;;  %v4756_v22 = vmul.f32 0.5, %v4740_v26  ;;  %v4477_v60 = vpop.f32.mrb[121].mxu0 }
 0x6f7   : > { %5787 = vmatprep.subr.bf16.mxu1 %v16374_v47  ;;  %v9727_v17 = vadd.f32 %v13541_v36, %v4475_v11  ;;  %9384 = vmatmul.mubr.msk.bf16.gmra.mrb[48].mxu1 %vm14028_vm13, %v16256_v32  ;;  %v14042_v63 = vmul.f32 %v4681_v35, %v13764_v46  ;;  %v4683_v5 = vsub.f32 1.0, %v14007_v23  ;;  %v4757_v39 = vmul.f32 0.5, %v4741_v50  ;;  %v4479_v8 = vpop.f32.mrb[122].mxu0  ;;  %v8934_v46 = vld [vmem:[%s11312_s18 + $0xd8] sm:$0xff]  ;;  %v14067_v47 = vld [vmem:[#allocation16 + $0x348] sm:$0xff] }
 0x6f8   : > { %v9730_v44 = vadd.f32 %v13543_v3, %v4477_v60  ;;  %v16377_v20 = vcombine.low %v13701_v54, %v13703_v52  ;;  %v4771_v21 = vadd.f32 %v4755_v51, %v13931_v38  ;;  %v9733_v41 = vadd.f32 %v13541_v36, %v4479_v8  ;;  %v4481_v15 = vpop.f32.mrb[123].mxu0  ;;  %v14069_v51 = vld [vmem:[#allocation16 + $0x368] sm:$0xff]  ;;  %v8935_v8 = vld [vmem:[%s11312_s18 + $0xe0] sm:$0xff] }
 0x6f9   : > { %v14051_v4 = vadd.f32 %v9727_v17, %v8931_v16  ;;  %v16378_v35 = vcombine.high %v13723_v12, %v13736_v49  ;;  %v4770_v29 = vadd.f32 %v4754_v48, %v13918_v6  ;;  %v4772_v23 = vadd.f32 %v4756_v22, %v13954_v40 }
 0x6fa   : > { %5788 = vmatpush1.bf16.msra.mxu1 %v16377_v20  ;;  %v4652_v54 = vsel %vm4636_vm10, 1.0, %v16343_v13  ;;  %v14063_v52 = vadd.f32 %v9730_v44, %v8932_v33  ;;  %v9736_v38 = vadd.f32 %v13543_v3, %v4481_v15  ;;  %v4773_v26 = vadd.f32 %v4757_v39, %v13962_v31 }
 0x6fb   : > { %5789 = vmatprep.subr.bf16.mxu1 %v16378_v35  ;;  %v4653_v6 = vsel %vm4637_vm15, 1.0, %v16343_v13  ;;  %v4742_v40 = vsub.f32 %v14051_v4, %v13986_v27  ;;  %v14076_v48 = vadd.f32 %v9733_v41, %v8933_v55  ;;  %vm4788_vm10 = vcmp.ge.f32.partialorder %v4772_v23, 1.0 }
 0x6fc   : > { %v4743_v50 = vsub.f32 %v14063_v52, %v14025_v53  ;;  %v14080_v11 = vadd.f32 %v9736_v38, %v8934_v46  ;;  %vm4787_vm6 = vcmp.ge.f32.partialorder %v4771_v21, 1.0  ;;  %vm4789_vm1 = vcmp.ge.f32.partialorder %v4773_v26, 1.0 }
 0x6fd   : > { %v16380_v31 = vcombine.low %v13723_v12, %v13736_v49  ;;  %v4758_v16 = vmul.f32 0.5, %v4742_v40  ;;  %v4744_v22 = vsub.f32 %v14076_v48, %v14033_v34  ;;  %vm14087_vm15 = vmpackc.low %vm4789_vm1, %vm4787_vm6  ;;  %v16381_v17 = vmov 0  ;;  %v4485_v44 = vpop.f32.mrb[124].mxu0 }
 0x6fe   : > { %16379 = vst [vmem:[#allocation41_spill] sm:$0xff] %v14080_v11  ;;  %v16382_v17 = vsel %vm14087_vm15, 4294967295, %v16381_v17  ;;  %vm4786_vm8 = vcmp.ge.f32.partialorder %v4770_v29, 1.0  ;;  %v16383_v60 = vcombine.high %v13738_v9, %v13740_v14  ;;  %v9045_v33 = vcombine.low %v14067_v47, %v14069_v51  ;;  %9386 = vmatprep.mubr.msk.bf16.mxu1 %vm14087_vm15, %v16256_v32  ;;  %v4487_v35 = vpop.f32.mrb[125].mxu0  ;;  %v8936_v29 = vld [vmem:[%s11312_s18 + $0xe8] sm:$0xff] }
 0x6ff   : > { %5790 = vmatpush1.bf16.msra.mxu1 %v16380_v31  ;;  %v4684_v39 = vsub.f32 1.0, %v4652_v54  ;;  %v4759_v12 = vmul.f32 0.5, %v4743_v50  ;;  %v4745_v49 = vsub.f32 %v14080_v11, %v14042_v63  ;;  %vm14103_vm11 = vmpackc.low %vm4788_vm10, %vm4786_vm8  ;;  %v16384_v55 = vmov 0  ;;  %v4489_v26 = vpop.f32.mrb[126].mxu0  ;;  %v8938_v50 = vld [vmem:[%s11312_s18 + $0xf8] sm:$0xff] }
 0x700   : > { %5791 = vmatprep.subr.bf16.mxu1 %v16383_v60  ;;  %v16385_v55 = vsel %vm14103_vm11, 4294967295, %v16384_v55  ;;  %v9046_v20 = vcombine.high %v14067_v47, %v14069_v51  ;;  %v4685_v21 = vsub.f32 1.0, %v4653_v6  ;;  %v4760_v41 = vmul.f32 0.5, %v4744_v22  ;;  %9388 = vmatmul.mubr.msk.bf16.gmra.mrb[52].mxu1 %vm14103_vm11, %v16256_v32  ;;  %v8937_v47 = vld [vmem:[%s11312_s18 + $0xf0] sm:$0xff]  ;;  %v4491_v40 = vpop.f32.mrb[127].mxu0  ;;  %v4959_v60 = vld [vmem:[#allocation16 + $0x388] sm:$0xff] }
 0x701   : > { %v9739_v15 = vadd.f32 %v13541_v36, %v4485_v44  ;;  %v4698_v46 = vmul.f32 %v4682_v45, %v13852_v43  ;;  %v4761_v23 = vmul.f32 0.5, %v4745_v49  ;;  %v9742_v54 = vadd.f32 %v13543_v3, %v4487_v35 }
 0x702   : > { %v4699_v38 = vmul.f32 %v4683_v5, %v13841_v24  ;;  %v16386_v51 = vcombine.low %v13738_v9, %v13740_v14  ;;  %v4775_v6 = vadd.f32 %v4759_v12, %v14025_v53  ;;  %v9745_v45 = vadd.f32 %v13541_v36, %v4489_v26  ;;  %v4963_v36 = vld [vmem:[#allocation16 + $0x3a8] sm:$0xff] }
 0x703   : > { %v14122_v43 = vadd.f32 %v9739_v15, %v8935_v8  ;;  %v16388_v31 = vcombine.high %v13786_v57, %v13788_v10  ;;  %v4774_v24 = vadd.f32 %v4758_v16, %v13986_v27  ;;  %v4776_v5 = vadd.f32 %v4760_v41, %v14033_v34 }
 0x704   : > { %5792 = vmatpush1.bf16.msra.mxu1 %v16386_v51  ;;  %v14131_v22 = vadd.f32 %v9742_v54, %v8936_v29  ;;  %v4700_v9 = vmul.f32 %v4684_v39, %v13855_v59  ;;  %v9748_v14 = vadd.f32 %v13543_v3, %v4491_v40  ;;  %v4777_v53 = vadd.f32 %v4761_v23, %v14042_v63  ;;  %v4852_v51 = vld [vmem:[#allocation16 + $0x30] sm:$0xff] }
 0x705   : > { %16387 = vst [vmem:[#allocation47_spill] sm:$0xff] %v14122_v43  ;;  %5793 = vmatprep.subr.bf16.mxu1 %v16388_v31  ;;  %v4746_v12 = vsub.f32 %v14122_v43, %v4698_v46  ;;  %v14137_v49 = vadd.f32 %v9745_v45, %v8937_v47  ;;  %v4701_v44 = vmul.f32 %v4685_v21, %v13870_v58  ;;  %vm4792_vm10 = vcmp.ge.f32.partialorder %v4776_v5, 1.0  ;;  %v4971_v21 = vld [vmem:[#allocation16 + $0x3e8] sm:$0xff]  ;;  %v4848_v47 = vld [vmem:[#allocation16 + $0x10] sm:$0xff] }
 0x706   : > { %16389 = vst [vmem:[#allocation48_spill] sm:$0xff] %v14131_v22  ;;  %v4747_v27 = vsub.f32 %v14131_v22, %v4699_v38  ;;  %v14141_v34 = vadd.f32 %v9748_v14, %v8938_v50  ;;  %vm4791_vm6 = vcmp.ge.f32.partialorder %v4775_v6, 1.0  ;;  %vm4793_vm1 = vcmp.ge.f32.partialorder %v4777_v53, 1.0  ;;  %v4860_v40 = vld [vmem:[#allocation16 + $0x70] sm:$0xff] }
 0x707   : > { %16390 = vst [vmem:[#allocation52_spill] sm:$0xff] %v14137_v49  ;;  %v16392_v3 = vcombine.low %v13786_v57, %v13788_v10  ;;  %v4762_v59 = vmul.f32 0.5, %v4746_v12  ;;  %v4748_v63 = vsub.f32 %v14137_v49, %v4700_v9  ;;  %vm14147_vm8 = vmpackc.low %vm4793_vm1, %vm4791_vm6  ;;  %v16393_v16 = vmov 0  ;;  %v4967_v10 = vld [vmem:[#allocation16 + $0x3c8] sm:$0xff]  ;;  %v4868_v5 = vld [vmem:[#allocation16 + $0xb0] sm:$0xff] }
 0x708   : > { %16391 = vst [vmem:[#allocation54_spill] sm:$0xff] %v14141_v34  ;;  %v16394_v16 = vsel %vm14147_vm8, 4294967295, %v16393_v16  ;;  %vm4790_vm11 = vcmp.ge.f32.partialorder %v4774_v24, 1.0  ;;  %v9054_v58 = vcombine.high %v4959_v60, %v4963_v36  ;;  %v4763_v39 = vmul.f32 0.5, %v4747_v27  ;;  %9390 = vmatprep.mubr.msk.bf16.mxu1 %vm14147_vm8, %v16256_v32  ;;  %v4864_v24 = vld [vmem:[#allocation16 + $0x90] sm:$0xff] }
 0x709   : > { %5794 = vmatpush1.bf16.msra.mxu1 %v16392_v3  ;;  %v4749_v8 = vsub.f32 %v14141_v34, %v4701_v44  ;;  %vm14156_vm15 = vmpackc.low %vm4792_vm10, %vm4790_vm11  ;;  %v16395_v57 = vmov 0  ;;  %v4764_v41 = vmul.f32 0.5, %v4748_v63  ;;  %v9053_v35 = vcombine.low %v4959_v60, %v4963_v36  ;;  %v4872_v53 = vld [vmem:[#allocation16 + $0xd0] sm:$0xff]  ;;  %v10660_v49 = vld [vmem:[#allocation17 + $0x360] ss:$8 sps:$4 sm:$0xff]  }
 0x70a   : > { %5795 = vmatprep.subr.bf16.mxu1 %v9046_v20  ;;  %v16396_v57 = vsel %vm14156_vm15, 4294967295, %v16395_v57  ;;  %9392 = vmatmul.mubr.msk.bf16.gmra.mrb[56].mxu1 %vm14156_vm15, %v16256_v32  ;;  %v4779_v15 = vadd.f32 %v4763_v39, %v4699_v38  ;;  %v4778_v29 = vadd.f32 %v4762_v59, %v4698_v46  ;;  %v9062_v54 = vcombine.high %v4967_v10, %v4971_v21  ;;  %v4856_v38 = vld [vmem:[#allocation16 + $0x50] sm:$0xff] }
 0x70b   : > { %v4765_v20 = vmul.f32 0.5, %v4749_v8  ;;  %v4780_v23 = vadd.f32 %v4764_v41, %v4700_v9  ;;  %v9061_v6 = vcombine.low %v4967_v10, %v4971_v21  ;;  %v8943_v50 = vcombine.low %v4848_v47, %v4852_v51  ;;  %v4876_v60 = vld [vmem:[#allocation16 + $0xf0] sm:$0xff] }
 0x70c   : > { %vm4795_vm10 = vcmp.ge.f32.partialorder %v4779_v15, 1.0  ;;  %vm4794_vm15 = vcmp.ge.f32.partialorder %v4778_v29, 1.0  ;;  %v8952_v31 = vcombine.high %v4856_v38, %v4860_v40  ;;  %v8951_v9 = vcombine.low %v4856_v38, %v4860_v40  ;;  %v4884_v27 = vld [vmem:[#allocation16 + $0x130] sm:$0xff] }
 0x70d   : > { %5796 = vmatpush1.bf16.msra.mxu1 %v9045_v33  ;;  %v4781_v26 = vadd.f32 %v4765_v20, %v4701_v44  ;;  %vm4796_vm11 = vcmp.ge.f32.partialorder %v4780_v23, 1.0  ;;  %v8944_v33 = vcombine.high %v4848_v47, %v4852_v51  ;;  %v8960_v14 = vcombine.high %v4864_v24, %v4868_v5  ;;  %v4880_v44 = vld [vmem:[#allocation16 + $0x110] sm:$0xff] }
 0x70e   : > { %5797 = vmatprep.subr.bf16.mxu1 %v9054_v58  ;;  %vm14170_vm8 = vmpackc.low %vm4796_vm11, %vm4794_vm15  ;;  %v8959_v36 = vcombine.low %v4864_v24, %v4868_v5  ;;  %v8968_v12 = vcombine.high %v4872_v53, %v4876_v60  ;;  %v8967_v3 = vcombine.low %v4872_v53, %v4876_v60  ;;  %v8976_v59 = vcombine.high %v4880_v44, %v4884_v27  ;;  %v4888_v63 = vld [vmem:[#allocation16 + $0x150] sm:$0xff] }
 0x70f   : > { %vm4797_vm6 = vcmp.ge.f32.partialorder %v4781_v26, 1.0  ;;  %v4892_v58 = vld [vmem:[#allocation16 + $0x170] sm:$0xff]  ;;  %v8975_v39 = vcombine.low %v4880_v44, %v4884_v27  ;;  %vm16401_vm15 = vnez %v16382_v17  ;;  %vm16402_vm11 = vnez %v16385_v55 }
 0x710   : > { %vm14163_vm1 = vmpackc.low %vm4797_vm6, %vm4795_vm10  ;;  %v8984_v8 = vcombine.high %v4888_v63, %v4892_v58  ;;  %v4896_v10 = vld [vmem:[#allocation16 + $0x190] sm:$0xff]  ;;  %v8983_v41 = vcombine.low %v4888_v63, %v4892_v58  ;;  %vm16403_vm10 = vnez %v16394_v16  ;;  %vm16404_vm6 = vnez %v16396_v57 }
 0x711   : > { %5798 = vmatpush1.bf16.msra.mxu1 %v9053_v35  ;;  %9394 = vmatprep.mubr.msk.bf16.mxu1 %vm14163_vm1, %v16256_v32  ;;  %v4900_v21 = vld [vmem:[#allocation16 + $0x1b0] sm:$0xff] }
 0x712   : > { %5799 = vmatprep.subr.bf16.mxu1 %v9062_v54  ;;  %9396 = vmatmul.mubr.msk.bf16.gmra.mrb[60].mxu1 %vm14170_vm8, %v16256_v32  ;;  %v8992_v20 = vcombine.high %v4896_v10, %v4900_v21  ;;  %v4904_v15 = vld [vmem:[#allocation16 + $0x1d0] sm:$0xff]  ;;  %v8991_v29 = vcombine.low %v4896_v10, %v4900_v21 }
 0x713   : > { %9398 = vmatprep.mubr.msk.bf16.mxu1 %vm13592_vm0, %v16256_v32  ;;  %v4908_v35 = vld [vmem:[#allocation16 + $0x1f0] sm:$0xff] }
 0x714   : > { %v9000_v23 = vcombine.high %v4904_v15, %v4908_v35  ;;  %v4912_v54 = vld [vmem:[#allocation16 + $0x210] sm:$0xff]  ;;  %v8999_v47 = vcombine.low %v4904_v15, %v4908_v35 }
 0x715   : > { %5800 = vmatpush1.bf16.msra.mxu1 %v9061_v6  ;;  %v4916_v26 = vld [vmem:[#allocation16 + $0x230] sm:$0xff] }
 0x716   : > { %5882 = vmatprep.subr.bf16.mxu1 %v8944_v33  ;;  %v9008_v51 = vcombine.high %v4912_v54, %v4916_v26  ;;  %v4920_v6 = vld [vmem:[#allocation16 + $0x250] sm:$0xff]  ;;  %v9007_v38 = vcombine.low %v4912_v54, %v4916_v26 }
 0x717   : > { %v4924_v33 = vld [vmem:[#allocation16 + $0x270] sm:$0xff] }
 0x718   : > { %v9016_v40 = vcombine.high %v4920_v6, %v4924_v33  ;;  %v9015_v24 = vcombine.low %v4920_v6, %v4924_v33  ;;  %v10644_v55 = vld [vmem:[#allocation17 + $0x334] ss:$8 sps:$4 sm:$0xff]   ;;  %v10543_v57 = vld [vmem:[#allocation17 + $0xd0] ss:$8 sps:$4 sm:$0xff]  }
 0x719   : > { %v10668_v46 = vld [vmem:[#allocation17 + $0x374] ss:$8 sps:$4 sm:$0xff]  }
 0x71a   : > { %9400 = vmatmul.mubr.msk.bf16.vlgmr.msra.gmra.mrb[64].mxu1 %vm13603_vm4, %v16256_v32 }
 0x71b   : > { %5883 = vmatpush1.bf16.msra.mxu1 %v8943_v50  ;;  %9402 = vmatprep.mubr.msk.bf16.mxu1 %vm13694_vm14, %v16256_v32  ;;  %v4928_v50 = vld [vmem:[#allocation16 + $0x290] sm:$0xff] }
 0x71c   : > { %5884 = vmatprep.subr.bf16.mxu1 %v8952_v31  ;;  %v4932_v31 = vld [vmem:[#allocation16 + $0x2b0] sm:$0xff] }
 0x71d   : > { %v9024_v5 = vcombine.high %v4928_v50, %v4932_v31  ;;  %v9023_v53 = vcombine.low %v4928_v50, %v4932_v31 }
 0x71f   : > { %5885 = vmatpush1.bf16.msra.mxu1 %v8951_v9  ;;  %v4936_v9 = vld [vmem:[#allocation16 + $0x2d0] sm:$0xff] }
 0x720   : > { %5886 = vmatprep.subr.bf16.mxu1 %v8960_v14  ;;  %v4940_v14 = vld [vmem:[#allocation16 + $0x2f0] sm:$0xff] }
 0x721   : > { %v9032_v60 = vcombine.high %v4936_v9, %v4940_v14  ;;  %v9031_v44 = vcombine.low %v4936_v9, %v4940_v14 }
 0x722   : > { %9404 = vmatmul.mubr.msk.bf16.gmra.mrb[68].mxu1 %vm13715_vm7, %v16256_v32 }
 0x723   : > { %5887 = vmatpush1.bf16.msra.mxu1 %v8959_v36  ;;  %9406 = vmatprep.mubr.msk.bf16.mxu1 %vm13801_vm2, %v16256_v32  ;;  %v4944_v36 = vld [vmem:[#allocation16 + $0x310] sm:$0xff] }
 0x724   : > { %5888 = vmatprep.subr.bf16.mxu1 %v8968_v12  ;;  %v4948_v12 = vld [vmem:[#allocation16 + $0x330] sm:$0xff] }
 0x725   : > { %v9040_v27 = vcombine.high %v4944_v36, %v4948_v12  ;;  %v9039_v63 = vcombine.low %v4944_v36, %v4948_v12 }
 0x727   : > { %5889 = vmatpush1.bf16.msra.mxu1 %v8967_v3  ;;  %v4952_v3 = vld [vmem:[#allocation16 + $0x350] sm:$0xff] }
 0x728   : > { %5890 = vmatprep.subr.bf16.mxu1 %v8976_v59  ;;  %v4956_v59 = vld [vmem:[#allocation16 + $0x370] sm:$0xff] }
 0x729   : > { %v9048_v58 = vcombine.high %v4952_v3, %v4956_v59  ;;  %v9047_v10 = vcombine.low %v4952_v3, %v4956_v59 }
 0x72a   : > { %9408 = vmatmul.mubr.msk.bf16.gmra.mrb[72].mxu1 %vm13819_vm5, %v16256_v32 }
 0x72b   : > { %5891 = vmatpush1.bf16.msra.mxu1 %v8975_v39  ;;  %9410 = vmatprep.mubr.msk.bf16.mxu1 %vm13895_vm9, %v16256_v32  ;;  %v4960_v39 = vld [vmem:[#allocation16 + $0x390] sm:$0xff] }
 0x72c   : > { %5892 = vmatprep.subr.bf16.mxu1 %v8984_v8  ;;  %v4964_v8 = vld [vmem:[#allocation16 + $0x3b0] sm:$0xff] }
 0x72d   : > { %v9056_v21 = vcombine.high %v4960_v39, %v4964_v8  ;;  %v9055_v15 = vcombine.low %v4960_v39, %v4964_v8 }
 0x72f   : > { %5893 = vmatpush1.bf16.msra.mxu1 %v8983_v41  ;;  %v4968_v41 = vld [vmem:[#allocation16 + $0x3d0] sm:$0xff] }
 0x730   : > { %5894 = vmatprep.subr.bf16.mxu1 %v8992_v20  ;;  %v4972_v20 = vld [vmem:[#allocation16 + $0x3f0] sm:$0xff] }
 0x731   : > { %v9064_v35 = vcombine.high %v4968_v41, %v4972_v20  ;;  %v9063_v54 = vcombine.low %v4968_v41, %v4972_v20 }
 0x732   : > { %9412 = vmatmul.mubr.msk.bf16.gmra.mrb[76].mxu1 %vm13913_vm12, %v16256_v32 }
 0x733   : > { %5895 = vmatpush1.bf16.msra.mxu1 %v8991_v29  ;;  %9414 = vmatprep.mubr.msk.bf16.mxu1 %vm14011_vm3, %v16256_v32  ;;  %v4849_v29 = vld [vmem:[#allocation16 + $0x18] sm:$0xff] }
 0x734   : > { %5896 = vmatprep.subr.bf16.mxu1 %v9000_v23  ;;  %v4853_v23 = vld [vmem:[#allocation16 + $0x38] sm:$0xff] }
 0x735   : > { %v8946_v26 = vcombine.high %v4849_v29, %v4853_v23  ;;  %v8945_v6 = vcombine.low %v4849_v29, %v4853_v23 }
 0x737   : > { %5897 = vmatpush1.bf16.msra.mxu1 %v8999_v47  ;;  %v4857_v47 = vld [vmem:[#allocation16 + $0x58] sm:$0xff] }
 0x738   : > { %5898 = vmatprep.subr.bf16.mxu1 %v9008_v51  ;;  %v4861_v51 = vld [vmem:[#allocation16 + $0x78] sm:$0xff] }
 0x739   : > { %v8954_v33 = vcombine.high %v4857_v47, %v4861_v51  ;;  %v8953_v50 = vcombine.low %v4857_v47, %v4861_v51 }
 0x73a   : > { %9416 = vmatmul.mubr.msk.bf16.gmra.mrb[80].mxu1 %vm14028_vm13, %v16256_v32 }
 0x73b   : > { %5899 = vmatpush1.bf16.msra.mxu1 %v9007_v38  ;;  %9418 = vmatprep.mubr.msk.bf16.mxu1 %vm16401_vm15, %v16256_v32  ;;  %v4865_v38 = vld [vmem:[#allocation16 + $0x98] sm:$0xff] }
 0x73c   : > { %5900 = vmatprep.subr.bf16.mxu1 %v9016_v40  ;;  %v4869_v40 = vld [vmem:[#allocation16 + $0xb8] sm:$0xff] }
 0x73d   : > { %v8962_v31 = vcombine.high %v4865_v38, %v4869_v40  ;;  %v8961_v9 = vcombine.low %v4865_v38, %v4869_v40 }
 0x73f   : > { %5901 = vmatpush1.bf16.msra.mxu1 %v9015_v24  ;;  %v4873_v24 = vld [vmem:[#allocation16 + $0xd8] sm:$0xff] }
 0x740   : > { %5902 = vmatprep.subr.bf16.mxu1 %v9024_v5  ;;  %v4877_v5 = vld [vmem:[#allocation16 + $0xf8] sm:$0xff] }
 0x741   : > { %v8970_v14 = vcombine.high %v4873_v24, %v4877_v5  ;;  %v8969_v36 = vcombine.low %v4873_v24, %v4877_v5 }
 0x742   : > { %9420 = vmatmul.mubr.msk.bf16.gmra.mrb[84].mxu1 %vm16402_vm11, %v16256_v32 }
 0x743   : > { %5903 = vmatpush1.bf16.msra.mxu1 %v9023_v53  ;;  %9422 = vmatprep.mubr.msk.bf16.mxu1 %vm16403_vm10, %v16256_v32  ;;  %v4881_v53 = vld [vmem:[#allocation16 + $0x118] sm:$0xff] }
 0x744   : > { %5904 = vmatprep.subr.bf16.mxu1 %v9032_v60  ;;  %v4885_v60 = vld [vmem:[#allocation16 + $0x138] sm:$0xff] }
 0x745   : > { %v8978_v12 = vcombine.high %v4881_v53, %v4885_v60  ;;  %v8977_v3 = vcombine.low %v4881_v53, %v4885_v60 }
 0x747   : > { %5905 = vmatpush1.bf16.msra.mxu1 %v9031_v44  ;;  %v4889_v44 = vld [vmem:[#allocation16 + $0x158] sm:$0xff] }
 0x748   : > { %5906 = vmatprep.subr.bf16.mxu1 %v9040_v27  ;;  %v4893_v27 = vld [vmem:[#allocation16 + $0x178] sm:$0xff] }
 0x749   : > { %v8986_v59 = vcombine.high %v4889_v44, %v4893_v27  ;;  %v8985_v39 = vcombine.low %v4889_v44, %v4893_v27 }
 0x74a   : > { %9424 = vmatmul.mubr.msk.bf16.gmra.mrb[88].mxu1 %vm16404_vm6, %v16256_v32 }
 0x74b   : > { %5907 = vmatpush1.bf16.msra.mxu1 %v9039_v63  ;;  %9426 = vmatprep.mubr.msk.bf16.mxu1 %vm14163_vm1, %v16256_v32  ;;  %v4897_v63 = vld [vmem:[#allocation16 + $0x198] sm:$0xff] }
 0x74c   : > { %5908 = vmatprep.subr.bf16.mxu1 %v9048_v58  ;;  %v4901_v58 = vld [vmem:[#allocation16 + $0x1b8] sm:$0xff] }
 0x74d   : > { %v8994_v8 = vcombine.high %v4897_v63, %v4901_v58  ;;  %v8993_v41 = vcombine.low %v4897_v63, %v4901_v58 }
 0x74f   : > { %5909 = vmatpush1.bf16.msra.mxu1 %v9047_v10  ;;  %v4905_v10 = vld [vmem:[#allocation16 + $0x1d8] sm:$0xff] }
 0x750   : > { %5910 = vmatprep.subr.bf16.mxu1 %v9056_v21  ;;  %v4909_v21 = vld [vmem:[#allocation16 + $0x1f8] sm:$0xff] }
 0x751   : > { %v9002_v20 = vcombine.high %v4905_v10, %v4909_v21  ;;  %v9001_v29 = vcombine.low %v4905_v10, %v4909_v21 }
 0x752   : > { %9428 = vmatmul.mubr.msk.bf16.gmra.mrb[92].mxu1 %vm14170_vm8, %v16256_v32 }
 0x753   : > { %5911 = vmatpush1.bf16.msra.mxu1 %v9055_v15  ;;  %9430 = vmatprep.mubr.msk.bf16.mxu1 %vm13592_vm0, %v16256_v32  ;;  %v4913_v15 = vld [vmem:[#allocation16 + $0x218] sm:$0xff] }
 0x754   : > { %5912 = vmatprep.subr.bf16.mxu1 %v9064_v35  ;;  %v4917_v35 = vld [vmem:[#allocation16 + $0x238] sm:$0xff] }
 0x755   : > { %v9010_v23 = vcombine.high %v4913_v15, %v4917_v35  ;;  %v9009_v47 = vcombine.low %v4913_v15, %v4917_v35  ;;  %v10504_v15 = vld [vmem:[#allocation17] ss:$8 sps:$4 sm:$0xff]   ;;  %v10509_v35 = vld [vmem:[#allocation17 + $0x14] ss:$8 sps:$4 sm:$0xff]  }
 0x757   : > { %5913 = vmatpush1.bf16.msra.mxu1 %v9063_v54  ;;  %v4921_v54 = vld [vmem:[#allocation16 + $0x258] sm:$0xff] }
 0x758   : > { %5995 = vmatprep.subr.bf16.mxu1 %v8946_v26  ;;  %v4925_v26 = vld [vmem:[#allocation16 + $0x278] sm:$0xff] }
 0x759   : > { %v9018_v51 = vcombine.high %v4921_v54, %v4925_v26  ;;  %v9017_v38 = vcombine.low %v4921_v54, %v4925_v26  ;;  %v10515_v54 = vld [vmem:[#allocation17 + $0x34] ss:$8 sps:$4 sm:$0xff]   ;;  %v10518_v26 = vld [vmem:[#allocation17 + $0x44] ss:$8 sps:$4 sm:$0xff]  }
 0x75a   : > { %9432 = vmatmul.mubr.msk.bf16.vlgmr.msra.gmra.mrb[96].mxu1 %vm13603_vm4, %v16256_v32 }
 0x75b   : > { %5996 = vmatpush1.bf16.msra.mxu1 %v8945_v6  ;;  %9434 = vmatprep.mubr.msk.bf16.mxu1 %vm13694_vm14, %v16256_v32  ;;  %v4929_v6 = vld [vmem:[#allocation16 + $0x298] sm:$0xff] }
 0x75c   : > { %5997 = vmatprep.subr.bf16.mxu1 %v8954_v33  ;;  %v4933_v33 = vld [vmem:[#allocation16 + $0x2b8] sm:$0xff] }
 0x75d   : > { %v9026_v40 = vcombine.high %v4929_v6, %v4933_v33  ;;  %v9025_v24 = vcombine.low %v4929_v6, %v4933_v33  ;;  %v16406_v6 = vld [vmem:[#allocation84_spill] sm:$0xff] }
 0x75e   : > { %v14296_v33 = vrot.slane %v14288_v30, %v16406_v6  ;;  %v10566_v6 = vld [vmem:[#allocation17 + $0x144] ss:$8 sps:$4 sm:$0xff]  }
 0x75f   : > { %5998 = vmatpush1.bf16.msra.mxu1 %v8953_v50  ;;  %v4937_v50 = vld [vmem:[#allocation16 + $0x2d8] sm:$0xff] }
 0x760   : > { %5999 = vmatprep.subr.bf16.mxu1 %v8962_v31  ;;  %v4941_v31 = vld [vmem:[#allocation16 + $0x2f8] sm:$0xff] }
 0x761   : > { %v9034_v5 = vcombine.high %v4937_v50, %v4941_v31  ;;  %v9033_v53 = vcombine.low %v4937_v50, %v4941_v31 }
 0x762   : > { %9436 = vmatmul.mubr.msk.bf16.gmra.mrb[100].mxu1 %vm13715_vm7, %v16256_v32 }
 0x763   : > { %6000 = vmatpush1.bf16.msra.mxu1 %v8961_v9  ;;  %9438 = vmatprep.mubr.msk.bf16.mxu1 %vm13801_vm2, %v16256_v32  ;;  %v4945_v9 = vld [vmem:[#allocation16 + $0x318] sm:$0xff] }
 0x764   : > { %6001 = vmatprep.subr.bf16.mxu1 %v8970_v14  ;;  %v4949_v14 = vld [vmem:[#allocation16 + $0x338] sm:$0xff] }
 0x765   : > { %v9042_v60 = vcombine.high %v4945_v9, %v4949_v14  ;;  %v9041_v44 = vcombine.low %v4945_v9, %v4949_v14 }
 0x767   : > { %6002 = vmatpush1.bf16.msra.mxu1 %v8969_v36  ;;  %v4953_v36 = vld [vmem:[#allocation16 + $0x358] sm:$0xff] }
 0x768   : > { %6003 = vmatprep.subr.bf16.mxu1 %v8978_v12  ;;  %v4957_v12 = vld [vmem:[#allocation16 + $0x378] sm:$0xff] }
 0x769   : > { %v9050_v27 = vcombine.high %v4953_v36, %v4957_v12  ;;  %v9049_v63 = vcombine.low %v4953_v36, %v4957_v12 }
 0x76a   : > { %9440 = vmatmul.mubr.msk.bf16.gmra.mrb[104].mxu1 %vm13819_vm5, %v16256_v32 }
 0x76b   : > { %6004 = vmatpush1.bf16.msra.mxu1 %v8977_v3  ;;  %9442 = vmatprep.mubr.msk.bf16.mxu1 %vm13895_vm9, %v16256_v32  ;;  %v4961_v3 = vld [vmem:[#allocation16 + $0x398] sm:$0xff] }
 0x76c   : > { %6005 = vmatprep.subr.bf16.mxu1 %v8986_v59  ;;  %v4965_v59 = vld [vmem:[#allocation16 + $0x3b8] sm:$0xff] }
 0x76d   : > { %v9058_v58 = vcombine.high %v4961_v3, %v4965_v59  ;;  %v9057_v10 = vcombine.low %v4961_v3, %v4965_v59 }
 0x76f   : > { %6006 = vmatpush1.bf16.msra.mxu1 %v8985_v39  ;;  %v4969_v39 = vld [vmem:[#allocation16 + $0x3d8] sm:$0xff] }
 0x770   : > { %6007 = vmatprep.subr.bf16.mxu1 %v8994_v8  ;;  %v4973_v8 = vld [vmem:[#allocation16 + $0x3f8] sm:$0xff] }
 0x771   : > { %v9066_v21 = vcombine.high %v4969_v39, %v4973_v8 }
 0x772   : > { %9444 = vmatmul.mubr.msk.bf16.gmra.mrb[108].mxu1 %vm13913_vm12, %v16256_v32 }
 0x773   : > { %6008 = vmatpush1.bf16.msra.mxu1 %v8993_v41  ;;  %9446 = vmatprep.mubr.msk.bf16.mxu1 %vm14011_vm3, %v16256_v32  ;;  %v9065_v41 = vcombine.low %v4969_v39, %v4973_v8 }
 0x774   : > { %6009 = vmatprep.subr.bf16.mxu1 %v9002_v20  ;;  %v10506_v20 = vld [vmem:[#allocation17 + $0x4] ss:$8 sps:$4 sm:$0xff]  }
 0x777   : > { %6010 = vmatpush1.bf16.msra.mxu1 %v9001_v29  ;;  %v10507_v29 = vld [vmem:[#allocation17 + $0x10] ss:$8 sps:$4 sm:$0xff]  }
 0x778   : > { %6011 = vmatprep.subr.bf16.mxu1 %v9010_v23  ;;  %v10510_v23 = vld [vmem:[#allocation17 + $0x20] ss:$8 sps:$4 sm:$0xff]  }
 0x77a   : > { %9448 = vmatmul.mubr.msk.bf16.gmra.mrb[112].mxu1 %vm14028_vm13, %v16256_v32 }
 0x77b   : > { %6012 = vmatpush1.bf16.msra.mxu1 %v9009_v47  ;;  %9450 = vmatprep.mubr.msk.bf16.mxu1 %vm16401_vm15, %v16256_v32  ;;  %v16405_v47 = vld [vmem:[#allocation83_spill] sm:$0xff] }
 0x77c   : > { %6013 = vmatprep.subr.bf16.mxu1 %v9018_v51  ;;  %v14292_v51 = vrot.slane %v14288_v30, %v16405_v47 }
 0x77f   : > { %6014 = vmatpush1.bf16.msra.mxu1 %v9017_v38  ;;  %v10521_v38 = vld [vmem:[#allocation17 + $0x54] ss:$8 sps:$4 sm:$0xff]  }
 0x780   : > { %6015 = vmatprep.subr.bf16.mxu1 %v9026_v40 }
 0x782   : > { %9452 = vmatmul.mubr.msk.bf16.gmra.mrb[116].mxu1 %vm16402_vm11, %v16256_v32 }
 0x783   : > { %6016 = vmatpush1.bf16.msra.mxu1 %v9025_v24  ;;  %9454 = vmatprep.mubr.msk.bf16.mxu1 %vm16403_vm10, %v16256_v32 }
 0x784   : > { %6017 = vmatprep.subr.bf16.mxu1 %v9034_v5  ;;  %v10519_v5 = vld [vmem:[#allocation17 + $0x50] ss:$8 sps:$4 sm:$0xff]  }
 0x787   : > { %6018 = vmatpush1.bf16.msra.mxu1 %v9033_v53 }
 0x788   : > { %6019 = vmatprep.subr.bf16.mxu1 %v9042_v60  ;;  %v10524_v60 = vld [vmem:[#allocation17 + $0x64] ss:$8 sps:$4 sm:$0xff]  }
 0x78a   : > { %9456 = vmatmul.mubr.msk.bf16.gmra.mrb[120].mxu1 %vm16404_vm6, %v16256_v32 }
 0x78b   : > { %6020 = vmatpush1.bf16.msra.mxu1 %v9041_v44  ;;  %9458 = vmatprep.mubr.msk.bf16.mxu1 %vm14163_vm1, %v16256_v32 }
 0x78c   : > { %6021 = vmatprep.subr.bf16.mxu1 %v9050_v27  ;;  %v10527_v27 = vld [vmem:[#allocation17 + $0x74] ss:$8 sps:$4 sm:$0xff]  }
 0x78f   : > { %6022 = vmatpush1.bf16.msra.mxu1 %v9049_v63 }
 0x790   : > { %6023 = vmatprep.subr.bf16.mxu1 %v9058_v58 }
 0x792   : > { %9460 = vmatmul.mubr.msk.bf16.gmra.mrb[124].mxu1 %vm14170_vm8, %v16256_v32 }
 0x793   : > { %6024 = vmatpush1.bf16.msra.mxu1 %v9057_v10  ;;  %9462 = vmatprep.mubr.msk.bf16.mxu1 %vm13592_vm0, %v16256_v32 }
 0x794   : > { %6025 = vmatprep.subr.bf16.mxu1 %v9066_v21  ;;  %v10525_v21 = vld [vmem:[#allocation17 + $0x70] ss:$8 sps:$4 sm:$0xff]  }
 0x797   : > { %6026 = vmatpush1.bf16.msra.mxu1 %v9065_v41 }
 0x798   : > { %7780 = vmatprep.subr.bf16.mxu1 %v10506_v20 }
 0x79a   : > { %9464 = vmatmul.mubr.msk.bf16.vlgmr.msra.gmra.mrb[128].mxu1 %vm13603_vm4, %v16256_v32 }
 0x79b   : > { %9466 = vmatprep.mubr.msk.bf16.mxu1 %vm13694_vm14, %v16256_v32  ;;  %7781 = vmatpush1.bf16.msra.mxu1 %v10504_v15  ;;  %v10530_v15 = vld [vmem:[#allocation17 + $0x84] ss:$8 sps:$4 sm:$0xff]  }
 0x79c   : > { %7782 = vmatprep.subr.bf16.mxu1 %v10509_v35 }
 0x79f   : > { %7783 = vmatpush1.bf16.msra.mxu1 %v10507_v29 }
 0x7a0   : > { %7784 = vmatprep.subr.bf16.mxu1 %v10512_v2 }
 0x7a2   : > { %9468 = vmatmul.mubr.msk.bf16.gmra.mrb[132].mxu1 %vm13715_vm7, %v16256_v32 }
 0x7a3   : > { %9470 = vmatprep.mubr.msk.bf16.mxu1 %vm13801_vm2, %v16256_v32  ;;  %7785 = vmatpush1.bf16.msra.mxu1 %v10510_v23 }
 0x7a4   : > { %7786 = vmatprep.subr.bf16.mxu1 %v10515_v54  ;;  %v10626_v54 = vld [vmem:[#allocation17 + $0x304] ss:$8 sps:$4 sm:$0xff]  }
 0x7a5   : > { %v5690_v1 = vpop.f32.mrb[32].mxu1  ;;  %8119 = vmatprep.subr.bf16.mxu0 %v10626_v54  ;;  %v10537_v54 = vld [vmem:[#allocation17 + $0xb0] ss:$8 sps:$4 sm:$0xff]  }
 0x7a6   : > { %v5691_v40 = vadd.f32 %v5690_v1, %v14292_v51  ;;  %v5692_v50 = vpop.f32.mrb[33].mxu1 }
 0x7a7   : > { %7787 = vmatpush1.bf16.msra.mxu1 %v10513_v62  ;;  %v5693_v31 = vadd.f32 %v5692_v50, %v14296_v33  ;;  %v5694_v24 = vpop.f32.mrb[34].mxu1  ;;  %v10533_v62 = vld [vmem:[#allocation17 + $0x94] ss:$8 sps:$4 sm:$0xff]  }
 0x7a8   : > { %7788 = vmatprep.subr.bf16.mxu1 %v10518_v26  ;;  %v14306_v9 = vmul.f32 0.5, %v5691_v40  ;;  %v5695_v14 = vadd.f32 %v5694_v24, %v14292_v51  ;;  %v5696_v53 = vpop.f32.mrb[35].mxu1  ;;  %v10624_v26 = vld [vmem:[#allocation17 + $0x300] ss:$8 sps:$4 sm:$0xff]  }
 0x7a9   : > { %v14309_v36 = vmul.f32 0.5, %v5693_v31  ;;  %v5697_v42 = vadd.f32 %v5696_v53, %v14296_v33  ;;  %8120 = vmatpush1.bf16.msra.mxu0 %v10624_v26  ;;  %v10531_v31 = vld [vmem:[#allocation17 + $0x90] ss:$8 sps:$4 sm:$0xff]   ;;  %v10536_v53 = vld [vmem:[#allocation17 + $0xa4] ss:$8 sps:$4 sm:$0xff]  }
 0x7aa   : > { %9472 = vmatmul.mubr.msk.bf16.gmra.mrb[136].mxu1 %vm13819_vm5, %v16256_v32  ;;  %v14312_v12 = vmul.f32 0.5, %v5695_v14  ;;  %vm6236_vm0 = vcmp.ge.f32.partialorder %v14306_v9, 1.0  ;;  %8121 = vmatprep.subr.bf16.mxu0 %v10632_v61  ;;  %v10540_v61 = vld [vmem:[#allocation17 + $0xc0] ss:$8 sps:$4 sm:$0xff]  }
 0x7ab   : > { %9474 = vmatprep.mubr.msk.bf16.mxu1 %vm13895_vm9, %v16256_v32  ;;  %7789 = vmatpush1.bf16.msra.mxu1 %v10516_v25  ;;  %v14314_v44 = vmul.f32 0.5, %v5697_v42  ;;  %vm15843_vm14 = vcmp.ge.f32.partialorder %v14309_v36, 1.0 }
 0x7ac   : > { %7790 = vmatprep.subr.bf16.mxu1 %v10521_v38  ;;  %vm15842_vm4 = vcmp.ge.f32.partialorder %v14312_v12, 1.0 }
 0x7ad   : > { %vm14323_vm7 = vmpackc.low %vm15842_vm4, %vm6236_vm0  ;;  %vm15841_vm2 = vcmp.ge.f32.partialorder %v14314_v44, 1.0  ;;  %v5700_v59 = vpop.f32.mrb[36].mxu1 }
 0x7ae   : > { %v5701_v63 = vadd.f32 %v5700_v59, %v14292_v51  ;;  %v5702_v58 = vpop.f32.mrb[37].mxu1  ;;  %vm14336_vm5 = vmpackc.low %vm15841_vm2, %vm15843_vm14  ;;  %v10534_v59 = vld [vmem:[#allocation17 + $0xa0] ss:$8 sps:$4 sm:$0xff]  }
 0x7af   : > { %7791 = vmatpush1.bf16.msra.mxu1 %v10519_v5  ;;  %v5703_v8 = vadd.f32 %v5702_v58, %v14296_v33  ;;  %v5704_v10 = vpop.f32.mrb[38].mxu1  ;;  %v10539_v58 = vld [vmem:[#allocation17 + $0xb4] ss:$8 sps:$4 sm:$0xff]  }
 0x7b0   : > { %7792 = vmatprep.subr.bf16.mxu1 %v10524_v60  ;;  %v14344_v41 = vmul.f32 0.5, %v5701_v63  ;;  %v5705_v18 = vadd.f32 %v5704_v10, %v14292_v51  ;;  %v5706_v20 = vpop.f32.mrb[39].mxu1  ;;  %v10630_v60 = vld [vmem:[#allocation17 + $0x310] ss:$8 sps:$4 sm:$0xff]   ;;  %v10638_v63 = vld [vmem:[#allocation17 + $0x324] ss:$8 sps:$4 sm:$0xff]  }
 0x7b1   : > { %v14347_v35 = vmul.f32 0.5, %v5703_v8  ;;  %v5707_v29 = vadd.f32 %v5706_v20, %v14296_v33  ;;  %8122 = vmatpush1.bf16.msra.mxu0 %v10630_v60  ;;  %v10636_v8 = vld [vmem:[#allocation17 + $0x320] ss:$8 sps:$4 sm:$0xff]  }
 0x7b2   : > { %9476 = vmatmul.mubr.msk.bf16.gmra.mrb[140].mxu1 %vm13913_vm12, %v16256_v32  ;;  %v14350_v2 = vmul.f32 0.5, %v5705_v18  ;;  %vm15847_vm9 = vcmp.ge.f32.partialorder %v14344_v41, 1.0  ;;  %8123 = vmatprep.subr.bf16.mxu0 %v10638_v63 }
 0x7b3   : > { %9478 = vmatprep.mubr.msk.bf16.mxu1 %vm14011_vm3, %v16256_v32  ;;  %7793 = vmatpush1.bf16.msra.mxu1 %v10522_v28  ;;  %v14352_v23 = vmul.f32 0.5, %v5707_v29  ;;  %vm15846_vm3 = vcmp.ge.f32.partialorder %v14347_v35, 1.0 }
 0x7b4   : > { %7794 = vmatprep.subr.bf16.mxu1 %v10527_v27  ;;  %vm15845_vm12 = vcmp.ge.f32.partialorder %v14350_v2, 1.0 }
 0x7b5   : > { %vm15844_vm2 = vcmp.ge.f32.partialorder %v14352_v23, 1.0  ;;  %v5710_v47 = vpop.f32.mrb[40].mxu1  ;;  %vm14362_vm4 = vmpackc.low %vm15845_vm12, %vm15847_vm9  ;;  %8124 = vmatpush1.bf16.msra.mxu0 %v10636_v8  ;;  %v10578_v8 = vld [vmem:[#allocation17 + $0x184] ss:$8 sps:$4 sm:$0xff]  }
 0x7b6   : > { %v5711_v25 = vadd.f32 %v5710_v47, %v14292_v51  ;;  %v5712_v38 = vpop.f32.mrb[41].mxu1  ;;  %vm14374_vm14 = vmpackc.low %vm15844_vm2, %vm15846_vm3  ;;  %8125 = vmatprep.subr.bf16.mxu0 %v10644_v55 }
 0x7b7   : > { %7795 = vmatpush1.bf16.msra.mxu1 %v10525_v21  ;;  %v5713_v40 = vadd.f32 %v5712_v38, %v14296_v33  ;;  %v5714_v50 = vpop.f32.mrb[42].mxu1  ;;  %v10642_v38 = vld [vmem:[#allocation17 + $0x330] ss:$8 sps:$4 sm:$0xff]  }
 0x7b8   : > { %7796 = vmatprep.subr.bf16.mxu1 %v10530_v15  ;;  %v14382_v24 = vmul.f32 0.5, %v5711_v25  ;;  %v5715_v5 = vadd.f32 %v5714_v50, %v14292_v51  ;;  %v5716_v14 = vpop.f32.mrb[43].mxu1  ;;  %v10542_v25 = vld [vmem:[#allocation17 + $0xc4] ss:$8 sps:$4 sm:$0xff]   ;;  %v10564_v15 = vld [vmem:[#allocation17 + $0x140] ss:$8 sps:$4 sm:$0xff]  }
 0x7b9   : > { %v14385_v42 = vmul.f32 0.5, %v5713_v40  ;;  %v5717_v28 = vadd.f32 %v5716_v14, %v14296_v33  ;;  %v6300_v40 = vsel %vm6236_vm0, 1.0, %v16343_v13  ;;  %8126 = vmatpush1.bf16.msra.mxu0 %v10642_v38  ;;  %v10545_v14 = vld [vmem:[#allocation17 + $0xd4] ss:$8 sps:$4 sm:$0xff]  }
 0x7ba   : > { %9480 = vmatmul.mubr.msk.bf16.gmra.mrb[144].mxu1 %vm14028_vm13, %v16256_v32  ;;  %v14388_v27 = vmul.f32 0.5, %v5715_v5  ;;  %vm15851_vm13 = vcmp.ge.f32.partialorder %v14382_v24, 1.0  ;;  %v6428_v60 = vsub.f32 1.0, %v6300_v40 }
 0x7bb   : > { %9482 = vmatprep.mubr.msk.bf16.mxu1 %vm16401_vm15, %v16256_v32  ;;  %7797 = vmatpush1.bf16.msra.mxu1 %v10528_v0  ;;  %v14390_v17 = vmul.f32 0.5, %v5717_v28  ;;  %vm15850_vm2 = vcmp.ge.f32.partialorder %v14385_v42, 1.0 }
 0x7bc   : > { %7798 = vmatprep.subr.bf16.mxu1 %v10533_v62  ;;  %vm15849_vm15 = vcmp.ge.f32.partialorder %v14388_v27, 1.0 }
 0x7bd   : > { %vm15848_vm12 = vcmp.ge.f32.partialorder %v14390_v17, 1.0  ;;  %v5720_v10 = vpop.f32.mrb[44].mxu1  ;;  %vm14400_vm3 = vmpackc.low %vm15849_vm15, %vm15851_vm13  ;;  %vm16421_vm15 = vcmp.ge.f32.partialorder %v14314_v44, 1.0 }
 0x7be   : > { %v5721_v18 = vadd.f32 %v5720_v10, %v14292_v51  ;;  %v5722_v20 = vpop.f32.mrb[45].mxu1  ;;  %vm14412_vm9 = vmpackc.low %vm15848_vm12, %vm15850_vm2  ;;  %vm16420_vm12 = vcmp.ge.f32.partialorder %v14312_v12, 1.0 }
 0x7bf   : > { %7799 = vmatpush1.bf16.msra.mxu1 %v10531_v31  ;;  %v5723_v29 = vadd.f32 %v5722_v20, %v14296_v33  ;;  %v5724_v0 = vpop.f32.mrb[46].mxu1  ;;  %v6308_v63 = vsel %vm16420_vm12, 1.0, %v16343_v13  ;;  %vm16424_vm12 = vcmp.ge.f32.partialorder %v14344_v41, 1.0 }
 0x7c0   : > { %7800 = vmatprep.subr.bf16.mxu1 %v10536_v53  ;;  %v14420_v62 = vmul.f32 0.5, %v5721_v18  ;;  %v5725_v26 = vadd.f32 %v5724_v0, %v14292_v51  ;;  %v5726_v47 = vpop.f32.mrb[47].mxu1  ;;  %v10650_v53 = vld [vmem:[#allocation17 + $0x344] ss:$8 sps:$4 sm:$0xff]   ;;  %v6316_v10 = vsel %vm16424_vm12, 1.0, %v16343_v13  ;;  %vm16431_vm12 = vcmp.ge.f32.partialorder %v14385_v42, 1.0 }
 0x7c1   : > { %v14426_v50 = vmul.f32 0.5, %v5723_v29  ;;  %v5727_v16 = vadd.f32 %v5726_v47, %v14296_v33  ;;  %8127 = vmatprep.subr.bf16.mxu0 %v10650_v53  ;;  %v10656_v0 = vld [vmem:[#allocation17 + $0x354] ss:$8 sps:$4 sm:$0xff]   ;;  %v10654_v47 = vld [vmem:[#allocation17 + $0x350] ss:$8 sps:$4 sm:$0xff]   ;;  %v6444_v38 = vsub.f32 1.0, %v6316_v10 }
 0x7c2   : > { %9484 = vmatmul.mubr.msk.bf16.gmra.mrb[148].mxu1 %vm16402_vm11, %v16256_v32  ;;  %v14429_v31 = vmul.f32 0.5, %v5725_v26  ;;  %vm16419_vm11 = vcmp.ge.f32.partialorder %v14309_v36, 1.0  ;;  %v10548_v26 = vld [vmem:[#allocation17 + $0xe4] ss:$8 sps:$4 sm:$0xff]  }
 0x7c3   : > { %9486 = vmatprep.mubr.msk.bf16.mxu1 %vm16403_vm10, %v16256_v32  ;;  %7801 = vmatpush1.bf16.msra.mxu1 %v10534_v59  ;;  %v14431_v5 = vmul.f32 0.5, %v5727_v16  ;;  %v6301_v28 = vsel %vm16419_vm11, 1.0, %v16343_v13  ;;  %vm6284_vm10 = vcmp.ge.f32.partialorder %v14420_v62, 1.0  ;;  %v10648_v59 = vld [vmem:[#allocation17 + $0x340] ss:$8 sps:$4 sm:$0xff]   ;;  %vm6285_vm2 = vcmp.ge.f32.partialorder %v14426_v50, 1.0 }
 0x7c4   : > { %7802 = vmatprep.subr.bf16.mxu1 %v10539_v58  ;;  %vm15852_vm0 = vcmp.ge.f32.partialorder %v14429_v31, 1.0  ;;  %v6309_v58 = vsel %vm16421_vm15, 1.0, %v16343_v13  ;;  %8128 = vmatpush1.bf16.msra.mxu0 %v10648_v59  ;;  %v6429_v20 = vsub.f32 1.0, %v6301_v28  ;;  %v10546_v59 = vld [vmem:[#allocation17 + $0xe0] ss:$8 sps:$4 sm:$0xff]  }
 0x7c5   : > { %vm6293_vm13 = vcmp.ge.f32.partialorder %v14431_v5, 1.0  ;;  %vm14450_vm11 = vmpackc.low %vm15852_vm0, %vm6284_vm10  ;;  %vm16427_vm0 = vcmp.ge.f32.partialorder %v14347_v35, 1.0  ;;  %v6437_v55 = vsub.f32 1.0, %v6309_v58  ;;  %8129 = vmatprep.subr.bf16.mxu0 %v10656_v0 }
 0x7c6   : > { %vm14464_vm15 = vmpackc.low %vm6293_vm13, %vm6285_vm2  ;;  %v6317_v29 = vsel %vm16427_vm0, 1.0, %v16343_v13  ;;  %vm16430_vm0 = vcmp.ge.f32.partialorder %v14382_v24, 1.0 }
 0x7c7   : > { %7803 = vmatpush1.bf16.msra.mxu1 %v10537_v54  ;;  %v6436_v54 = vsub.f32 1.0, %v6308_v63  ;;  %v6445_v16 = vsub.f32 1.0, %v6317_v29  ;;  %v10662_v63 = vld [vmem:[#allocation17 + $0x364] ss:$8 sps:$4 sm:$0xff]   ;;  %v6501_v10 = vmul.f32 %v6437_v55, %v14314_v44  ;;  %v10549_v55 = vld [vmem:[#allocation17 + $0xf0] ss:$8 sps:$4 sm:$0xff]  }
 0x7c8   : > { %7804 = vmatprep.subr.bf16.mxu1 %v10542_v25  ;;  %v6492_v25 = vmul.f32 %v6428_v60, %v14306_v9  ;;  %8130 = vmatpush1.bf16.msra.mxu0 %v10654_v47 }
 0x7c9   : > { %v6500_v58 = vmul.f32 %v6436_v54, %v14312_v12  ;;  %8131 = vmatprep.subr.bf16.mxu0 %v10662_v63  ;;  %v14492_v12 = vmul.f32 %v6445_v16, %v14347_v35 }
 0x7ca   : > { %9488 = vmatmul.mubr.msk.bf16.gmra.mrb[152].mxu1 %vm16404_vm6, %v16256_v32  ;;  %v5730_v40 = vpop.f32.mrb[48].mxu1  ;;  %vm16428_vm6 = vcmp.ge.f32.partialorder %v14350_v2, 1.0 }
 0x7cb   : > { %9490 = vmatprep.mubr.msk.bf16.mxu1 %vm14163_vm1, %v16256_v32  ;;  %7805 = vmatpush1.bf16.msra.mxu1 %v10540_v61  ;;  %v6324_v53 = vsel %vm16428_vm6, 1.0, %v16343_v13  ;;  %vm16429_vm1 = vcmp.ge.f32.partialorder %v14352_v23, 1.0  ;;  %v5731_v61 = vadd.f32 %v5730_v40, %v14292_v51  ;;  %v5732_v28 = vpop.f32.mrb[49].mxu1  ;;  %v10551_v40 = vld [vmem:[#allocation17 + $0xf4] ss:$8 sps:$4 sm:$0xff]   ;;  %vm16433_vm6 = vcmp.ge.f32.partialorder %v14390_v17, 1.0 }
 0x7cc   : > { %7806 = vmatprep.subr.bf16.mxu1 %v10545_v14  ;;  %v6325_v45 = vsel %vm16429_vm1, 1.0, %v16343_v13  ;;  %v6493_v14 = vmul.f32 %v6429_v20, %v14309_v36  ;;  %v5733_v9 = vadd.f32 %v5732_v28, %v14296_v33  ;;  %v5734_v60 = vpop.f32.mrb[50].mxu1  ;;  %v6452_v47 = vsub.f32 1.0, %v6324_v53  ;;  %8132 = vmatpush1.bf16.msra.mxu0 %v10660_v49 }
 0x7cd   : > { %v6556_v29 = vsub.f32 %v5731_v61, %v6492_v25  ;;  %v5735_v0 = vadd.f32 %v5734_v60, %v14292_v51  ;;  %v5736_v34 = vpop.f32.mrb[51].mxu1  ;;  %v6453_v22 = vsub.f32 1.0, %v6325_v45  ;;  %v6341_v16 = vsel %vm16433_vm6, 1.0, %v16343_v13  ;;  %v10666_v61 = vld [vmem:[#allocation17 + $0x370] ss:$8 sps:$4 sm:$0xff]   ;;  %8133 = vmatprep.subr.bf16.mxu0 %v10668_v46 }
 0x7ce   : > { %v6557_v36 = vsub.f32 %v5733_v9, %v6493_v14  ;;  %v5737_v20 = vadd.f32 %v5736_v34, %v14296_v33  ;;  %v6332_v34 = vsel %vm16430_vm0, 1.0, %v16343_v13  ;;  %v14513_v28 = vmul.f32 %v6452_v47, %v14350_v2 }
 0x7cf   : > { %7807 = vmatpush1.bf16.msra.mxu1 %v10543_v57  ;;  %v14489_v57 = vmul.f32 %v6444_v38, %v14344_v41  ;;  %v6620_v44 = vmul.f32 0.5, %v6556_v29  ;;  %v6564_v54 = vsub.f32 %v5735_v0, %v6500_v58  ;;  %v6333_v41 = vsel %vm16431_vm12, 1.0, %v16343_v13 }
 0x7d0   : > { %7808 = vmatprep.subr.bf16.mxu1 %v10548_v26  ;;  %v10554_v26 = vld [vmem:[#allocation17 + $0x104] ss:$8 sps:$4 sm:$0xff]   ;;  %v6621_v38 = vmul.f32 0.5, %v6557_v36  ;;  %v6565_v35 = vsub.f32 %v5737_v20, %v6501_v10  ;;  %v14516_v9 = vmul.f32 %v6453_v22, %v14352_v23  ;;  %v6460_v29 = vsub.f32 1.0, %v6332_v34  ;;  %8134 = vmatpush1.bf16.msra.mxu0 %v10666_v61 }
 0x7d1   : > { %v6628_v53 = vmul.f32 0.5, %v6564_v54  ;;  %v6684_v45 = vadd.f32 %v6620_v44, %v6492_v25  ;;  %v6461_v0 = vsub.f32 1.0, %v6333_v41  ;;  %v10557_v54 = vld [vmem:[#allocation17 + $0x114] ss:$8 sps:$4 sm:$0xff]   ;;  %v6469_v44 = vsub.f32 1.0, %v6341_v16 }
 0x7d2   : > { %9492 = vmatmul.mubr.msk.bf16.gmra.mrb[156].mxu1 %vm14170_vm8, %v16256_v32  ;;  %vm16432_vm8 = vcmp.ge.f32.partialorder %v14388_v27, 1.0  ;;  %v6629_v39 = vmul.f32 0.5, %v6565_v35  ;;  %v6685_v63 = vadd.f32 %v6621_v38, %v6493_v14  ;;  %v10674_v23 = vld [vmem:[#allocation17 + $0x384] ss:$8 sps:$4 sm:$0xff]   ;;  %v10672_v41 = vld [vmem:[#allocation17 + $0x380] ss:$8 sps:$4 sm:$0xff]   ;;  %v6524_v61 = vmul.f32 %v6460_v29, %v14382_v24 }
 0x7d3   : > { %7809 = vmatpush1.bf16.msra.mxu1 %v10546_v59  ;;  %9494 = vmatprep.mubr.msk.bf16.mxu1 %vm14336_vm5, %v16256_v32  ;;  %v6340_v49 = vsel %vm16432_vm8, 1.0, %v16343_v13  ;;  %v5740_v60 = vpop.f32.mrb[52].mxu1  ;;  %v10552_v59 = vld [vmem:[#allocation17 + $0x100] ss:$8 sps:$4 sm:$0xff]   ;;  %vm6748_vm5 = vcmp.ge.f32.partialorder %v6684_v45, 1.0  ;;  %v6525_v3 = vmul.f32 %v6461_v0, %v14385_v42  ;;  %v6348_v24 = vsel %vm6284_vm10, 1.0, %v16343_v13 }
 0x7d4   : > { %7810 = vmatprep.subr.bf16.mxu1 %v10551_v40  ;;  %v5741_v36 = vadd.f32 %v5740_v60, %v14292_v51  ;;  %v5742_v20 = vpop.f32.mrb[53].mxu1  ;;  %v6692_v40 = vadd.f32 %v6628_v53, %v6500_v58  ;;  %v6468_v25 = vsub.f32 1.0, %v6340_v49  ;;  %v6693_v22 = vadd.f32 %v6629_v39, %v6501_v10  ;;  %8135 = vmatprep.subr.bf16.mxu0 %v10674_v23  ;;  %v10555_v53 = vld [vmem:[#allocation17 + $0x110] ss:$8 sps:$4 sm:$0xff]   ;;  %v10677_v45 = vld [vmem:[#allocation17 + $0x394] ss:$8 sps:$4 sm:$0xff]  }
 0x7d5   : > { %v5743_v2 = vadd.f32 %v5742_v20, %v14296_v33  ;;  %v5744_v47 = vpop.f32.mrb[54].mxu1  ;;  %vm6749_vm0 = vcmp.ge.f32.partialorder %v6685_v63, 1.0  ;;  %8136 = vmatpush1.bf16.msra.mxu0 %v10672_v41  ;;  %v10560_v60 = vld [vmem:[#allocation17 + $0x124] ss:$8 sps:$4 sm:$0xff]   ;;  %v6349_v42 = vsel %vm6285_vm2, 1.0, %v16343_v13  ;;  %v6357_v0 = vsel %vm6293_vm13, 1.0, %v16343_v13 }
 0x7d6   : > { %v6572_v35 = vsub.f32 %v5741_v36, %v14489_v57  ;;  %v5745_v14 = vadd.f32 %v5744_v47, %v14292_v51  ;;  %v5746_v34 = vpop.f32.mrb[55].mxu1  ;;  %vm6756_vm1 = vcmp.ge.f32.partialorder %v6692_v40, 1.0  ;;  %vm6757_vm12 = vcmp.ge.f32.partialorder %v6693_v22, 1.0  ;;  %v10675_v36 = vld [vmem:[#allocation17 + $0x390] ss:$8 sps:$4 sm:$0xff]   ;;  %8137 = vmatprep.subr.bf16.mxu0 %v10677_v45 }
 0x7d7   : > { %7811 = vmatpush1.bf16.msra.mxu1 %v10549_v55  ;;  %v6573_v58 = vsub.f32 %v5743_v2, %v14492_v12  ;;  %v5747_v38 = vadd.f32 %v5746_v34, %v14296_v33  ;;  %vm14524_vm8 = vmpackc.low %vm6756_vm1, %vm6748_vm5  ;;  %v14544_v20 = vmul.f32 %v6468_v25, %v14388_v27  ;;  %v14547_v40 = vmul.f32 %v6469_v44, %v14390_v17  ;;  %v10558_v2 = vld [vmem:[#allocation17 + $0x120] ss:$8 sps:$4 sm:$0xff]   ;;  %v10563_v29 = vld [vmem:[#allocation17 + $0x134] ss:$8 sps:$4 sm:$0xff]  }
 0x7d8   : > { %7893 = vmatprep.subr.bf16.mxu1 %v10554_v26  ;;  %v6636_v10 = vmul.f32 0.5, %v6572_v35  ;;  %v6580_v55 = vsub.f32 %v5745_v14, %v14513_v28  ;;  %vm14532_vm6 = vmpackc.low %vm6757_vm12, %vm6749_vm0  ;;  %v10680_v22 = vld [vmem:[#allocation17 + $0x3a4] ss:$8 sps:$4 sm:$0xff]   ;;  %v10678_v14 = vld [vmem:[#allocation17 + $0x3a0] ss:$8 sps:$4 sm:$0xff]   ;;  %v6485_v45 = vsub.f32 1.0, %v6357_v0 }
 0x7d9   : > { %v6637_v49 = vmul.f32 0.5, %v6573_v58  ;;  %v6581_v16 = vsub.f32 %v5747_v38, %v14516_v9  ;;  %8138 = vmatpush1.bf16.msra.mxu0 %v10675_v36  ;;  %v6477_v38 = vsub.f32 1.0, %v6349_v42 }
 0x7da   : > { %9496 = vmatmul.mubr.msk.bf16.vlgmr.msra.gmra.mrb[160].mxu1 %vm14323_vm7, %v16256_v32  ;;  %v6644_v39 = vmul.f32 0.5, %v6580_v55  ;;  %v6700_v63 = vadd.f32 %v6636_v10, %v14489_v57  ;;  %8139 = vmatprep.subr.bf16.mxu0 %v10680_v22 }
 0x7db   : > { %9498 = vmatprep.mubr.msk.bf16.mxu1 %vm14374_vm14, %v16256_v32  ;;  %7894 = vmatpush1.bf16.msra.mxu1 %v10552_v59  ;;  %v6645_v1 = vmul.f32 0.5, %v6581_v16  ;;  %v6701_v47 = vadd.f32 %v6637_v49, %v14492_v12  ;;  %vm16438_vm14 = vcmp.ge.f32.partialorder %v14429_v31, 1.0  ;;  %v10561_v49 = vld [vmem:[#allocation17 + $0x130] ss:$8 sps:$4 sm:$0xff]  }
 0x7dc   : > { %7895 = vmatprep.subr.bf16.mxu1 %v10557_v54  ;;  %v6708_v17 = vadd.f32 %v6644_v39, %v14513_v28  ;;  %v6356_v12 = vsel %vm16438_vm14, 1.0, %v16343_v13  ;;  %vm6764_vm7 = vcmp.ge.f32.partialorder %v6700_v63, 1.0  ;;  %v10683_v63 = vld [vmem:[#allocation17 + $0x3b4] ss:$8 sps:$4 sm:$0xff]  }
 0x7dd   : > { %v5750_v59 = vpop.f32.mrb[56].mxu1  ;;  %v6709_v44 = vadd.f32 %v6645_v1, %v14516_v9  ;;  %vm6765_vm10 = vcmp.ge.f32.partialorder %v6701_v47, 1.0  ;;  %v6476_v9 = vsub.f32 1.0, %v6348_v24  ;;  %8140 = vmatpush1.bf16.msra.mxu0 %v10678_v14 }
 0x7de   : > { %v5751_v27 = vadd.f32 %v5750_v59, %v14292_v51  ;;  %v5752_v57 = vpop.f32.mrb[57].mxu1  ;;  %vm6772_vm2 = vcmp.ge.f32.partialorder %v6708_v17, 1.0  ;;  %v10681_v59 = vld [vmem:[#allocation17 + $0x3b0] ss:$8 sps:$4 sm:$0xff]   ;;  %8141 = vmatprep.subr.bf16.mxu0 %v10683_v63 }
 0x7df   : > { %v5753_v54 = vadd.f32 %v5752_v57, %v14296_v33  ;;  %v5754_v25 = vpop.f32.mrb[58].mxu1  ;;  %7896 = vmatpush1.bf16.msra.mxu1 %v10555_v53  ;;  %vm6773_vm13 = vcmp.ge.f32.partialorder %v6709_v44, 1.0  ;;  %vm14568_vm5 = vmpackc.low %vm6772_vm2, %vm6764_vm7  ;;  %v6484_v53 = vsub.f32 1.0, %v6356_v12  ;;  %v6541_v57 = vmul.f32 %v6477_v38, %v14426_v50  ;;  %v10689_v38 = vld [vmem:[#allocation17 + $0x3d4] ss:$8 sps:$4 sm:$0xff]  }
 0x7e0   : > { %v6588_v23 = vsub.f32 %v5751_v27, %v6524_v61  ;;  %v5755_v35 = vadd.f32 %v5754_v25, %v14292_v51  ;;  %v5756_v28 = vpop.f32.mrb[59].mxu1  ;;  %7897 = vmatprep.subr.bf16.mxu1 %v10560_v60  ;;  %vm14576_vm1 = vmpackc.low %vm6773_vm13, %vm6765_vm10  ;;  %v6540_v27 = vmul.f32 %v6476_v9, %v14420_v62  ;;  %v10686_v25 = vld [vmem:[#allocation17 + $0x3c4] ss:$8 sps:$4 sm:$0xff]   ;;  %v10567_v9 = vld [vmem:[#allocation17 + $0x150] ss:$8 sps:$4 sm:$0xff]  }
 0x7e1   : > { %v6589_v34 = vsub.f32 %v5753_v54, %v6525_v3  ;;  %v5757_v41 = vadd.f32 %v5756_v28, %v14296_v33  ;;  %8142 = vmatpush1.bf16.msra.mxu0 %v10681_v59  ;;  %v10575_v59 = vld [vmem:[#allocation17 + $0x174] ss:$8 sps:$4 sm:$0xff]  }
 0x7e2   : > { %v6652_v10 = vmul.f32 0.5, %v6588_v23  ;;  %v6596_v55 = vsub.f32 %v5755_v35, %v14544_v20  ;;  %9500 = vmatmul.mubr.msk.bf16.gmra.mrb[164].mxu1 %vm14362_vm4, %v16256_v32  ;;  %8143 = vmatprep.subr.bf16.mxu0 %v10686_v25  ;;  %v10608_v25 = vld [vmem:[#allocation17 + $0x224] ss:$8 sps:$4 sm:$0xff]  }
 0x7e3   : > { %v6653_v39 = vmul.f32 0.5, %v6589_v34  ;;  %v6597_v60 = vsub.f32 %v5757_v41, %v14547_v40  ;;  %9502 = vmatprep.mubr.msk.bf16.mxu1 %vm14412_vm9, %v16256_v32  ;;  %7898 = vmatpush1.bf16.msra.mxu1 %v10558_v2  ;;  %v16448_v41 = vld [vmem:[#allocation67_spill] sm:$0xff] }
 0x7e4   : > { %v6660_v36 = vmul.f32 0.5, %v6596_v55  ;;  %7899 = vmatprep.subr.bf16.mxu1 %v10563_v29  ;;  %v6716_v1 = vadd.f32 %v6652_v10, %v6524_v61  ;;  %v6548_v29 = vmul.f32 %v6484_v53, %v14429_v31  ;;  %v6549_v61 = vmul.f32 %v6485_v45, %v14431_v5  ;;  %v10572_v55 = vld [vmem:[#allocation17 + $0x164] ss:$8 sps:$4 sm:$0xff]   ;;  %v10687_v53 = vld [vmem:[#allocation17 + $0x3d0] ss:$8 sps:$4 sm:$0xff]  }
 0x7e5   : > { %v6661_v47 = vmul.f32 0.5, %v6597_v60  ;;  %v5760_v24 = vpop.f32.mrb[60].mxu1  ;;  %v6717_v42 = vadd.f32 %v6653_v39, %v6525_v3  ;;  %v10569_v3 = vld [vmem:[#allocation17 + $0x154] ss:$8 sps:$4 sm:$0xff]   ;;  %v14614_v21 = vrot.slane %v14288_v30, %v16448_v41  ;;  %v10596_v5 = vld [vmem:[#allocation17 + $0x1e4] ss:$8 sps:$4 sm:$0xff]  }
 0x7e6   : > { %v5761_v17 = vadd.f32 %v5760_v24, %v14292_v51  ;;  %v5762_v12 = vpop.f32.mrb[61].mxu1  ;;  %v6724_v2 = vadd.f32 %v6660_v36, %v14544_v20  ;;  %vm6780_vm4 = vcmp.ge.f32.partialorder %v6716_v1, 1.0  ;;  %v10684_v20 = vld [vmem:[#allocation17 + $0x3c0] ss:$8 sps:$4 sm:$0xff]   ;;  %v10692_v24 = vld [vmem:[#allocation17 + $0x3e4] ss:$8 sps:$4 sm:$0xff]  }
 0x7e7   : > { %v5763_v0 = vadd.f32 %v5762_v12, %v14296_v33  ;;  %v5764_v54 = vpop.f32.mrb[62].mxu1  ;;  %7900 = vmatpush1.bf16.msra.mxu1 %v10561_v49  ;;  %v6725_v62 = vadd.f32 %v6661_v47, %v14547_v40  ;;  %vm6781_vm0 = vcmp.ge.f32.partialorder %v6717_v42, 1.0  ;;  %8144 = vmatpush1.bf16.msra.mxu0 %v10684_v20  ;;  %v10570_v36 = vld [vmem:[#allocation17 + $0x160] ss:$8 sps:$4 sm:$0xff]  }
 0x7e8   : > { %v6604_v50 = vsub.f32 %v5761_v17, %v6540_v27  ;;  %v5765_v44 = vadd.f32 %v5764_v54, %v14292_v51  ;;  %v5766_v22 = vpop.f32.mrb[63].mxu1  ;;  %7901 = vmatprep.subr.bf16.mxu1 %v10566_v6  ;;  %vm6788_vm9 = vcmp.ge.f32.partialorder %v6724_v2, 1.0  ;;  %v16445_v51 = vld [vmem:[#allocation64_spill] sm:$0xff]  ;;  %8145 = vmatprep.subr.bf16.mxu0 %v10689_v38 }
 0x7e9   : > { %v6605_v23 = vsub.f32 %v5763_v0, %v6541_v57  ;;  %v5767_v31 = vadd.f32 %v5766_v22, %v14296_v33  ;;  %vm6789_vm12 = vcmp.ge.f32.partialorder %v6725_v62, 1.0  ;;  %vm14594_vm14 = vmpackc.low %vm6788_vm9, %vm6780_vm4  ;;  %v14603_v28 = vrot.slane %v14288_v30, %v16445_v51  ;;  %v10573_v54 = vld [vmem:[#allocation17 + $0x170] ss:$8 sps:$4 sm:$0xff]  }
 0x7ea   : > { %v6668_v40 = vmul.f32 0.5, %v6604_v50  ;;  %v6612_v35 = vsub.f32 %v5765_v44, %v6548_v29  ;;  %9504 = vmatmul.mubr.msk.bf16.gmra.mrb[168].mxu1 %vm14400_vm3, %v16256_v32  ;;  %vm14605_vm7 = vmpackc.low %vm6789_vm12, %vm6781_vm0  ;;  %v10693_v62 = vld [vmem:[#allocation17 + $0x3f0] ss:$8 sps:$4 sm:$0xff]  }
 0x7eb   : > { %v6669_v33 = vmul.f32 0.5, %v6605_v23  ;;  %v6613_v34 = vsub.f32 %v5767_v31, %v6549_v61  ;;  %9506 = vmatprep.mubr.msk.bf16.mxu1 %vm14464_vm15, %v16256_v32  ;;  %7902 = vmatpush1.bf16.msra.mxu1 %v10564_v15  ;;  %v10576_v31 = vld [vmem:[#allocation17 + $0x180] ss:$8 sps:$4 sm:$0xff]  }
 0x7ec   : > { %v6676_v10 = vmul.f32 0.5, %v6612_v35  ;;  %7903 = vmatprep.subr.bf16.mxu1 %v10569_v3  ;;  %v6732_v49 = vadd.f32 %v6668_v40, %v6540_v27  ;;  %8146 = vmatpush1.bf16.msra.mxu0 %v10687_v53  ;;  %v10695_v3 = vld [vmem:[#allocation17 + $0x3f4] ss:$8 sps:$4 sm:$0xff]  }
 0x7ed   : > { %v6677_v45 = vmul.f32 0.5, %v6613_v34  ;;  %v5803_v39 = vpop.f32.mrb[64].mxu1  ;;  %v6733_v60 = vadd.f32 %v6669_v33, %v6541_v57  ;;  %v10690_v57 = vld [vmem:[#allocation17 + $0x3e0] ss:$8 sps:$4 sm:$0xff]   ;;  %8147 = vmatprep.subr.bf16.mxu0 %v10692_v24  ;;  %v10581_v33 = vld [vmem:[#allocation17 + $0x194] ss:$8 sps:$4 sm:$0xff]  }
 0x7ee   : > { %v5804_v63 = vadd.f32 %v5803_v39, %v14603_v28  ;;  %v5805_v18 = vpop.f32.mrb[65].mxu1  ;;  %v6740_v6 = vadd.f32 %v6676_v10, %v6548_v29  ;;  %vm6796_vm3 = vcmp.ge.f32.partialorder %v6732_v49, 1.0  ;;  %v10579_v10 = vld [vmem:[#allocation17 + $0x190] ss:$8 sps:$4 sm:$0xff]  }
 0x7ef   : > { %v5806_v30 = vadd.f32 %v5805_v18, %v14614_v21  ;;  %v5807_v1 = vpop.f32.mrb[66].mxu1  ;;  %7904 = vmatpush1.bf16.msra.mxu1 %v10567_v9  ;;  %v6741_v47 = vadd.f32 %v6677_v45, %v6549_v61  ;;  %vm6797_vm2 = vcmp.ge.f32.partialorder %v6733_v60, 1.0 }
 0x7f0   : > { %v14618_v42 = vmul.f32 0.5, %v5804_v63  ;;  %v5808_v27 = vadd.f32 %v5807_v1, %v14603_v28  ;;  %v5809_v17 = vpop.f32.mrb[67].mxu1  ;;  %7905 = vmatprep.subr.bf16.mxu1 %v10572_v55  ;;  %vm6804_vm15 = vcmp.ge.f32.partialorder %v6740_v6, 1.0  ;;  %8148 = vmatpush1.bf16.msra.mxu0 %v10690_v57  ;;  %v10584_v55 = vld [vmem:[#allocation17 + $0x1a4] ss:$8 sps:$4 sm:$0xff]  }
 0x7f1   : > { %v14621_v12 = vmul.f32 0.5, %v5806_v30  ;;  %v5810_v15 = vadd.f32 %v5809_v17, %v14614_v21  ;;  %vm6805_vm10 = vcmp.ge.f32.partialorder %v6741_v47, 1.0  ;;  %vm14624_vm13 = vmpackc.low %vm6804_vm15, %vm6796_vm3  ;;  %8149 = vmatprep.subr.bf16.mxu0 %v10695_v3  ;;  %v10582_v63 = vld [vmem:[#allocation17 + $0x1a0] ss:$8 sps:$4 sm:$0xff]   ;;  %v10587_v30 = vld [vmem:[#allocation17 + $0x1b4] ss:$8 sps:$4 sm:$0xff]  }
 0x7f2   : > { %v14628_v29 = vmul.f32 0.5, %v5808_v27  ;;  %9508 = vmatmul.mubr.msk.bf16.gmra.mrb[172].mxu1 %vm14450_vm11, %v16256_v32  ;;  %vm14633_vm4 = vmpackc.low %vm6805_vm10, %vm6797_vm2  ;;  %vm6238_vm9 = vcmp.ge.f32.partialorder %v14618_v42, 1.0  ;;  %v10585_v27 = vld [vmem:[#allocation17 + $0x1b0] ss:$8 sps:$4 sm:$0xff]   ;;  %v10590_v17 = vld [vmem:[#allocation17 + $0x1c4] ss:$8 sps:$4 sm:$0xff]  }
 0x7f3   : > { %v14637_v0 = vmul.f32 0.5, %v5810_v15  ;;  %9510 = vmatprep.mubr.msk.bf16.mxu1 %vm14532_vm6, %v16256_v32  ;;  %7906 = vmatpush1.bf16.msra.mxu1 %v10570_v36  ;;  %vm6239_vm11 = vcmp.ge.f32.partialorder %v14621_v12, 1.0  ;;  %v6302_v57 = vsel %vm6238_vm9, 1.0, %v16343_v13 }
 0x7f4   : > { %vm6246_vm0 = vcmp.ge.f32.partialorder %v14628_v29, 1.0  ;;  %7907 = vmatprep.subr.bf16.mxu1 %v10575_v59  ;;  %8150 = vmatpush1.bf16.msra.mxu0 %v10693_v62 }
 0x7f5   : > { %vm14649_vm12 = vmpackc.low %vm6246_vm0, %vm6238_vm9  ;;  %vm15856_vm6 = vcmp.ge.f32.partialorder %v14637_v0, 1.0  ;;  %v5813_v26 = vpop.f32.mrb[68].mxu1 }
 0x7f6   : > { %v5814_v50 = vadd.f32 %v5813_v26, %v14603_v28  ;;  %v5815_v44 = vpop.f32.mrb[69].mxu1  ;;  %vm14659_vm3 = vmpackc.low %vm15856_vm6, %vm6239_vm11  ;;  %v10588_v26 = vld [vmem:[#allocation17 + $0x1c0] ss:$8 sps:$4 sm:$0xff]  }
 0x7f7   : > { %v5816_v20 = vadd.f32 %v5815_v44, %v14614_v21  ;;  %v5817_v23 = vpop.f32.mrb[70].mxu1  ;;  %7908 = vmatpush1.bf16.msra.mxu1 %v10573_v54  ;;  %v6303_v44 = vsel %vm6239_vm11, 1.0, %v16343_v13 }
 0x7f8   : > { %v14664_v40 = vmul.f32 0.5, %v5814_v50  ;;  %v5818_v35 = vadd.f32 %v5817_v23, %v14603_v28  ;;  %v5819_v51 = vpop.f32.mrb[71].mxu1  ;;  %7909 = vmatprep.subr.bf16.mxu1 %v10578_v8  ;;  %v6430_v50 = vsub.f32 1.0, %v6302_v57 }
 0x7f9   : > { %v14667_v34 = vmul.f32 0.5, %v5816_v20  ;;  %v5820_v41 = vadd.f32 %v5819_v51, %v14614_v21  ;;  %v6310_v51 = vsel %vm6246_vm0, 1.0, %v16343_v13 }
 0x7fa   : > { %v14670_v9 = vmul.f32 0.5, %v5818_v35  ;;  %9512 = vmatmul.mubr.msk.bf16.gmra.mrb[176].mxu1 %vm14524_vm8, %v16256_v32  ;;  %vm6254_vm15 = vcmp.ge.f32.partialorder %v14664_v40, 1.0  ;;  %v10593_v35 = vld [vmem:[#allocation17 + $0x1d4] ss:$8 sps:$4 sm:$0xff]  }
 0x7fb   : > { %v14675_v38 = vmul.f32 0.5, %v5820_v41  ;;  %9514 = vmatprep.mubr.msk.bf16.mxu1 %vm14576_vm1, %v16256_v32  ;;  %7910 = vmatpush1.bf16.msra.mxu1 %v10576_v31  ;;  %vm15859_vm10 = vcmp.ge.f32.partialorder %v14667_v34, 1.0  ;;  %vm16466_vm0 = vcmp.ge.f32.partialorder %v14667_v34, 1.0 }
 0x7fc   : > { %vm15858_vm2 = vcmp.ge.f32.partialorder %v14670_v9, 1.0  ;;  %7911 = vmatprep.subr.bf16.mxu1 %v10581_v33 }
 0x7fd   : > { %vm15857_vm6 = vcmp.ge.f32.partialorder %v14675_v38, 1.0  ;;  %v5823_v46 = vpop.f32.mrb[72].mxu1  ;;  %vm14688_vm8 = vmpackc.low %vm15858_vm2, %vm6254_vm15 }
 0x7fe   : > { %v5824_v49 = vadd.f32 %v5823_v46, %v14603_v28  ;;  %v5825_v53 = vpop.f32.mrb[73].mxu1  ;;  %vm14697_vm1 = vmpackc.low %vm15857_vm6, %vm15859_vm10 }
 0x7ff   : > { %v5826_v39 = vadd.f32 %v5825_v53, %v14614_v21  ;;  %v5827_v60 = vpop.f32.mrb[74].mxu1  ;;  %7912 = vmatpush1.bf16.msra.mxu1 %v10579_v10  ;;  %v6319_v53 = vsel %vm16466_vm0, 1.0, %v16343_v13  ;;  %vm16469_vm0 = vcmp.ge.f32.partialorder %v14670_v9, 1.0 }
 0x800   : > { %v14702_v18 = vmul.f32 0.5, %v5824_v49  ;;  %v5828_v36 = vadd.f32 %v5827_v60, %v14603_v28  ;;  %v5829_v6 = vpop.f32.mrb[75].mxu1  ;;  %7913 = vmatprep.subr.bf16.mxu1 %v10584_v55  ;;  %v6318_v55 = vsel %vm6254_vm15, 1.0, %v16343_v13  ;;  %v6431_v49 = vsub.f32 1.0, %v6303_v44  ;;  %v10591_v60 = vld [vmem:[#allocation17 + $0x1d0] ss:$8 sps:$4 sm:$0xff]  }
 0x801   : > { %v14705_v1 = vmul.f32 0.5, %v5826_v39  ;;  %v5830_v59 = vadd.f32 %v5829_v6, %v14614_v21  ;;  %v6494_v6 = vmul.f32 %v6430_v50, %v14618_v42 }
 0x802   : > { %v14708_v47 = vmul.f32 0.5, %v5828_v36  ;;  %9516 = vmatmul.mubr.msk.bf16.gmra.mrb[180].mxu1 %vm14568_vm5, %v16256_v32  ;;  %vm6270_vm6 = vcmp.ge.f32.partialorder %v14702_v18, 1.0 }
 0x803   : > { %v14713_v24 = vmul.f32 0.5, %v5830_v59  ;;  %9518 = vmatprep.mubr.msk.bf16.mxu1 %vm14605_vm7, %v16256_v32  ;;  %7914 = vmatpush1.bf16.msra.mxu1 %v10582_v63  ;;  %vm6271_vm5 = vcmp.ge.f32.partialorder %v14705_v1, 1.0  ;;  %v6438_v63 = vsub.f32 1.0, %v6310_v51  ;;  %v10599_v51 = vld [vmem:[#allocation17 + $0x1f4] ss:$8 sps:$4 sm:$0xff]  }
 0x804   : > { %vm15861_vm2 = vcmp.ge.f32.partialorder %v14708_v47, 1.0  ;;  %7915 = vmatprep.subr.bf16.mxu1 %v10587_v30  ;;  %v6446_v30 = vsub.f32 1.0, %v6318_v55 }
 0x805   : > { %vm15860_vm10 = vcmp.ge.f32.partialorder %v14713_v24, 1.0  ;;  %v5833_v58 = vpop.f32.mrb[76].mxu1  ;;  %vm14729_vm7 = vmpackc.low %vm15861_vm2, %vm6270_vm6  ;;  %vm16470_vm2 = vcmp.ge.f32.partialorder %v14675_v38, 1.0  ;;  %v6502_v50 = vmul.f32 %v6438_v63, %v14628_v29  ;;  %v6335_v63 = vsel %vm6271_vm5, 1.0, %v16343_v13 }
 0x806   : > { %v5834_v15 = vadd.f32 %v5833_v58, %v14603_v28  ;;  %v5835_v54 = vpop.f32.mrb[77].mxu1  ;;  %vm14738_vm9 = vmpackc.low %vm15860_vm10, %vm6271_vm5  ;;  %vm16465_vm10 = vcmp.ge.f32.partialorder %v14637_v0, 1.0  ;;  %v6327_v42 = vsel %vm16470_vm2, 1.0, %v16343_v13  ;;  %vm16473_vm2 = vcmp.ge.f32.partialorder %v14708_v47, 1.0 }
 0x807   : > { %v5836_v8 = vadd.f32 %v5835_v54, %v14614_v21  ;;  %v5837_v62 = vpop.f32.mrb[78].mxu1  ;;  %7916 = vmatpush1.bf16.msra.mxu1 %v10585_v27  ;;  %v6311_v33 = vsel %vm16465_vm10, 1.0, %v16343_v13  ;;  %v6447_v27 = vsub.f32 1.0, %v6319_v53  ;;  %v6495_v54 = vmul.f32 %v6431_v49, %v14621_v12 }
 0x808   : > { %v14746_v20 = vmul.f32 0.5, %v5834_v15  ;;  %v5838_v23 = vadd.f32 %v5837_v62, %v14603_v28  ;;  %v5839_v31 = vpop.f32.mrb[79].mxu1  ;;  %7917 = vmatprep.subr.bf16.mxu1 %v10590_v17  ;;  %v6439_v36 = vsub.f32 1.0, %v6311_v33  ;;  %v6326_v17 = vsel %vm16469_vm0, 1.0, %v16343_v13 }
 0x809   : > { %v14755_v41 = vmul.f32 0.5, %v5836_v8  ;;  %v5840_v10 = vadd.f32 %v5839_v31, %v14614_v21  ;;  %v6454_v33 = vsub.f32 1.0, %v6326_v17  ;;  %v6510_v49 = vmul.f32 %v6446_v30, %v14664_v40  ;;  %v10597_v40 = vld [vmem:[#allocation17 + $0x1f0] ss:$8 sps:$4 sm:$0xff]  }
 0x80a   : > { %v14761_v46 = vmul.f32 0.5, %v5838_v23  ;;  %9520 = vmatmul.mubr.msk.bf16.gmra.mrb[184].mxu1 %vm14594_vm14, %v16256_v32  ;;  %vm6286_vm11 = vcmp.ge.f32.partialorder %v14746_v20, 1.0  ;;  %v6503_v44 = vmul.f32 %v6439_v36, %v14637_v0  ;;  %v14810_v53 = vmul.f32 %v6447_v27, %v14667_v34 }
 0x80b   : > { %v14769_v39 = vmul.f32 0.5, %v5840_v10  ;;  %9522 = vmatprep.mubr.msk.bf16.mxu1 %vm14633_vm4, %v16256_v32  ;;  %7918 = vmatpush1.bf16.msra.mxu1 %v10588_v26  ;;  %vm6287_vm14 = vcmp.ge.f32.partialorder %v14755_v41, 1.0  ;;  %v10594_v26 = vld [vmem:[#allocation17 + $0x1e0] ss:$8 sps:$4 sm:$0xff]   ;;  %v6455_v10 = vsub.f32 1.0, %v6327_v42  ;;  %v6334_v0 = vsel %vm6270_vm6, 1.0, %v16343_v13 }
 0x80c   : > { %vm15862_vm15 = vcmp.ge.f32.partialorder %v14761_v46, 1.0  ;;  %7919 = vmatprep.subr.bf16.mxu1 %v10593_v35  ;;  %v6342_v2 = vsel %vm16473_vm2, 1.0, %v16343_v13  ;;  %v6518_v17 = vmul.f32 %v6454_v33, %v14670_v9  ;;  %v6350_v45 = vsel %vm6286_vm11, 1.0, %v16343_v13 }
 0x80d   : > { %vm6295_vm10 = vcmp.ge.f32.partialorder %v14769_v39, 1.0  ;;  %v5843_v59 = vpop.f32.mrb[80].mxu1  ;;  %vm14783_vm4 = vmpackc.low %vm15862_vm15, %vm6286_vm11  ;;  %v6519_v42 = vmul.f32 %v6455_v10, %v14675_v38 }
 0x80e   : > { %v5844_v57 = vadd.f32 %v5843_v59, %v14603_v28  ;;  %v5845_v58 = vpop.f32.mrb[81].mxu1  ;;  %vm14798_vm15 = vmpackc.low %vm6295_vm10, %vm6287_vm14  ;;  %v10602_v59 = vld [vmem:[#allocation17 + $0x204] ss:$8 sps:$4 sm:$0xff]  }
 0x80f   : > { %v5846_v8 = vadd.f32 %v5845_v58, %v14614_v21  ;;  %v5847_v62 = vpop.f32.mrb[82].mxu1  ;;  %7920 = vmatpush1.bf16.msra.mxu1 %v10591_v60 }
 0x810   : > { %v6558_v23 = vsub.f32 %v5844_v57, %v6494_v6  ;;  %v5848_v31 = vadd.f32 %v5847_v62, %v14603_v28  ;;  %v5849_v35 = vpop.f32.mrb[83].mxu1  ;;  %7921 = vmatprep.subr.bf16.mxu1 %v10596_v5  ;;  %v6463_v62 = vsub.f32 1.0, %v6335_v63 }
 0x811   : > { %v6559_v55 = vsub.f32 %v5846_v8, %v6495_v54  ;;  %v5850_v12 = vadd.f32 %v5849_v35, %v14614_v21  ;;  %v6462_v8 = vsub.f32 1.0, %v6334_v0  ;;  %v6470_v35 = vsub.f32 1.0, %v6342_v2 }
 0x812   : > { %v6622_v60 = vmul.f32 0.5, %v6558_v23  ;;  %v6566_v29 = vsub.f32 %v5848_v31, %v6502_v50  ;;  %9524 = vmatmul.mubr.msk.bf16.gmra.mrb[188].mxu1 %vm14624_vm13, %v16256_v32  ;;  %vm16474_vm13 = vcmp.ge.f32.partialorder %v14713_v24, 1.0 }
 0x813   : > { %v6623_v36 = vmul.f32 0.5, %v6559_v55  ;;  %v6567_v5 = vsub.f32 %v5850_v12, %v6503_v44  ;;  %7922 = vmatpush1.bf16.msra.mxu1 %v10594_v26  ;;  %9526 = vmatprep.mubr.msk.bf16.mxu1 %vm14659_vm3, %v16256_v32  ;;  %v6343_v34 = vsel %vm16474_vm13, 1.0, %v16343_v13  ;;  %v6526_v2 = vmul.f32 %v6462_v8, %v14702_v18 }
 0x814   : > { %v6630_v30 = vmul.f32 0.5, %v6566_v29  ;;  %7923 = vmatprep.subr.bf16.mxu1 %v10599_v51  ;;  %v6686_v27 = vadd.f32 %v6622_v60, %v6494_v6  ;;  %v6471_v55 = vsub.f32 1.0, %v6343_v34  ;;  %v10600_v6 = vld [vmem:[#allocation17 + $0x200] ss:$8 sps:$4 sm:$0xff]   ;;  %v6527_v34 = vmul.f32 %v6463_v62, %v14705_v1 }
 0x815   : > { %v6631_v57 = vmul.f32 0.5, %v6567_v5  ;;  %v5853_v22 = vpop.f32.mrb[84].mxu1  ;;  %v6687_v58 = vadd.f32 %v6623_v36, %v6495_v54  ;;  %v10605_v54 = vld [vmem:[#allocation17 + $0x214] ss:$8 sps:$4 sm:$0xff]   ;;  %v6351_v18 = vsel %vm6287_vm14, 1.0, %v16343_v13 }
 0x816   : > { %v5854_v26 = vadd.f32 %v5853_v22, %v14603_v28  ;;  %v5855_v23 = vpop.f32.mrb[85].mxu1  ;;  %v6694_v31 = vadd.f32 %v6630_v30, %v6502_v50  ;;  %vm6750_vm6 = vcmp.ge.f32.partialorder %v6686_v27, 1.0  ;;  %v6534_v27 = vmul.f32 %v6470_v35, %v14708_v47 }
 0x817   : > { %v5856_v12 = vadd.f32 %v5855_v23, %v14614_v21  ;;  %v5857_v51 = vpop.f32.mrb[86].mxu1  ;;  %7924 = vmatpush1.bf16.msra.mxu1 %v10597_v40  ;;  %v6695_v60 = vadd.f32 %v6631_v57, %v6503_v44  ;;  %vm6751_vm5 = vcmp.ge.f32.partialorder %v6687_v58, 1.0  ;;  %v10603_v40 = vld [vmem:[#allocation17 + $0x210] ss:$8 sps:$4 sm:$0xff]   ;;  %v6535_v57 = vmul.f32 %v6471_v55, %v14713_v24  ;;  %v10606_v23 = vld [vmem:[#allocation17 + $0x220] ss:$8 sps:$4 sm:$0xff]  }
 0x818   : > { %v6574_v9 = vsub.f32 %v5854_v26, %v6510_v49  ;;  %v5858_v38 = vadd.f32 %v5857_v51, %v14603_v28  ;;  %v5859_v33 = vpop.f32.mrb[87].mxu1  ;;  %8006 = vmatprep.subr.bf16.mxu1 %v10602_v59  ;;  %vm6758_vm3 = vcmp.ge.f32.partialorder %v6694_v31, 1.0  ;;  %v6359_v24 = vsel %vm6295_vm10, 1.0, %v16343_v13 }
 0x819   : > { %v6575_v10 = vsub.f32 %v5856_v12, %v14810_v53  ;;  %v5860_v50 = vadd.f32 %v5859_v33, %v14614_v21  ;;  %vm6759_vm0 = vcmp.ge.f32.partialorder %v6695_v60, 1.0  ;;  %vm14837_vm2 = vmpackc.low %vm6758_vm3, %vm6750_vm6 }
 0x81a   : > { %v6638_v0 = vmul.f32 0.5, %v6574_v9  ;;  %v6582_v44 = vsub.f32 %v5858_v38, %v6518_v17  ;;  %9528 = vmatmul.mubr.msk.bf16.vlgmr.msra.gmra.mrb[160].mxu1 %vm14649_vm12, %v16256_v32  ;;  %vm14844_vm13 = vmpackc.low %vm6759_vm0, %vm6751_vm5  ;;  %vm16479_vm12 = vcmp.ge.f32.partialorder %v14761_v46, 1.0  ;;  %v6478_v9 = vsub.f32 1.0, %v6350_v45 }
 0x81b   : > { %v6639_v36 = vmul.f32 0.5, %v6575_v10  ;;  %v6583_v5 = vsub.f32 %v5860_v50, %v6519_v42  ;;  %9530 = vmatprep.mubr.msk.bf16.mxu1 %vm14697_vm1, %v16256_v32  ;;  %8007 = vmatpush1.bf16.msra.mxu1 %v10600_v6  ;;  %v6358_v47 = vsel %vm16479_vm12, 1.0, %v16343_v13  ;;  %v6479_v38 = vsub.f32 1.0, %v6351_v18 }
 0x81c   : > { %v6646_v30 = vmul.f32 0.5, %v6582_v44  ;;  %8008 = vmatprep.subr.bf16.mxu1 %v10605_v54  ;;  %v6702_v59 = vadd.f32 %v6638_v0, %v6510_v49  ;;  %v6486_v10 = vsub.f32 1.0, %v6358_v47  ;;  %v6487_v50 = vsub.f32 1.0, %v6359_v24  ;;  %v10612_v24 = vld [vmem:[#allocation17 + $0x240] ss:$8 sps:$4 sm:$0xff]  }
 0x81d   : > { %v6647_v22 = vmul.f32 0.5, %v6583_v5  ;;  %v5863_v58 = vpop.f32.mrb[88].mxu1  ;;  %v6703_v26 = vadd.f32 %v6639_v36, %v14810_v53  ;;  %v10609_v36 = vld [vmem:[#allocation17 + $0x230] ss:$8 sps:$4 sm:$0xff]   ;;  %v6543_v45 = vmul.f32 %v6479_v38, %v14755_v41  ;;  %v10617_v41 = vld [vmem:[#allocation17 + $0x254] ss:$8 sps:$4 sm:$0xff]  }
 0x81e   : > { %v5864_v1 = vadd.f32 %v5863_v58, %v14603_v28  ;;  %v5865_v8 = vpop.f32.mrb[89].mxu1  ;;  %v6710_v49 = vadd.f32 %v6646_v30, %v6518_v17  ;;  %v10611_v17 = vld [vmem:[#allocation17 + $0x234] ss:$8 sps:$4 sm:$0xff]   ;;  %vm6766_vm1 = vcmp.ge.f32.partialorder %v6702_v59, 1.0  ;;  %v16484_v59 = vld [vmem:[#allocation42_spill] sm:$0xff] }
 0x81f   : > { %v5866_v53 = vadd.f32 %v5865_v8, %v14614_v21  ;;  %v5867_v62 = vpop.f32.mrb[90].mxu1  ;;  %8009 = vmatpush1.bf16.msra.mxu1 %v10603_v40  ;;  %v6711_v31 = vadd.f32 %v6647_v22, %v6519_v42  ;;  %vm6767_vm14 = vcmp.ge.f32.partialorder %v6703_v26, 1.0  ;;  %v10614_v40 = vld [vmem:[#allocation17 + $0x244] ss:$8 sps:$4 sm:$0xff]   ;;  %v14887_v22 = vsub.s32 5, %v16484_v59 }
 0x820   : > { %v6590_v35 = vsub.f32 %v5864_v1, %v6526_v2  ;;  %v5868_v55 = vadd.f32 %v5867_v62, %v14603_v28  ;;  %v5869_v12 = vpop.f32.mrb[91].mxu1  ;;  %8010 = vmatprep.subr.bf16.mxu1 %v10608_v25  ;;  %vm6774_vm11 = vcmp.ge.f32.partialorder %v6710_v49, 1.0  ;;  %v6542_v26 = vmul.f32 %v6478_v9, %v14746_v20 }
 0x821   : > { %v6591_v51 = vsub.f32 %v5866_v53, %v6527_v34  ;;  %v5870_v6 = vadd.f32 %v5869_v12, %v14614_v21  ;;  %vm6775_vm6 = vcmp.ge.f32.partialorder %v6711_v31, 1.0  ;;  %vm14872_vm10 = vmpackc.low %vm6774_vm11, %vm6766_vm1  ;;  %v6550_v8 = vmul.f32 %v6486_v10, %v14761_v46  ;;  %v10665_v46 = vld [vmem:[#allocation17 + $0x2e4] ss:$8 sps:$4 sm:$0xff]  }
 0x822   : > { %v6654_v42 = vmul.f32 0.5, %v6590_v35  ;;  %v6598_v33 = vsub.f32 %v5868_v55, %v6534_v27  ;;  %9532 = vmatmul.mubr.msk.bf16.gmra.mrb[164].mxu1 %vm14688_vm8, %v16256_v32  ;;  %vm14879_vm3 = vmpackc.low %vm6775_vm6, %vm6767_vm14  ;;  %v6551_v49 = vmul.f32 %v6487_v50, %v14769_v39 }
 0x823   : > { %v6655_v0 = vmul.f32 0.5, %v6591_v51  ;;  %v6599_v44 = vsub.f32 %v5870_v6, %v6535_v57  ;;  %9534 = vmatprep.mubr.msk.bf16.mxu1 %vm14738_vm9, %v16256_v32  ;;  %8011 = vmatpush1.bf16.msra.mxu1 %v10606_v23  ;;  %v10620_v6 = vld [vmem:[#allocation17 + $0x264] ss:$8 sps:$4 sm:$0xff]  }
 0x824   : > { %v6662_v5 = vmul.f32 0.5, %v6598_v33  ;;  %8012 = vmatprep.subr.bf16.mxu1 %v10611_v17  ;;  %v6718_v30 = vadd.f32 %v6654_v42, %v6526_v2  ;;  %v10615_v17 = vld [vmem:[#allocation17 + $0x250] ss:$8 sps:$4 sm:$0xff]  }
 0x825   : > { %v6663_v16 = vmul.f32 0.5, %v6599_v44  ;;  %v5873_v25 = vpop.f32.mrb[92].mxu1  ;;  %v6719_v58 = vadd.f32 %v6655_v0, %v6527_v34 }
 0x826   : > { %v5874_v18 = vadd.f32 %v5873_v25, %v14603_v28  ;;  %v5875_v3 = vpop.f32.mrb[93].mxu1  ;;  %v6726_v1 = vadd.f32 %v6662_v5, %v6534_v27  ;;  %vm6782_vm8 = vcmp.ge.f32.partialorder %v6718_v30, 1.0  ;;  %v10623_v25 = vld [vmem:[#allocation17 + $0x274] ss:$8 sps:$4 sm:$0xff]  }
 0x827   : > { %v5876_v2 = vadd.f32 %v5875_v3, %v14614_v21  ;;  %v5877_v47 = vpop.f32.mrb[94].mxu1  ;;  %8013 = vmatpush1.bf16.msra.mxu1 %v10609_v36  ;;  %v6727_v53 = vadd.f32 %v6663_v16, %v6535_v57  ;;  %vm6783_vm5 = vcmp.ge.f32.partialorder %v6719_v58, 1.0  ;;  %v16487_v57 = vld [vmem:[#allocation51_spill] sm:$0xff]  ;;  %v10618_v36 = vld [vmem:[#allocation17 + $0x260] ss:$8 sps:$4 sm:$0xff]  }
 0x828   : > { %v6606_v62 = vsub.f32 %v5874_v18, %v6542_v26  ;;  %v5878_v34 = vadd.f32 %v5877_v47, %v14603_v28  ;;  %v5879_v20 = vpop.f32.mrb[95].mxu1  ;;  %8014 = vmatprep.subr.bf16.mxu1 %v10614_v40  ;;  %vm6790_vm9 = vcmp.ge.f32.partialorder %v6726_v1, 1.0  ;;  %v14904_v28 = vld [vmem:[#allocation20] sm:$0xff] }
 0x829   : > { %v6607_v23 = vsub.f32 %v5876_v2, %v6543_v45  ;;  %v5880_v27 = vadd.f32 %v5879_v20, %v14614_v21  ;;  %vm6791_vm0 = vcmp.ge.f32.partialorder %v6727_v53, 1.0  ;;  %vm14897_vm12 = vmpackc.low %vm6790_vm9, %vm6782_vm8  ;;  %v14908_v35 = vrot.slane %v14904_v28, %v16487_v57 }
 0x82a   : > { %v6670_v39 = vmul.f32 0.5, %v6606_v62  ;;  %v6614_v31 = vsub.f32 %v5878_v34, %v6550_v8  ;;  %9536 = vmatmul.mubr.msk.bf16.gmra.mrb[168].mxu1 %vm14729_vm7, %v16256_v32  ;;  %vm14910_vm1 = vmpackc.low %vm6791_vm0, %vm6783_vm5  ;;  %v14919_v14 = vrot.slane %v14904_v28, %v14887_v22  ;;  %v10627_v34 = vld [vmem:[#allocation17 + $0x280] ss:$8 sps:$4 sm:$0xff]  }
 0x82b   : > { %v6671_v55 = vmul.f32 0.5, %v6607_v23  ;;  %v6615_v12 = vsub.f32 %v5880_v27, %v6551_v49  ;;  %9538 = vmatprep.mubr.msk.bf16.mxu1 %vm14798_vm15, %v16256_v32  ;;  %8015 = vmatpush1.bf16.msra.mxu1 %v10612_v24  ;;  %v10635_v27 = vld [vmem:[#allocation17 + $0x294] ss:$8 sps:$4 sm:$0xff]  }
 0x82c   : > { %v6678_v51 = vmul.f32 0.5, %v6614_v31  ;;  %8016 = vmatprep.subr.bf16.mxu1 %v10617_v41  ;;  %v6734_v9 = vadd.f32 %v6670_v39, %v6542_v26 }
 0x82d   : > { %v6679_v38 = vmul.f32 0.5, %v6615_v12  ;;  %v5916_v42 = vpop.f32.mrb[96].mxu1  ;;  %v6735_v33 = vadd.f32 %v6671_v55, %v6543_v45  ;;  %v10633_v12 = vld [vmem:[#allocation17 + $0x290] ss:$8 sps:$4 sm:$0xff]  }
 0x82e   : > { %v5917_v10 = vadd.f32 %v5916_v42, %v14908_v35  ;;  %v5918_v50 = vpop.f32.mrb[97].mxu1  ;;  %v6742_v0 = vadd.f32 %v6678_v51, %v6550_v8  ;;  %vm6798_vm7 = vcmp.ge.f32.partialorder %v6734_v9, 1.0  ;;  %v10621_v8 = vld [vmem:[#allocation17 + $0x270] ss:$8 sps:$4 sm:$0xff]  }
 0x82f   : > { %v5919_v15 = vadd.f32 %v5918_v50, %v14919_v14  ;;  %v5920_v44 = vpop.f32.mrb[98].mxu1  ;;  %8017 = vmatpush1.bf16.msra.mxu1 %v10615_v17  ;;  %v6743_v5 = vadd.f32 %v6679_v38, %v6551_v49  ;;  %vm6799_vm11 = vcmp.ge.f32.partialorder %v6735_v33, 1.0  ;;  %v10629_v49 = vld [vmem:[#allocation17 + $0x284] ss:$8 sps:$4 sm:$0xff]   ;;  %v10639_v33 = vld [vmem:[#allocation17 + $0x2a0] ss:$8 sps:$4 sm:$0xff]  }
 0x830   : > { %v14923_v40 = vmul.f32 0.5, %v5917_v10  ;;  %v5921_v30 = vadd.f32 %v5920_v44, %v14908_v35  ;;  %v5922_v16 = vpop.f32.mrb[99].mxu1  ;;  %8018 = vmatprep.subr.bf16.mxu1 %v10620_v6  ;;  %vm6806_vm15 = vcmp.ge.f32.partialorder %v6742_v0, 1.0  ;;  %v10641_v17 = vld [vmem:[#allocation17 + $0x2a4] ss:$8 sps:$4 sm:$0xff]  }
 0x831   : > { %v14926_v58 = vmul.f32 0.5, %v5919_v15  ;;  %v5923_v26 = vadd.f32 %v5922_v16, %v14919_v14  ;;  %vm6807_vm14 = vcmp.ge.f32.partialorder %v6743_v5, 1.0  ;;  %vm14929_vm6 = vmpackc.low %vm6806_vm15, %vm6798_vm7  ;;  %v10647_v15 = vld [vmem:[#allocation17 + $0x2b4] ss:$8 sps:$4 sm:$0xff]   ;;  %v10645_v16 = vld [vmem:[#allocation17 + $0x2b0] ss:$8 sps:$4 sm:$0xff]  }
 0x832   : > { %v14933_v18 = vmul.f32 0.5, %v5921_v30  ;;  %9540 = vmatmul.mubr.msk.bf16.gmra.mrb[172].mxu1 %vm14783_vm4, %v16256_v32  ;;  %vm14938_vm8 = vmpackc.low %vm6807_vm14, %vm6799_vm11  ;;  %vm6240_vm9 = vcmp.ge.f32.partialorder %v14923_v40, 1.0 }
 0x833   : > { %v14942_v1 = vmul.f32 0.5, %v5923_v26  ;;  %9542 = vmatprep.mubr.msk.bf16.mxu1 %vm14844_vm13, %v16256_v32  ;;  %8019 = vmatpush1.bf16.msra.mxu1 %v10618_v36  ;;  %vm6241_vm4 = vcmp.ge.f32.partialorder %v14926_v58, 1.0  ;;  %v6304_v26 = vsel %vm6240_vm9, 1.0, %v16343_v13 }
 0x834   : > { %vm6248_vm5 = vcmp.ge.f32.partialorder %v14933_v18, 1.0  ;;  %8020 = vmatprep.subr.bf16.mxu1 %v10623_v25  ;;  %v10653_v25 = vld [vmem:[#allocation17 + $0x2c4] ss:$8 sps:$4 sm:$0xff]  }
 0x835   : > { %vm14954_vm0 = vmpackc.low %vm6248_vm5, %vm6240_vm9  ;;  %vm15863_vm13 = vcmp.ge.f32.partialorder %v14942_v1, 1.0  ;;  %v5926_v63 = vpop.f32.mrb[100].mxu1 }
 0x836   : > { %v5927_v2 = vadd.f32 %v5926_v63, %v14908_v35  ;;  %v5928_v47 = vpop.f32.mrb[101].mxu1  ;;  %vm14964_vm7 = vmpackc.low %vm15863_vm13, %vm6241_vm4 }
 0x837   : > { %v5929_v53 = vadd.f32 %v5928_v47, %v14919_v14  ;;  %v5930_v62 = vpop.f32.mrb[102].mxu1  ;;  %8021 = vmatpush1.bf16.msra.mxu1 %v10621_v8 }
 0x838   : > { %v14969_v20 = vmul.f32 0.5, %v5927_v2  ;;  %v5931_v41 = vadd.f32 %v5930_v62, %v14908_v35  ;;  %v5932_v23 = vpop.f32.mrb[103].mxu1  ;;  %8022 = vmatprep.subr.bf16.mxu1 %v10629_v49  ;;  %v6432_v62 = vsub.f32 1.0, %v6304_v26 }
 0x839   : > { %v14972_v39 = vmul.f32 0.5, %v5929_v53  ;;  %v5933_v31 = vadd.f32 %v5932_v23, %v14919_v14  ;;  %v10651_v53 = vld [vmem:[#allocation17 + $0x2c0] ss:$8 sps:$4 sm:$0xff]  }
 0x83a   : > { %v14975_v57 = vmul.f32 0.5, %v5931_v41  ;;  %9544 = vmatmul.mubr.msk.bf16.gmra.mrb[176].mxu1 %vm14837_vm2, %v16256_v32  ;;  %vm6256_vm15 = vcmp.ge.f32.partialorder %v14969_v20, 1.0 }
 0x83b   : > { %v14980_v55 = vmul.f32 0.5, %v5933_v31  ;;  %9546 = vmatprep.mubr.msk.bf16.mxu1 %vm14879_vm3, %v16256_v32  ;;  %8023 = vmatpush1.bf16.msra.mxu1 %v10627_v34  ;;  %vm15866_vm14 = vcmp.ge.f32.partialorder %v14972_v39, 1.0  ;;  %v6305_v34 = vsel %vm6241_vm4, 1.0, %v16343_v13  ;;  %v10659_v31 = vld [vmem:[#allocation17 + $0x2d4] ss:$8 sps:$4 sm:$0xff]  }
 0x83c   : > { %vm15865_vm11 = vcmp.ge.f32.partialorder %v14975_v57, 1.0  ;;  %8024 = vmatprep.subr.bf16.mxu1 %v10635_v27 }
 0x83d   : > { %vm15864_vm13 = vcmp.ge.f32.partialorder %v14980_v55, 1.0  ;;  %v5936_v29 = vpop.f32.mrb[104].mxu1  ;;  %vm14993_vm2 = vmpackc.low %vm15865_vm11, %vm6256_vm15 }
 0x83e   : > { %v5937_v51 = vadd.f32 %v5936_v29, %v14908_v35  ;;  %v5938_v6 = vpop.f32.mrb[105].mxu1  ;;  %vm15002_vm3 = vmpackc.low %vm15864_vm13, %vm15866_vm14 }
 0x83f   : > { %v5939_v38 = vadd.f32 %v5938_v6, %v14919_v14  ;;  %v5940_v42 = vpop.f32.mrb[106].mxu1  ;;  %8025 = vmatpush1.bf16.msra.mxu1 %v10633_v12  ;;  %v6312_v12 = vsel %vm6248_vm5, 1.0, %v16343_v13  ;;  %v6320_v6 = vsel %vm6256_vm15, 1.0, %v16343_v13  ;;  %vm16507_vm5 = vcmp.ge.f32.partialorder %v14972_v39, 1.0 }
 0x840   : > { %v15007_v10 = vmul.f32 0.5, %v5937_v51  ;;  %v5941_v50 = vadd.f32 %v5940_v42, %v14908_v35  ;;  %v5942_v0 = vpop.f32.mrb[107].mxu1  ;;  %8026 = vmatprep.subr.bf16.mxu1 %v10641_v17  ;;  %v6433_v42 = vsub.f32 1.0, %v6305_v34 }
 0x841   : > { %v15010_v44 = vmul.f32 0.5, %v5939_v38  ;;  %v5943_v36 = vadd.f32 %v5942_v0, %v14919_v14  ;;  %v10657_v0 = vld [vmem:[#allocation17 + $0x2d0] ss:$8 sps:$4 sm:$0xff]  }
 0x842   : > { %v15013_v5 = vmul.f32 0.5, %v5941_v50  ;;  %9548 = vmatmul.mubr.msk.bf16.gmra.mrb[180].mxu1 %vm14872_vm10, %v16256_v32  ;;  %vm6272_vm13 = vcmp.ge.f32.partialorder %v15007_v10, 1.0 }
 0x843   : > { %v15018_v30 = vmul.f32 0.5, %v5943_v36  ;;  %9550 = vmatprep.mubr.msk.bf16.mxu1 %vm14910_vm1, %v16256_v32  ;;  %8027 = vmatpush1.bf16.msra.mxu1 %v10639_v33  ;;  %vm6273_vm10 = vcmp.ge.f32.partialorder %v15010_v44, 1.0  ;;  %v6321_v33 = vsel %vm16507_vm5, 1.0, %v16343_v13  ;;  %vm16510_vm5 = vcmp.ge.f32.partialorder %v14975_v57, 1.0 }
 0x844   : > { %vm15868_vm11 = vcmp.ge.f32.partialorder %v15013_v5, 1.0  ;;  %8028 = vmatprep.subr.bf16.mxu1 %v10647_v15  ;;  %v6440_v15 = vsub.f32 1.0, %v6312_v12 }
 0x845   : > { %vm15867_vm14 = vcmp.ge.f32.partialorder %v15018_v30, 1.0  ;;  %v5946_v60 = vpop.f32.mrb[108].mxu1  ;;  %vm15034_vm1 = vmpackc.low %vm15868_vm11, %vm6272_vm13  ;;  %vm16511_vm11 = vcmp.ge.f32.partialorder %v14980_v55, 1.0 }
 0x846   : > { %v5947_v8 = vadd.f32 %v5946_v60, %v14908_v35  ;;  %v5948_v49 = vpop.f32.mrb[109].mxu1  ;;  %vm15043_vm9 = vmpackc.low %vm15867_vm14, %vm6273_vm10  ;;  %vm16506_vm14 = vcmp.ge.f32.partialorder %v14942_v1, 1.0  ;;  %v6449_v60 = vsub.f32 1.0, %v6321_v33 }
 0x847   : > { %v5949_v2 = vadd.f32 %v5948_v49, %v14919_v14  ;;  %v5950_v47 = vpop.f32.mrb[110].mxu1  ;;  %8029 = vmatpush1.bf16.msra.mxu1 %v10645_v16  ;;  %v6313_v17 = vsel %vm16506_vm14, 1.0, %v16343_v13  ;;  %v6496_v16 = vmul.f32 %v6432_v62, %v14923_v40  ;;  %v6329_v40 = vsel %vm16511_vm11, 1.0, %v16343_v13 }
 0x848   : > { %v15051_v41 = vmul.f32 0.5, %v5947_v8  ;;  %v5951_v23 = vadd.f32 %v5950_v47, %v14908_v35  ;;  %v5952_v27 = vpop.f32.mrb[111].mxu1  ;;  %8030 = vmatprep.subr.bf16.mxu1 %v10653_v25  ;;  %v6441_v36 = vsub.f32 1.0, %v6313_v17  ;;  %v6448_v25 = vsub.f32 1.0, %v6320_v6  ;;  %v10671_v6 = vld [vmem:[#allocation17 + $0x2f4] ss:$8 sps:$4 sm:$0xff]  }
 0x849   : > { %v15060_v29 = vmul.f32 0.5, %v5949_v2  ;;  %v5953_v51 = vadd.f32 %v5952_v27, %v14919_v14  ;;  %v6328_v8 = vsel %vm16510_vm5, 1.0, %v16343_v13  ;;  %v6504_v27 = vmul.f32 %v6440_v15, %v14933_v18 }
 0x84a   : > { %v15066_v38 = vmul.f32 0.5, %v5951_v23  ;;  %9552 = vmatmul.mubr.msk.bf16.gmra.mrb[184].mxu1 %vm14897_vm12, %v16256_v32  ;;  %vm6288_vm4 = vcmp.ge.f32.partialorder %v15051_v41, 1.0  ;;  %v10663_v23 = vld [vmem:[#allocation17 + $0x2e0] ss:$8 sps:$4 sm:$0xff]   ;;  %v6456_v33 = vsub.f32 1.0, %v6328_v8  ;;  %v6337_v15 = vsel %vm6273_vm10, 1.0, %v16343_v13 }
 0x84b   : > { %v15074_v50 = vmul.f32 0.5, %v5953_v51  ;;  %9554 = vmatprep.mubr.msk.bf16.mxu1 %vm14938_vm8, %v16256_v32  ;;  %8031 = vmatpush1.bf16.msra.mxu1 %v10651_v53  ;;  %vm6289_vm12 = vcmp.ge.f32.partialorder %v15060_v29, 1.0  ;;  %v6497_v53 = vmul.f32 %v6433_v42, %v14926_v58  ;;  %v6512_v42 = vmul.f32 %v6448_v25, %v14969_v20  ;;  %v10669_v20 = vld [vmem:[#allocation17 + $0x2f0] ss:$8 sps:$4 sm:$0xff]  }
 0x84c   : > { %vm15869_vm15 = vcmp.ge.f32.partialorder %v15066_v38, 1.0  ;;  %8032 = vmatprep.subr.bf16.mxu1 %v10659_v31  ;;  %v6505_v31 = vmul.f32 %v6441_v36, %v14942_v1  ;;  %v6336_v1 = vsel %vm6272_vm13, 1.0, %v16343_v13  ;;  %vm16514_vm11 = vcmp.ge.f32.partialorder %v15013_v5, 1.0 }
 0x84d   : > { %vm6297_vm14 = vcmp.ge.f32.partialorder %v15074_v50, 1.0  ;;  %v5956_v26 = vpop.f32.mrb[112].mxu1  ;;  %vm15088_vm8 = vmpackc.low %vm15869_vm15, %vm6288_vm4  ;;  %v6344_v45 = vsel %vm16514_vm11, 1.0, %v16343_v13  ;;  %v6352_v9 = vsel %vm6288_vm4, 1.0, %v16343_v13 }
 0x84e   : > { %v5957_v49 = vadd.f32 %v5956_v26, %v14908_v35  ;;  %v5958_v2 = vpop.f32.mrb[113].mxu1  ;;  %vm15103_vm15 = vmpackc.low %vm6297_vm14, %vm6289_vm12  ;;  %v6457_v26 = vsub.f32 1.0, %v6329_v40 }
 0x84f   : > { %v5959_v62 = vadd.f32 %v5958_v2, %v14919_v14  ;;  %v5960_v34 = vpop.f32.mrb[114].mxu1  ;;  %8033 = vmatpush1.bf16.msra.mxu1 %v10657_v0  ;;  %v15115_v0 = vmul.f32 %v6449_v60, %v14972_v39 }
 0x850   : > { %v6560_v12 = vsub.f32 %v5957_v49, %v6496_v16  ;;  %v5961_v17 = vadd.f32 %v5960_v34, %v14908_v35  ;;  %v5962_v51 = vpop.f32.mrb[115].mxu1  ;;  %8034 = vmatprep.subr.bf16.mxu1 %v10665_v46  ;;  %v6521_v8 = vmul.f32 %v6457_v26, %v14980_v55  ;;  %v6465_v34 = vsub.f32 1.0, %v6337_v15 }
 0x851   : > { %v6561_v43 = vsub.f32 %v5959_v62, %v6497_v53  ;;  %v5963_v58 = vadd.f32 %v5962_v51, %v14919_v14  ;;  %v6464_v62 = vsub.f32 1.0, %v6336_v1  ;;  %v6472_v51 = vsub.f32 1.0, %v6344_v45 }
 0x852   : > { %v6624_v2 = vmul.f32 0.5, %v6560_v12  ;;  %v6568_v18 = vsub.f32 %v5961_v17, %v6504_v27  ;;  %9556 = vmatmul.mubr.msk.bf16.gmra.mrb[188].mxu1 %vm14929_vm6, %v16256_v32  ;;  %vm16515_vm6 = vcmp.ge.f32.partialorder %v15018_v30, 1.0 }
 0x853   : > { %v6625_v36 = vmul.f32 0.5, %v6561_v43  ;;  %v6569_v46 = vsub.f32 %v5963_v58, %v6505_v31  ;;  %8035 = vmatpush1.bf16.msra.mxu1 %v10663_v23  ;;  %9558 = vmatprep.mubr.msk.bf16.mxu1 %vm14964_vm7, %v16256_v32  ;;  %v6345_v39 = vsel %vm16515_vm6, 1.0, %v16343_v13  ;;  %v6520_v43 = vmul.f32 %v6456_v33, %v14975_v57  ;;  %v10699_v33 = vld [vmem:[#allocation17 + $0x304] ss:$8 sps:$4 sm:$0xff]  }
 0x854   : > { %v6632_v25 = vmul.f32 0.5, %v6568_v18  ;;  %8036 = vmatprep.subr.bf16.mxu1 %v10671_v6  ;;  %v6688_v60 = vadd.f32 %v6624_v2, %v6496_v16  ;;  %v6473_v58 = vsub.f32 1.0, %v6345_v39  ;;  %v10701_v39 = vld [vmem:[#allocation17 + $0x314] ss:$8 sps:$4 sm:$0xff]  }
 0x855   : > { %v6633_v40 = vmul.f32 0.5, %v6569_v46  ;;  %v5966_v49 = vpop.f32.mrb[116].mxu1  ;;  %v6689_v24 = vadd.f32 %v6625_v36, %v6497_v53  ;;  %v10700_v36 = vld [vmem:[#allocation17 + $0x300] ss:$8 sps:$4 sm:$0xff]   ;;  %v6528_v46 = vmul.f32 %v6464_v62, %v15007_v10  ;;  %v6353_v10 = vsel %vm6289_vm12, 1.0, %v16343_v13 }
 0x856   : > { %v5967_v23 = vadd.f32 %v5966_v49, %v14908_v35  ;;  %v5968_v12 = vpop.f32.mrb[117].mxu1  ;;  %v6696_v17 = vadd.f32 %v6632_v25, %v6504_v27  ;;  %vm6752_vm13 = vcmp.ge.f32.partialorder %v6688_v60, 1.0  ;;  %v6536_v25 = vmul.f32 %v6472_v51, %v15013_v5 }
 0x857   : > { %v5969_v11 = vadd.f32 %v5968_v12, %v14919_v14  ;;  %v5970_v18 = vpop.f32.mrb[118].mxu1  ;;  %8037 = vmatpush1.bf16.msra.mxu1 %v10669_v20  ;;  %v6697_v16 = vadd.f32 %v6633_v40, %v6505_v31  ;;  %vm6753_vm10 = vcmp.ge.f32.partialorder %v6689_v24, 1.0  ;;  %v6529_v20 = vmul.f32 %v6465_v34, %v15010_v44 }
 0x858   : > { %v6576_v6 = vsub.f32 %v5967_v23, %v6512_v42  ;;  %v5971_v57 = vadd.f32 %v5970_v18, %v14908_v35  ;;  %v5972_v55 = vpop.f32.mrb[119].mxu1  ;;  %9621 = vmatprep.subr.bf16.mxu1 %v10699_v33  ;;  %vm6760_vm7 = vcmp.ge.f32.partialorder %v6696_v17, 1.0  ;;  %v6537_v60 = vmul.f32 %v6473_v58, %v15018_v30  ;;  %v10702_v23 = vld [vmem:[#allocation17 + $0x310] ss:$8 sps:$4 sm:$0xff]   ;;  %v10703_v18 = vld [vmem:[#allocation17 + $0x324] ss:$8 sps:$4 sm:$0xff]  }
 0x859   : > { %v6577_v53 = vsub.f32 %v5969_v11, %v15115_v0  ;;  %v5973_v26 = vadd.f32 %v5972_v55, %v14919_v14  ;;  %vm6761_vm5 = vcmp.ge.f32.partialorder %v6697_v16, 1.0  ;;  %vm15142_vm11 = vmpackc.low %vm6760_vm7, %vm6752_vm13  ;;  %v6361_v30 = vsel %vm6297_vm14, 1.0, %v16343_v13 }
 0x85a   : > { %v6640_v2 = vmul.f32 0.5, %v6576_v6  ;;  %v6584_v31 = vsub.f32 %v5971_v57, %v6520_v43  ;;  %9560 = vmatmul.mubr.msk.bf16.vlgmr.msra.gmra.mrb[160].mxu1 %vm14954_vm0, %v16256_v32  ;;  %vm15149_vm6 = vmpackc.low %vm6761_vm5, %vm6753_vm10  ;;  %vm16520_vm0 = vcmp.ge.f32.partialorder %v15066_v38, 1.0  ;;  %v6480_v57 = vsub.f32 1.0, %v6352_v9 }
 0x85b   : > { %v6641_v15 = vmul.f32 0.5, %v6577_v53  ;;  %v6585_v11 = vsub.f32 %v5973_v26, %v6521_v8  ;;  %9562 = vmatprep.mubr.msk.bf16.mxu1 %vm15002_vm3, %v16256_v32  ;;  %9637 = vmatpush1.bf16.msra.mxu1 %v10700_v36  ;;  %v6360_v5 = vsel %vm16520_vm0, 1.0, %v16343_v13  ;;  %v6481_v55 = vsub.f32 1.0, %v6353_v10 }
 0x85c   : > { %v6648_v45 = vmul.f32 0.5, %v6584_v31  ;;  %9622 = vmatprep.subr.bf16.mxu1 %v10701_v39  ;;  %v6704_v61 = vadd.f32 %v6640_v2, %v6512_v42  ;;  %v6488_v26 = vsub.f32 1.0, %v6360_v5  ;;  %v6489_v2 = vsub.f32 1.0, %v6361_v30 }
 0x85d   : > { %v6649_v40 = vmul.f32 0.5, %v6585_v11  ;;  %v5976_v49 = vpop.f32.mrb[120].mxu1  ;;  %v6705_v24 = vadd.f32 %v6641_v15, %v15115_v0  ;;  %v10704_v11 = vld [vmem:[#allocation17 + $0x320] ss:$8 sps:$4 sm:$0xff]   ;;  %v6544_v9 = vmul.f32 %v6480_v57, %v15051_v41  ;;  %v6545_v10 = vmul.f32 %v6481_v55, %v15060_v29 }
 0x85e   : > { %v5977_v44 = vadd.f32 %v5976_v49, %v14908_v35  ;;  %v5978_v62 = vpop.f32.mrb[121].mxu1  ;;  %v6712_v42 = vadd.f32 %v6648_v45, %v6520_v43  ;;  %vm6768_vm3 = vcmp.ge.f32.partialorder %v6704_v61, 1.0  ;;  %v10705_v45 = vld [vmem:[#allocation17 + $0x334] ss:$8 sps:$4 sm:$0xff]   ;;  %v5006_v49 = vsub.s32 7, %v16484_v59 }
 0x85f   : > { %v5979_v0 = vadd.f32 %v5978_v62, %v14919_v14  ;;  %v5980_v34 = vpop.f32.mrb[122].mxu1  ;;  %9638 = vmatpush1.bf16.msra.mxu1 %v10702_v23  ;;  %v6713_v12 = vadd.f32 %v6649_v40, %v6521_v8  ;;  %vm6769_vm12 = vcmp.ge.f32.partialorder %v6705_v24, 1.0  ;;  %v5002_v40 = vsub.s32 6, %v16484_v59  ;;  %v10707_v23 = vld [vmem:[#allocation17 + $0x344] ss:$8 sps:$4 sm:$0xff]  }
 0x860   : > { %v6592_v17 = vsub.f32 %v5977_v44, %v6528_v46  ;;  %v5981_v51 = vadd.f32 %v5980_v34, %v14908_v35  ;;  %v5982_v58 = vpop.f32.mrb[123].mxu1  ;;  %9623 = vmatprep.subr.bf16.mxu1 %v10703_v18  ;;  %vm6776_vm4 = vcmp.ge.f32.partialorder %v6712_v42, 1.0  ;;  %v6552_v42 = vmul.f32 %v6488_v26, %v15066_v38  ;;  %v10709_v18 = vld [vmem:[#allocation17 + $0x354] ss:$8 sps:$4 sm:$0xff]  }
 0x861   : > { %v6593_v43 = vsub.f32 %v5979_v0, %v6529_v20  ;;  %v5983_v16 = vadd.f32 %v5982_v58, %v14919_v14  ;;  %vm6777_vm13 = vcmp.ge.f32.partialorder %v6713_v12, 1.0  ;;  %vm15177_vm14 = vmpackc.low %vm6776_vm4, %vm6768_vm3  ;;  %v6553_v5 = vmul.f32 %v6489_v2, %v15074_v50  ;;  %v10706_v0 = vld [vmem:[#allocation17 + $0x330] ss:$8 sps:$4 sm:$0xff]   ;;  %v10725_v38 = vld [vmem:[#allocation17 + $0x3d4] ss:$8 sps:$4 sm:$0xff]  }
 0x862   : > { %v6656_v8 = vmul.f32 0.5, %v6592_v17  ;;  %v6600_v33 = vsub.f32 %v5981_v51, %v6536_v25  ;;  %9564 = vmatmul.mubr.msk.bf16.gmra.mrb[164].mxu1 %vm14993_vm2, %v16256_v32  ;;  %vm15184_vm7 = vmpackc.low %vm6777_vm13, %vm6769_vm12  ;;  %v10708_v51 = vld [vmem:[#allocation17 + $0x340] ss:$8 sps:$4 sm:$0xff]   ;;  %v15219_v58 = vrot.slane %v14904_v28, %v5006_v49 }
 0x863   : > { %v6657_v31 = vmul.f32 0.5, %v6593_v43  ;;  %v6601_v15 = vsub.f32 %v5983_v16, %v6537_v60  ;;  %9566 = vmatprep.mubr.msk.bf16.mxu1 %vm15043_vm9, %v16256_v32  ;;  %9639 = vmatpush1.bf16.msra.mxu1 %v10704_v11 }
 0x864   : > { %v6664_v36 = vmul.f32 0.5, %v6600_v33  ;;  %9624 = vmatprep.subr.bf16.mxu1 %v10705_v45  ;;  %v6720_v39 = vadd.f32 %v6656_v8, %v6528_v46  ;;  %v10711_v45 = vld [vmem:[#allocation17 + $0x364] ss:$8 sps:$4 sm:$0xff]  }
 0x865   : > { %v6665_v54 = vmul.f32 0.5, %v6601_v15  ;;  %v5986_v61 = vpop.f32.mrb[124].mxu1  ;;  %v6721_v24 = vadd.f32 %v6657_v31, %v6529_v20  ;;  %v10710_v31 = vld [vmem:[#allocation17 + $0x350] ss:$8 sps:$4 sm:$0xff]  }
 0x866   : > { %v5987_v63 = vadd.f32 %v5986_v61, %v14908_v35  ;;  %v5988_v44 = vpop.f32.mrb[125].mxu1  ;;  %v6728_v62 = vadd.f32 %v6664_v36, %v6536_v25  ;;  %vm6784_vm2 = vcmp.ge.f32.partialorder %v6720_v39, 1.0 }
 0x867   : > { %v5989_v46 = vadd.f32 %v5988_v44, %v14919_v14  ;;  %v5990_v30 = vpop.f32.mrb[126].mxu1  ;;  %9640 = vmatpush1.bf16.msra.mxu1 %v10706_v0  ;;  %v6729_v34 = vadd.f32 %v6665_v54, %v6537_v60  ;;  %vm6785_vm10 = vcmp.ge.f32.partialorder %v6721_v24, 1.0  ;;  %v10715_v0 = vld [vmem:[#allocation17 + $0x384] ss:$8 sps:$4 sm:$0xff]  }
 0x868   : > { %v6608_v59 = vsub.f32 %v5987_v63, %v6544_v9  ;;  %v5991_v20 = vadd.f32 %v5990_v30, %v14908_v35  ;;  %v5992_v41 = vpop.f32.mrb[127].mxu1  ;;  %9625 = vmatprep.subr.bf16.mxu1 %v10707_v23  ;;  %vm6792_vm9 = vcmp.ge.f32.partialorder %v6728_v62, 1.0  ;;  %v15209_v35 = vrot.slane %v14904_v28, %v5002_v40  ;;  %v10716_v23 = vld [vmem:[#allocation17 + $0x380] ss:$8 sps:$4 sm:$0xff]  }
 0x869   : > { %v6609_v29 = vsub.f32 %v5989_v46, %v6545_v10  ;;  %v5993_v25 = vadd.f32 %v5992_v41, %v14919_v14  ;;  %vm6793_vm5 = vcmp.ge.f32.partialorder %v6729_v34, 1.0  ;;  %vm15201_vm0 = vmpackc.low %vm6792_vm9, %vm6784_vm2 }
 0x86a   : > { %v6672_v50 = vmul.f32 0.5, %v6608_v59  ;;  %v6616_v12 = vsub.f32 %v5991_v20, %v6552_v42  ;;  %9568 = vmatmul.mubr.msk.bf16.gmra.mrb[168].mxu1 %vm15034_vm1, %v16256_v32  ;;  %vm15211_vm3 = vmpackc.low %vm6793_vm5, %vm6785_vm10 }
 0x86b   : > { %v6673_v14 = vmul.f32 0.5, %v6609_v29  ;;  %v6617_v17 = vsub.f32 %v5993_v25, %v6553_v5  ;;  %9570 = vmatprep.mubr.msk.bf16.mxu1 %vm15103_vm15, %v16256_v32  ;;  %9641 = vmatpush1.bf16.msra.mxu1 %v10708_v51  ;;  %v10717_v29 = vld [vmem:[#allocation17 + $0x394] ss:$8 sps:$4 sm:$0xff]  }
 0x86c   : > { %v6680_v21 = vmul.f32 0.5, %v6616_v12  ;;  %9626 = vmatprep.subr.bf16.mxu1 %v10709_v18  ;;  %v6736_v43 = vadd.f32 %v6672_v50, %v6544_v9  ;;  %v10712_v9 = vld [vmem:[#allocation17 + $0x360] ss:$8 sps:$4 sm:$0xff]   ;;  %v10719_v18 = vld [vmem:[#allocation17 + $0x3a4] ss:$8 sps:$4 sm:$0xff]  }
 0x86d   : > { %v6681_v16 = vmul.f32 0.5, %v6617_v17  ;;  %v6029_v57 = vpop.f32.mrb[128].mxu1  ;;  %v6737_v55 = vadd.f32 %v6673_v14, %v6545_v10  ;;  %v10713_v10 = vld [vmem:[#allocation17 + $0x374] ss:$8 sps:$4 sm:$0xff]   ;;  %v10718_v14 = vld [vmem:[#allocation17 + $0x390] ss:$8 sps:$4 sm:$0xff]  }
 0x86e   : > { %v6030_v8 = vadd.f32 %v6029_v57, %v15209_v35  ;;  %v6031_v33 = vpop.f32.mrb[129].mxu1  ;;  %v6744_v26 = vadd.f32 %v6680_v21, %v6552_v42  ;;  %vm6800_vm1 = vcmp.ge.f32.partialorder %v6736_v43, 1.0  ;;  %v10714_v42 = vld [vmem:[#allocation17 + $0x370] ss:$8 sps:$4 sm:$0xff]  }
 0x86f   : > { %v6032_v2 = vadd.f32 %v6031_v33, %v15219_v58  ;;  %v6033_v47 = vpop.f32.mrb[130].mxu1  ;;  %9642 = vmatpush1.bf16.msra.mxu1 %v10710_v31  ;;  %v6745_v15 = vadd.f32 %v6681_v16, %v6553_v5  ;;  %vm6801_vm4 = vcmp.ge.f32.partialorder %v6737_v55, 1.0  ;;  %v10721_v33 = vld [vmem:[#allocation17 + $0x3b4] ss:$8 sps:$4 sm:$0xff]  }
 0x870   : > { %v15223_v11 = vmul.f32 0.5, %v6030_v8  ;;  %v6034_v28 = vadd.f32 %v6033_v47, %v15209_v35  ;;  %v6035_v36 = vpop.f32.mrb[131].mxu1  ;;  %9627 = vmatprep.subr.bf16.mxu1 %v10711_v45  ;;  %vm6808_vm15 = vcmp.ge.f32.partialorder %v6744_v26, 1.0  ;;  %v10720_v8 = vld [vmem:[#allocation17 + $0x3a0] ss:$8 sps:$4 sm:$0xff]  }
 0x871   : > { %v15226_v39 = vmul.f32 0.5, %v6032_v2  ;;  %v6036_v54 = vadd.f32 %v6035_v36, %v15219_v58  ;;  %vm6809_vm12 = vcmp.ge.f32.partialorder %v6745_v15, 1.0  ;;  %vm15229_vm13 = vmpackc.low %vm6808_vm15, %vm6800_vm1  ;;  %v10722_v15 = vld [vmem:[#allocation17 + $0x3b0] ss:$8 sps:$4 sm:$0xff]  }
 0x872   : > { %v15233_v40 = vmul.f32 0.5, %v6034_v28  ;;  %9572 = vmatmul.mubr.msk.bf16.gmra.mrb[172].mxu1 %vm15088_vm8, %v16256_v32  ;;  %vm15238_vm2 = vmpackc.low %vm6809_vm12, %vm6801_vm4  ;;  %vm6242_vm9 = vcmp.ge.f32.partialorder %v15223_v11, 1.0 }
 0x873   : > { %v15242_v24 = vmul.f32 0.5, %v6036_v54  ;;  %9574 = vmatprep.mubr.msk.bf16.mxu1 %vm15149_vm6, %v16256_v32  ;;  %9643 = vmatpush1.bf16.msra.mxu1 %v10712_v9  ;;  %vm6243_vm8 = vcmp.ge.f32.partialorder %v15226_v39, 1.0  ;;  %v6306_v60 = vsel %vm6242_vm9, 1.0, %v16343_v13 }
 0x874   : > { %vm6250_vm10 = vcmp.ge.f32.partialorder %v15233_v40, 1.0  ;;  %9628 = vmatprep.subr.bf16.mxu1 %v10713_v10  ;;  %v6307_v28 = vsel %vm6243_vm8, 1.0, %v16343_v13  ;;  %v10723_v10 = vld [vmem:[#allocation17 + $0x3c4] ss:$8 sps:$4 sm:$0xff]  }
 0x875   : > { %vm9591_vm5 = vmpackc.low %vm6250_vm10, %vm6242_vm9  ;;  %vm6251_vm1 = vcmp.ge.f32.partialorder %v15242_v24, 1.0  ;;  %v6039_v3 = vpop.f32.mrb[132].mxu1  ;;  %v6314_v36 = vsel %vm6250_vm10, 1.0, %v16343_v13 }
 0x876   : > { %v6040_v1 = vadd.f32 %v6039_v3, %v15209_v35  ;;  %v6041_v63 = vpop.f32.mrb[133].mxu1  ;;  %vm9589_vm6 = vmpackc.low %vm6251_vm1, %vm6243_vm8  ;;  %v6434_v3 = vsub.f32 1.0, %v6306_v60 }
 0x877   : > { %v6042_v44 = vadd.f32 %v6041_v63, %v15219_v58  ;;  %v6043_v62 = vpop.f32.mrb[134].mxu1  ;;  %9590 = vmatprep.mubr.msk.bf16.mxu0 %vm9589_vm6, %v16256_v32  ;;  %9644 = vmatpush1.bf16.msra.mxu1 %v10714_v42 }
 0x878   : > { %v15262_v5 = vmul.f32 0.5, %v6040_v1  ;;  %v6044_v46 = vadd.f32 %v6043_v62, %v15209_v35  ;;  %v6045_v30 = vpop.f32.mrb[135].mxu1  ;;  %9592 = vmatmul.mubr.msk.bf16.vlgmr.msra.gmra.mrb[128].mxu0 %vm9591_vm5, %v16256_v32  ;;  %9629 = vmatprep.subr.bf16.mxu1 %v10715_v0  ;;  %v6315_v1 = vsel %vm6251_vm1, 1.0, %v16343_v13 }
 0x879   : > { %v15266_v34 = vmul.f32 0.5, %v6042_v44  ;;  %v6046_v59 = vadd.f32 %v6045_v30, %v15219_v58  ;;  %v6442_v30 = vsub.f32 1.0, %v6314_v36 }
 0x87a   : > { %v15269_v20 = vmul.f32 0.5, %v6044_v46  ;;  %9576 = vmatmul.mubr.msk.bf16.gmra.mrb[176].mxu1 %vm15142_vm11, %v16256_v32  ;;  %vm6258_vm15 = vcmp.ge.f32.partialorder %v15262_v5, 1.0  ;;  %v6435_v46 = vsub.f32 1.0, %v6307_v28 }
 0x87b   : > { %v15274_v41 = vmul.f32 0.5, %v6046_v59  ;;  %9578 = vmatprep.mubr.msk.bf16.mxu1 %vm15184_vm7, %v16256_v32  ;;  %9645 = vmatpush1.bf16.msra.mxu1 %v10716_v23  ;;  %vm6259_vm12 = vcmp.ge.f32.partialorder %v15266_v34, 1.0  ;;  %v6322_v62 = vsel %vm6258_vm15, 1.0, %v16343_v13  ;;  %v10724_v23 = vld [vmem:[#allocation17 + $0x3c0] ss:$8 sps:$4 sm:$0xff]  }
 0x87c   : > { %vm6266_vm4 = vcmp.ge.f32.partialorder %v15269_v20, 1.0  ;;  %9630 = vmatprep.subr.bf16.mxu1 %v10717_v29  ;;  %v6323_v0 = vsel %vm6259_vm12, 1.0, %v16343_v13  ;;  %v6443_v29 = vsub.f32 1.0, %v6315_v1 }
 0x87d   : > { %vm15872_vm5 = vcmp.ge.f32.partialorder %v15274_v41, 1.0  ;;  %v6049_v27 = vpop.f32.mrb[136].mxu1  ;;  %vm9595_vm11 = vmpackc.low %vm6266_vm4, %vm6258_vm15  ;;  %vm16535_vm1 = vcmp.ge.f32.partialorder %v15274_v41, 1.0 }
 0x87e   : > { %v6050_v53 = vadd.f32 %v6049_v27, %v15209_v35  ;;  %v6051_v25 = vpop.f32.mrb[137].mxu1  ;;  %vm9593_vm7 = vmpackc.low %vm15872_vm5, %vm6259_vm12  ;;  %v6498_v27 = vmul.f32 %v6434_v3, %v15223_v11  ;;  %v6331_v11 = vsel %vm16535_vm1, 1.0, %v16343_v13 }
 0x87f   : > { %v6052_v50 = vadd.f32 %v6051_v25, %v15219_v58  ;;  %v6053_v12 = vpop.f32.mrb[138].mxu1  ;;  %9594 = vmatprep.mubr.msk.bf16.mxu0 %vm9593_vm7, %v16256_v32  ;;  %9646 = vmatpush1.bf16.msra.mxu1 %v10718_v14 }
 0x880   : > { %v15294_v17 = vmul.f32 0.5, %v6050_v53  ;;  %v6054_v51 = vadd.f32 %v6053_v12, %v15209_v35  ;;  %v6055_v21 = vpop.f32.mrb[139].mxu1  ;;  %9596 = vmatmul.mubr.msk.bf16.gmra.mrb[132].mxu0 %vm9595_vm11, %v16256_v32  ;;  %9631 = vmatprep.subr.bf16.mxu1 %v10719_v18  ;;  %v6450_v53 = vsub.f32 1.0, %v6322_v62  ;;  %v6330_v12 = vsel %vm6266_vm4, 1.0, %v16343_v13 }
 0x881   : > { %v15298_v43 = vmul.f32 0.5, %v6052_v50  ;;  %v6056_v16 = vadd.f32 %v6055_v21, %v15219_v58  ;;  %v6451_v50 = vsub.f32 1.0, %v6323_v0  ;;  %v6499_v21 = vmul.f32 %v6435_v46, %v15226_v39  ;;  %v10727_v39 = vld [vmem:[#allocation17 + $0x3e4] ss:$8 sps:$4 sm:$0xff]   ;;  %v10729_v46 = vld [vmem:[#allocation17 + $0x3f4] ss:$8 sps:$4 sm:$0xff]  }
 0x882   : > { %v15301_v57 = vmul.f32 0.5, %v6054_v51  ;;  %9580 = vmatmul.mubr.msk.bf16.gmra.mrb[180].mxu1 %vm15177_vm14, %v16256_v32  ;;  %vm6274_vm6 = vcmp.ge.f32.partialorder %v15294_v17, 1.0  ;;  %v6506_v18 = vmul.f32 %v6442_v30, %v15233_v40  ;;  %v6458_v40 = vsub.f32 1.0, %v6330_v12 }
 0x883   : > { %v15306_v55 = vmul.f32 0.5, %v6056_v16  ;;  %9582 = vmatprep.mubr.msk.bf16.mxu1 %vm15211_vm3, %v16256_v32  ;;  %9647 = vmatpush1.bf16.msra.mxu1 %v10720_v8  ;;  %vm6275_vm7 = vcmp.ge.f32.partialorder %v15298_v43, 1.0  ;;  %v6514_v28 = vmul.f32 %v6450_v53, %v15262_v5  ;;  %v6515_v36 = vmul.f32 %v6451_v50, %v15266_v34 }
 0x884   : > { %vm6282_vm11 = vcmp.ge.f32.partialorder %v15301_v57, 1.0  ;;  %9632 = vmatprep.subr.bf16.mxu1 %v10721_v33  ;;  %v10726_v33 = vld [vmem:[#allocation17 + $0x3d0] ss:$8 sps:$4 sm:$0xff]   ;;  %v6522_v30 = vmul.f32 %v6458_v40, %v15269_v20 }
 0x885   : > { %vm6283_vm5 = vcmp.ge.f32.partialorder %v15306_v55, 1.0  ;;  %v6059_v6 = vpop.f32.mrb[140].mxu1  ;;  %vm9599_vm14 = vmpackc.low %vm6282_vm11, %vm6274_vm6  ;;  %v6346_v5 = vsel %vm6282_vm11, 1.0, %v16343_v13 }
 0x886   : > { %v6060_v26 = vadd.f32 %v6059_v6, %v15209_v35  ;;  %v6061_v2 = vpop.f32.mrb[141].mxu1  ;;  %vm9597_vm3 = vmpackc.low %vm6283_vm5, %vm6275_vm7  ;;  %v6507_v6 = vmul.f32 %v6443_v29, %v15242_v24  ;;  %v6347_v61 = vsel %vm6283_vm5, 1.0, %v16343_v13 }
 0x887   : > { %v6062_v47 = vadd.f32 %v6061_v2, %v15219_v58  ;;  %v6063_v31 = vpop.f32.mrb[142].mxu1  ;;  %9598 = vmatprep.mubr.msk.bf16.mxu0 %vm9597_vm3, %v16256_v32  ;;  %9648 = vmatpush1.bf16.msra.mxu1 %v10722_v15 }
 0x888   : > { %v15335_v45 = vmul.f32 0.5, %v6060_v26  ;;  %v6064_v54 = vadd.f32 %v6063_v31, %v15209_v35  ;;  %v6065_v9 = vpop.f32.mrb[143].mxu1  ;;  %9600 = vmatmul.mubr.msk.bf16.gmra.mrb[136].mxu0 %vm9599_vm14, %v16256_v32  ;;  %9633 = vmatprep.subr.bf16.mxu1 %v10723_v10  ;;  %v6339_v10 = vsel %vm6275_vm7, 1.0, %v16343_v13 }
 0x889   : > { %v15342_v63 = vmul.f32 0.5, %v6062_v47  ;;  %v6066_v44 = vadd.f32 %v6065_v9, %v15219_v58  ;;  %v6459_v47 = vsub.f32 1.0, %v6331_v11  ;;  %v6338_v9 = vsel %vm6274_vm6, 1.0, %v16343_v13 }
 0x88a   : > { %v15348_v42 = vmul.f32 0.5, %v6064_v54  ;;  %9584 = vmatmul.mubr.msk.bf16.gmra.mrb[184].mxu1 %vm15201_vm0, %v16256_v32  ;;  %vm6290_vm9 = vcmp.ge.f32.partialorder %v15335_v45, 1.0  ;;  %v6466_v53 = vsub.f32 1.0, %v6338_v9  ;;  %v6474_v11 = vsub.f32 1.0, %v6346_v5 }
 0x88b   : > { %v15356_v59 = vmul.f32 0.5, %v6066_v44  ;;  %9586 = vmatprep.mubr.msk.bf16.mxu1 %vm15238_vm2, %v16256_v32  ;;  %9649 = vmatpush1.bf16.msra.mxu1 %v10724_v23  ;;  %vm6291_vm0 = vcmp.ge.f32.partialorder %v15342_v63, 1.0  ;;  %v10728_v44 = vld [vmem:[#allocation17 + $0x3e0] ss:$8 sps:$4 sm:$0xff]   ;;  %v6523_v0 = vmul.f32 %v6459_v47, %v15274_v41 }
 0x88c   : > { %vm6298_vm10 = vcmp.ge.f32.partialorder %v15348_v42, 1.0  ;;  %9634 = vmatprep.subr.bf16.mxu1 %v10725_v38 }
 0x88d   : > { %vm6299_vm8 = vcmp.ge.f32.partialorder %v15356_v59, 1.0  ;;  %v6069_v25 = vpop.f32.mrb[144].mxu1  ;;  %vm15370_vm2 = vmpackc.low %vm6298_vm10, %vm6290_vm9 }
 0x88e   : > { %v6070_v14 = vadd.f32 %v6069_v25, %v15209_v35  ;;  %v6071_v51 = vpop.f32.mrb[145].mxu1  ;;  %vm9601_vm15 = vmpackc.low %vm6299_vm8, %vm6291_vm0  ;;  %v6467_v25 = vsub.f32 1.0, %v6339_v10 }
 0x88f   : > { %v6072_v16 = vadd.f32 %v6071_v51, %v15219_v58  ;;  %v6073_v8 = vpop.f32.mrb[146].mxu1  ;;  %9602 = vmatprep.mubr.msk.bf16.mxu0 %vm9601_vm15, %v16256_v32  ;;  %9650 = vmatpush1.bf16.msra.mxu1 %v10726_v33 }
 0x890   : > { %v6562_v60 = vsub.f32 %v6070_v14, %v6498_v27  ;;  %v6074_v26 = vadd.f32 %v6073_v8, %v15209_v35  ;;  %v6075_v2 = vpop.f32.mrb[147].mxu1  ;;  %9604 = vmatmul.mubr.msk.bf16.gmra.mrb[140].mxu0 %vm15370_vm2, %v16256_v32  ;;  %9635 = vmatprep.subr.bf16.mxu1 %v10727_v39  ;;  %v6475_v14 = vsub.f32 1.0, %v6347_v61  ;;  %v6531_v40 = vmul.f32 %v6467_v25, %v15298_v43 }
 0x891   : > { %v6563_v31 = vsub.f32 %v6072_v16, %v6499_v21  ;;  %v6076_v15 = vadd.f32 %v6075_v2, %v15219_v58  ;;  %v10730_v16 = vld [vmem:[#allocation17 + $0x3f0] ss:$8 sps:$4 sm:$0xff]  }
 0x892   : > { %v6626_v24 = vmul.f32 0.5, %v6562_v60  ;;  %v6570_v54 = vsub.f32 %v6074_v26, %v6506_v18  ;;  %9588 = vmatmul.mubr.msk.bf16.gmra.mrb[188].mxu1 %vm15229_vm13, %v16256_v32 }
 0x893   : > { %v6627_v3 = vmul.f32 0.5, %v6563_v31  ;;  %v6571_v1 = vsub.f32 %v6076_v15, %v6507_v6  ;;  %9651 = vmatpush1.bf16.msra.mxu1 %v10728_v44  ;;  %v6538_v15 = vmul.f32 %v6474_v11, %v15301_v57  ;;  %v6362_v57 = vsel %vm6298_vm10, 1.0, %v16343_v13 }
 0x894   : > { %v6690_v34 = vadd.f32 %v6626_v24, %v6498_v27  ;;  %v6634_v62 = vmul.f32 0.5, %v6570_v54  ;;  %9636 = vmatprep.subr.bf16.mxu1 %v10729_v46  ;;  %v6539_v24 = vmul.f32 %v6475_v14, %v15306_v55  ;;  %v6363_v55 = vsel %vm6299_vm8, 1.0, %v16343_v13 }
 0x895   : > { %v6635_v23 = vmul.f32 0.5, %v6571_v1  ;;  %v6079_v29 = vpop.f32.mrb[148].mxu1  ;;  %v6691_v38 = vadd.f32 %v6627_v3, %v6499_v21  ;;  %v6354_v3 = vsel %vm6290_vm9, 1.0, %v16343_v13  ;;  %v6491_v25 = vsub.f32 1.0, %v6363_v55 }
 0x896   : > { %v6698_v49 = vadd.f32 %v6634_v62, %v6506_v18  ;;  %v6080_v50 = vadd.f32 %v6079_v29, %v15209_v35  ;;  %v6081_v12 = vpop.f32.mrb[149].mxu1  ;;  %vm6754_vm13 = vcmp.ge.f32.partialorder %v6690_v34, 1.0 }
 0x897   : > { %v6082_v27 = vadd.f32 %v6081_v12, %v15219_v58  ;;  %v6083_v51 = vpop.f32.mrb[150].mxu1  ;;  %9652 = vmatpush1.bf16.msra.mxu1 %v10730_v16  ;;  %v6699_v8 = vadd.f32 %v6635_v23, %v6507_v6  ;;  %vm6755_vm5 = vcmp.ge.f32.partialorder %v6691_v38, 1.0  ;;  %v6530_v6 = vmul.f32 %v6466_v53, %v15294_v17 }
 0x898   : > { %vm6762_vm4 = vcmp.ge.f32.partialorder %v6698_v49, 1.0  ;;  %v6578_v20 = vsub.f32 %v6080_v50, %v6514_v28  ;;  %v6084_v41 = vadd.f32 %v6083_v51, %v15209_v35  ;;  %v6085_v21 = vpop.f32.mrb[151].mxu1  ;;  %v6355_v17 = vsel %vm6291_vm0, 1.0, %v16343_v13 }
 0x899   : > { %vm9607_vm12 = vmpackc.low %vm6762_vm4, %vm6754_vm13  ;;  %v6579_v33 = vsub.f32 %v6082_v27, %v6515_v36  ;;  %v6086_v18 = vadd.f32 %v6085_v21, %v15219_v58  ;;  %vm6763_vm6 = vcmp.ge.f32.partialorder %v6699_v8, 1.0  ;;  %v6482_v23 = vsub.f32 1.0, %v6354_v3 }
 0x89a   : > { %v6642_v60 = vmul.f32 0.5, %v6578_v20  ;;  %v6586_v26 = vsub.f32 %v6084_v41, %v6522_v30  ;;  %vm9605_vm11 = vmpackc.low %vm6763_vm6, %vm6755_vm5  ;;  %v6483_v29 = vsub.f32 1.0, %v6355_v17  ;;  %v6490_v53 = vsub.f32 1.0, %v6362_v57 }
 0x89b   : > { %v6643_v2 = vmul.f32 0.5, %v6579_v33  ;;  %v6587_v39 = vsub.f32 %v6086_v18, %v6523_v0  ;;  %9606 = vmatprep.mubr.msk.bf16.mxu1 %vm9605_vm11, %v16256_v32  ;;  %v6546_v51 = vmul.f32 %v6482_v23, %v15335_v45  ;;  %v6555_v33 = vmul.f32 %v6491_v25, %v15356_v59 }
 0x89c   : > { %v6650_v47 = vmul.f32 0.5, %v6586_v26  ;;  %9608 = vmatmul.mubr.msk.bf16.vlgmr.msra.gmra.mrb[176].mxu1 %vm9607_vm12, %v16256_v32  ;;  %v6706_v31 = vadd.f32 %v6642_v60, %v6514_v28  ;;  %v6547_v16 = vmul.f32 %v6483_v29, %v15342_v63  ;;  %v6554_v21 = vmul.f32 %v6490_v53, %v15348_v42 }
 0x89d   : > { %v6651_v54 = vmul.f32 0.5, %v6587_v39  ;;  %v6089_v9 = vpop.f32.mrb[152].mxu1  ;;  %v6707_v10 = vadd.f32 %v6643_v2, %v6515_v36 }
 0x89e   : > { %v6090_v43 = vadd.f32 %v6089_v9, %v15209_v35  ;;  %v6091_v1 = vpop.f32.mrb[153].mxu1  ;;  %v6714_v44 = vadd.f32 %v6650_v47, %v6522_v30  ;;  %vm6770_vm7 = vcmp.ge.f32.partialorder %v6706_v31, 1.0 }
 0x89f   : > { %v6092_v28 = vadd.f32 %v6091_v1, %v15219_v58  ;;  %v6093_v36 = vpop.f32.mrb[154].mxu1  ;;  %v6715_v5 = vadd.f32 %v6651_v54, %v6523_v0  ;;  %vm6771_vm3 = vcmp.ge.f32.partialorder %v6707_v10, 1.0 }
 0x8a0   : > { %v6594_v61 = vsub.f32 %v6090_v43, %v6530_v6  ;;  %v6094_v34 = vadd.f32 %v6093_v36, %v15209_v35  ;;  %v6095_v62 = vpop.f32.mrb[155].mxu1  ;;  %vm6778_vm14 = vcmp.ge.f32.partialorder %v6714_v44, 1.0 }
 0x8a1   : > { %v6595_v46 = vsub.f32 %v6092_v28, %v6531_v40  ;;  %v6096_v30 = vadd.f32 %v6095_v62, %v15219_v58  ;;  %vm6779_vm9 = vcmp.ge.f32.partialorder %v6715_v5, 1.0  ;;  %vm9611_vm10 = vmpackc.low %vm6778_vm14, %vm6770_vm7 }
 0x8a2   : > { %v6658_v38 = vmul.f32 0.5, %v6594_v61  ;;  %v6602_v13 = vsub.f32 %v6094_v34, %v6538_v15  ;;  %vm9609_vm0 = vmpackc.low %vm6779_vm9, %vm6771_vm3  ;;  %v10731_v34 = vld [vmem:[#allocation19] sm:$0xff] }
 0x8a3   : > { %v6659_v0 = vmul.f32 0.5, %v6595_v46  ;;  %v6603_v49 = vsub.f32 %v6096_v30, %v6539_v24  ;;  %9610 = vmatprep.mubr.msk.bf16.mxu1 %vm9609_vm0, %v16256_v32  ;;  %v15457_v62 = vrot.slane %v10731_v34, %v14887_v22 }
 0x8a4   : > { %v6666_v50 = vmul.f32 0.5, %v6602_v13  ;;  %9612 = vmatmul.mubr.msk.bf16.gmra.mrb[180].mxu1 %vm9611_vm10, %v16256_v32  ;;  %v6722_v12 = vadd.f32 %v6658_v38, %v6530_v6 }
 0x8a5   : > { %v6667_v11 = vmul.f32 0.5, %v6603_v49  ;;  %v6099_v14 = vpop.f32.mrb[156].mxu1  ;;  %v6723_v27 = vadd.f32 %v6659_v0, %v6531_v40 }
 0x8a6   : > { %v6100_v8 = vadd.f32 %v6099_v14, %v15209_v35  ;;  %v6101_v20 = vpop.f32.mrb[157].mxu1  ;;  %v6730_v41 = vadd.f32 %v6666_v50, %v6538_v15  ;;  %vm6786_vm8 = vcmp.ge.f32.partialorder %v6722_v12, 1.0 }
 0x8a7   : > { %v6102_v18 = vadd.f32 %v6101_v20, %v15219_v58  ;;  %v6103_v60 = vpop.f32.mrb[158].mxu1  ;;  %v6731_v26 = vadd.f32 %v6667_v11, %v6539_v24  ;;  %vm6787_vm1 = vcmp.ge.f32.partialorder %v6723_v27, 1.0 }
 0x8a8   : > { %v6610_v2 = vsub.f32 %v6100_v8, %v6546_v51  ;;  %v6104_v39 = vadd.f32 %v6103_v60, %v15209_v35  ;;  %v6105_v6 = vpop.f32.mrb[159].mxu1  ;;  %vm6794_vm2 = vcmp.ge.f32.partialorder %v6730_v41, 1.0  ;;  %v16538_v41 = vld [vmem:[#allocation60_spill] sm:$0xff] }
 0x8a9   : > { %v6611_v45 = vsub.f32 %v6102_v18, %v6547_v16  ;;  %v6106_v63 = vadd.f32 %v6105_v6, %v15219_v58  ;;  %vm6795_vm15 = vcmp.ge.f32.partialorder %v6731_v26, 1.0  ;;  %vm9615_vm13 = vmpackc.low %vm6794_vm2, %vm6786_vm8 }
 0x8aa   : > { %v6674_v40 = vmul.f32 0.5, %v6610_v2  ;;  %v6618_v42 = vsub.f32 %v6104_v39, %v6554_v21  ;;  %vm9613_vm4 = vmpackc.low %vm6795_vm15, %vm6787_vm1 }
 0x8ab   : > { %v6675_v59 = vmul.f32 0.5, %v6611_v45  ;;  %v6619_v47 = vsub.f32 %v6106_v63, %v6555_v33  ;;  %9614 = vmatprep.mubr.msk.bf16.mxu1 %vm9613_vm4, %v16256_v32 }
 0x8ac   : > { %v6682_v31 = vmul.f32 0.5, %v6618_v42  ;;  %9616 = vmatmul.mubr.msk.bf16.gmra.mrb[184].mxu1 %vm9615_vm13, %v16256_v32  ;;  %v6738_v35 = vadd.f32 %v6674_v40, %v6546_v51 }
 0x8ad   : > { %v6683_v15 = vmul.f32 0.5, %v6619_v47  ;;  %v6739_v24 = vadd.f32 %v6675_v59, %v6547_v16  ;;  %v16537_v16 = vld [vmem:[#allocation59_spill] sm:$0xff]  ;;  %v16540_v59 = vld [vmem:[#allocation82_spill] sm:$0xff] }
 0x8ae   : > { %v6746_v54 = vadd.f32 %v6682_v31, %v6554_v21  ;;  %vm6802_vm12 = vcmp.ge.f32.partialorder %v6738_v35, 1.0 }
 0x8af   : > { %v6747_v9 = vadd.f32 %v6683_v15, %v6555_v33  ;;  %vm6803_vm6 = vcmp.ge.f32.partialorder %v6739_v24, 1.0  ;;  %v16539_v33 = vld [vmem:[#allocation45_spill] sm:$0xff]  ;;  %v16541_v15 = vld [vmem:[#allocation50_spill] sm:$0xff] }
 0x8b0   : > { %vm6810_vm5 = vcmp.ge.f32.partialorder %v6746_v54, 1.0 }
 0x8b1   : > { %vm6811_vm11 = vcmp.ge.f32.partialorder %v6747_v9, 1.0  ;;  %vm9619_vm7 = vmpackc.low %vm6810_vm5, %vm6802_vm12  ;;  %v16542_v9 = vld [vmem:[#allocation68_spill] sm:$0xff] }
 0x8b2   : > { %vm9617_vm14 = vmpackc.low %vm6811_vm11, %vm6803_vm6 }
 0x8b3   : > { %9618 = vmatprep.mubr.msk.bf16.mxu1 %vm9617_vm14, %v16256_v32 }
 0x8b4   : > { %9620 = vmatmul.mubr.msk.bf16.gmra.mrb[188].mxu1 %vm9619_vm7, %v16256_v32  ;;  %v10732_v32 = vld [vmem:[#allocation19 + $0x8] sm:$0xff] }
 0x8b5   : > { %v15462_v30 = vrot.slane %v10732_v32, %v14887_v22  ;;  %v16536_v22 = vld [vmem:[#allocation55_spill] sm:$0xff] }
 0x92d   : > { %v8040_v58 = vpop.f32.mrb[160].mxu1 }
 0x92e   : > { %v8042_v10 = vpop.f32.mrb[161].mxu1  ;;  %v9749_v38 = vadd.f32 %v8040_v58, %v15457_v62 }
 0x92f   : > { %v8044_v3 = vpop.f32.mrb[162].mxu1  ;;  %v9751_v13 = vadd.f32 %v8042_v10, %v15462_v30  ;;  %v16543_v10 = vld [vmem:[#allocation71_spill] sm:$0xff] }
 0x930   : > { %v8046_v17 = vpop.f32.mrb[163].mxu1  ;;  %v9753_v25 = vadd.f32 %v8044_v3, %v15457_v62 }
 0x931   : > { %v9755_v50 = vadd.f32 %v8046_v17, %v15462_v30 }
 0x935   : > { %v8050_v43 = vpop.f32.mrb[164].mxu1 }
 0x936   : > { %v8052_v1 = vpop.f32.mrb[165].mxu1  ;;  %v9757_v60 = vadd.f32 %v8050_v43, %v15457_v62 }
 0x937   : > { %v8054_v44 = vpop.f32.mrb[166].mxu1  ;;  %v9759_v26 = vadd.f32 %v8052_v1, %v15462_v30 }
 0x938   : > { %v8056_v57 = vpop.f32.mrb[167].mxu1  ;;  %v9761_v39 = vadd.f32 %v8054_v44, %v15457_v62 }
 0x939   : > { %v9763_v63 = vadd.f32 %v8056_v57, %v15462_v30 }
 0x93d   : > { %v8060_v55 = vpop.f32.mrb[168].mxu1 }
 0x93e   : > { %v8062_v28 = vpop.f32.mrb[169].mxu1  ;;  %v9765_v17 = vadd.f32 %v8060_v55, %v15457_v62 }
 0x93f   : > { %v8064_v36 = vpop.f32.mrb[170].mxu1  ;;  %v9767_v43 = vadd.f32 %v8062_v28, %v15462_v30 }
 0x940   : > { %v8066_v5 = vpop.f32.mrb[171].mxu1  ;;  %v9769_v44 = vadd.f32 %v8064_v36, %v15457_v62  ;;  %v16547_v36 = vld [vmem:[#allocation72_spill] sm:$0xff] }
 0x941   : > { %v9771_v32 = vadd.f32 %v8066_v5, %v15462_v30 }
 0x945   : > { %v15454_v61 = vpop.f32.mrb[172].mxu1 }
 0x946   : > { %v15459_v46 = vpop.f32.mrb[173].mxu1 }
 0x947   : > { %v15464_v23 = vpop.f32.mrb[174].mxu1  ;;  %v9775_v5 = vadd.f32 %v15459_v46, %v15462_v30  ;;  %v16549_v46 = vld [vmem:[#allocation49_spill] sm:$0xff] }
 0x948   : > { %v15466_v29 = vpop.f32.mrb[175].mxu1 }
 0x94b   : > { %v8153_v53 = vpop.f32.mrb[128].mxu0 }
 0x94c   : > { %v9750_v0 = vadd.f32 %v9749_v38, %v8153_v53  ;;  %v8155_v49 = vpop.f32.mrb[129].mxu0  ;;  %v16544_v53 = vld [vmem:[#allocation44_spill] sm:$0xff] }
 0x94d   : > { %v9752_v12 = vadd.f32 %v9751_v13, %v8155_v49  ;;  %v8157_v11 = vpop.f32.mrb[130].mxu0  ;;  %v16545_v49 = vld [vmem:[#allocation85_spill] sm:$0xff] }
 0x94e   : > { %v8264_v14 = vadd.f32 %v9750_v0, %v16536_v22  ;;  %v9754_v27 = vadd.f32 %v9753_v25, %v8157_v11  ;;  %v8159_v51 = vpop.f32.mrb[131].mxu0 }
 0x94f   : > { %v8265_v8 = vadd.f32 %v9752_v12, %v16537_v16  ;;  %v9756_v20 = vadd.f32 %v9755_v50, %v8159_v51  ;;  %v16546_v12 = vld [vmem:[#allocation80_spill] sm:$0xff]  ;;  %v9777_v51 = vadd.f32 %v15464_v23, %v15457_v62  ;;  %v16551_v23 = vld [vmem:[#allocation66_spill] sm:$0xff] }
 0x950   : > { %8280 = vst [vmem:[%s15476_s16] sm:$0xff] %v8264_v14  ;;  %v8266_v21 = vadd.f32 %v9754_v27, %v16538_v41  ;;  %v9773_v14 = vadd.f32 %v15454_v61, %v15457_v62 }
 0x951   : > { %8281 = vst [vmem:[%s15476_s16 + $0x8] sm:$0xff] %v8265_v8  ;;  %v8267_v18 = vadd.f32 %v9756_v20, %v16539_v33  ;;  %v9779_v20 = vadd.f32 %v15466_v29, %v15462_v30 }
 0x952   : > { %8282 = vst [vmem:[%s15476_s16 + $0x10] sm:$0xff] %v8266_v21  ;;  %v16548_v21 = vld [vmem:[#allocation73_spill] sm:$0xff] }
 0x953   : > { %8283 = vst [vmem:[%s15476_s16 + $0x18] sm:$0xff] %v8267_v18  ;;  %v8163_v2 = vpop.f32.mrb[132].mxu0 }
 0x954   : > { %v9758_v6 = vadd.f32 %v9757_v60, %v8163_v2  ;;  %v8165_v45 = vpop.f32.mrb[133].mxu0 }
 0x955   : > { %v9760_v40 = vadd.f32 %v9759_v26, %v8165_v45  ;;  %v8167_v42 = vpop.f32.mrb[134].mxu0 }
 0x956   : > { %v8268_v47 = vadd.f32 %v9758_v6, %v16540_v59  ;;  %v9762_v31 = vadd.f32 %v9761_v39, %v8167_v42  ;;  %v8169_v35 = vpop.f32.mrb[135].mxu0  ;;  %v16550_v39 = vld [vmem:[#allocation74_spill] sm:$0xff] }
 0x957   : > { %v8269_v24 = vadd.f32 %v9760_v40, %v16541_v15  ;;  %v9764_v54 = vadd.f32 %v9763_v63, %v8169_v35 }
 0x958   : > { %8284 = vst [vmem:[%s15476_s16 + $0x20] sm:$0xff] %v8268_v47  ;;  %v8270_v58 = vadd.f32 %v9762_v31, %v16542_v9  ;;  %v16552_v47 = vld [vmem:[#allocation43_spill] sm:$0xff] }
 0x959   : > { %8285 = vst [vmem:[%s15476_s16 + $0x28] sm:$0xff] %v8269_v24  ;;  %v8271_v3 = vadd.f32 %v9764_v54, %v16543_v10  ;;  %v16553_v24 = vld [vmem:[#allocation76_spill] sm:$0xff] }
 0x95a   : > { %8286 = vst [vmem:[%s15476_s16 + $0x30] sm:$0xff] %v8270_v58  ;;  %v16554_v58 = vld [vmem:[#allocation61_spill] sm:$0xff] }
 0x95b   : > { %8287 = vst [vmem:[%s15476_s16 + $0x38] sm:$0xff] %v8271_v3  ;;  %v8173_v1 = vpop.f32.mrb[136].mxu0  ;;  %v16555_v3 = vld [vmem:[#allocation40_spill] sm:$0xff] }
 0x95c   : > { %v9766_v57 = vadd.f32 %v9765_v17, %v8173_v1  ;;  %v8175_v34 = vpop.f32.mrb[137].mxu0 }
 0x95d   : > { %v9768_v38 = vadd.f32 %v9767_v43, %v8175_v34  ;;  %v8177_v13 = vpop.f32.mrb[138].mxu0 }
 0x95e   : > { %v8272_v25 = vadd.f32 %v9766_v57, %v16544_v53  ;;  %v9770_v55 = vadd.f32 %v9769_v44, %v8177_v13  ;;  %v8179_v0 = vpop.f32.mrb[139].mxu0 }
 0x95f   : > { %v8273_v50 = vadd.f32 %v9768_v38, %v16545_v49  ;;  %v9772_v28 = vadd.f32 %v9771_v32, %v8179_v0 }
 0x960   : > { %8288 = vst [vmem:[%s15476_s16 + $0x40] sm:$0xff] %v8272_v25  ;;  %v8274_v11 = vadd.f32 %v9770_v55, %v16546_v12 }
 0x961   : > { %8289 = vst [vmem:[%s15476_s16 + $0x48] sm:$0xff] %v8273_v50  ;;  %v8275_v22 = vadd.f32 %v9772_v28, %v16547_v36 }
 0x962   : > { %8290 = vst [vmem:[%s15476_s16 + $0x50] sm:$0xff] %v8274_v11 }
 0x963   : > { %8291 = vst [vmem:[%s15476_s16 + $0x58] sm:$0xff] %v8275_v22  ;;  %v8183_v27 = vpop.f32.mrb[140].mxu0 }
 0x964   : > { %v9774_v16 = vadd.f32 %v9773_v14, %v8183_v27  ;;  %v8185_v8 = vpop.f32.mrb[141].mxu0  ;;  %v16556_v14 = vld [vmem:[#allocation41_spill] sm:$0xff] }
 0x965   : > { %v9776_v41 = vadd.f32 %v9775_v5, %v8185_v8  ;;  %v8187_v61 = vpop.f32.mrb[142].mxu0  ;;  %v16557_v8 = vld [vmem:[#allocation47_spill] sm:$0xff] }
 0x966   : > { %v8276_v33 = vadd.f32 %v9774_v16, %v16548_v21  ;;  %v9778_v18 = vadd.f32 %v9777_v51, %v8187_v61  ;;  %v8189_v60 = vpop.f32.mrb[143].mxu0  ;;  %v16558_v61 = vld [vmem:[#allocation48_spill] sm:$0xff] }
 0x967   : > { %v8277_v26 = vadd.f32 %v9776_v41, %v16549_v46  ;;  %v9780_v2 = vadd.f32 %v9779_v20, %v8189_v60  ;;  %v16560_v46 = vld [vmem:[#allocation54_spill] sm:$0xff] }
 0x968   : > { %8292 = vst [vmem:[%s15476_s16 + $0x60] sm:$0xff] %v8276_v33  ;;  %v8278_v6 = vadd.f32 %v9778_v18, %v16550_v39  ;;  %v16559_v18 = vld [vmem:[#allocation52_spill] sm:$0xff] }
 0x969   : > { %8293 = vst [vmem:[%s15476_s16 + $0x68] sm:$0xff] %v8277_v26  ;;  %v8279_v45 = vadd.f32 %v9780_v2, %v16551_v23 }
 0x96a   : > { %8294 = vst [vmem:[%s15476_s16 + $0x70] sm:$0xff] %v8278_v6 }
 0x96b   : > { %8295 = vst [vmem:[%s15476_s16 + $0x78] sm:$0xff] %v8279_v45 }
 0x96f   : > { %v8193_v29 = vpop.f32.mrb[176].mxu1 }
 0x970   : > { %v9781_v63 = vadd.f32 %v8193_v29, %v15457_v62  ;;  %v8195_v40 = vpop.f32.mrb[177].mxu1 }
 0x971   : > { %v9782_v42 = vadd.f32 %v8195_v40, %v15462_v30  ;;  %v8197_v59 = vpop.f32.mrb[178].mxu1 }
 0x972   : > { %v8328_v31 = vadd.f32 %v9781_v63, %v16552_v47  ;;  %v9783_v35 = vadd.f32 %v8197_v59, %v15457_v62  ;;  %v8199_v15 = vpop.f32.mrb[179].mxu1 }
 0x973   : > { %v8329_v54 = vadd.f32 %v9782_v42, %v16553_v24  ;;  %v9784_v9 = vadd.f32 %v8199_v15, %v15462_v30 }
 0x974   : > { %9211 = vst [vmem:[%s15476_s16 + $0x80] sm:$0xff] %v8328_v31  ;;  %v8330_v10 = vadd.f32 %v9783_v35, %v16554_v58 }
 0x975   : > { %9212 = vst [vmem:[%s15476_s16 + $0x88] sm:$0xff] %v8329_v54  ;;  %v8331_v17 = vadd.f32 %v9784_v9, %v16555_v3 }
 0x976   : > { %9213 = vst [vmem:[%s15476_s16 + $0x90] sm:$0xff] %v8330_v10 }
 0x977   : > { %9214 = vst [vmem:[%s15476_s16 + $0x98] sm:$0xff] %v8331_v17  ;;  %v8203_v43 = vpop.f32.mrb[180].mxu1 }
 0x978   : > { %v9785_v1 = vadd.f32 %v8203_v43, %v15457_v62  ;;  %v8205_v44 = vpop.f32.mrb[181].mxu1 }
 0x979   : > { %v9786_v57 = vadd.f32 %v8205_v44, %v15462_v30  ;;  %v8207_v34 = vpop.f32.mrb[182].mxu1 }
 0x97a   : > { %v8332_v32 = vadd.f32 %v9785_v1, %v13973_v19  ;;  %v9787_v38 = vadd.f32 %v8207_v34, %v15457_v62  ;;  %v8209_v13 = vpop.f32.mrb[183].mxu1 }
 0x97b   : > { %v8333_v53 = vadd.f32 %v9786_v57, %v13982_v7  ;;  %v9788_v25 = vadd.f32 %v8209_v13, %v15462_v30 }
 0x97c   : > { %9215 = vst [vmem:[%s15476_s16 + $0xa0] sm:$0xff] %v8332_v32  ;;  %v8334_v55 = vadd.f32 %v9787_v38, %v13995_v56 }
 0x97d   : > { %9216 = vst [vmem:[%s15476_s16 + $0xa8] sm:$0xff] %v8333_v53  ;;  %v8335_v0 = vadd.f32 %v9788_v25, %v13999_v37 }
 0x97e   : > { %9217 = vst [vmem:[%s15476_s16 + $0xb0] sm:$0xff] %v8334_v55 }
 0x97f   : > { %9218 = vst [vmem:[%s15476_s16 + $0xb8] sm:$0xff] %v8335_v0  ;;  %v8213_v19 = vpop.f32.mrb[184].mxu1 }
 0x980   : > { %v9789_v49 = vadd.f32 %v8213_v19, %v15457_v62  ;;  %v8215_v50 = vpop.f32.mrb[185].mxu1 }
 0x981   : > { %v9790_v7 = vadd.f32 %v8215_v50, %v15462_v30  ;;  %v8217_v28 = vpop.f32.mrb[186].mxu1 }
 0x982   : > { %v8336_v12 = vadd.f32 %v9789_v49, %v14051_v4  ;;  %v9791_v11 = vadd.f32 %v8217_v28, %v15457_v62  ;;  %v8219_v56 = vpop.f32.mrb[187].mxu1 }
 0x983   : > { %v8337_v36 = vadd.f32 %v9790_v7, %v14063_v52  ;;  %v9792_v37 = vadd.f32 %v8219_v56, %v15462_v30 }
 0x984   : > { %9219 = vst [vmem:[%s15476_s16 + $0xc0] sm:$0xff] %v8336_v12  ;;  %v8338_v22 = vadd.f32 %v9791_v11, %v14076_v48 }
 0x985   : > { %9220 = vst [vmem:[%s15476_s16 + $0xc8] sm:$0xff] %v8337_v36  ;;  %v8339_v5 = vadd.f32 %v9792_v37, %v16556_v14 }
 0x986   : > { %9221 = vst [vmem:[%s15476_s16 + $0xd0] sm:$0xff] %v8338_v22 }
 0x987   : > { %9222 = vst [vmem:[%s15476_s16 + $0xd8] sm:$0xff] %v8339_v5  ;;  %v8223_v4 = vpop.f32.mrb[188].mxu1 }
 0x988   : > { %v9793_v27 = vadd.f32 %v8223_v4, %v15457_v62  ;;  %v8225_v51 = vpop.f32.mrb[189].mxu1 }
 0x989   : > { %v9794_v52 = vadd.f32 %v8225_v51, %v15462_v30  ;;  %v8227_v16 = vpop.f32.mrb[190].mxu1 }
 0x98a   : > { %v8340_v20 = vadd.f32 %v9793_v27, %v16557_v8  ;;  %v9795_v48 = vadd.f32 %v8227_v16, %v15457_v62  ;;  %v8229_v41 = vpop.f32.mrb[191].mxu1 }
 0x98b   : > { %v8341_v21 = vadd.f32 %v9794_v52, %v16558_v61  ;;  %v9796_v33 = vadd.f32 %v8229_v41, %v15462_v30 }
 0x98c   : > { %9223 = vst [vmem:[%s15476_s16 + $0xe0] sm:$0xff] %v8340_v20  ;;  %v8342_v60 = vadd.f32 %v9795_v48, %v16559_v18 }
 0x98d   : > { %9224 = vst [vmem:[%s15476_s16 + $0xe8] sm:$0xff] %v8341_v21  ;;  %v8343_v26 = vadd.f32 %v9796_v33, %v16560_v46 }
 0x98e   : > { %9225 = vst [vmem:[%s15476_s16 + $0xf0] sm:$0xff] %v8342_v60 }
 0x98f   : > { %9226 = vst [vmem:[%s15476_s16 + $0xf8] sm:$0xff] %v8343_v26 }
 0x990   : > { %s16561_s20 = sld [smem:[#allocation38_spill]]  ;;  %s9236_s9 = sshll.u32 %s15892_s15, 11 }
 0x991   : > { %s8392_s10 = sshll.u32 %s15476_s16, 4  ;;  %s16562_s26 = sld [smem:[#allocation87_spill]]  ;;  %s8393_s10 = int_to_ptr.vmem [resolvable:$true] %s8392_s10 }
 0x992   : > { %s11007_s17 = smov 2048   ;;  %s11008_s8 = smov 4096  }
 0x993   : > { %s11009_s21 = smov 8   ;;  %s11010_s11 = smov 256  }
 0x994   : > { %s11011_s25 = smov 16   ;;  %s11012_s14 = smov [#allocation25]  }
 0x995   : > { %s11013_s12 = smov 0  }
 0x996   : > { %p16563_p10 = scmp.ne.s32.totalorder %s16561_s20, 0 }
 0x997   : > { %s8375_s24 = scalar_lea.hbm %s16562_s26, %s9236_s9 }
 0x998   : > { %10042 = sst [smem:[#allocation26]] (%p16563_p10), %s11007_s17 }
 0x999   : > { %10043 = sst [smem:[#allocation26 + $0x1]] (%p16563_p10), %s11008_s8 }
 0x99a   : > { %10044 = sst [smem:[#allocation26 + $0x2]] (%p16563_p10), %s11009_s21 }
 0x99b   : > { %10045 = sst [smem:[#allocation26 + $0x3]] (%p16563_p10), %s11010_s11 }
 0x99c   : > { %10046 = sst [smem:[#allocation26 + $0x4]] (%p16563_p10), %s11010_s11 }
 0x99d   : > { %10047 = sst [smem:[#allocation26 + $0x5]] (%p16563_p10), %s11011_s25 }
 0x99e   : > { %10048 = dma.general (%p16563_p10), %s8393_s10, 4096, %s8375_s24, %s8362_s19, %s11012_s14, [#allocation26], %s11013_s12, 0  }
 0x99f PF: > { %s16564_s22 = sld [smem:[#allocation34_spill]]  ;;  %s16565_s1 = sld [smem:[#allocation39_spill]] }
 0x9a5   : > { %s8420_s27 = sand.u32 1, %s16564_s22   ;;  %p16566_p1 = scmp.ne.s32.totalorder %s16565_s1, 0 }
 0x9a6   : > { %s8421_s18 = scalar_lea.sflag [#allocation10], %s8420_s27 }
 0x9a7   : > { %p10073_p2 = pnand %p8554_p4, %p16566_p1 }
 0x9a9   : > { %10966 = dma.done.wait (!%p10073_p2), %s8421_s18, 4096  }
 0x9aa   : > { %10968 = vsyncadd (!%p10073_p2), %s8421_s18, 4294963200  ;;  %s16567_s30 = sld [smem:[#allocation36_spill]]  ;;  %s16568_s15 = sld [smem:[#allocation37_spill]] }
 0x9ab   : > { %s16569_s27 = smov %s10975_s28  ;;  %s16570_s28 = smov %s10979_s29 }
 0x9b0   : > { %p25_p3 = scmp.ge.s32.totalorder %s16567_s30, 4   ;;  %s16571_s29 = smov %s16568_s15 }
 0x9b2   :  { %27 = sbr.rel (!%p25_p3) target bundleno = 12 (0xc), region = 141 }
 0x9b9   :  { %8426 = vsyncpa [#allocation9], 1 }
 0x9ba   :  { %8428 = vsyncpa [#allocation9 + $0x1], 1 }
 0x9bb   :  { %8429 = vsyncpa [#allocation12], 1 }
 0x9bc   :  { %8430 = vsyncpa [#allocation15], 1 }
 0x9bd   :  { %8431 = vsyncpa [#allocation18], 1 }
 0x9be   :  { %8432 = vsyncpa [#allocation21], 1 }
 0x9bf   :  { %8433 = vsyncpa [#allocation10], 1 }
 0x9c0   :  { %8435 = vsyncpa [#allocation10 + $0x1], 1 }

</bundles_post_ra>
